<compile_context>
chip_gen: v7x
topology: tpu7x:2x2x1
jax: 0.10.0
libtpu: 0.0.40
codegen_flags: <defaults>
</compile_context>

<pallas_src>
import functools

import jax
import jax.numpy as jnp
from jax import lax
from jax.experimental import pallas as pl
from jax.experimental.pallas import tpu as pltpu

KS = 3  # kernel size (module default: ks=3, stride=1, dilation=1)


def _conv_bn_relu_kernel(xm_ref, xa_ref, xb_ref, w_ref, b_ref, o_ref, xcat_ref,
                         *, Dt, H, W, Cin, Cout):
    """One (batch, D-block) per grid step.

    xm_ref  : (Dt, H+2, W+2, Cin)   bf16  main D rows of the zero-padded input
    xa_ref  : (1,  H+2, W+2, Cin)   bf16  D-halo row at +Dt
    xb_ref  : (1,  H+2, W+2, Cin)   bf16  D-halo row at +Dt+1
    w_ref   : (9, 3*Cin, Cout)      bf16  per-(kd,kh) weights, kw folded into K,
                                          BN scale folded in
    b_ref   : (1, Cout)             f32   BN bias (beta - mean*scale)
    o_ref   : (Dt, H, W, Cout)      bf16  output block
    xcat_ref: (Dt+2, H+2, W, 3*Cin) bf16  scratch: in-kernel im2col along W
    """
    Kc = KS * Cin

    # ---- in-kernel im2col: fold kw into the contraction, once per grid step ----
    xcat_ref[0:Dt] = jnp.concatenate(
        [xm_ref[:, :, kw:kw + W, :] for kw in range(KS)], axis=-1)
    xcat_ref[Dt:Dt + 1] = jnp.concatenate(
        [xa_ref[:, :, kw:kw + W, :] for kw in range(KS)], axis=-1)
    xcat_ref[Dt + 1:Dt + 2] = jnp.concatenate(
        [xb_ref[:, :, kw:kw + W, :] for kw in range(KS)], axis=-1)

    bias = b_ref[...]                       # (1, Cout) f32
    M = Dt * H * W

    # ---- 9 chained MXU dots over the whole D-block, f32 accumulation ----
    acc = None
    for kd in range(KS):
        for kh in range(KS):
            # Slices only touch leading (untiled) dims; the (Dt,H,W,Kc)->(M,Kc)
            # reshape merges leading dims with W (== bf16 sublane tile) -> layout-free.
            lhs = xcat_ref[kd:kd + Dt, kh:kh + H, :, :].reshape(M, Kc)
            part = jnp.dot(lhs, w_ref[kd * KS + kh],
                           preferred_element_type=jnp.float32)
            acc = part if acc is None else acc + part

    y = jnp.maximum(acc + bias, 0.0)        # BN bias + ReLU epilogue
    o_ref[...] = y.reshape(Dt, H, W, Cout).astype(o_ref.dtype)


@jax.jit
def basic_convolution_block(x, w, bn_gamma, bn_beta, bn_mean, bn_var, eps=1e-5):
    """x: (B, D, H, W, Cin) dense voxel grid; w: (ks^3, Cin, Cout) spnn weights.

    Returns bf16 (B, D, H, W, Cout) activations (cast in the caller if f32 needed).
    """
    B, D, H, W, Cin = x.shape
    Cout = w.shape[-1]
    assert w.shape == (KS ** 3, Cin, Cout), w.shape
    # Layout requirement for layout-free (M, K) reshapes inside the kernel.
    assert W % 8 == 0, "W must be a multiple of 8 (16 preferred for bf16 tiles)"

    Kc = KS * Cin

    # Fold BatchNorm (inference) into the conv: scale into bf16 weights, bias apart.
    scale = bn_gamma / jnp.sqrt(bn_var + eps)                      # (Cout,)
    bias = (bn_beta - bn_mean * scale).reshape(1, Cout).astype(jnp.float32)
    w_eff = w * scale[None, None, :]                               # (27, Cin, Cout)
    # (kd, kh, kw, ci, co) -> (kd*3+kh, kw*Cin+ci, co): K axis ordered (kw, ci).
    w9 = (w_eff.reshape(KS, KS, KS, Cin, Cout)
               .reshape(KS * KS, Kc, Cout).astype(jnp.bfloat16))

    # Single "same" zero pad: the only wrapper-side HBM pass over the activations.
    x_pad = jnp.pad(x.astype(jnp.bfloat16), ((0, 0), (1, 1), (1, 1), (1, 1), (0, 0)))
    Hp, Wp = H + 2, W + 2

    # D tile: keep the grid deep enough (>= 8 steps) for pipelining / both v7x TCs.
    cands = [t for t in (8, 4, 2, 1) if D % t == 0]
    Dt = next((t for t in cands if B * (D // t) >= 8), cands[-1])
    nD = D // Dt

    kernel = functools.partial(_conv_bn_relu_kernel,
                               Dt=Dt, H=H, W=W, Cin=Cin, Cout=Cout)

    return pl.pallas_call(
        kernel,
        out_shape=jax.ShapeDtypeStruct((B, D, H, W, Cout), jnp.bfloat16),
        grid=(B, nD),
        in_specs=[
            # main Dt rows of the halo'd slab
            pl.BlockSpec((None, Dt, Hp, Wp, Cin), lambda b, i: (b, i, 0, 0, 0)),
            # +Dt and +Dt+1 halo rows (block size 1 -> arbitrary element offset)
            pl.BlockSpec((None, 1, Hp, Wp, Cin),
                         lambda b, i: (b, i * Dt + Dt, 0, 0, 0)),
            pl.BlockSpec((None, 1, Hp, Wp, Cin),
                         lambda b, i: (b, i * Dt + Dt + 1, 0, 0, 0)),
            pl.BlockSpec((KS * KS, Kc, Cout), lambda b, i: (0, 0, 0)),
            pl.BlockSpec((1, Cout), lambda b, i: (0, 0)),
        ],
        out_specs=pl.BlockSpec((None, Dt, H, W, Cout), lambda b, i: (b, i, 0, 0, 0)),
        scratch_shapes=[pltpu.VMEM((Dt + 2, Hp, W, Kc), jnp.bfloat16)],
        compiler_params=pltpu.CompilerParams(
            dimension_semantics=("parallel", "parallel"),
            vmem_limit_bytes=32 * 1024 * 1024),
    )(x_pad, x_pad, x_pad, w9, bias)


def _reference(x, w, bn_gamma, bn_beta, bn_mean, bn_var, eps=1e-5):
    """Precision-matched pure-JAX reference: same-padded 3D conv + folded BN + ReLU."""
    Cin, Cout = w.shape[1], w.shape[2]
    scale = bn_gamma / jnp.sqrt(bn_var + eps)
    bias = bn_beta - bn_mean * scale
    w_eff = (w * scale[None, None, :]).reshape(KS, KS, KS, Cin, Cout)
    xb = x.astype(jnp.bfloat16).astype(jnp.float32)   # match kernel's bf16 inputs
    wb = w_eff.astype(jnp.bfloat16).astype(jnp.float32)
    y = lax.conv_general_dilated(
        xb, wb, window_strides=(1, 1, 1), padding="SAME",
        dimension_numbers=("NDHWC", "DHWIO", "NDHWC"),
        precision=lax.Precision.HIGHEST)
    return jnp.maximum(y + bias, 0.0)


if __name__ == "__main__":
    key = jax.random.PRNGKey(0)
    B, D, H, W = 2, 16, 16, 16
    Cin, Cout = 32, 64

    k1, k2, k3, k4, k5, k6 = jax.random.split(key, 6)
    x = jax.random.normal(k1, (B, D, H, W, Cin), dtype=jnp.float32)
    # spnn.Conv3d weight: (ks^3, inc, outc), no bias.
    w = 0.05 * jax.random.normal(k2, (KS ** 3, Cin, Cout), dtype=jnp.float32)
    # BatchNorm parameters / running stats (inference mode).
    bn_gamma = 1.0 + 0.1 * jax.random.normal(k3, (Cout,), dtype=jnp.float32)
    bn_beta = 0.1 * jax.random.normal(k4, (Cout,), dtype=jnp.float32)
    bn_mean = 0.05 * jax.random.normal(k5, (Cout,), dtype=jnp.float32)
    bn_var = 1.0 + 0.1 * jax.random.uniform(k6, (Cout,), dtype=jnp.float32)

    out = basic_convolution_block(x, w, bn_gamma, bn_beta, bn_mean, bn_var)
    out = jax.block_until_ready(out)

    ref = _reference(x, w, bn_gamma, bn_beta, bn_mean, bn_var)
    assert out.shape == (B, D, H, W, Cout)
    assert out.dtype == jnp.bfloat16
    out_f32 = out.astype(jnp.float32)
    max_err = float(jnp.max(jnp.abs(out_f32 - ref)))
    # Tolerance budget is dominated by the bf16 rounding of the stored output.
    assert jnp.allclose(out_f32, ref, atol=1e-2, rtol=2e-2), max_err

    print("KERNEL_OK")
</pallas_src>

<mosaic_0001>
module attributes {stable_mosaic.version = 11 : i64} {
  func.func @_conv_bn_relu_kernel(%arg0: i32, %arg1: i32, %arg2: memref<1x4x18x18x32xbf16, #tpu.memory_space<vmem>>, %arg3: memref<1x1x18x18x32xbf16, #tpu.memory_space<vmem>>, %arg4: memref<1x1x18x18x32xbf16, #tpu.memory_space<vmem>>, %arg5: memref<9x96x64xbf16, #tpu.memory_space<vmem>>, %arg6: memref<1x64xf32, #tpu.memory_space<vmem>>, %arg7: memref<1x4x16x16x64xbf16, #tpu.memory_space<vmem>>, %arg8: memref<6x18x16x96xbf16, #tpu.memory_space<vmem>>) attributes {dimension_semantics = [#tpu.dimension_semantics<parallel>, #tpu.dimension_semantics<parallel>], iteration_bounds = array<i64: 2, 4>, scalar_prefetch = 0 : i64, scratch_operands = 1 : i64, tpu.core_type = #tpu.core_type<tc>, window_params = [{transform_indices = @transform_0, window_bounds = array<i64: 1, 4, 18, 18, 32>}, {transform_indices = @transform_1, window_bounds = array<i64: 1, 1, 18, 18, 32>}, {transform_indices = @transform_2, window_bounds = array<i64: 1, 1, 18, 18, 32>}, {pipeline_mode = #tpu.pipeline_mode<synchronous>, transform_indices = @transform_3, window_bounds = array<i64: 9, 96, 64>}, {pipeline_mode = #tpu.pipeline_mode<synchronous>, transform_indices = @transform_4, window_bounds = array<i64: 1, 64>}, {transform_indices = @transform_5, window_bounds = array<i64: 1, 4, 16, 16, 64>}]} {
    %c0 = arith.constant 0 : index
    %c0_0 = arith.constant 0 : index
    %c0_1 = arith.constant 0 : index
    %c0_2 = arith.constant 0 : index
    %c0_3 = arith.constant 0 : index
    %0 = vector.load %arg2[%c0, %c0_0, %c0_1, %c0_2, %c0_3] : memref<1x4x18x18x32xbf16, #tpu.memory_space<vmem>>, vector<1x4x18x16x32xbf16>
    %1 = vector.shape_cast %0 : vector<1x4x18x16x32xbf16> to vector<4x18x16x32xbf16>
    %c0_4 = arith.constant 0 : index
    %c0_5 = arith.constant 0 : index
    %c0_6 = arith.constant 0 : index
    %c1 = arith.constant 1 : index
    %c0_7 = arith.constant 0 : index
    %2 = vector.load %arg2[%c0_4, %c0_5, %c0_6, %c1, %c0_7] : memref<1x4x18x18x32xbf16, #tpu.memory_space<vmem>>, vector<1x4x18x16x32xbf16>
    %3 = vector.shape_cast %2 : vector<1x4x18x16x32xbf16> to vector<4x18x16x32xbf16>
    %c0_8 = arith.constant 0 : index
    %c0_9 = arith.constant 0 : index
    %c0_10 = arith.constant 0 : index
    %c2 = arith.constant 2 : index
    %c0_11 = arith.constant 0 : index
    %4 = vector.load %arg2[%c0_8, %c0_9, %c0_10, %c2, %c0_11] : memref<1x4x18x18x32xbf16, #tpu.memory_space<vmem>>, vector<1x4x18x16x32xbf16>
    %5 = vector.shape_cast %4 : vector<1x4x18x16x32xbf16> to vector<4x18x16x32xbf16>
    %6 = tpu.concatenate %1, %3, %5 in 3 : vector<4x18x16x32xbf16>, vector<4x18x16x32xbf16>, vector<4x18x16x32xbf16> -> vector<4x18x16x96xbf16>
    %c0_12 = arith.constant 0 : index
    %c0_13 = arith.constant 0 : index
    %c0_14 = arith.constant 0 : index
    %c0_15 = arith.constant 0 : index
    %7 = vector.load %arg8[%c0_12, %c0_13, %c0_14, %c0_15] : memref<6x18x16x96xbf16, #tpu.memory_space<vmem>>, vector<4x18x16x96xbf16>
    tpu.vector_store %arg8[%c0_12, %c0_13, %c0_14, %c0_15], %6 {strides = array<i32>} : memref<6x18x16x96xbf16, #tpu.memory_space<vmem>>, vector<4x18x16x96xbf16>,
    %c0_16 = arith.constant 0 : index
    %c0_17 = arith.constant 0 : index
    %c0_18 = arith.constant 0 : index
    %c0_19 = arith.constant 0 : index
    %c0_20 = arith.constant 0 : index
    %8 = vector.load %arg3[%c0_16, %c0_17, %c0_18, %c0_19, %c0_20] : memref<1x1x18x18x32xbf16, #tpu.memory_space<vmem>>, vector<1x1x18x16x32xbf16>
    %9 = vector.shape_cast %8 : vector<1x1x18x16x32xbf16> to vector<1x18x16x32xbf16>
    %c0_21 = arith.constant 0 : index
    %c0_22 = arith.constant 0 : index
    %c0_23 = arith.constant 0 : index
    %c1_24 = arith.constant 1 : index
    %c0_25 = arith.constant 0 : index
    %10 = vector.load %arg3[%c0_21, %c0_22, %c0_23, %c1_24, %c0_25] : memref<1x1x18x18x32xbf16, #tpu.memory_space<vmem>>, vector<1x1x18x16x32xbf16>
    %11 = vector.shape_cast %10 : vector<1x1x18x16x32xbf16> to vector<1x18x16x32xbf16>
    %c0_26 = arith.constant 0 : index
    %c0_27 = arith.constant 0 : index
    %c0_28 = arith.constant 0 : index
    %c2_29 = arith.constant 2 : index
    %c0_30 = arith.constant 0 : index
    %12 = vector.load %arg3[%c0_26, %c0_27, %c0_28, %c2_29, %c0_30] : memref<1x1x18x18x32xbf16, #tpu.memory_space<vmem>>, vector<1x1x18x16x32xbf16>
    %13 = vector.shape_cast %12 : vector<1x1x18x16x32xbf16> to vector<1x18x16x32xbf16>
    %14 = tpu.concatenate %9, %11, %13 in 3 : vector<1x18x16x32xbf16>, vector<1x18x16x32xbf16>, vector<1x18x16x32xbf16> -> vector<1x18x16x96xbf16>
    %c4 = arith.constant 4 : index
    %c0_31 = arith.constant 0 : index
    %c0_32 = arith.constant 0 : index
    %c0_33 = arith.constant 0 : index
    %15 = vector.load %arg8[%c4, %c0_31, %c0_32, %c0_33] : memref<6x18x16x96xbf16, #tpu.memory_space<vmem>>, vector<1x18x16x96xbf16>
    tpu.vector_store %arg8[%c4, %c0_31, %c0_32, %c0_33], %14 {strides = array<i32>} : memref<6x18x16x96xbf16, #tpu.memory_space<vmem>>, vector<1x18x16x96xbf16>,
    %c0_34 = arith.constant 0 : index
    %c0_35 = arith.constant 0 : index
    %c0_36 = arith.constant 0 : index
    %c0_37 = arith.constant 0 : index
    %c0_38 = arith.constant 0 : index
    %16 = vector.load %arg4[%c0_34, %c0_35, %c0_36, %c0_37, %c0_38] : memref<1x1x18x18x32xbf16, #tpu.memory_space<vmem>>, vector<1x1x18x16x32xbf16>
    %17 = vector.shape_cast %16 : vector<1x1x18x16x32xbf16> to vector<1x18x16x32xbf16>
    %c0_39 = arith.constant 0 : index
    %c0_40 = arith.constant 0 : index
    %c0_41 = arith.constant 0 : index
    %c1_42 = arith.constant 1 : index
    %c0_43 = arith.constant 0 : index
    %18 = vector.load %arg4[%c0_39, %c0_40, %c0_41, %c1_42, %c0_43] : memref<1x1x18x18x32xbf16, #tpu.memory_space<vmem>>, vector<1x1x18x16x32xbf16>
    %19 = vector.shape_cast %18 : vector<1x1x18x16x32xbf16> to vector<1x18x16x32xbf16>
    %c0_44 = arith.constant 0 : index
    %c0_45 = arith.constant 0 : index
    %c0_46 = arith.constant 0 : index
    %c2_47 = arith.constant 2 : index
    %c0_48 = arith.constant 0 : index
    %20 = vector.load %arg4[%c0_44, %c0_45, %c0_46, %c2_47, %c0_48] : memref<1x1x18x18x32xbf16, #tpu.memory_space<vmem>>, vector<1x1x18x16x32xbf16>
    %21 = vector.shape_cast %20 : vector<1x1x18x16x32xbf16> to vector<1x18x16x32xbf16>
    %22 = tpu.concatenate %17, %19, %21 in 3 : vector<1x18x16x32xbf16>, vector<1x18x16x32xbf16>, vector<1x18x16x32xbf16> -> vector<1x18x16x96xbf16>
    %c5 = arith.constant 5 : index
    %c0_49 = arith.constant 0 : index
    %c0_50 = arith.constant 0 : index
    %c0_51 = arith.constant 0 : index
    %23 = vector.load %arg8[%c5, %c0_49, %c0_50, %c0_51] : memref<6x18x16x96xbf16, #tpu.memory_space<vmem>>, vector<1x18x16x96xbf16>
    tpu.vector_store %arg8[%c5, %c0_49, %c0_50, %c0_51], %22 {strides = array<i32>} : memref<6x18x16x96xbf16, #tpu.memory_space<vmem>>, vector<1x18x16x96xbf16>,
    %c0_52 = arith.constant 0 : index
    %c0_53 = arith.constant 0 : index
    %24 = vector.load %arg6[%c0_52, %c0_53] : memref<1x64xf32, #tpu.memory_space<vmem>>, vector<1x64xf32>
    %c0_54 = arith.constant 0 : index
    %c0_55 = arith.constant 0 : index
    %c0_56 = arith.constant 0 : index
    %c0_57 = arith.constant 0 : index
    %25 = vector.load %arg8[%c0_54, %c0_55, %c0_56, %c0_57] : memref<6x18x16x96xbf16, #tpu.memory_space<vmem>>, vector<4x16x16x96xbf16>
    %26 = vector.shape_cast %25 : vector<4x16x16x96xbf16> to vector<1024x96xbf16>
    %c0_58 = arith.constant 0 : index
    %c0_59 = arith.constant 0 : index
    %c0_60 = arith.constant 0 : index
    %27 = vector.load %arg5[%c0_58, %c0_59, %c0_60] : memref<9x96x64xbf16, #tpu.memory_space<vmem>>, vector<1x96x64xbf16>
    %28 = vector.shape_cast %27 : vector<1x96x64xbf16> to vector<96x64xbf16>
    %cst = arith.constant dense<0.000000e+00> : vector<1024x64xf32>
    %29 = tpu.matmul %26, %28, %cst {dimension_numbers = #tpu.dot_dimension_numbers<[1], [0], [0], [1], [0, 0, 1, 1], [], []>} : vector<1024x96xbf16>, vector<96x64xbf16>, vector<1024x64xf32> -> vector<1024x64xf32>
    %c0_61 = arith.constant 0 : index
    %c1_62 = arith.constant 1 : index
    %c0_63 = arith.constant 0 : index
    %c0_64 = arith.constant 0 : index
    %30 = vector.load %arg8[%c0_61, %c1_62, %c0_63, %c0_64] : memref<6x18x16x96xbf16, #tpu.memory_space<vmem>>, vector<4x16x16x96xbf16>
    %31 = vector.shape_cast %30 : vector<4x16x16x96xbf16> to vector<1024x96xbf16>
    %c1_65 = arith.constant 1 : index
    %c0_66 = arith.constant 0 : index
    %c0_67 = arith.constant 0 : index
    %32 = vector.load %arg5[%c1_65, %c0_66, %c0_67] : memref<9x96x64xbf16, #tpu.memory_space<vmem>>, vector<1x96x64xbf16>
    %33 = vector.shape_cast %32 : vector<1x96x64xbf16> to vector<96x64xbf16>
    %cst_68 = arith.constant dense<0.000000e+00> : vector<1024x64xf32>
    %34 = tpu.matmul %31, %33, %cst_68 {dimension_numbers = #tpu.dot_dimension_numbers<[1], [0], [0], [1], [0, 0, 1, 1], [], []>} : vector<1024x96xbf16>, vector<96x64xbf16>, vector<1024x64xf32> -> vector<1024x64xf32>
    %35 = arith.addf %29, %34 : vector<1024x64xf32>
    %c0_69 = arith.constant 0 : index
    %c2_70 = arith.constant 2 : index
    %c0_71 = arith.constant 0 : index
    %c0_72 = arith.constant 0 : index
    %36 = vector.load %arg8[%c0_69, %c2_70, %c0_71, %c0_72] : memref<6x18x16x96xbf16, #tpu.memory_space<vmem>>, vector<4x16x16x96xbf16>
    %37 = vector.shape_cast %36 : vector<4x16x16x96xbf16> to vector<1024x96xbf16>
    %c2_73 = arith.constant 2 : index
    %c0_74 = arith.constant 0 : index
    %c0_75 = arith.constant 0 : index
    %38 = vector.load %arg5[%c2_73, %c0_74, %c0_75] : memref<9x96x64xbf16, #tpu.memory_space<vmem>>, vector<1x96x64xbf16>
    %39 = vector.shape_cast %38 : vector<1x96x64xbf16> to vector<96x64xbf16>
    %cst_76 = arith.constant dense<0.000000e+00> : vector<1024x64xf32>
    %40 = tpu.matmul %37, %39, %cst_76 {dimension_numbers = #tpu.dot_dimension_numbers<[1], [0], [0], [1], [0, 0, 1, 1], [], []>} : vector<1024x96xbf16>, vector<96x64xbf16>, vector<1024x64xf32> -> vector<1024x64xf32>
    %41 = arith.addf %35, %40 : vector<1024x64xf32>
    %c1_77 = arith.constant 1 : index
    %c0_78 = arith.constant 0 : index
    %c0_79 = arith.constant 0 : index
    %c0_80 = arith.constant 0 : index
    %42 = vector.load %arg8[%c1_77, %c0_78, %c0_79, %c0_80] : memref<6x18x16x96xbf16, #tpu.memory_space<vmem>>, vector<4x16x16x96xbf16>
    %43 = vector.shape_cast %42 : vector<4x16x16x96xbf16> to vector<1024x96xbf16>
    %c3 = arith.constant 3 : index
    %c0_81 = arith.constant 0 : index
    %c0_82 = arith.constant 0 : index
    %44 = vector.load %arg5[%c3, %c0_81, %c0_82] : memref<9x96x64xbf16, #tpu.memory_space<vmem>>, vector<1x96x64xbf16>
    %45 = vector.shape_cast %44 : vector<1x96x64xbf16> to vector<96x64xbf16>
    %cst_83 = arith.constant dense<0.000000e+00> : vector<1024x64xf32>
    %46 = tpu.matmul %43, %45, %cst_83 {dimension_numbers = #tpu.dot_dimension_numbers<[1], [0], [0], [1], [0, 0, 1, 1], [], []>} : vector<1024x96xbf16>, vector<96x64xbf16>, vector<1024x64xf32> -> vector<1024x64xf32>
    %47 = arith.addf %41, %46 : vector<1024x64xf32>
    %c1_84 = arith.constant 1 : index
    %c1_85 = arith.constant 1 : index
    %c0_86 = arith.constant 0 : index
    %c0_87 = arith.constant 0 : index
    %48 = vector.load %arg8[%c1_84, %c1_85, %c0_86, %c0_87] : memref<6x18x16x96xbf16, #tpu.memory_space<vmem>>, vector<4x16x16x96xbf16>
    %49 = vector.shape_cast %48 : vector<4x16x16x96xbf16> to vector<1024x96xbf16>
    %c4_88 = arith.constant 4 : index
    %c0_89 = arith.constant 0 : index
    %c0_90 = arith.constant 0 : index
    %50 = vector.load %arg5[%c4_88, %c0_89, %c0_90] : memref<9x96x64xbf16, #tpu.memory_space<vmem>>, vector<1x96x64xbf16>
    %51 = vector.shape_cast %50 : vector<1x96x64xbf16> to vector<96x64xbf16>
    %cst_91 = arith.constant dense<0.000000e+00> : vector<1024x64xf32>
    %52 = tpu.matmul %49, %51, %cst_91 {dimension_numbers = #tpu.dot_dimension_numbers<[1], [0], [0], [1], [0, 0, 1, 1], [], []>} : vector<1024x96xbf16>, vector<96x64xbf16>, vector<1024x64xf32> -> vector<1024x64xf32>
    %53 = arith.addf %47, %52 : vector<1024x64xf32>
    %c1_92 = arith.constant 1 : index
    %c2_93 = arith.constant 2 : index
    %c0_94 = arith.constant 0 : index
    %c0_95 = arith.constant 0 : index
    %54 = vector.load %arg8[%c1_92, %c2_93, %c0_94, %c0_95] : memref<6x18x16x96xbf16, #tpu.memory_space<vmem>>, vector<4x16x16x96xbf16>
    %55 = vector.shape_cast %54 : vector<4x16x16x96xbf16> to vector<1024x96xbf16>
    %c5_96 = arith.constant 5 : index
    %c0_97 = arith.constant 0 : index
    %c0_98 = arith.constant 0 : index
    %56 = vector.load %arg5[%c5_96, %c0_97, %c0_98] : memref<9x96x64xbf16, #tpu.memory_space<vmem>>, vector<1x96x64xbf16>
    %57 = vector.shape_cast %56 : vector<1x96x64xbf16> to vector<96x64xbf16>
    %cst_99 = arith.constant dense<0.000000e+00> : vector<1024x64xf32>
    %58 = tpu.matmul %55, %57, %cst_99 {dimension_numbers = #tpu.dot_dimension_numbers<[1], [0], [0], [1], [0, 0, 1, 1], [], []>} : vector<1024x96xbf16>, vector<96x64xbf16>, vector<1024x64xf32> -> vector<1024x64xf32>
    %59 = arith.addf %53, %58 : vector<1024x64xf32>
    %c2_100 = arith.constant 2 : index
    %c0_101 = arith.constant 0 : index
    %c0_102 = arith.constant 0 : index
    %c0_103 = arith.constant 0 : index
    %60 = vector.load %arg8[%c2_100, %c0_101, %c0_102, %c0_103] : memref<6x18x16x96xbf16, #tpu.memory_space<vmem>>, vector<4x16x16x96xbf16>
    %61 = vector.shape_cast %60 : vector<4x16x16x96xbf16> to vector<1024x96xbf16>
    %c6 = arith.constant 6 : index
    %c0_104 = arith.constant 0 : index
    %c0_105 = arith.constant 0 : index
    %62 = vector.load %arg5[%c6, %c0_104, %c0_105] : memref<9x96x64xbf16, #tpu.memory_space<vmem>>, vector<1x96x64xbf16>
    %63 = vector.shape_cast %62 : vector<1x96x64xbf16> to vector<96x64xbf16>
    %cst_106 = arith.constant dense<0.000000e+00> : vector<1024x64xf32>
    %64 = tpu.matmul %61, %63, %cst_106 {dimension_numbers = #tpu.dot_dimension_numbers<[1], [0], [0], [1], [0, 0, 1, 1], [], []>} : vector<1024x96xbf16>, vector<96x64xbf16>, vector<1024x64xf32> -> vector<1024x64xf32>
    %65 = arith.addf %59, %64 : vector<1024x64xf32>
    %c2_107 = arith.constant 2 : index
    %c1_108 = arith.constant 1 : index
    %c0_109 = arith.constant 0 : index
    %c0_110 = arith.constant 0 : index
    %66 = vector.load %arg8[%c2_107, %c1_108, %c0_109, %c0_110] : memref<6x18x16x96xbf16, #tpu.memory_space<vmem>>, vector<4x16x16x96xbf16>
    %67 = vector.shape_cast %66 : vector<4x16x16x96xbf16> to vector<1024x96xbf16>
    %c7 = arith.constant 7 : index
    %c0_111 = arith.constant 0 : index
    %c0_112 = arith.constant 0 : index
    %68 = vector.load %arg5[%c7, %c0_111, %c0_112] : memref<9x96x64xbf16, #tpu.memory_space<vmem>>, vector<1x96x64xbf16>
    %69 = vector.shape_cast %68 : vector<1x96x64xbf16> to vector<96x64xbf16>
    %cst_113 = arith.constant dense<0.000000e+00> : vector<1024x64xf32>
    %70 = tpu.matmul %67, %69, %cst_113 {dimension_numbers = #tpu.dot_dimension_numbers<[1], [0], [0], [1], [0, 0, 1, 1], [], []>} : vector<1024x96xbf16>, vector<96x64xbf16>, vector<1024x64xf32> -> vector<1024x64xf32>
    %71 = arith.addf %65, %70 : vector<1024x64xf32>
    %c2_114 = arith.constant 2 : index
    %c2_115 = arith.constant 2 : index
    %c0_116 = arith.constant 0 : index
    %c0_117 = arith.constant 0 : index
    %72 = vector.load %arg8[%c2_114, %c2_115, %c0_116, %c0_117] : memref<6x18x16x96xbf16, #tpu.memory_space<vmem>>, vector<4x16x16x96xbf16>
    %73 = vector.shape_cast %72 : vector<4x16x16x96xbf16> to vector<1024x96xbf16>
    %c8 = arith.constant 8 : index
    %c0_118 = arith.constant 0 : index
    %c0_119 = arith.constant 0 : index
    %74 = vector.load %arg5[%c8, %c0_118, %c0_119] : memref<9x96x64xbf16, #tpu.memory_space<vmem>>, vector<1x96x64xbf16>
    %75 = vector.shape_cast %74 : vector<1x96x64xbf16> to vector<96x64xbf16>
    %cst_120 = arith.constant dense<0.000000e+00> : vector<1024x64xf32>
    %76 = tpu.matmul %73, %75, %cst_120 {dimension_numbers = #tpu.dot_dimension_numbers<[1], [0], [0], [1], [0, 0, 1, 1], [], []>} : vector<1024x96xbf16>, vector<96x64xbf16>, vector<1024x64xf32> -> vector<1024x64xf32>
    %77 = arith.addf %71, %76 : vector<1024x64xf32>
    %78 = vector.broadcast %24 : vector<1x64xf32> to vector<1024x64xf32>
    %79 = arith.addf %77, %78 : vector<1024x64xf32>
    %cst_121 = arith.constant 0.000000e+00 : f32
    %80 = vector.broadcast %cst_121 : f32 to vector<1024x64xf32>
    %81 = arith.maximumf %79, %80 : vector<1024x64xf32>
    %82 = vector.shape_cast %81 : vector<1024x64xf32> to vector<4x16x16x64xf32>
    %83 = arith.truncf %82 : vector<4x16x16x64xf32> to vector<4x16x16x64xbf16>
    %c0_122 = arith.constant 0 : index
    %c0_123 = arith.constant 0 : index
    %c0_124 = arith.constant 0 : index
    %c0_125 = arith.constant 0 : index
    %c0_126 = arith.constant 0 : index
    %84 = vector.load %arg7[%c0_122, %c0_123, %c0_124, %c0_125, %c0_126] : memref<1x4x16x16x64xbf16, #tpu.memory_space<vmem>>, vector<1x4x16x16x64xbf16>
    %85 = vector.shape_cast %84 : vector<1x4x16x16x64xbf16> to vector<4x16x16x64xbf16>
    %86 = vector.shape_cast %83 : vector<4x16x16x64xbf16> to vector<1x4x16x16x64xbf16>
    tpu.vector_store %arg7[%c0_122, %c0_123, %c0_124, %c0_125, %c0_126], %86 {strides = array<i32>} : memref<1x4x16x16x64xbf16, #tpu.memory_space<vmem>>, vector<1x4x16x16x64xbf16>,
    return
  }
  func.func @transform_0(%arg0: i32, %arg1: i32) -> (i32, i32, i32, i32, i32) {
    %c0_i32 = arith.constant 0 : i32
    %c0_i32_0 = arith.constant 0 : i32
    %c0_i32_1 = arith.constant 0 : i32
    %c0_i32_2 = arith.constant 0 : i32
    return %arg0, %arg1, %c0_i32, %c0_i32_0, %c0_i32_1 : i32, i32, i32, i32, i32
  }
  func.func @transform_1(%arg0: i32, %arg1: i32) -> (i32, i32, i32, i32, i32) {
    %c4_i32 = arith.constant 4 : i32
    %0 = arith.muli %arg1, %c4_i32 : i32
    %c4_i32_0 = arith.constant 4 : i32
    %1 = arith.addi %0, %c4_i32_0 : i32
    %c0_i32 = arith.constant 0 : i32
    %c0_i32_1 = arith.constant 0 : i32
    %c0_i32_2 = arith.constant 0 : i32
    %c0_i32_3 = arith.constant 0 : i32
    return %arg0, %1, %c0_i32, %c0_i32_1, %c0_i32_2 : i32, i32, i32, i32, i32
  }
  func.func @transform_2(%arg0: i32, %arg1: i32) -> (i32, i32, i32, i32, i32) {
    %c4_i32 = arith.constant 4 : i32
    %0 = arith.muli %arg1, %c4_i32 : i32
    %c4_i32_0 = arith.constant 4 : i32
    %1 = arith.addi %0, %c4_i32_0 : i32
    %c1_i32 = arith.constant 1 : i32
    %2 = arith.addi %1, %c1_i32 : i32
    %c0_i32 = arith.constant 0 : i32
    %c0_i32_1 = arith.constant 0 : i32
    %c0_i32_2 = arith.constant 0 : i32
    %c0_i32_3 = arith.constant 0 : i32
    return %arg0, %2, %c0_i32, %c0_i32_1, %c0_i32_2 : i32, i32, i32, i32, i32
  }
  func.func @transform_3(%arg0: i32, %arg1: i32) -> (i32, i32, i32) {
    %c0_i32 = arith.constant 0 : i32
    %c0_i32_0 = arith.constant 0 : i32
    %c0_i32_1 = arith.constant 0 : i32
    %c0_i32_2 = arith.constant 0 : i32
    return %c0_i32, %c0_i32_0, %c0_i32_1 : i32, i32, i32
  }
  func.func @transform_4(%arg0: i32, %arg1: i32) -> (i32, i32) {
    %c0_i32 = arith.constant 0 : i32
    %c0_i32_0 = arith.constant 0 : i32
    %c0_i32_1 = arith.constant 0 : i32
    return %c0_i32, %c0_i32_0 : i32, i32
  }
  func.func @transform_5(%arg0: i32, %arg1: i32) -> (i32, i32, i32, i32, i32) {
    %c0_i32 = arith.constant 0 : i32
    %c0_i32_0 = arith.constant 0 : i32
    %c0_i32_1 = arith.constant 0 : i32
    %c0_i32_2 = arith.constant 0 : i32
    return %arg0, %arg1, %c0_i32, %c0_i32_0, %c0_i32_1 : i32, i32, i32, i32, i32
  }
}

</mosaic_0001>

<bundles_post_ra>
// kernel: basic_convolution_block.1
= control target key start
LH: loop header
LB: loop body
LE: loop exit
PB: predicated region body
PF: predicated region fallthrough
CT: control target
= control target key end

     0   :  { %10 = vsyncpa [#allocation4], 0  ;;  %s24091_s0 = inlined_call_operand.vmem [shape: bf16[2,18,18,18,32], index: 0, kind: input, shape index: {}, may-alias: {0,1,2}]   ;;  %s24092_s1 = inlined_call_operand.vmem [shape: bf16[2,18,18,18,32], index: 1, kind: input, shape index: {}, may-alias: {0,1,2}]   ;;  %s24093_s2 = inlined_call_operand.vmem [shape: bf16[2,18,18,18,32], index: 2, kind: input, shape index: {}, may-alias: {0,1,2}]   ;;  %s24094_s3 = inlined_call_operand.vmem [shape: bf16[9,96,64], index: 3, kind: input, shape index: {}]   ;;  %s24095_s4 = inlined_call_operand.vmem [shape: f32[1,64], index: 4, kind: input, shape index: {}]   ;;  %s24096_s5 = inlined_call_operand.hbm [shape: bf16[2,16,16,16,64], index: 5, kind: output, shape index: {}]  }
   0x1   :  { %12 = vsyncpa [#allocation4 + $0x1], 0  ;;  %s19144_s18 = smov 0   ;;  %s19146_s19 = smov 0  }
   0x2   :  { %s19148_s20 = smov 0   ;;  %s19150_s21 = smov 0  }
   0x3   :  { %s19152_s22 = smov 0   ;;  %s19154_s23 = smov 0  }
   0x4   :  { %s19156_s24 = smov 0   ;;  %s19158_s25 = smov 0  }
   0x5 LB: > { %s14312_s26 = sadd.s32 4294967295, %s19108_s25   ;;  %s14313_s27 = sadd.s32 4294967294, %s19108_s25   ;;  %s19108_s25 = sphi %s19158_s25, %s18_s25   ;;  %s19104_s24 = sphi %s19156_s24, %s24363_s24   ;;  %s19100_s23 = sphi %s19154_s23, %s24362_s23   ;;  %s19096_s22 = sphi %s19152_s22, %s24361_s22   ;;  %s19092_s21 = sphi %s19150_s21, %s24360_s21   ;;  %s19088_s20 = sphi %s19148_s20, %s24359_s20   ;;  %s19084_s19 = sphi %s19146_s19, %s24358_s19   ;;  %s19080_s18 = sphi %s19144_s18, %s24357_s18  }
   0x6   : > { %s27_s28 = sadd.s32 1, %s19100_s23  ;;  %s30_s29 = sadd.s32 1, %s19104_s24 }
   0x7   : > { %p28_p0 = scmp.ge.s32.totalorder %s27_s28, 4  ;;  %p183_p1 = scmp.ne.s32.totalorder %s19088_s20, %s19084_s19 }
   0x8   : > { %p184_p2 = scmp.eq.s32.totalorder %s14312_s26, 7  ;;  %p189_p5 = scmp.ne.s32.totalorder %s19084_s19, %s19080_s18 }
   0x9   : > { %s24365_s28 = smov (%p28_p0, %s27_s28), 0  ;;  %s24367_s29 = smov (!%p28_p0, %s30_s29), %s19104_s24 }
   0xa   : > { %24168 = sst [smem:[#allocation6_spill]] %s24365_s28  ;;  %s169_s30 = ssub.s32 %s19100_s23, %s24365_s28 }
   0xb   : > { %p19195_p3 = por %p184_p2, %p183_p1  ;;  %p32_p4 = scmp.ge.s32.totalorder %s24367_s29, 2 }
   0xc   : > { %p190_p6 = scmp.eq.s32.totalorder %s14313_s27, 7  ;;  %p14320_p7 = scmp.ge.s32.totalorder %s19108_s25, 1 }
   0xd   : > { %s24369_s29 = smov (%p32_p4, %s24367_s29), 0  ;;  %p272_p9 = scmp.lt.s32.totalorder %s19108_s25, 9 }
   0xe   : > { %24170 = sst [smem:[#allocation7_spill]] %s24369_s29  ;;  %p19204_p8 = por %p190_p6, %p189_p5 }
   0xf   : > { %s168_s8 = ssub.s32 %s19104_s24, %s24369_s29  ;;  %s173_s9 = sadd.s32 1, %s19088_s20 }
  0x10   : > { %s170_s10 = sor.u32 %s169_s30, %s168_s8  ;;  %p273_p10 = pnand %p14320_p7, %p272_p9 }
  0x11   : > { %p171_p11 = scmp.eq.s32.totalorder %s170_s10, 0 }
  0x12   : > { %276 = sbr.rel (%p273_p10) target bundleno = 1620 (0x654), region = 40 }
  0x13   : > { %s19213_s11 = scalar_select %p171_p11, %s19088_s20, %s173_s9  }
  0x19   : > { %s19216_s12 = sshll.u32 %s19092_s21, 2  ;;  %p340_p12 = scmp.lt.s32.totalorder %s19096_s22, 1  ;;  %v18731_v0 = vld [vmem:[%s24094_s3 + $0x30] sm:$0xff]   ;;  %v18736_v1 = vld [vmem:[%s24094_s3 + $0x38] sm:$0xff]   ;;  %v18737_v2 = vld [vmem:[%s24094_s3 + $0xc0] sm:$0xff]   ;;  %vm2473_vm0 = vcmask 1046528  }
  0x1a   : > { %p342_p13 = scmp.lt.s32.totalorder %s19216_s12, 17  ;;  %16273 = vmatprep.subr.bf16.mxu1 %v18731_v0  ;;  %16833 = vmatprep.subr.bf16.mxu0 %v18737_v2  ;;  %v18742_v3 = vld [vmem:[%s24094_s3 + $0x40] sm:$0xff]   ;;  %v18743_v4 = vld [vmem:[%s24094_s3 + $0xc8] sm:$0xff]   ;;  %vm1248_vm1 = vsmask.f32 7424  ;;  %s19110_s28 = smov 64  }
  0x1b   : > { %s341_s15 = scalar_select %p340_p12, %s19096_s22, 1  ;;  %16274 = vmatpush3.bf16.msra.mxu1 %v18731_v0  ;;  %16834 = vmatpush3.bf16.msra.mxu0 %v18737_v2  ;;  %v18746_v39 = vld [vmem:[%s24094_s3 + $0x48] sm:$0xff]   ;;  %v18747_v50 = vld [vmem:[%s24094_s3 + $0xd0] sm:$0xff]   ;;  %vm2834_vm2 = vcmask 261120   ;;  %vm2979_vm3 = vcmask 523264   ;;  %vm3196_vm4 = vcmask 785408  }
  0x1c   : > { %s343_s16 = scalar_select %p342_p13, %s19216_s12, 17  ;;  %16275 = vmatprep.subr.bf16.mxu1 %v18736_v1  ;;  %16835 = vmatprep.subr.bf16.mxu0 %v18743_v4  ;;  %vm14039_vm5 = vcmask 519168  }
  0x1d   : > { %s19225_s17 = smul.u32 972, %s341_s15  ;;  %s19111_s26 = smov 32  }
  0x1e   : > { %s18569_s9 = smul.u32 54, %s343_s16  ;;  %s357_s8 = sadd.s32 4, %s19216_s12 }
  0x1f   : > { %16276 = vmatpush3.bf16.msra.mxu1 %v18736_v1  ;;  %16836 = vmatpush3.bf16.msra.mxu0 %v18743_v4  ;;  %v18748_v1 = vld [vmem:[%s24094_s3 + $0x50] sm:$0xff]   ;;  %p21001_p0 = scmp.lt.s32.totalorder %s357_s8, 17 }
  0x20   : > { %s346_s10 = sadd.s32 %s19225_s17, %s18569_s9  ;;  %16277 = vmatprep.subr.bf16.mxu1 %v18742_v3  ;;  %16837 = vmatprep.subr.bf16.mxu0 %v18747_v50 }
  0x21   : > { %s14323_s13 = sshll.u32 %s346_s10, 2  ;;  %s24371_s8 = smov (!%p21001_p0, %s357_s8), 17 }
  0x22   : > { %s19243_s30 = scalar_lea.vmem %s24091_s0, %s14323_s13  ;;  %s18571_s10 = smul.u32 54, %s24371_s8 }
  0x23   : > { %v423_v5 = vld [vmem:[%s19243_s30 + $0xe8] sm:$0xf]  ;;  %v619_v6 = vld [vmem:[%s19243_s30 + $0xe4] sm:$0xe]  ;;  %16278 = vmatpush3.bf16.msra.mxu1 %v18742_v3  ;;  %v387_v10 = vld [vmem:[%s19243_s30 + $0x10] sm:$0xf]  ;;  %16838 = vmatpush3.bf16.msra.mxu0 %v18747_v50 }
  0x24   : > { %v19248_v7 = vld [vmem:[%s19243_s30 + $0xec] ss:$0 sps:$4 sm:$0x11]   ;;  %v14491_v8 = vcombine.low %v619_v6, %v423_v5  ;;  %v422_v9 = vld [vmem:[%s19243_s30 + $0xe4] sm:$0xf]  ;;  %16279 = vmatprep.subr.bf16.mxu1 %v18746_v39  ;;  %s364_s13 = sadd.s32 %s18571_s10, %s19225_s17  ;;  %s370_s8 = sadd.s32 5, %s19216_s12 }
  0x25   : > { %v601_v11 = vld [vmem:[%s19243_s30 + $0xc] sm:$0xe]  ;;  %v2532_v13 = vrot.slane %v19248_v7, 1  ;;  %v18650_v14 = vld [vmem:[%s19243_s30 + $0x14] ss:$0 sps:$4 sm:$0x11]   ;;  %v19266_v29 = vcombine.low %v422_v9, %v423_v5 }
  0x26   : > { %v2531_v12 = vrot.slane %v14491_v8, 1  ;;  %v14473_v15 = vcombine.low %v601_v11, %v387_v10  ;;  %v1485_v16 = vshll.u32 %v19248_v7, 16  ;;  %v386_v17 = vld [vmem:[%s19243_s30 + $0xc] sm:$0xf]  ;;  %v424_v18 = vld [vmem:[%s19243_s30 + $0xf0] sm:$0xf] }
  0x27   : > { %v425_v19 = vld [vmem:[%s19243_s30 + $0xf4] sm:$0xf]  ;;  %v2478_v22 = vrot.slane %v18650_v14, 1  ;;  %v19260_v23 = vcombine.low %v386_v17, %v387_v10  ;;  %v620_v24 = vld [vmem:[%s19243_s30 + $0xf0] sm:$0xe]  ;;  %v1269_v28 = vshll.u32 %v18650_v14, 16  ;;  %16280 = vmatpush3.bf16.msra.mxu1 %v18746_v39 }
  0x28   : > { %v2533_v20 = vsel %vm2473_vm0, %v2531_v12, %v2532_v13  ;;  %v2477_v21 = vrot.slane %v14473_v15, 1  ;;  %v18654_v25 = vld [vmem:[%s19243_s30 + $0xf8] ss:$0 sps:$4 sm:$0x11]   ;;  %v14492_v26 = vcombine.low %v620_v24, %v425_v19  ;;  %v19269_v31 = vcombine.low %v424_v18, %v425_v19  ;;  %v389_v32 = vld [vmem:[%s19243_s30 + $0x1c] sm:$0xf]  ;;  %16281 = vmatprep.subr.bf16.mxu1 %v18748_v1 }
  0x29   : > { %2728 = vrot.lane.b32.xlu1 %v2533_v20, %s19110_s28  ;;  %v388_v27 = vld [vmem:[%s19243_s30 + $0x18] sm:$0xf]  ;;  %v2535_v35 = vrot.slane %v18654_v25, 1  ;;  %v18657_v37 = vld [vmem:[%s19243_s30 + $0x20] ss:$0 sps:$4 sm:$0x11]  }
  0x2a   : > { %v2479_v30 = vsel %vm2473_vm0, %v2477_v21, %v2478_v22  ;;  %v602_v33 = vld [vmem:[%s19243_s30 + $0x18] sm:$0xe]  ;;  %v2534_v34 = vrot.slane %v14492_v26, 1  ;;  %v19274_v36 = vcombine.low %v388_v27, %v389_v32  ;;  %v1262_v40 = vshrl.u32 %v19260_v23, 16  ;;  %v426_v44 = vld [vmem:[%s19243_s30 + $0xfc] sm:$0xf] }
  0x2b   : > { %2692 = vrot.lane.b32.xlu0 %v2479_v30, %s19110_s28  ;;  %v14474_v38 = vcombine.low %v602_v33, %v389_v32  ;;  %v1264_v41 = vshll.u32 %v19260_v23, 16  ;;  %v1271_v42 = vrot.slane %v1269_v28, 1  ;;  %v1490_v43 = vshrl.u32 %v19269_v31, 16  ;;  %v19287_v49 = vld [vmem:[%s19243_s30 + $0x100] sm:$0xf]  ;;  %v18749_v7 = vld [vmem:[%s24094_s3 + $0xd8] sm:$0xff]   ;;  %16282 = vmatpush3.bf16.msra.mxu1 %v18748_v1 }
  0x2c   : > { %v2536_v45 = vsel %vm2473_vm0, %v2534_v34, %v2535_v35  ;;  %v2481_v47 = vrot.slane %v18657_v37, 1  ;;  %v1274_v48 = vshrl.u32 %v19274_v36, 16  ;;  %v1276_v51 = vshll.u32 %v19274_v36, 16  ;;  %v19299_v59 = vld [vmem:[%s19243_s30 + $0x104] ss:$0 sps:$4 sm:$0x11]   ;;  %16839 = vmatprep.subr.bf16.mxu0 %v18749_v7 }
  0x2d   : > { %v2480_v46 = vrot.slane %v14474_v38, 1  ;;  %2730 = vrot.lane.b32.xlu1 %v2536_v45, %s19110_s28  ;;  %v1281_v52 = vshll.u32 %v18657_v37, 16  ;;  %v1266_v53 = vrot.slane %v1264_v41, 1  ;;  %v1492_v54 = vshll.u32 %v19269_v31, 16  ;;  %v390_v0 = vld [vmem:[%s19243_s30 + $0x24] sm:$0xf]  ;;  %16840 = vmatpush3.bf16.msra.mxu0 %v18749_v7 }
  0x2e   : > { %v1497_v56 = vshll.u32 %v18654_v25, 16  ;;  %v1478_v57 = vshrl.u32 %v19266_v29, 16  ;;  %v1480_v58 = vshll.u32 %v19266_v29, 16  ;;  %v1278_v60 = vrot.slane %v1276_v51, 1  ;;  %v19310_v6 = vld [vmem:[%s19243_s30 + $0x28] sm:$0xf] }
  0x2f   : > { %v2482_v55 = vsel %vm2473_vm0, %v2480_v46, %v2481_v47  ;;  %v1283_v61 = vrot.slane %v1281_v52, 1  ;;  %v1267_v62 = vor.u32 %v1266_v53, %v1262_v40  ;;  %v1494_v63 = vrot.slane %v1492_v54, 1  ;;  %v19318_v12 = vld [vmem:[%s19243_s30 + $0x2c] ss:$0 sps:$4 sm:$0x11]   ;;  %v18754_v41 = vld [vmem:[%s24094_s3 + $0x58] sm:$0xff]  }
  0x30   : > { %2694 = vrot.lane.b32.xlu0 %v2482_v55, %s19110_s28  ;;  %v1499_v2 = vrot.slane %v1497_v56, 1  ;;  %v1482_v3 = vrot.slane %v1480_v58, 1  ;;  %v1487_v4 = vrot.slane %v1485_v16, 1  ;;  %v19307_v5 = vcombine.low %v426_v44, %v19287_v49  ;;  %v428_v17 = vld [vmem:[%s19243_s30 + $0x108] sm:$0xf]  ;;  %16283 = vmatprep.subr.bf16.mxu1 %v18754_v41  ;;  %v18755_v58 = vld [vmem:[%s24094_s3 + $0xe0] sm:$0xff]  }
  0x31   : > { %v1279_v8 = vor.u32 %v1278_v60, %v1274_v48  ;;  %v1272_v9 = vsel %vm1248_vm1, %v1267_v62, %v1271_v42  ;;  %v1495_v10 = vor.u32 %v1494_v63, %v1490_v43  ;;  %v1509_v11 = vshll.u32 %v19299_v59, 16  ;;  %v19327_v18 = vld [vmem:[%s19243_s30 + $0x10c] sm:$0xf]  ;;  %v392_v22 = vld [vmem:[%s19243_s30 + $0x30] sm:$0xf]  ;;  %16284 = vmatpush3.bf16.msra.mxu1 %v18754_v41  ;;  %16841 = vmatprep.subr.bf16.mxu0 %v18755_v58  ;;  %s14325_s14 = sshll.u32 %s364_s13, 2 }
  0x32   : > { %v1483_v13 = vor.u32 %v1482_v3, %v1478_v57  ;;  %v1502_v14 = vshrl.u32 %v19307_v5, 16  ;;  %v1504_v15 = vshll.u32 %v19307_v5, 16  ;;  %v19323_v16 = vcombine.low %v390_v0, %v19310_v6  ;;  %v19338_v28 = vld [vmem:[%s19243_s30 + $0x110] ss:$0 sps:$4 sm:$0x11]   ;;  %v18758_v0 = vld [vmem:[%s24094_s3 + $0xe8] sm:$0xff]   ;;  %16842 = vmatpush3.bf16.msra.mxu0 %v18755_v58  ;;  %s21067_s29 = scalar_lea.vmem %s24092_s1, %s14325_s14 }
  0x33   : > { %v1284_v19 = vsel %vm1248_vm1, %v1279_v8, %v1283_v61  ;;  %v1511_v20 = vrot.slane %v1509_v11, 1  ;;  %v1293_v21 = vshll.u32 %v19318_v12, 16  ;;  %v1500_v30 = vsel %vm1248_vm1, %v1495_v10, %v1499_v2  ;;  %v393_v34 = vld [vmem:[%s19243_s30 + $0x34] sm:$0xf]  ;;  %v621_v44 = vld [vmem:[%s19243_s30 + $0xfc] sm:$0xe]  ;;  %16843 = vmatprep.subr.bf16.mxu0 %v18758_v0 }
  0x34   : > { %2115 = vrot.lane.b32.xlu0 %v1272_v9, %s19111_s26  ;;  %2117 = vrot.lane.b32.xlu1 %v1284_v19, %s19111_s26  ;;  %v1488_v24 = vsel %vm1248_vm1, %v1483_v13, %v1487_v4  ;;  %v1506_v25 = vrot.slane %v1504_v15, 1  ;;  %v1286_v26 = vshrl.u32 %v19323_v16, 16  ;;  %v1288_v27 = vshll.u32 %v19323_v16, 16  ;;  %v19349_v40 = vld [vmem:[%s19243_s30 + $0x38] ss:$0 sps:$4 sm:$0x11]  }
  0x35   : > { %v1295_v32 = vrot.slane %v1293_v21, 1  ;;  %v19342_v33 = vcombine.low %v428_v17, %v19327_v18  ;;  %v1521_v38 = vshll.u32 %v19338_v28, 16  ;;  %v19346_v39 = vcombine.low %v392_v22, %v393_v34  ;;  %v603_v45 = vld [vmem:[%s19243_s30 + $0x24] sm:$0xe]  ;;  %v622_v51 = vld [vmem:[%s19243_s30 + $0x108] sm:$0xe] }
  0x36   : > { %v1507_v35 = vor.u32 %v1506_v25, %v1502_v14  ;;  %v1290_v37 = vrot.slane %v1288_v27, 1  ;;  %v604_v52 = vld [vmem:[%s19243_s30 + $0x30] sm:$0xe]  ;;  %v1305_v55 = vshll.u32 %v19349_v40, 16  ;;  %v14493_v56 = vcombine.low %v621_v44, %v19287_v49  ;;  %v430_v57 = vld [vmem:[%s19243_s30 + $0x114] sm:$0xf]  ;;  %16844 = vmatpush3.bf16.msra.mxu0 %v18758_v0 }
  0x37   : > { %v1514_v42 = vshrl.u32 %v19342_v33, 16  ;;  %v1516_v43 = vshll.u32 %v19342_v33, 16  ;;  %v1523_v48 = vrot.slane %v1521_v38, 1  ;;  %v1298_v50 = vshrl.u32 %v19346_v39, 16  ;;  %v19375_v63 = vld [vmem:[%s19243_s30 + $0x118] sm:$0xf] }
  0x38   : > { %2151 = vrot.lane.b32.xlu0 %v1488_v24, %s19111_s26  ;;  %2153 = vrot.lane.b32.xlu1 %v1500_v30, %s19111_s26  ;;  %v1512_v46 = vsel %vm1248_vm1, %v1507_v35, %v1511_v20  ;;  %v1291_v47 = vor.u32 %v1290_v37, %v1286_v26  ;;  %v1300_v54 = vshll.u32 %v19346_v39, 16  ;;  %v14475_v61 = vcombine.low %v603_v45, %v19310_v6  ;;  %v19383_v4 = vld [vmem:[%s19243_s30 + $0x11c] ss:$0 sps:$4 sm:$0x11]   ;;  %v19391_v15 = vld [vmem:[%s19243_s30 + $0x40] sm:$0xf] }
  0x39   : > { %v1518_v53 = vrot.slane %v1516_v43, 1  ;;  %v14494_v62 = vcombine.low %v622_v51, %v19327_v18  ;;  %v1307_v2 = vrot.slane %v1305_v55, 1  ;;  %v2538_v3 = vrot.slane %v19299_v59, 1  ;;  %v394_v10 = vld [vmem:[%s19243_s30 + $0x3c] sm:$0xf]  ;;  %p373_p1 = scmp.lt.s32.totalorder %s370_s8, 17 }
  0x3a   : > { %v1296_v60 = vsel %vm1248_vm1, %v1291_v47, %v1295_v32  ;;  %v1302_v1 = vrot.slane %v1300_v54, 1  ;;  %v2537_v6 = vrot.slane %v14493_v56, 1  ;;  %v2483_v7 = vrot.slane %v14475_v61, 1  ;;  %v432_v19 = vld [vmem:[%s19243_s30 + $0x120] sm:$0xf]  ;;  %s15642_s10 = sshll.u32 %s19092_s21, 7 }
  0x3b   : > { %v1519_v49 = vor.u32 %v1518_v53, %v1514_v42  ;;  %v2484_v8 = vrot.slane %v19318_v12, 1  ;;  %v14476_v9 = vcombine.low %v604_v52, %v393_v34  ;;  %v2540_v14 = vrot.slane %v14494_v62, 1  ;;  %v19398_v12 = vld [vmem:[%s19243_s30 + $0x44] ss:$0 sps:$4 sm:$0x11]   ;;  %s24373_s8 = smov (!%p373_p1, %s370_s8), 17 }
  0x3c   : > { %2119 = vrot.lane.b32.xlu0 %v1296_v60, %s19111_s26  ;;  %2155 = vrot.lane.b32.xlu1 %v1512_v46, %s19111_s26  ;;  %v1303_v13 = vor.u32 %v1302_v1, %v1298_v50  ;;  %v2541_v59 = vrot.slane %v19338_v28, 1  ;;  %v2487_v17 = vrot.slane %v19349_v40, 1  ;;  %v19395_v18 = vcombine.low %v430_v57, %v19375_v63  ;;  %v19407_v25 = vld [vmem:[%s19243_s30 + $0x124] sm:$0xf]  ;;  %v396_v40 = vld [vmem:[%s19243_s30 + $0x48] sm:$0xf] }
  0x3d   : > { %v1524_v11 = vsel %vm1248_vm1, %v1519_v49, %v1523_v48  ;;  %v2486_v21 = vrot.slane %v14476_v9, 1  ;;  %v1533_v22 = vshll.u32 %v19383_v4, 16  ;;  %v19404_v24 = vcombine.low %v394_v10, %v19391_v15  ;;  %v19416_v32 = vld [vmem:[%s19243_s30 + $0x128] ss:$0 sps:$4 sm:$0x11]   ;;  %s18572_s12 = smul.u32 54, %s24373_s8 }
  0x3e   : > { %v1308_v20 = vsel %vm1248_vm1, %v1303_v13, %v1307_v2  ;;  %v2539_v26 = vsel %vm2473_vm0, %v2537_v6, %v2538_v3  ;;  %v1526_v27 = vshrl.u32 %v19395_v18, 16  ;;  %v1528_v28 = vshll.u32 %v19395_v18, 16  ;;  %v19426_v44 = vld [vmem:[%s19243_s30 + $0x4c] sm:$0xf]  ;;  %v623_v55 = vld [vmem:[%s19243_s30 + $0x114] sm:$0xe] }
  0x3f   : > { %v1317_v30 = vshll.u32 %v19398_v12, 16  ;;  %v2485_v34 = vsel %vm2473_vm0, %v2483_v7, %v2484_v8  ;;  %v1310_v35 = vshrl.u32 %v19404_v24, 16  ;;  %v1312_v37 = vshll.u32 %v19404_v24, 16  ;;  %v19439_v54 = vld [vmem:[%s19243_s30 + $0x50] ss:$0 sps:$4 sm:$0x11]  }
  0x40   : > { %2157 = vrot.lane.b32.xlu1 %v1524_v11, %s19111_s26  ;;  %2121 = vrot.lane.b32.xlu0 %v1308_v20, %s19111_s26  ;;  %v19422_v38 = vcombine.low %v432_v19, %v19407_v25  ;;  %v1530_v41 = vrot.slane %v1528_v28, 1  ;;  %v1535_v42 = vrot.slane %v1533_v22, 1  ;;  %v1545_v47 = vshll.u32 %v19416_v32, 16  ;;  %v605_v61 = vld [vmem:[%s19243_s30 + $0x3c] sm:$0xe]  ;;  %s15510_s13 = sshll.u32 %s19096_s22, 9 }
  0x41   : > { %v1319_v43 = vrot.slane %v1317_v30, 1  ;;  %v1314_v45 = vrot.slane %v1312_v37, 1  ;;  %v19431_v48 = vcombine.low %v396_v40, %v19426_v44  ;;  %v2542_v50 = vsel %vm2473_vm0, %v2540_v14, %v2541_v59  ;;  %v624_v0 = vld [vmem:[%s19243_s30 + $0x120] sm:$0xe]  ;;  %v434_v6 = vld [vmem:[%s19243_s30 + $0x12c] sm:$0xf]  ;;  %s14182_s21 = sadd.s32 %s15642_s10, %s15510_s13 }
  0x42   : > { %v1540_v46 = vshll.u32 %v19422_v38, 16  ;;  %v2488_v51 = vsel %vm2473_vm0, %v2486_v21, %v2487_v17  ;;  %v1531_v52 = vor.u32 %v1530_v41, %v1526_v27  ;;  %v1538_v53 = vshrl.u32 %v19422_v38, 16  ;;  %v19452_v7 = vld [vmem:[%s19243_s30 + $0x130] sm:$0xf]  ;;  %v606_v17 = vld [vmem:[%s19243_s30 + $0x48] sm:$0xe] }
  0x43   : > { %v1315_v56 = vor.u32 %v1314_v45, %v1310_v35  ;;  %v1322_v58 = vshrl.u32 %v19431_v48, 16  ;;  %v1324_v60 = vshll.u32 %v19431_v48, 16  ;;  %v1329_v62 = vshll.u32 %v19439_v54, 16  ;;  %v19461_v59 = vld [vmem:[%s19243_s30 + $0x134] ss:$0 sps:$4 sm:$0x11]  }
  0x44   : > { %2732 = vrot.lane.b32.xlu1 %v2539_v26, %s19110_s28  ;;  %2696 = vrot.lane.b32.xlu0 %v2485_v34, %s19110_s28  ;;  %v1542_v57 = vrot.slane %v1540_v46, 1  ;;  %v14495_v1 = vcombine.low %v623_v55, %v19375_v63  ;;  %v2544_v2 = vrot.slane %v19383_v4, 1  ;;  %v14477_v3 = vcombine.low %v605_v61, %v19391_v15  ;;  %v398_v15 = vld [vmem:[%s19243_s30 + $0x54] sm:$0xf]  ;;  %v19469_v20 = vld [vmem:[%s19243_s30 + $0x58] sm:$0xf] }
  0x45   : > { %v1326_v49 = vrot.slane %v1324_v60, 1  ;;  %v1547_v9 = vrot.slane %v1545_v47, 1  ;;  %v2490_v10 = vrot.slane %v19398_v12, 1  ;;  %v14496_v63 = vcombine.low %v624_v0, %v19407_v25  ;;  %v19473_v25 = vld [vmem:[%s19243_s30 + $0x5c] ss:$0 sps:$4 sm:$0x11]  }
  0x46   : > { %v1543_v8 = vor.u32 %v1542_v57, %v1538_v53  ;;  %v1536_v4 = vsel %vm1248_vm1, %v1531_v52, %v1535_v42  ;;  %v1320_v11 = vsel %vm1248_vm1, %v1315_v56, %v1319_v43  ;;  %v1331_v14 = vrot.slane %v1329_v62, 1  ;;  %v436_v34 = vld [vmem:[%s19243_s30 + $0x138] sm:$0xf]  ;;  %v19484_v35 = vld [vmem:[%s19243_s30 + $0x13c] sm:$0xf] }
  0x47   : > { %v1327_v13 = vor.u32 %v1326_v49, %v1322_v58  ;;  %v19466_v19 = vcombine.low %v434_v6, %v19452_v7  ;;  %v2543_v12 = vrot.slane %v14495_v1, 1  ;;  %v2489_v21 = vrot.slane %v14477_v3, 1  ;;  %v400_v42 = vld [vmem:[%s19243_s30 + $0x60] sm:$0xf]  ;;  %v625_v61 = vld [vmem:[%s19243_s30 + $0x12c] sm:$0xe] }
  0x48   : > { %2734 = vrot.lane.b32.xlu1 %v2542_v50, %s19110_s28  ;;  %2698 = vrot.lane.b32.xlu0 %v2488_v51, %s19110_s28  ;;  %v2547_v22 = vrot.slane %v19416_v32, 1  ;;  %v1548_v26 = vsel %vm1248_vm1, %v1543_v8, %v1547_v9  ;;  %v2546_v27 = vrot.slane %v14496_v63, 1  ;;  %v19480_v30 = vcombine.low %v398_v15, %v19469_v20  ;;  %v19498_v51 = vld [vmem:[%s19243_s30 + $0x140] ss:$0 sps:$4 sm:$0x11]  }
  0x49   : > { %v1552_v28 = vshll.u32 %v19466_v19, 16  ;;  %v1332_v32 = vsel %vm1248_vm1, %v1327_v13, %v1331_v14  ;;  %v14478_v37 = vcombine.low %v606_v17, %v19426_v44  ;;  %v2493_v40 = vrot.slane %v19439_v54, 1  ;;  %v19501_v44 = vld [vmem:[%s19243_s30 + $0x64] sm:$0xf]  ;;  %v607_v17 = vld [vmem:[%s19243_s30 + $0x54] sm:$0xe] }
  0x4a   : > { %v19490_v41 = vcombine.low %v436_v34, %v19484_v35  ;;  %v1550_v43 = vshrl.u32 %v19466_v19, 16  ;;  %v1557_v45 = vshll.u32 %v19461_v59, 16  ;;  %v1336_v46 = vshll.u32 %v19480_v30, 16  ;;  %v19513_v60 = vld [vmem:[%s19243_s30 + $0x68] ss:$0 sps:$4 sm:$0x11]  }
  0x4b   : > { %v1341_v47 = vshll.u32 %v19473_v25, 16  ;;  %v1554_v50 = vrot.slane %v1552_v28, 1  ;;  %v1334_v52 = vshrl.u32 %v19480_v30, 16  ;;  %v19508_v55 = vcombine.low %v400_v42, %v19501_v44  ;;  %v19539_v28 = vld [vmem:[%s19243_s30 + $0x70] sm:$0xf] }
  0x4c   : > { %2159 = vrot.lane.b32.xlu1 %v1536_v4, %s19111_s26  ;;  %2123 = vrot.lane.b32.xlu0 %v1320_v11, %s19111_s26  ;;  %v1338_v53 = vrot.slane %v1336_v46, 1  ;;  %v1564_v54 = vshll.u32 %v19490_v41, 16  ;;  %v2545_v56 = vsel %vm2473_vm0, %v2543_v12, %v2544_v2  ;;  %v2491_v57 = vsel %vm2473_vm0, %v2489_v21, %v2490_v10  ;;  %v438_v2 = vld [vmem:[%s19243_s30 + $0x144] sm:$0xf]  ;;  %v19525_v4 = vld [vmem:[%s19243_s30 + $0x148] sm:$0xf] }
  0x4d   : > { %v2492_v58 = vrot.slane %v14478_v37, 1  ;;  %v2548_v62 = vsel %vm2473_vm0, %v2546_v27, %v2547_v22  ;;  %v1559_v0 = vrot.slane %v1557_v45, 1  ;;  %v1555_v49 = vor.u32 %v1554_v50, %v1550_v43  ;;  %v626_v12 = vld [vmem:[%s19243_s30 + $0x138] sm:$0xe]  ;;  %v402_v21 = vld [vmem:[%s19243_s30 + $0x6c] sm:$0xf] }
  0x4e   : > { %v1343_v1 = vrot.slane %v1341_v47, 1  ;;  %v1569_v3 = vshll.u32 %v19498_v51, 16  ;;  %v1348_v6 = vshll.u32 %v19508_v55, 16  ;;  %v1339_v8 = vor.u32 %v1338_v53, %v1334_v52  ;;  %v608_v46 = vld [vmem:[%s19243_s30 + $0x60] sm:$0xe] }
  0x4f   : > { %v1562_v9 = vshrl.u32 %v19490_v41, 16  ;;  %v1566_v10 = vrot.slane %v1564_v54, 1  ;;  %v14497_v63 = vcombine.low %v625_v61, %v19452_v7  ;;  %v2494_v11 = vsel %vm2473_vm0, %v2492_v58, %v2493_v40  ;;  %v19551_v47 = vld [vmem:[%s19243_s30 + $0x14c] ss:$0 sps:$4 sm:$0x11]  }
  0x50   : > { %2161 = vrot.lane.b32.xlu1 %v1548_v26, %s19111_s26  ;;  %2125 = vrot.lane.b32.xlu0 %v1332_v32, %s19111_s26  ;;  %v1346_v13 = vshrl.u32 %v19508_v55, 16  ;;  %v1350_v14 = vrot.slane %v1348_v6, 1  ;;  %v1353_v15 = vshll.u32 %v19513_v60, 16  ;;  %v1560_v22 = vsel %vm1248_vm1, %v1555_v49, %v1559_v0  ;;  %v440_v50 = vld [vmem:[%s19243_s30 + $0x150] sm:$0xf] }
  0x51   : > { %v1571_v26 = vrot.slane %v1569_v3, 1  ;;  %v2550_v7 = vrot.slane %v19461_v59, 1  ;;  %v19536_v27 = vcombine.low %v438_v2, %v19525_v4  ;;  %v1344_v34 = vsel %vm1248_vm1, %v1339_v8, %v1343_v1  ;;  %v19555_v52 = vld [vmem:[%s19243_s30 + $0x154] sm:$0xf]  ;;  %v19569_v61 = vld [vmem:[%s19243_s30 + $0x7c] sm:$0xf] }
  0x52   : > { %v1567_v32 = vor.u32 %v1566_v10, %v1562_v9  ;;  %v2549_v37 = vrot.slane %v14497_v63, 1  ;;  %v19545_v40 = vcombine.low %v402_v21, %v19539_v28  ;;  %v1351_v59 = vor.u32 %v1350_v14, %v1346_v13  ;;  %v19559_v54 = vld [vmem:[%s19243_s30 + $0x74] ss:$0 sps:$4 sm:$0x11]  }
  0x53   : > { %v1355_v42 = vrot.slane %v1353_v15, 1  ;;  %v14479_v43 = vcombine.low %v607_v17, %v19469_v20  ;;  %v14498_v45 = vcombine.low %v626_v12, %v19484_v35  ;;  %v1576_v53 = vshll.u32 %v19536_v27, 16  ;;  %v19584_v10 = vld [vmem:[%s19243_s30 + $0x158] ss:$0 sps:$4 sm:$0x11]  }
  0x54   : > { %2736 = vrot.lane.b32.xlu1 %v2545_v56, %s19110_s28  ;;  %2700 = vrot.lane.b32.xlu0 %v2491_v57, %s19110_s28  ;;  %v404_v56 = vld [vmem:[%s19243_s30 + $0x78] sm:$0xf]  ;;  %v1572_v57 = vsel %vm1248_vm1, %v1567_v32, %v1571_v26  ;;  %v2496_v20 = vrot.slane %v19473_v25, 1  ;;  %v14480_v35 = vcombine.low %v608_v46, %v19501_v44  ;;  %v1360_v58 = vshll.u32 %v19545_v40, 16  ;;  %v442_v32 = vld [vmem:[%s19243_s30 + $0x15c] sm:$0xf] }
  0x55   : > { %v2495_v0 = vrot.slane %v14479_v43, 1  ;;  %v2552_v49 = vrot.slane %v14498_v45, 1  ;;  %v19573_v1 = vcombine.low %v440_v50, %v19555_v52  ;;  %v2553_v3 = vrot.slane %v19498_v51, 1  ;;  %v19605_v43 = vld [vmem:[%s19243_s30 + $0x160] sm:$0xf] }
  0x56   : > { %v2499_v6 = vrot.slane %v19513_v60, 1  ;;  %v1581_v25 = vshll.u32 %v19551_v47, 16  ;;  %v19579_v44 = vcombine.low %v404_v56, %v19569_v61  ;;  %v1574_v2 = vshrl.u32 %v19536_v27, 16  ;;  %v609_v56 = vld [vmem:[%s19243_s30 + $0x6c] sm:$0xe] }
  0x57   : > { %v1578_v8 = vrot.slane %v1576_v53, 1  ;;  %v1365_v9 = vshll.u32 %v19559_v54, 16  ;;  %v2498_v51 = vrot.slane %v14480_v35, 1  ;;  %v1358_v60 = vshrl.u32 %v19545_v40, 16 }
  0x58   : > { %2738 = vrot.lane.b32.xlu1 %v2548_v62, %s19110_s28  ;;  %2702 = vrot.lane.b32.xlu0 %v2494_v11, %s19110_s28  ;;  %v1356_v62 = vsel %vm1248_vm1, %v1351_v59, %v1355_v42  ;;  %v1362_v63 = vrot.slane %v1360_v58, 1  ;;  %v19590_v11 = vld [vmem:[%s19243_s30 + $0x80] ss:$0 sps:$4 sm:$0x11]   ;;  %v2551_v13 = vsel %vm2473_vm0, %v2549_v37, %v2550_v7  ;;  %v2497_v14 = vsel %vm2473_vm0, %v2495_v0, %v2496_v20  ;;  %v19612_v20 = vld [vmem:[%s19243_s30 + $0x88] sm:$0xf] }
  0x59   : > { %v1588_v15 = vshll.u32 %v19573_v1, 16  ;;  %v1372_v17 = vshll.u32 %v19579_v44, 16  ;;  %v2554_v12 = vsel %vm2473_vm0, %v2552_v49, %v2553_v3  ;;  %v1579_v21 = vor.u32 %v1578_v8, %v1574_v2  ;;  %v628_v58 = vld [vmem:[%s19243_s30 + $0x150] sm:$0xe]  ;;  %v444_v2 = vld [vmem:[%s19243_s30 + $0x168] sm:$0xf] }
  0x5a   : > { %v1367_v26 = vrot.slane %v1365_v9, 1  ;;  %v2500_v7 = vsel %vm2473_vm0, %v2498_v51, %v2499_v6  ;;  %v1363_v37 = vor.u32 %v1362_v63, %v1358_v60  ;;  %v1593_v59 = vshll.u32 %v19584_v10, 16  ;;  %v19626_v8 = vld [vmem:[%s19243_s30 + $0x16c] sm:$0xf] }
  0x5b   : > { %v1377_v42 = vshll.u32 %v19590_v11, 16  ;;  %v1586_v45 = vshrl.u32 %v19573_v1, 16  ;;  %v1590_v46 = vrot.slane %v1588_v15, 1  ;;  %v1370_v50 = vshrl.u32 %v19579_v44, 16 }
  0x5c   : > { %2163 = vrot.lane.b32.xlu1 %v1560_v22, %s19111_s26  ;;  %2127 = vrot.lane.b32.xlu0 %v1344_v34, %s19111_s26  ;;  %v1583_v22 = vrot.slane %v1581_v25, 1  ;;  %v627_v34 = vld [vmem:[%s19243_s30 + $0x144] sm:$0xe]  ;;  %v1374_v53 = vrot.slane %v1372_v17, 1  ;;  %v19618_v0 = vcombine.low %v442_v32, %v19605_v43  ;;  %v1368_v49 = vsel %vm1248_vm1, %v1363_v37, %v1367_v26 }
  0x5d   : > { %v1595_v3 = vrot.slane %v1593_v59, 1  ;;  %v1379_v6 = vrot.slane %v1377_v42, 1  ;;  %v14499_v25 = vcombine.low %v627_v34, %v19525_v4  ;;  %v1591_v9 = vor.u32 %v1590_v46, %v1586_v45  ;;  %v19638_v17 = vld [vmem:[%s19243_s30 + $0x164] ss:$0 sps:$4 sm:$0x11]  }
  0x5e   : > { %v1584_v35 = vsel %vm1248_vm1, %v1579_v21, %v1583_v22  ;;  %v1375_v51 = vor.u32 %v1374_v53, %v1370_v50  ;;  %v14481_v60 = vcombine.low %v609_v56, %v19539_v28  ;;  %v14500_v15 = vcombine.low %v628_v58, %v19555_v52  ;;  %v19675_v56 = vld [vmem:[%s19243_s30 + $0x170] ss:$0 sps:$4 sm:$0x11]  }
  0x5f   : > { %v2556_v4 = vrot.slane %v19551_v47, 1  ;;  %v2502_v21 = vrot.slane %v19559_v54, 1  ;;  %v1600_v22 = vshll.u32 %v19618_v0, 16  ;;  %v19647_v28 = vcombine.low %v444_v2, %v19626_v8  ;;  %v19659_v47 = vld [vmem:[%s24094_s3] sm:$0xff]  }
  0x60   : > { %2165 = vrot.lane.b32.xlu1 %v1572_v57, %s19111_s26  ;;  %2129 = vrot.lane.b32.xlu0 %v1356_v62, %s19111_s26  ;;  %v406_v57 = vld [vmem:[%s19243_s30 + $0x84] sm:$0xf]  ;;  %v610_v62 = vld [vmem:[%s19243_s30 + $0x78] sm:$0xe]  ;;  %v2555_v26 = vrot.slane %v14499_v25, 1  ;;  %v2559_v52 = vrot.slane %v19584_v10, 1  ;;  %v1596_v54 = vsel %vm1248_vm1, %v1591_v9, %v1595_v3 }
  0x61   : > { %v19630_v63 = vcombine.low %v406_v57, %v19612_v20  ;;  %24173 = vst [vmem:[#allocation9_spill] sm:$0xff] %v19647_v28  ;;  %v14482_v34 = vcombine.low %v610_v62, %v19569_v61  ;;  %v2501_v37 = vrot.slane %v14481_v60, 1  ;;  %v19667_v61 = vld [vmem:[%s24094_s3 + $0xf0] sm:$0xff]   ;;  %v2558_v10 = vrot.slane %v14500_v15, 1  ;;  %16413 = vmatprep.subr.bf16.mxu1 %v19659_v47 }
  0x62   : > { %v2505_v42 = vrot.slane %v19590_v11, 1  ;;  %v1605_v45 = vshll.u32 %v19638_v17, 16  ;;  %v1598_v50 = vshrl.u32 %v19618_v0, 16  ;;  %v1602_v53 = vrot.slane %v1600_v22, 1  ;;  %16973 = vmatprep.subr.bf16.mxu0 %v19667_v61 }
  0x63   : > { %24172 = vst [vmem:[#allocation8_spill] sm:$0xff] %v19630_v63  ;;  %v1384_v59 = vshll.u32 %v19630_v63, 16  ;;  %v1612_v57 = vshll.u32 %v19647_v28, 16  ;;  %v2557_v11 = vsel %vm2473_vm0, %v2555_v26, %v2556_v4  ;;  %v2503_v62 = vsel %vm2473_vm0, %v2501_v37, %v2502_v21  ;;  %v446_v26 = vld [vmem:[%s19243_s30 + $0x174] sm:$0xf] }
  0x64   : > { %2740 = vrot.lane.b32.xlu1 %v2551_v13, %s19110_s28  ;;  %2704 = vrot.lane.b32.xlu0 %v2497_v14, %s19110_s28  ;;  %v408_v13 = vld [vmem:[%s19243_s30 + $0x90] sm:$0xf]  ;;  %v19634_v14 = vld [vmem:[%s19243_s30 + $0x94] sm:$0xf]  ;;  %v1382_v3 = vshrl.u32 %v19630_v63, 16  ;;  %v1607_v25 = vrot.slane %v1605_v45, 1  ;;  %v1603_v9 = vor.u32 %v1602_v53, %v1598_v50 }
  0x65   : > { %v19654_v32 = vcombine.low %v408_v13, %v19634_v14  ;;  %v1617_v60 = vshll.u32 %v19675_v56, 16  ;;  %v629_v13 = vld [vmem:[%s19243_s30 + $0x15c] sm:$0xe]  ;;  %v1614_v15 = vrot.slane %v1612_v57, 1  ;;  %v19699_v37 = vld [vmem:[%s19243_s30 + $0x178] sm:$0xf] }
  0x66   : > { %v19703_v45 = vld [vmem:[%s19243_s30 + $0xa0] sm:$0xf]  ;;  %v611_v50 = vld [vmem:[%s19243_s30 + $0x84] sm:$0xe]  ;;  %v1608_v53 = vsel %vm1248_vm1, %v1603_v9, %v1607_v25 }
  0x67   : > { %24174 = vst [vmem:[#allocation10_spill] sm:$0xff] %v19654_v32  ;;  %v1396_v58 = vshll.u32 %v19654_v32, 16  ;;  %v1394_v4 = vshrl.u32 %v19654_v32, 16  ;;  %v1619_v57 = vrot.slane %v1617_v60, 1  ;;  %v14483_v25 = vcombine.low %v611_v50, %v19612_v20  ;;  %v448_v9 = vld [vmem:[%s19243_s30 + $0x180] sm:$0xf] }
  0x68   : > { %2742 = vrot.lane.b32.xlu1 %v2554_v12, %s19110_s28  ;;  %2706 = vrot.lane.b32.xlu0 %v2500_v7, %s19110_s28  ;;  %v19641_v12 = vld [vmem:[%s19243_s30 + $0x8c] ss:$0 sps:$4 sm:$0x11]   ;;  %v1380_v7 = vsel %vm1248_vm1, %v1375_v51, %v1379_v6  ;;  %v1386_v6 = vrot.slane %v1384_v59, 1  ;;  %v1610_v51 = vshrl.u32 %v19647_v28, 16 }
  0x69   : > { %v1389_v46 = vshll.u32 %v19641_v12, 16  ;;  %v1398_v21 = vrot.slane %v1396_v58, 1  ;;  %v410_v59 = vld [vmem:[%s19243_s30 + $0x9c] sm:$0xf]  ;;  %v19728_v60 = vld [vmem:[%s19243_s30 + $0x184] sm:$0xf] }
  0x6a   : > { %v19716_v58 = vld [vmem:[%s19243_s30 + $0x17c] ss:$0 sps:$4 sm:$0x11]   ;;  %v20086_v63 = vld [vmem:[%s19243_s30 + $0x224] ss:$0 sps:$4 sm:$0x11]  }
  0x6b   : > { %v1391_v2 = vrot.slane %v1389_v46, 1  ;;  %v14501_v46 = vcombine.low %v629_v13, %v19605_v43  ;;  %v19719_v43 = vcombine.low %v410_v59, %v19703_v45  ;;  %v2562_v13 = vrot.slane %v19638_v17, 1  ;;  %v19754_v59 = vld [vmem:[%s19243_s30 + $0x188] ss:$0 sps:$4 sm:$0x11]  }
  0x6c   : > { %2167 = vrot.lane.b32.xlu1 %v1584_v35, %s19111_s26  ;;  %2131 = vrot.lane.b32.xlu0 %v1368_v49, %s19111_s26  ;;  %v19683_v35 = vld [vmem:[%s19243_s30 + $0x98] ss:$0 sps:$4 sm:$0x11]   ;;  %v2504_v49 = vrot.slane %v14482_v34, 1  ;;  %v2560_v34 = vsel %vm2473_vm0, %v2558_v10, %v2559_v52  ;;  %v612_v52 = vld [vmem:[%s19243_s30 + $0x90] sm:$0xe]  ;;  %v1615_v10 = vor.u32 %v1614_v15, %v1610_v51 }
  0x6d   : > { %v1401_v22 = vshll.u32 %v19683_v35, 16  ;;  %24176 = vst [vmem:[#allocation12_spill] sm:$0xff] %v19719_v43  ;;  %v2561_v51 = vrot.slane %v14501_v46, 1  ;;  %v412_v15 = vld [vmem:[%s19243_s30 + $0xa8] sm:$0xf] }
  0x6e   : > { %v1620_v20 = vsel %vm1248_vm1, %v1615_v10, %v1619_v57 }
  0x70   : > { %2169 = vrot.lane.b32.xlu1 %v1596_v54, %s19111_s26  ;;  %2133 = vrot.lane.b32.xlu0 %v1380_v7, %s19111_s26  ;;  %v2506_v54 = vsel %vm2473_vm0, %v2504_v49, %v2505_v42  ;;  %v1387_v7 = vor.u32 %v1386_v6, %v1382_v3  ;;  %v19713_v42 = vcombine.low %v446_v26, %v19699_v37  ;;  %v1403_v6 = vrot.slane %v1401_v22, 1  ;;  %v19733_v26 = vld [vmem:[%s19243_s30 + $0xac] sm:$0xf] }
  0x71   : > { %v1399_v3 = vor.u32 %v1398_v21, %v1394_v4  ;;  %v14484_v4 = vcombine.low %v612_v52, %v19634_v14  ;;  %v1408_v21 = vshll.u32 %v19719_v43, 16  ;;  %v19745_v22 = vcombine.low %v448_v9, %v19728_v60 }
  0x72   : > { %24175 = vst [vmem:[#allocation11_spill] sm:$0xff] %v19713_v42  ;;  %v1392_v49 = vsel %vm1248_vm1, %v1387_v7, %v1391_v2  ;;  %v2565_v2 = vrot.slane %v19675_v56, 1  ;;  %v1624_v17 = vshll.u32 %v19713_v42, 16  ;;  %v1629_v56 = vshll.u32 %v19716_v58, 16 }
  0x73   : > { %24177 = vst [vmem:[#allocation13_spill] sm:$0xff] %v19745_v22  ;;  %v19750_v14 = vcombine.low %v412_v15, %v19733_v26  ;;  %v2510_v50 = vrot.slane %v14484_v4, 1  ;;  %v1622_v57 = vshrl.u32 %v19713_v42, 16  ;;  %v1406_v52 = vshrl.u32 %v19719_v43, 16  ;;  %v450_v4 = vld [vmem:[%s19243_s30 + $0x18c] sm:$0xf] }
  0x74   : > { %2744 = vrot.lane.b32.xlu1 %v2557_v11, %s19110_s28  ;;  %2708 = vrot.lane.b32.xlu0 %v2503_v62, %s19110_s28  ;;  %v630_v11 = vld [vmem:[%s19243_s30 + $0x168] sm:$0xe]  ;;  %v19722_v62 = vld [vmem:[%s19243_s30 + $0xa4] ss:$0 sps:$4 sm:$0x11]   ;;  %v1410_v10 = vrot.slane %v1408_v21, 1 }
  0x75   : > { %24178 = vst [vmem:[#allocation14_spill] sm:$0xff] %v19750_v14  ;;  %v1413_v7 = vshll.u32 %v19722_v62, 16  ;;  %v1420_v9 = vshll.u32 %v19750_v14, 16  ;;  %v19782_v43 = vld [vmem:[%s19243_s30 + $0xb8] sm:$0xf] }
  0x76   : > { %v19812_v42 = vld [vmem:[%s19243_s30 + $0xbc] ss:$0 sps:$4 sm:$0x11]  }
  0x77   : > { %v1415_v15 = vrot.slane %v1413_v7, 1  ;;  %v414_v7 = vld [vmem:[%s19243_s30 + $0xb4] sm:$0xf] }
  0x78   : > { %2746 = vrot.lane.b32.xlu1 %v2560_v34, %s19110_s28  ;;  %2710 = vrot.lane.b32.xlu0 %v2506_v54, %s19110_s28  ;;  %v2508_v34 = vrot.slane %v19641_v12, 1  ;;  %v14502_v54 = vcombine.low %v630_v11, %v19626_v8  ;;  %v1404_v12 = vsel %vm1248_vm1, %v1399_v3, %v1403_v6  ;;  %v2507_v8 = vrot.slane %v14483_v25, 1  ;;  %v19765_v25 = vld [vmem:[%s19243_s30 + $0xb0] ss:$0 sps:$4 sm:$0x11]  }
  0x79   : > { %v1626_v11 = vrot.slane %v1624_v17, 1  ;;  %v2563_v3 = vsel %vm2473_vm0, %v2561_v51, %v2562_v13  ;;  %v631_v13 = vld [vmem:[%s19243_s30 + $0x174] sm:$0xe] }
  0x7a   : > { %v2564_v46 = vrot.slane %v14502_v54, 1  ;;  %v2509_v6 = vsel %vm2473_vm0, %v2507_v8, %v2508_v34  ;;  %v1641_v54 = vshll.u32 %v19754_v59, 16  ;;  %v613_v34 = vld [vmem:[%s19243_s30 + $0x9c] sm:$0xe]  ;;  %v1634_v8 = vshrl.u32 %v19745_v22, 16 }
  0x7b   : > { %v1627_v21 = vor.u32 %v1626_v11, %v1622_v57  ;;  %v2568_v57 = vrot.slane %v19716_v58, 1  ;;  %v2514_v11 = vrot.slane %v19722_v62, 1 }
  0x7c   : > { %2171 = vrot.lane.b32.xlu1 %v1608_v53, %s19111_s26  ;;  %2135 = vrot.lane.b32.xlu0 %v1392_v49, %s19111_s26  ;;  %v2511_v53 = vrot.slane %v19683_v35, 1  ;;  %v1636_v49 = vshll.u32 %v19745_v22, 16  ;;  %v1631_v35 = vrot.slane %v1629_v56, 1  ;;  %v2566_v17 = vsel %vm2473_vm0, %v2564_v46, %v2565_v2 }
  0x7d   : > { %v1418_v2 = vshrl.u32 %v19750_v14, 16  ;;  %v1422_v46 = vrot.slane %v1420_v9, 1  ;;  %v19799_v9 = vld [vmem:[%s19243_s30 + $0x19c] sm:$0xf] }
  0x7e   : > { %v2512_v51 = vsel %vm2473_vm0, %v2510_v50, %v2511_v53  ;;  %v1638_v56 = vrot.slane %v1636_v49, 1  ;;  %v1425_v50 = vshll.u32 %v19765_v25, 16  ;;  %v632_v53 = vld [vmem:[%s19243_s30 + $0x180] sm:$0xe]  ;;  %v19795_v49 = vcombine.low %v414_v7, %v19782_v43 }
  0x7f   : > { %v1632_v58 = vsel %vm1248_vm1, %v1627_v21, %v1631_v35  ;;  %v1423_v7 = vor.u32 %v1422_v46, %v1418_v2  ;;  %v19819_v35 = vld [vmem:[%s19243_s30 + $0xc4] sm:$0xf]  ;;  %v2571_v21 = vrot.slane %v19754_v59, 1  ;;  %v2517_v2 = vrot.slane %v19765_v25, 1 }
  0x80   : > { %2173 = vrot.lane.b32.xlu1 %v1620_v20, %s19111_s26  ;;  %2137 = vrot.lane.b32.xlu0 %v1404_v12, %s19111_s26  ;;  %v19771_v20 = vld [vmem:[%s19243_s30 + $0x190] sm:$0xf]  ;;  %v1411_v12 = vor.u32 %v1410_v10, %v1406_v52  ;;  %v14503_v52 = vcombine.low %v631_v13, %v19699_v37  ;;  %v14485_v10 = vcombine.low %v613_v34, %v19703_v45  ;;  %v614_v45 = vld [vmem:[%s19243_s30 + $0xa8] sm:$0xe]  ;;  %v1427_v14 = vrot.slane %v1425_v50, 1 }
  0x81   : > { %24180 = vst [vmem:[#allocation16_spill] sm:$0xff] %v19795_v49  ;;  %v1639_v62 = vor.u32 %v1638_v56, %v1634_v8  ;;  %v14504_v37 = vcombine.low %v632_v53, %v19728_v60  ;;  %v19807_v13 = vld [vmem:[%s19243_s30 + $0x194] ss:$0 sps:$4 sm:$0x11]   ;;  %v1432_v8 = vshll.u32 %v19795_v49, 16  ;;  %v14486_v56 = vcombine.low %v614_v45, %v19733_v26 }
  0x82   : > { %v1416_v34 = vsel %vm1248_vm1, %v1411_v12, %v1415_v15  ;;  %v2513_v60 = vrot.slane %v14485_v10, 1  ;;  %v1428_v46 = vsel %vm1248_vm1, %v1423_v7, %v1427_v14  ;;  %v1653_v59 = vshll.u32 %v19807_v13, 16  ;;  %v615_v7 = vld [vmem:[%s19243_s30 + $0xb4] sm:$0xe] }
  0x83   : > { %v2570_v12 = vrot.slane %v14504_v37, 1  ;;  %v1437_v10 = vshll.u32 %v19812_v42, 16  ;;  %v1434_v25 = vrot.slane %v1432_v8, 1  ;;  %v2516_v14 = vrot.slane %v14486_v56, 1 }
  0x84   : > { %2748 = vrot.lane.b32.xlu1 %v2563_v3, %s19110_s28  ;;  %2712 = vrot.lane.b32.xlu0 %v2509_v6, %s19110_s28  ;;  %v19788_v3 = vcombine.low %v450_v4, %v19771_v20  ;;  %v452_v6 = vld [vmem:[%s19243_s30 + $0x198] sm:$0xf]  ;;  %v1643_v4 = vrot.slane %v1641_v54, 1  ;;  %v2567_v54 = vrot.slane %v14503_v52, 1  ;;  %v2515_v37 = vsel %vm2473_vm0, %v2513_v60, %v2514_v11 }
  0x85   : > { %v1655_v45 = vrot.slane %v1653_v59, 1  ;;  %v14487_v60 = vcombine.low %v615_v7, %v19782_v43  ;;  %v19860_v59 = vld [vmem:[%s19243_s30 + $0x1cc] sm:$0xf]  ;;  %v2574_v43 = vrot.slane %v19807_v13, 1  ;;  %v616_v7 = vld [vmem:[%s19243_s30 + $0xc0] sm:$0xe] }
  0x86   : > { %24179 = vst [vmem:[#allocation15_spill] sm:$0xff] %v19788_v3  ;;  %v1648_v22 = vshll.u32 %v19788_v3, 16  ;;  %v1644_v15 = vsel %vm1248_vm1, %v1639_v62, %v1643_v4  ;;  %v1646_v50 = vshrl.u32 %v19788_v3, 16  ;;  %v633_v62 = vld [vmem:[%s19243_s30 + $0x18c] sm:$0xe]  ;;  %v2520_v13 = vrot.slane %v19812_v42, 1 }
  0x87   : > { %v19844_v4 = vld [vmem:[%s19243_s30 + $0xc8] ss:$0 sps:$4 sm:$0x11]   ;;  %v19896_v42 = vld [vmem:[%s19243_s30 + $0x1e4] sm:$0xf] }
  0x88   : > { %2750 = vrot.lane.b32.xlu1 %v2566_v17, %s19110_s28  ;;  %2714 = vrot.lane.b32.xlu0 %v2512_v51, %s19110_s28  ;;  %v19815_v17 = vcombine.low %v452_v6, %v19799_v9  ;;  %v416_v51 = vld [vmem:[%s19243_s30 + $0xc0] sm:$0xf]  ;;  %v1650_v52 = vrot.slane %v1648_v22, 1  ;;  %v2569_v22 = vsel %vm2473_vm0, %v2567_v54, %v2568_v57  ;;  %v14505_v57 = vcombine.low %v633_v62, %v19771_v20  ;;  %v634_v54 = vld [vmem:[%s19243_s30 + $0x198] sm:$0xe] }
  0x89   : > { %v19832_v53 = vcombine.low %v416_v51, %v19819_v35  ;;  %v19836_v6 = vld [vmem:[%s19243_s30 + $0x1a0] ss:$0 sps:$4 sm:$0x11]   ;;  %v1449_v11 = vshll.u32 %v19844_v4, 16 }
  0x8a   : > { %24181 = vst [vmem:[#allocation17_spill] sm:$0xff] %v19815_v17  ;;  %v1660_v26 = vshll.u32 %v19815_v17, 16  ;;  %v1651_v51 = vor.u32 %v1650_v52, %v1646_v50  ;;  %v1658_v8 = vshrl.u32 %v19815_v17, 16  ;;  %v460_v50 = vld [vmem:[%s19243_s30 + $0x1c8] sm:$0xf]  ;;  %v2572_v52 = vsel %vm2473_vm0, %v2570_v12, %v2571_v21 }
  0x8b   : > { %24182 = vst [vmem:[#allocation18_spill] sm:$0xff] %v19832_v53  ;;  %v2573_v21 = vrot.slane %v14505_v57, 1  ;;  %v14506_v12 = vcombine.low %v634_v54, %v19799_v9  ;;  %v464_v57 = vld [vmem:[%s19243_s30 + $0x1e0] sm:$0xf] }
  0x8c   : > { %2175 = vrot.lane.b32.xlu1 %v1632_v58, %s19111_s26  ;;  %2139 = vrot.lane.b32.xlu0 %v1416_v34, %s19111_s26  ;;  %v1430_v58 = vshrl.u32 %v19795_v49, 16  ;;  %v1444_v34 = vshll.u32 %v19832_v53, 16  ;;  %v1439_v49 = vrot.slane %v1437_v10, 1  ;;  %v1442_v10 = vshrl.u32 %v19832_v53, 16 }
  0x8d   : > { %v1656_v62 = vsel %vm1248_vm1, %v1651_v51, %v1655_v45  ;;  %v2519_v45 = vrot.slane %v14487_v60, 1  ;;  %v2577_v51 = vrot.slane %v19836_v6, 1  ;;  %v2576_v54 = vrot.slane %v14506_v12, 1  ;;  %v638_v60 = vld [vmem:[%s19243_s30 + $0x1c8] sm:$0xe] }
  0x8e   : > { %v1435_v56 = vor.u32 %v1434_v25, %v1430_v58  ;;  %v1446_v20 = vrot.slane %v1444_v34, 1  ;;  %v458_v58 = vld [vmem:[%s19243_s30 + $0x1bc] sm:$0xf]  ;;  %v19867_v25 = vld [vmem:[%s19243_s30 + $0x1c0] sm:$0xf]  ;;  %v14510_v3 = vcombine.low %v638_v60, %v19860_v59 }
  0x8f   : > { %v19881_v34 = vld [vmem:[%s19243_s30 + $0x1d0] ss:$0 sps:$4 sm:$0x11]   ;;  %v19921_v12 = vld [vmem:[%s19243_s30 + $0x1e8] ss:$0 sps:$4 sm:$0x11]  }
  0x90   : > { %2177 = vrot.lane.b32.xlu1 %v1644_v15, %s19111_s26  ;;  %2141 = vrot.lane.b32.xlu0 %v1428_v46, %s19111_s26  ;;  %v1662_v15 = vrot.slane %v1660_v26, 1  ;;  %v1665_v46 = vshll.u32 %v19836_v6, 16  ;;  %v2518_v26 = vsel %vm2473_vm0, %v2516_v14, %v2517_v2  ;;  %v1440_v17 = vsel %vm1248_vm1, %v1435_v56, %v1439_v49  ;;  %v19936_v60 = vld [vmem:[%s19243_s30 + $0x1dc] ss:$0 sps:$4 sm:$0x11]  }
  0x91   : > { %v19875_v2 = vcombine.low %v460_v50, %v19860_v59  ;;  %v1451_v14 = vrot.slane %v1449_v11, 1  ;;  %v19884_v49 = vcombine.low %v458_v58, %v19867_v25  ;;  %v1447_v9 = vor.u32 %v1446_v20, %v1442_v10  ;;  %v637_v50 = vld [vmem:[%s19243_s30 + $0x1bc] sm:$0xe]  ;;  %v19910_v10 = vld [vmem:[%s19243_s30 + $0x1d8] sm:$0xf] }
  0x93   : > { %24183 = vst [vmem:[#allocation19_spill] sm:$0xff] %v19875_v2  ;;  %24184 = vst [vmem:[#allocation20_spill] sm:$0xff] %v19884_v49  ;;  %v1708_v11 = vshll.u32 %v19875_v2, 16  ;;  %v1452_v20 = vsel %vm1248_vm1, %v1447_v9, %v1451_v14  ;;  %v14509_v14 = vcombine.low %v637_v50, %v19867_v25  ;;  %v2578_v50 = vsel %vm2473_vm0, %v2576_v54, %v2577_v51 }
  0x94   : > { %2752 = vrot.lane.b32.xlu1 %v2569_v22, %s19110_s28  ;;  %2716 = vrot.lane.b32.xlu0 %v2515_v37, %s19110_s28  ;;  %v1663_v22 = vor.u32 %v1662_v15, %v1658_v8  ;;  %v1667_v37 = vrot.slane %v1665_v46, 1  ;;  %v14488_v8 = vcombine.low %v616_v7, %v19819_v35  ;;  %v2523_v15 = vrot.slane %v19844_v4, 1  ;;  %v19890_v46 = vld [vmem:[%s19243_s30 + $0x1c4] ss:$0 sps:$4 sm:$0x11]  }
  0x95   : > { %v1713_v4 = vshll.u32 %v19881_v34, 16  ;;  %v1701_v7 = vshll.u32 %v19890_v46, 16  ;;  %v1710_v53 = vrot.slane %v1708_v11, 1  ;;  %v2521_v11 = vsel %vm2473_vm0, %v2519_v45, %v2520_v13  ;;  %v639_v13 = vld [vmem:[%s19243_s30 + $0x1d4] sm:$0xe] }
  0x96   : > { %v1668_v6 = vsel %vm1248_vm1, %v1663_v22, %v1667_v37  ;;  %v2522_v58 = vrot.slane %v14488_v8, 1  ;;  %v1706_v22 = vshrl.u32 %v19875_v2, 16  ;;  %v1694_v37 = vshrl.u32 %v19884_v49, 16  ;;  %v640_v8 = vld [vmem:[%s19243_s30 + $0x1e0] sm:$0xe] }
  0x97   : > { %v468_v2 = vld [vmem:[%s19243_s30 + $0x1f8] sm:$0xf]  ;;  %v1703_v32 = vrot.slane %v1701_v7, 1  ;;  %v14512_v45 = vcombine.low %v640_v8, %v19896_v42  ;;  %v2588_v51 = vrot.slane %v14510_v3, 1  ;;  %v2585_v54 = vrot.slane %v14509_v14, 1 }
  0x98   : > { %2754 = vrot.lane.b32.xlu1 %v2572_v52, %s19110_s28  ;;  %2718 = vrot.lane.b32.xlu0 %v2518_v26, %s19110_s28  ;;  %v1696_v52 = vshll.u32 %v19884_v49, 16  ;;  %v462_v26 = vld [vmem:[%s19243_s30 + $0x1d4] sm:$0xf]  ;;  %v1715_v49 = vrot.slane %v1713_v4, 1  ;;  %v19959_v8 = vld [vmem:[%s19243_s30 + $0x1f0] sm:$0xf] }
  0x99   : > { %v19926_v9 = vcombine.low %v462_v26, %v19910_v10  ;;  %v2524_v26 = vsel %vm2473_vm0, %v2522_v58, %v2523_v15  ;;  %v2592_v14 = vrot.slane %v19936_v60, 1  ;;  %v2594_v7 = vrot.slane %v14512_v45, 1  ;;  %v642_v45 = vld [vmem:[%s19243_s30 + $0x1f8] sm:$0xe] }
  0x9a   : > { %v1698_v59 = vrot.slane %v1696_v52, 1  ;;  %v1711_v52 = vor.u32 %v1710_v53, %v1706_v22  ;;  %v1725_v22 = vshll.u32 %v19936_v60, 16 }
  0x9b   : > { %v19892_v56 = vpop.permute.xlu1 %2728  ;;  %24186 = vst [vmem:[#allocation22_spill] sm:$0xff] %v19926_v9  ;;  %v1720_v15 = vshll.u32 %v19926_v9, 16 }
  0x9c   : > { %2179 = vrot.lane.b32.xlu1 %v1656_v62, %s19111_s26  ;;  %2143 = vrot.lane.b32.xlu0 %v1440_v17, %s19111_s26  ;;  %v19915_v62 = vcombine.low %v464_v57, %v19896_v42  ;;  %v2575_v17 = vsel %vm2473_vm0, %v2573_v21, %v2574_v43  ;;  %v2586_v43 = vrot.slane %v19890_v46, 1  ;;  %v1737_v21 = vshll.u32 %v19921_v12, 16  ;;  %v466_v42 = vld [vmem:[%s19243_s30 + $0x1ec] sm:$0xf] }
  0x9d   : > { %v19903_v35 = vpop.permute.xlu0 %2692  ;;  %v1699_v4 = vor.u32 %v1698_v59, %v1694_v37  ;;  %v1718_v59 = vshrl.u32 %v19926_v9, 16  ;;  %v1722_v28 = vrot.slane %v1720_v15, 1  ;;  %v19975_v60 = vcombine.low %v466_v42, %v19959_v8 }
  0x9e   : > { %24185 = vst [vmem:[#allocation21_spill] sm:$0xff] %v19915_v62  ;;  %v1730_v58 = vshrl.u32 %v19915_v62, 16 }
  0x9f   : > { %v19931_v57 = vpop.permute.xlu1 %2730  ;;  %24188 = vst [vmem:[#allocation24_spill] sm:$0xff] %v19975_v60  ;;  %v1704_v15 = vsel %vm1248_vm1, %v1699_v4, %v1703_v32  ;;  %v1744_v4 = vshll.u32 %v19975_v60, 16 }
  0xa0   : > { %2181 = vrot.lane.b32.xlu1 %v1668_v6, %s19111_s26  ;;  %2145 = vrot.lane.b32.xlu0 %v1452_v20, %s19111_s26  ;;  %v1732_v6 = vshll.u32 %v19915_v62, 16  ;;  %v19943_v20 = vld [vmem:[%s19243_s30 + $0x1fc] sm:$0xf] }
  0xa1   : > { %v19955_v46 = vcombine.low %v468_v2, %v19943_v20  ;;  %v1739_v2 = vrot.slane %v1737_v21, 1  ;;  %v19984_v21 = vld [vmem:[%s19243_s30 + $0x1f4] ss:$0 sps:$4 sm:$0x11]  }
  0xa2   : > { %v2695_v25 = vpop.permute.xlu0 %2694  ;;  %v1734_v53 = vrot.slane %v1732_v6, 1 }
  0xa3   : > { %24187 = vst [vmem:[#allocation23_spill] sm:$0xff] %v19955_v46  ;;  %v1754_v32 = vshrl.u32 %v19955_v46, 16 }
  0xa4   : > { %2756 = vrot.lane.b32.xlu1 %v2575_v17, %s19110_s28  ;;  %2720 = vrot.lane.b32.xlu0 %v2521_v11, %s19110_s28  ;;  %v14511_v17 = vcombine.low %v639_v13, %v19910_v10  ;;  %v19972_v10 = vld [vmem:[%s19243_s30 + $0x200] ss:$0 sps:$4 sm:$0x11]  }
  0xa6   : > { %v2116_v3 = vpop.permute.xlu0 %2115  ;;  %v2118_v37 = vpop.permute.xlu1 %2117 }
  0xa7   : > { %v2838_v11 = vsel %vm2834_vm2, %v19260_v23, %v2116_v3  ;;  %v2840_v62 = vsel %vm2834_vm2, %v19274_v36, %v2118_v37  ;;  %v1716_v36 = vsel %vm1248_vm1, %v1711_v52, %v1715_v49  ;;  %v1735_v49 = vor.u32 %v1734_v53, %v1730_v58  ;;  %v19995_v52 = vld [vmem:[%s19243_s30 + $0x214] sm:$0xf]  ;;  %v20007_v58 = vld [vmem:[%s19243_s30 + $0x218] ss:$0 sps:$4 sm:$0x11]  }
  0xa8   : > { %v2984_v6 = vsel %vm2979_vm3, %v2838_v11, %v19903_v35  ;;  %v2987_v23 = vsel %vm2979_vm3, %v2840_v62, %v2695_v25  ;;  %2758 = vrot.lane.b32.xlu1 %v2578_v50, %s19110_s28  ;;  %2722 = vrot.lane.b32.xlu0 %v2524_v26, %s19110_s28  ;;  %v1756_v35 = vshll.u32 %v19955_v46, 16  ;;  %v24189_v62 = vrot.slane %v19881_v34, 1  ;;  %v472_v26 = vld [vmem:[%s19243_s30 + $0x210] sm:$0xf]  ;;  %v641_v34 = vld [vmem:[%s19243_s30 + $0x1ec] sm:$0xe] }
  0xa9   : > { %3198 = vst.msk [vmem:[#allocation2 + $0x8] sm:$0xff] %vm3196_vm4, %v2984_v6  ;;  %3199 = vst.msk [vmem:[#allocation2 + $0x10] sm:$0xff] %vm3196_vm4, %v2987_v23  ;;  %v2587_v50 = vsel %vm2473_vm0, %v2585_v54, %v2586_v43  ;;  %v1727_v37 = vrot.slane %v1725_v22, 1  ;;  %v2591_v11 = vrot.slane %v14511_v17, 1  ;;  %v1723_v54 = vor.u32 %v1722_v28, %v1718_v59  ;;  %v470_v53 = vld [vmem:[%s19243_s30 + $0x204] sm:$0xf] }
  0xaa   : > { %v2152_v13 = vpop.permute.xlu0 %2151  ;;  %v2590_v25 = vsel %vm2473_vm0, %v2588_v51, %v24189_v62  ;;  %v2154_v42 = vpop.permute.xlu1 %2153  ;;  %v14514_v28 = vcombine.low %v642_v45, %v19943_v20  ;;  %v20021_v22 = vld [vmem:[%s19243_s30 + $0x208] sm:$0xf]  ;;  %v1758_v17 = vrot.slane %v1756_v35, 1  ;;  %v1749_v59 = vshll.u32 %v19984_v21, 16  ;;  %v644_v35 = vld [vmem:[%s19243_s30 + $0x210] sm:$0xe] }
  0xab   : > { %v2874_v3 = vsel %vm2834_vm2, %v19266_v29, %v2152_v13  ;;  %v2876_v51 = vsel %vm2834_vm2, %v19269_v31, %v2154_v42  ;;  %v1761_v31 = vshll.u32 %v19972_v10, 16  ;;  %v14513_v23 = vcombine.low %v641_v34, %v19959_v8  ;;  %v20044_v42 = vld [vmem:[%s19243_s30 + $0x22c] sm:$0xf] }
  0xac   : > { %v3038_v43 = vsel %vm2979_vm3, %v2874_v3, %v19892_v56  ;;  %v3041_v29 = vsel %vm2979_vm3, %v2876_v51, %v19931_v57  ;;  %2189 = vrot.lane.b32.xlu1 %v1716_v36, %s19111_s26  ;;  %2187 = vrot.lane.b32.xlu0 %v1704_v15, %s19111_s26  ;;  %v20018_v56 = vcombine.low %v472_v26, %v19995_v52  ;;  %v20030_v36 = vld [vmem:[%s19243_s30 + $0x20c] ss:$0 sps:$4 sm:$0x11]   ;;  %v24190_v13 = vrot.slane %v19921_v12, 1  ;;  %v476_v26 = vld [vmem:[%s19243_s30 + $0x228] sm:$0xf] }
  0xad   : > { %3216 = vst.msk [vmem:[#allocation2 + $0x98] sm:$0xff] %vm3196_vm4, %v3038_v43  ;;  %3217 = vst.msk [vmem:[#allocation2 + $0xa0] sm:$0xff] %vm3196_vm4, %v3041_v29  ;;  %v1740_v45 = vsel %vm1248_vm1, %v1735_v49, %v1739_v2  ;;  %v20039_v62 = vsel %vm2473_vm0, %v2591_v11, %v2592_v14  ;;  %v1742_v8 = vshrl.u32 %v19975_v60, 16  ;;  %v1746_v34 = vrot.slane %v1744_v4, 1  ;;  %v643_v12 = vld [vmem:[%s19243_s30 + $0x204] sm:$0xe] }
  0xae   : > { %v20024_v57 = vpop.permute.xlu0 %2119  ;;  %v2156_v20 = vpop.permute.xlu1 %2155  ;;  %v20036_v15 = vsel %vm2473_vm0, %v2594_v7, %v24190_v13  ;;  %v1785_v51 = vshll.u32 %v20007_v58, 16  ;;  %v20049_v2 = vcombine.low %v470_v53, %v20021_v22  ;;  %v18796_v7 = vld [vmem:[%s24094_s3 + $0x8] sm:$0xff]   ;;  %v1728_v49 = vsel %vm1248_vm1, %v1723_v54, %v1727_v37  ;;  %v474_v37 = vld [vmem:[%s19243_s30 + $0x21c] sm:$0xf]  ;;  %v20073_v54 = vld [vmem:[%s19243_s30 + $0x220] sm:$0xf] }
  0xaf   : > { %v20058_v11 = vrot.slane %v1761_v31, 1  ;;  %v20060_v43 = vrot.slane %v14514_v28, 1  ;;  %v1780_v4 = vshll.u32 %v20018_v56, 16  ;;  %v20064_v53 = vrot.slane %v14513_v23, 1 }
  0xb0   : > { %v4789_v3 = vld [vmem:[#allocation2 + $0x8] sm:$0xff]  ;;  %2766 = vrot.lane.b32.xlu1 %v2590_v25, %s19110_s28  ;;  %2764 = vrot.lane.b32.xlu0 %v2587_v50, %s19110_s28  ;;  %v4790_v14 = vld [vmem:[#allocation2 + $0x10] sm:$0xff]  ;;  %v1773_v29 = vshll.u32 %v20030_v36, 16  ;;  %v14516_v25 = vcombine.low %v644_v35, %v19995_v52  ;;  %v20069_v50 = vcombine.low %v476_v26, %v20044_v42  ;;  %v1751_v13 = vrot.slane %v1749_v59, 1  ;;  %v18795_v59 = vld [vmem:[%s24094_s3 + $0xf8] sm:$0xff]  }
  0xb1   : > { %16285 = vmatprep.mubr.msk.bf16.mxu1 %vm3196_vm4, %v4789_v3  ;;  %v2598_v3 = vrot.slane %v19984_v21, 1  ;;  %v1778_v23 = vshrl.u32 %v20018_v56, 16  ;;  %v14515_v6 = vcombine.low %v643_v12, %v20021_v22  ;;  %v20080_v60 = vld [vmem:[%s19243_s30 + $0x230] ss:$0 sps:$4 sm:$0x11]   ;;  %v1759_v35 = vor.u32 %v1758_v17, %v1754_v32 }
  0xb2   : > { %v2158_v31 = vpop.permute.xlu1 %2157  ;;  %16286 = vmatmul.mubr.msk.bf16.vlgmr.msra.gmra.mrb[0].mxu1 %vm3196_vm4, %v4790_v14  ;;  %v2122_v28 = vpop.permute.xlu0 %2121  ;;  %v1747_v26 = vor.u32 %v1746_v34, %v1742_v8  ;;  %v20082_v46 = vrot.slane %v1785_v51, 1  ;;  %v1768_v9 = vshll.u32 %v20049_v2, 16  ;;  %v1782_v32 = vrot.slane %v1780_v4, 1  ;;  %v646_v14 = vld [vmem:[%s19243_s30 + $0x228] sm:$0xe] }
  0xb3   : > { %16414 = vmatpush3.bf16.msra.mxu1 %v19659_v47  ;;  %v20097_v34 = vcombine.low %v474_v37, %v20073_v54  ;;  %v20100_v47 = vrot.slane %v1773_v29, 1  ;;  %v20102_v51 = vrot.slane %v14516_v25, 1  ;;  %v2842_v4 = vsel %vm2834_vm2, %v19323_v16, %v20024_v57  ;;  %v18797_v16 = vld [vmem:[%s24094_s3 + $0x100] sm:$0xff]  }
  0xb4   : > { %v8371_v52 = vld [vmem:[#allocation2 + $0x98] sm:$0xff]  ;;  %2193 = vrot.lane.b32.xlu1 %v1740_v45, %s19111_s26  ;;  %2191 = vrot.lane.b32.xlu0 %v1728_v49, %s19111_s26  ;;  %v8372_v22 = vld [vmem:[#allocation2 + $0xa0] sm:$0xff]  ;;  %v1804_v45 = vshll.u32 %v20069_v50, 16  ;;  %v2878_v49 = vsel %vm2834_vm2, %v19307_v5, %v2156_v20  ;;  %v1809_v25 = vshll.u32 %v20080_v60, 16  ;;  %v1770_v17 = vrot.slane %v1768_v9, 1 }
  0xb5   : > { %16845 = vmatprep.mubr.msk.bf16.mxu0 %vm3196_vm4, %v8371_v52  ;;  %16415 = vmatprep.subr.bf16.mxu1 %v18796_v7  ;;  %v20113_v52 = vrot.slane %v14515_v6, 1  ;;  %v1797_v5 = vshll.u32 %v20086_v63, 16  ;;  %v1802_v9 = vshrl.u32 %v20069_v50, 16  ;;  %v14518_v57 = vcombine.low %v646_v14, %v20044_v42  ;;  %v480_v6 = vld [vmem:[%s19243_s30 + $0x240] sm:$0xf] }
  0xb6   : > { %v2733_v37 = vpop.permute.xlu1 %2732  ;;  %16846 = vmatmul.mubr.msk.bf16.vlgmr.msra.gmra.mrb[0].mxu0 %vm3196_vm4, %v8372_v22  ;;  %v2697_v29 = vpop.permute.xlu0 %2696  ;;  %v20134_v20 = vld [vmem:[%s19243_s30 + $0x244] sm:$0xf]  ;;  %v1752_v22 = vsel %vm1248_vm1, %v1747_v26, %v1751_v13  ;;  %v2880_v42 = vsel %vm2834_vm2, %v19342_v33, %v2158_v31  ;;  %v2844_v14 = vsel %vm2834_vm2, %v19346_v39, %v2122_v28  ;;  %v1790_v13 = vshrl.u32 %v20097_v34, 16  ;;  %v20160_v31 = vld [vmem:[%s19243_s30 + $0x248] ss:$0 sps:$4 sm:$0x11]  }
  0xb7   : > { %v3044_v12 = vsel %vm2979_vm3, %v2878_v49, %v2733_v37  ;;  %v2990_v8 = vsel %vm2979_vm3, %v2842_v4, %v2697_v29  ;;  %16974 = vmatpush3.bf16.msra.mxu0 %v19667_v61  ;;  %16416 = vmatpush3.bf16.msra.mxu1 %v18796_v7  ;;  %v1792_v61 = vshll.u32 %v20097_v34, 16  ;;  %v1764_v7 = vsel %vm1248_vm1, %v1759_v35, %v20058_v11  ;;  %v645_v37 = vld [vmem:[%s19243_s30 + $0x21c] sm:$0xe] }
  0xb8   : > { %3218 = vst.msk [vmem:[#allocation2 + $0xa8] sm:$0xff] %vm3196_vm4, %v3044_v12  ;;  %3200 = vst.msk [vmem:[#allocation2 + $0x18] sm:$0xff] %vm3196_vm4, %v2990_v8  ;;  %2770 = vrot.lane.b32.xlu1 %v20036_v15, %s19110_s28  ;;  %2768 = vrot.lane.b32.xlu0 %v20039_v62, %s19110_s28  ;;  %v1806_v8 = vrot.slane %v1804_v45, 1  ;;  %v2613_v15 = vrot.slane %v20080_v60, 1  ;;  %v478_v62 = vld [vmem:[%s19243_s30 + $0x234] sm:$0xf]  ;;  %v20157_v33 = vcombine.low %v480_v6, %v20134_v20 }
  0xb9   : > { %v20142_v12 = vld [vmem:[%s19243_s30 + $0x238] sm:$0xf]  ;;  %16975 = vmatprep.subr.bf16.mxu0 %v18795_v59  ;;  %v20148_v11 = vrot.slane %v1809_v25, 1  ;;  %v20153_v45 = vrot.slane %v1797_v5, 1  ;;  %v1783_v39 = vor.u32 %v1782_v32, %v1778_v23  ;;  %v1794_v28 = vrot.slane %v1792_v61, 1  ;;  %v18808_v6 = vld [vmem:[%s24094_s3 + $0x108] sm:$0xff]  }
  0xba   : > { %v2735_v49 = vpop.permute.xlu1 %2734  ;;  %v2699_v4 = vpop.permute.xlu0 %2698  ;;  %v20168_v29 = vrot.slane %v14518_v57, 1  ;;  %v20171_v25 = vcombine.low %v478_v62, %v20142_v12  ;;  %v648_v5 = vld [vmem:[%s19243_s30 + $0x240] sm:$0xe]  ;;  %v2599_v32 = vsel %vm2473_vm0, %v20064_v53, %v2598_v3  ;;  %v24192_v61 = vshrl.u32 %v20049_v2, 16  ;;  %v651_v60 = vld [vmem:[%s19243_s30 + $0x264] sm:$0xe] }
  0xbb   : > { %v3047_v35 = vsel %vm2979_vm3, %v2880_v42, %v2735_v49  ;;  %v2993_v26 = vsel %vm2979_vm3, %v2844_v14, %v2699_v4  ;;  %16976 = vmatpush3.bf16.msra.mxu0 %v18795_v59  ;;  %v20174_v59 = vld [vmem:[%s19243_s30 + $0x23c] ss:$0 sps:$4 sm:$0x11]   ;;  %v14517_v14 = vcombine.low %v645_v37, %v20073_v54  ;;  %v647_v49 = vld [vmem:[%s19243_s30 + $0x234] sm:$0xe]  ;;  %v1828_v53 = vshll.u32 %v20157_v33, 16 }
  0xbc   : > { %3219 = vst.msk [vmem:[#allocation2 + $0xb0] sm:$0xff] %vm3196_vm4, %v3047_v35  ;;  %3201 = vst.msk [vmem:[#allocation2 + $0x20] sm:$0xff] %vm3196_vm4, %v2993_v26  ;;  %2197 = vrot.lane.b32.xlu1 %v1764_v7, %s19111_s26  ;;  %2195 = vrot.lane.b32.xlu0 %v1752_v22, %s19111_s26  ;;  %v24191_v7 = vrot.slane %v19972_v10, 1  ;;  %v1771_v57 = vor.u32 %v1770_v17, %v24192_v61  ;;  %v484_v22 = vld [vmem:[%s19243_s30 + $0x258] sm:$0xf]  ;;  %v1833_v3 = vshll.u32 %v20160_v31, 16 }
  0xbd   : > { %16977 = vmatprep.subr.bf16.mxu0 %v18797_v16  ;;  %v20194_v10 = vld [vmem:[%s19243_s30 + $0x25c] sm:$0xf]  ;;  %v20197_v4 = vld [vmem:[%s19243_s30 + $0x260] ss:$0 sps:$4 sm:$0x11]   ;;  %v1788_v54 = vsel %vm1248_vm1, %v1783_v39, %v20082_v46  ;;  %v24193_v17 = vrot.slane %v20007_v58, 1  ;;  %v14520_v58 = vcombine.low %v648_v5, %v20134_v20  ;;  %v1807_v61 = vor.u32 %v1806_v8, %v1802_v9 }
  0xbe   : > { %v2602_v23 = vsel %vm2473_vm0, %v20060_v43, %v24191_v7  ;;  %v2160_v62 = vpop.permute.xlu1 %2159  ;;  %v2124_v42 = vpop.permute.xlu0 %2123  ;;  %v1816_v26 = vshll.u32 %v20171_v25, 16  ;;  %v1821_v37 = vshll.u32 %v20174_v59, 16  ;;  %v482_v7 = vld [vmem:[%s19243_s30 + $0x24c] sm:$0xf]  ;;  %v20233_v20 = vrot.slane %v1833_v3, 1 }
  0xbf   : > { %v4791_v43 = vld [vmem:[#allocation2 + $0x18] sm:$0xff]  ;;  %v8373_v21 = vld [vmem:[#allocation2 + $0xa8] sm:$0xff]  ;;  %16978 = vmatpush3.bf16.msra.mxu0 %v18797_v16  ;;  %v2608_v35 = vsel %vm2473_vm0, %v20102_v51, %v24193_v17  ;;  %v1776_v16 = vsel %vm1248_vm1, %v1771_v57, %v20100_v47  ;;  %v20222_v51 = vld [vmem:[%s19243_s30 + $0x250] sm:$0xf]  ;;  %v20230_v47 = vcombine.low %v484_v22, %v20194_v10  ;;  %v2619_v5 = vrot.slane %v20160_v31, 1 }
  0xc0   : > { %2774 = vrot.lane.b32.xlu1 %v2602_v23, %s19110_s28  ;;  %2772 = vrot.lane.b32.xlu0 %v2599_v32, %s19110_s28  ;;  %v24194_v23 = vrot.slane %v20030_v36, 1  ;;  %v14519_v17 = vcombine.low %v647_v49, %v20142_v12  ;;  %v1830_v9 = vrot.slane %v1828_v53, 1  ;;  %v1814_v8 = vshrl.u32 %v20171_v25, 16  ;;  %v650_v3 = vld [vmem:[%s19243_s30 + $0x258] sm:$0xe] }
  0xc1   : > { %16289 = vmatprep.mubr.msk.bf16.mxu1 %vm3196_vm4, %v4791_v43  ;;  %16849 = vmatprep.mubr.msk.bf16.mxu0 %vm3196_vm4, %v8373_v21  ;;  %v20226_v43 = vrot.slane %v14517_v14, 1  ;;  %v2610_v21 = vrot.slane %v20086_v63, 1  ;;  %v1857_v22 = vshll.u32 %v20197_v4, 16  ;;  %v20242_v14 = vcombine.low %v482_v7, %v20222_v51 }
  0xc2   : > { %v2605_v46 = vsel %vm2473_vm0, %v20113_v52, %v24194_v23  ;;  %v2162_v39 = vpop.permute.xlu1 %2161  ;;  %v2126_v32 = vpop.permute.xlu0 %2125  ;;  %16979 = vmatprep.subr.bf16.mxu0 %v18808_v6  ;;  %v1826_v52 = vshrl.u32 %v20157_v33, 16  ;;  %v1795_v12 = vor.u32 %v1794_v28, %v1790_v13  ;;  %v20248_v49 = vrot.slane %v1821_v37, 1 }
  0xc3   : > { %v4792_v36 = vld [vmem:[#allocation2 + $0x20] sm:$0xff]  ;;  %v8374_v57 = vld [vmem:[#allocation2 + $0xb0] sm:$0xff]  ;;  %16980 = vmatpush3.bf16.msra.mxu0 %v18808_v6  ;;  %v1818_v6 = vrot.slane %v1816_v26, 1  ;;  %v2618_v53 = vrot.slane %v14520_v58, 1  ;;  %v2882_v7 = vsel %vm2834_vm2, %v19395_v18, %v2160_v62  ;;  %v1812_v13 = vsel %vm1248_vm1, %v1807_v61, %v20148_v11 }
  0xc4   : > { %2201 = vrot.lane.b32.xlu1 %v1788_v54, %s19111_s26  ;;  %2199 = vrot.lane.b32.xlu0 %v1776_v16, %s19111_s26  ;;  %v18822_v54 = vld [vmem:[%s24094_s3 + $0x10] sm:$0xff]   ;;  %v2846_v16 = vsel %vm2834_vm2, %v19404_v24, %v2124_v42  ;;  %v1852_v28 = vshll.u32 %v20230_v47, 16  ;;  %v2616_v18 = vrot.slane %v20174_v59, 1  ;;  %v1850_v62 = vshrl.u32 %v20230_v47, 16 }
  0xc5   : > { %16290 = vmatmul.mubr.msk.bf16.gmra.mrb[4].mxu1 %vm3196_vm4, %v4792_v36  ;;  %16850 = vmatmul.mubr.msk.bf16.gmra.mrb[4].mxu0 %vm3196_vm4, %v8374_v57  ;;  %v20262_v26 = vld [vmem:[%s19243_s30 + $0x254] ss:$0 sps:$4 sm:$0x11]   ;;  %v20266_v57 = vrot.slane %v14519_v17, 1  ;;  %v488_v24 = vld [vmem:[%s19243_s30 + $0x270] sm:$0xf]  ;;  %v14522_v17 = vcombine.low %v650_v3, %v20194_v10  ;;  %v2848_v10 = vsel %vm2834_vm2, %v19431_v48, %v2126_v32 }
  0xc6   : > { %v2737_v23 = vpop.permute.xlu1 %2736  ;;  %v2701_v36 = vpop.permute.xlu0 %2700  ;;  %16417 = vmatprep.subr.bf16.mxu1 %v18822_v54  ;;  %v18823_v11 = vld [vmem:[%s24094_s3 + $0x110] sm:$0xff]   ;;  %v20278_v42 = vrot.slane %v1857_v22, 1  ;;  %v1840_v61 = vshll.u32 %v20242_v14, 16 }
  0xc7   : > { %v3050_v37 = vsel %vm2979_vm3, %v2882_v7, %v2737_v23  ;;  %v2996_v58 = vsel %vm2979_vm3, %v2846_v16, %v2701_v36  ;;  %v20283_v7 = vld [vmem:[%s19243_s30 + $0x274] sm:$0xf]  ;;  %v1800_v16 = vsel %vm1248_vm1, %v1795_v12, %v20153_v45  ;;  %v1831_v23 = vor.u32 %v1830_v9, %v1826_v52  ;;  %16981 = vmatprep.subr.bf16.mxu0 %v18823_v11  ;;  %v649_v12 = vld [vmem:[%s19243_s30 + $0x24c] sm:$0xe] }
  0xc8   : > { %3220 = vst.msk [vmem:[#allocation2 + $0xb8] sm:$0xff] %vm3196_vm4, %v3050_v37  ;;  %3202 = vst.msk [vmem:[#allocation2 + $0x28] sm:$0xff] %vm3196_vm4, %v2996_v58  ;;  %2778 = vrot.lane.b32.xlu1 %v2608_v35, %s19110_s28  ;;  %2776 = vrot.lane.b32.xlu0 %v2605_v46, %s19110_s28  ;;  %v1819_v36 = vor.u32 %v1818_v6, %v1814_v8  ;;  %v486_v37 = vld [vmem:[%s19243_s30 + $0x264] sm:$0xf]  ;;  %v20289_v35 = vld [vmem:[%s19243_s30 + $0x268] sm:$0xf]  ;;  %v2884_v46 = vsel %vm2834_vm2, %v19422_v38, %v2162_v39 }
  0xc9   : > { %16418 = vmatpush3.bf16.msra.mxu1 %v18822_v54  ;;  %v1854_v58 = vrot.slane %v1852_v28, 1  ;;  %v1838_v45 = vshrl.u32 %v20242_v14, 16  ;;  %16982 = vmatpush3.bf16.msra.mxu0 %v18823_v11  ;;  %v1845_v8 = vshll.u32 %v20262_v26, 16  ;;  %v20301_v38 = vcombine.low %v488_v24, %v20283_v7  ;;  %v20304_v39 = vld [vmem:[%s19243_s30 + $0x278] ss:$0 sps:$4 sm:$0x11]  }
  0xca   : > { %v2739_v22 = vpop.permute.xlu1 %2738  ;;  %v2703_v3 = vpop.permute.xlu0 %2702  ;;  %v1842_v48 = vrot.slane %v1840_v61, 1  ;;  %v20310_v32 = vrot.slane %v14522_v17, 1  ;;  %v2625_v6 = vrot.slane %v20197_v4, 1  ;;  %v20314_v54 = vcombine.low %v486_v37, %v20289_v35  ;;  %v20317_v28 = vld [vmem:[%s19243_s30 + $0x26c] ss:$0 sps:$4 sm:$0x11]  }
  0xcb   : > { %v3053_v52 = vsel %vm2979_vm3, %v2884_v46, %v2739_v22  ;;  %v2999_v9 = vsel %vm2979_vm3, %v2848_v10, %v2703_v3  ;;  %v2614_v24 = vsel %vm2473_vm0, %v20168_v29, %v2613_v15  ;;  %v652_v11 = vld [vmem:[%s19243_s30 + $0x270] sm:$0xe]  ;;  %v14521_v37 = vcombine.low %v649_v12, %v20222_v51  ;;  %v454_v46 = vld [vmem:[%s19243_s30 + $0x1a4] sm:$0xf]  ;;  %v20337_v10 = vld [vmem:[%s19243_s30 + $0x1a8] sm:$0xf] }
  0xcc   : > { %3221 = vst.msk [vmem:[#allocation2 + $0xc0] sm:$0xff] %vm3196_vm4, %v3053_v52  ;;  %3203 = vst.msk [vmem:[#allocation2 + $0x30] sm:$0xff] %vm3196_vm4, %v2999_v9  ;;  %2205 = vrot.lane.b32.xlu1 %v1812_v13, %s19111_s26  ;;  %2203 = vrot.lane.b32.xlu0 %v1800_v16, %s19111_s26  ;;  %v2611_v13 = vsel %vm2473_vm0, %v20226_v43, %v2610_v21  ;;  %v20331_v16 = vsel %vm2473_vm0, %v2618_v53, %v2619_v5  ;;  %v1876_v31 = vshll.u32 %v20301_v38, 16  ;;  %v494_v3 = vld [vmem:[%s19243_s30 + $0x294] sm:$0xf] }
  0xcd   : > { %v1836_v29 = vsel %vm1248_vm1, %v1831_v23, %v20233_v20  ;;  %v1824_v43 = vsel %vm1248_vm1, %v1819_v36, %v20248_v49  ;;  %v1881_v21 = vshll.u32 %v20304_v39, 16  ;;  %v2622_v51 = vrot.slane %v20262_v26, 1  ;;  %v635_v23 = vld [vmem:[%s19243_s30 + $0x1a4] sm:$0xe]  ;;  %v20363_v52 = vld [vmem:[%s19243_s30 + $0x298] sm:$0xf] }
  0xce   : > { %v2164_v61 = vpop.permute.xlu1 %2163  ;;  %v2128_v17 = vpop.permute.xlu0 %2127  ;;  %v1864_v5 = vshll.u32 %v20314_v54, 16  ;;  %v1869_v53 = vshll.u32 %v20317_v28, 16  ;;  %v14524_v20 = vcombine.low %v652_v11, %v20283_v7  ;;  %v2617_v49 = vsel %vm2473_vm0, %v20266_v57, %v2616_v18  ;;  %v20370_v11 = vld [vmem:[%s19243_s30 + $0x1ac] ss:$0 sps:$4 sm:$0x11]  }
  0xcf   : > { %v4793_v15 = vld [vmem:[#allocation2 + $0x28] sm:$0xff]  ;;  %v8375_v63 = vld [vmem:[#allocation2 + $0xb8] sm:$0xff]  ;;  %v1855_v36 = vor.u32 %v1854_v58, %v1850_v62  ;;  %v20359_v22 = vcombine.low %v454_v46, %v20337_v10  ;;  %v1847_v7 = vrot.slane %v1845_v8, 1  ;;  %v14523_v59 = vcombine.low %v651_v60, %v20289_v35 }
  0xd0   : > { %2782 = vrot.lane.b32.xlu1 %v2614_v24, %s19110_s28  ;;  %2780 = vrot.lane.b32.xlu0 %v2611_v13, %s19110_s28  ;;  %v20365_v24 = vrot.slane %v14521_v37, 1  ;;  %v1874_v13 = vshrl.u32 %v20301_v38, 16  ;;  %v1843_v62 = vor.u32 %v1842_v48, %v1838_v45  ;;  %v20372_v58 = vrot.slane %v1876_v31, 1  ;;  %v20388_v48 = vld [vmem:[%s19243_s30 + $0x29c] ss:$0 sps:$4 sm:$0x11]  }
  0xd1   : > { %16293 = vmatprep.mubr.msk.bf16.mxu1 %vm3196_vm4, %v4793_v15  ;;  %16853 = vmatprep.mubr.msk.bf16.mxu0 %vm3196_vm4, %v8375_v63  ;;  %v20374_v46 = vrot.slane %v1881_v21, 1  ;;  %v20379_v8 = vrot.slane %v1869_v53, 1  ;;  %v20381_v37 = vrot.slane %v14524_v20, 1  ;;  %v14507_v35 = vcombine.low %v635_v23, %v20337_v10  ;;  %v20466_v4 = vld [vmem:[%s19243_s30 + $0x2bc] sm:$0xf] }
  0xd2   : > { %v2166_v9 = vpop.permute.xlu1 %2165  ;;  %v2130_v12 = vpop.permute.xlu0 %2129  ;;  %v20385_v45 = vcombine.low %v494_v3, %v20363_v52  ;;  %v1866_v60 = vrot.slane %v1864_v5, 1  ;;  %v2886_v10 = vsel %vm2834_vm2, %v19466_v19, %v2164_v61  ;;  %v2850_v31 = vsel %vm2834_vm2, %v19480_v30, %v2128_v17  ;;  %v496_v3 = vld [vmem:[%s19243_s30 + $0x2a0] sm:$0xf]  ;;  %v497_v5 = vld [vmem:[%s19243_s30 + $0x2a4] sm:$0xf]  ;;  %v18838_v19 = vld [vmem:[%s24094_s3 + $0x118] sm:$0xff]  }
  0xd3   : > { %v4794_v57 = vld [vmem:[#allocation2 + $0x30] sm:$0xff]  ;;  %v8376_v18 = vld [vmem:[#allocation2 + $0xc0] sm:$0xff]  ;;  %v20399_v20 = vrot.slane %v14523_v59, 1  ;;  %v1677_v23 = vshll.u32 %v20370_v11, 16  ;;  %v1670_v30 = vshrl.u32 %v20359_v22, 16  ;;  %v20418_v61 = vrot.slane %v14507_v35, 1  ;;  %16983 = vmatprep.subr.bf16.mxu0 %v18838_v19 }
  0xd4   : > { %2209 = vrot.lane.b32.xlu1 %v1836_v29, %s19111_s26  ;;  %2207 = vrot.lane.b32.xlu0 %v1824_v43, %s19111_s26  ;;  %v1672_v43 = vshll.u32 %v20359_v22, 16  ;;  %v20407_v29 = vld [vmem:[%s19243_s30 + $0x2a8] ss:$0 sps:$4 sm:$0x11]   ;;  %v1912_v17 = vshll.u32 %v20385_v45, 16  ;;  %v1917_v59 = vshll.u32 %v20388_v48, 16  ;;  %v2852_v35 = vsel %vm2834_vm2, %v19508_v55, %v2130_v12 }
  0xd5   : > { %16294 = vmatmul.mubr.msk.bf16.gmra.mrb[8].mxu1 %vm3196_vm4, %v4794_v57  ;;  %16854 = vmatmul.mubr.msk.bf16.gmra.mrb[8].mxu0 %vm3196_vm4, %v8376_v18  ;;  %v20432_v15 = vrot.slane %v1677_v23, 1  ;;  %v2626_v23 = vsel %vm2473_vm0, %v20310_v32, %v2625_v6 }
  0xd6   : > { %v2741_v21 = vpop.permute.xlu1 %2740  ;;  %v2705_v53 = vpop.permute.xlu0 %2704  ;;  %16984 = vmatpush3.bf16.msra.mxu0 %v18838_v19  ;;  %v1914_v55 = vrot.slane %v1912_v17, 1  ;;  %v1879_v19 = vor.u32 %v20372_v58, %v1874_v13  ;;  %v24195_v17 = vshrl.u32 %v20314_v54, 16 }
  0xd7   : > { %v3056_v57 = vsel %vm2979_vm3, %v2886_v10, %v2741_v21  ;;  %v3002_v18 = vsel %vm2979_vm3, %v2850_v31, %v2705_v53  ;;  %v1860_v10 = vsel %vm1248_vm1, %v1855_v36, %v20278_v42  ;;  %v1848_v31 = vsel %vm1248_vm1, %v1843_v62, %v1847_v7 }
  0xd8   : > { %3222 = vst.msk [vmem:[#allocation2 + $0xc8] sm:$0xff] %vm3196_vm4, %v3056_v57  ;;  %3204 = vst.msk [vmem:[#allocation2 + $0x38] sm:$0xff] %vm3196_vm4, %v3002_v18  ;;  %2786 = vrot.lane.b32.xlu1 %v20331_v16, %s19110_s28  ;;  %2784 = vrot.lane.b32.xlu0 %v2617_v49, %s19110_s28  ;;  %v1674_v21 = vrot.slane %v1672_v43, 1  ;;  %v2580_v53 = vrot.slane %v20370_v11, 1  ;;  %v655_v57 = vld [vmem:[%s19243_s30 + $0x294] sm:$0xe]  ;;  %v2888_v49 = vsel %vm2834_vm2, %v19490_v41, %v2166_v9 }
  0xd9   : > { %v656_v16 = vld [vmem:[%s19243_s30 + $0x2a0] sm:$0xe]  ;;  %v20434_v42 = vcombine.low %v496_v3, %v497_v5  ;;  %v1910_v62 = vshrl.u32 %v20385_v45, 16  ;;  %v1929_v41 = vshll.u32 %v20407_v29, 16  ;;  %v20444_v9 = vrot.slane %v1917_v59, 1 }
  0xda   : > { %v2743_v18 = vpop.permute.xlu1 %2742  ;;  %v2707_v63 = vpop.permute.xlu0 %2706  ;;  %v14527_v12 = vcombine.low %v655_v57, %v20363_v52  ;;  %v498_v43 = vld [vmem:[%s19243_s30 + $0x2ac] sm:$0xf]  ;;  %v2623_v3 = vsel %vm2473_vm0, %v20365_v24, %v2622_v51  ;;  %v1867_v52 = vor.u32 %v1866_v60, %v24195_v17  ;;  %v500_v59 = vld [vmem:[%s19243_s30 + $0x2b8] sm:$0xf]  ;;  %v2640_v51 = vrot.slane %v20388_v48, 1 }
  0xdb   : > { %v3059_v36 = vsel %vm2979_vm3, %v2888_v49, %v2743_v18  ;;  %v3005_v7 = vsel %vm2979_vm3, %v2852_v35, %v2707_v63  ;;  %v14528_v63 = vcombine.low %v656_v16, %v497_v5  ;;  %v20462_v5 = vld [vmem:[%s19243_s30 + $0x2b0] sm:$0xf]  ;;  %v1922_v26 = vshrl.u32 %v20434_v42, 16  ;;  %v20490_v18 = vld [vmem:[%s19243_s30 + $0x2c0] ss:$0 sps:$4 sm:$0x11]  }
  0xdc   : > { %3223 = vst.msk [vmem:[#allocation2 + $0xd0] sm:$0xff] %vm3196_vm4, %v3059_v36  ;;  %3205 = vst.msk [vmem:[#allocation2 + $0x40] sm:$0xff] %vm3196_vm4, %v3005_v7  ;;  %2213 = vrot.lane.b32.xlu1 %v1860_v10, %s19111_s26  ;;  %2211 = vrot.lane.b32.xlu0 %v1848_v31, %s19111_s26  ;;  %v1924_v6 = vshll.u32 %v20434_v42, 16  ;;  %v20472_v60 = vrot.slane %v1929_v41, 1  ;;  %v20479_v57 = vrot.slane %v14527_v12, 1  ;;  %v20484_v49 = vcombine.low %v498_v43, %v20462_v5 }
  0xdd   : > { %v20475_v31 = vld [vmem:[%s19243_s30 + $0x2b4] ss:$0 sps:$4 sm:$0x11]   ;;  %v20481_v16 = vrot.slane %v14528_v63, 1  ;;  %v20487_v35 = vcombine.low %v500_v59, %v20466_v4  ;;  %v1884_v36 = vsel %vm1248_vm1, %v1879_v19, %v20374_v46  ;;  %v1872_v7 = vsel %vm1248_vm1, %v1867_v52, %v20379_v8  ;;  %v657_v12 = vld [vmem:[%s19243_s30 + $0x2ac] sm:$0xe] }
  0xde   : > { %v2168_v10 = vpop.permute.xlu1 %2167  ;;  %v2132_v32 = vpop.permute.xlu0 %2131  ;;  %v1675_v41 = vor.u32 %v1674_v21, %v1670_v30  ;;  %v24196_v24 = vrot.slane %v20304_v39, 1  ;;  %v24197_v46 = vrot.slane %v20317_v28, 1  ;;  %v1926_v30 = vrot.slane %v1924_v6, 1 }
  0xdf   : > { %v4795_v13 = vld [vmem:[#allocation2 + $0x38] sm:$0xff]  ;;  %v8377_v58 = vld [vmem:[#allocation2 + $0xc8] sm:$0xff]  ;;  %v1941_v21 = vshll.u32 %v20475_v31, 16  ;;  %v1936_v19 = vshll.u32 %v20484_v49, 16  ;;  %v1948_v39 = vshll.u32 %v20487_v35, 16  ;;  %v2646_v28 = vrot.slane %v20475_v31, 1 }
  0xe0   : > { %2790 = vrot.lane.b32.xlu1 %v2626_v23, %s19110_s28  ;;  %2788 = vrot.lane.b32.xlu0 %v2623_v3, %s19110_s28  ;;  %v502_v23 = vld [vmem:[%s19243_s30 + $0x2c4] sm:$0xf]  ;;  %v20501_v3 = vld [vmem:[%s19243_s30 + $0x2c8] sm:$0xf]  ;;  %v2629_v8 = vsel %vm2473_vm0, %v20399_v20, %v24197_v46  ;;  %v1680_v20 = vsel %vm1248_vm1, %v1675_v41, %v20432_v15  ;;  %v2581_v52 = vsel %vm2473_vm0, %v20418_v61, %v2580_v53 }
  0xe1   : > { %16297 = vmatprep.mubr.msk.bf16.mxu1 %vm3196_vm4, %v4795_v13  ;;  %16857 = vmatprep.mubr.msk.bf16.mxu0 %vm3196_vm4, %v8377_v58  ;;  %v2632_v13 = vsel %vm2473_vm0, %v20381_v37, %v24196_v24  ;;  %v1953_v37 = vshll.u32 %v20490_v18, 16  ;;  %v1915_v6 = vor.u32 %v1914_v55, %v1910_v62  ;;  %v504_v24 = vld [vmem:[%s19243_s30 + $0x2d0] sm:$0xf]  ;;  %v20528_v58 = vld [vmem:[%s19243_s30 + $0x2d4] sm:$0xf]  ;;  %v14529_v15 = vcombine.low %v657_v12, %v20462_v5 }
  0xe2   : > { %v2170_v63 = vpop.permute.xlu1 %2169  ;;  %v2134_v43 = vpop.permute.xlu0 %2133  ;;  %v658_v41 = vld [vmem:[%s19243_s30 + $0x2b8] sm:$0xe]  ;;  %v20537_v11 = vcombine.low %v502_v23, %v20501_v3  ;;  %v20540_v61 = vld [vmem:[%s19243_s30 + $0x2cc] ss:$0 sps:$4 sm:$0x11]   ;;  %v1927_v55 = vor.u32 %v1926_v30, %v1922_v26  ;;  %v20552_v5 = vrot.slane %v1941_v21, 1  ;;  %v20556_v12 = vcombine.low %v504_v24, %v20528_v58 }
  0xe3   : > { %v4796_v17 = vld [vmem:[#allocation2 + $0x40] sm:$0xff]  ;;  %v8378_v59 = vld [vmem:[#allocation2 + $0xd0] sm:$0xff]  ;;  %v1950_v26 = vrot.slane %v1948_v39, 1  ;;  %v20558_v23 = vrot.slane %v1953_v37, 1  ;;  %v14530_v46 = vcombine.low %v658_v41, %v20466_v4  ;;  %v2856_v21 = vsel %vm2834_vm2, %v19579_v44, %v2134_v43 }
  0xe4   : > { %2217 = vrot.lane.b32.xlu1 %v1884_v36, %s19111_s26  ;;  %2215 = vrot.lane.b32.xlu0 %v1872_v7, %s19111_s26  ;;  %v2890_v36 = vsel %vm2834_vm2, %v19536_v27, %v2168_v10  ;;  %v2854_v7 = vsel %vm2834_vm2, %v19545_v40, %v2132_v32  ;;  %v1934_v27 = vshrl.u32 %v20484_v49, 16  ;;  %v20546_v10 = vld [vmem:[%s19243_s30 + $0x2d8] ss:$0 sps:$4 sm:$0x11]   ;;  %v1938_v40 = vrot.slane %v1936_v19, 1 }
  0xe5   : > { %16298 = vmatmul.mubr.msk.bf16.gmra.mrb[12].mxu1 %vm3196_vm4, %v4796_v17  ;;  %16858 = vmatmul.mubr.msk.bf16.gmra.mrb[12].mxu0 %vm3196_vm4, %v8378_v59  ;;  %v1946_v32 = vshrl.u32 %v20487_v35, 16  ;;  %v1960_v39 = vshll.u32 %v20537_v11, 16  ;;  %v1972_v44 = vshll.u32 %v20556_v12, 16  ;;  %v1920_v41 = vsel %vm1248_vm1, %v1915_v6, %v20444_v9 }
  0xe6   : > { %v2745_v17 = vpop.permute.xlu1 %2744  ;;  %v2709_v59 = vpop.permute.xlu0 %2708 }
  0xe7   : > { %v3062_v53 = vsel %vm2979_vm3, %v2890_v36, %v2745_v17  ;;  %v3008_v62 = vsel %vm2979_vm3, %v2854_v7, %v2709_v59  ;;  %v2645_v36 = vrot.slane %v14529_v15, 1  ;;  %v1965_v7 = vshll.u32 %v20540_v61, 16  ;;  %v20581_v59 = vld [vmem:[%s19243_s30 + $0x2e0] sm:$0xf] }
  0xe8   : > { %3224 = vst.msk [vmem:[#allocation2 + $0xd8] sm:$0xff] %vm3196_vm4, %v3062_v53  ;;  %3206 = vst.msk [vmem:[#allocation2 + $0x48] sm:$0xff] %vm3196_vm4, %v3008_v62  ;;  %2794 = vrot.lane.b32.xlu1 %v2632_v13, %s19110_s28  ;;  %2792 = vrot.lane.b32.xlu0 %v2629_v8, %s19110_s28  ;;  %v659_v13 = vld [vmem:[%s19243_s30 + $0x2c4] sm:$0xe]  ;;  %v2892_v8 = vsel %vm2834_vm2, %v19573_v1, %v2170_v63  ;;  %v1977_v17 = vshll.u32 %v20546_v10, 16  ;;  %v1932_v53 = vsel %vm1248_vm1, %v1927_v55, %v20472_v60 }
  0xe9   : > { %v660_v1 = vld [vmem:[%s19243_s30 + $0x2d0] sm:$0xe]  ;;  %v506_v63 = vld [vmem:[%s19243_s30 + $0x2dc] sm:$0xf]  ;;  %v14531_v43 = vcombine.low %v659_v13, %v20501_v3  ;;  %v1939_v62 = vor.u32 %v1938_v40, %v1934_v27  ;;  %v1958_v3 = vshrl.u32 %v20537_v11, 16  ;;  %v1962_v13 = vrot.slane %v1960_v39, 1 }
  0xea   : > { %v2747_v19 = vpop.permute.xlu1 %2746  ;;  %v2711_v24 = vpop.permute.xlu0 %2710  ;;  %v20584_v15 = vld [vmem:[%s19243_s30 + $0x2e4] ss:$0 sps:$4 sm:$0x11]   ;;  %v20596_v9 = vrot.slane %v1965_v7, 1  ;;  %v1970_v60 = vshrl.u32 %v20556_v12, 16  ;;  %v20599_v6 = vrot.slane %v1977_v17, 1  ;;  %v20602_v55 = vcombine.low %v506_v63, %v20581_v59 }
  0xeb   : > { %v3065_v37 = vsel %vm2979_vm3, %v2892_v8, %v2747_v19  ;;  %v3011_v4 = vsel %vm2979_vm3, %v2856_v21, %v2711_v24  ;;  %v1951_v8 = vor.u32 %v1950_v26, %v1946_v32  ;;  %v508_v21 = vld [vmem:[%s19243_s30 + $0x2e8] sm:$0xf]  ;;  %v2648_v24 = vrot.slane %v14530_v46, 1  ;;  %v661_v7 = vld [vmem:[%s19243_s30 + $0x2dc] sm:$0xe] }
  0xec   : > { %3225 = vst.msk [vmem:[#allocation2 + $0xe0] sm:$0xff] %vm3196_vm4, %v3065_v37  ;;  %3207 = vst.msk [vmem:[#allocation2 + $0x50] sm:$0xff] %vm3196_vm4, %v3011_v4  ;;  %2183 = vrot.lane.b32.xlu0 %v1680_v20, %s19111_s26  ;;  %2760 = vrot.lane.b32.xlu1 %v2581_v52, %s19110_s28  ;;  %v20592_v20 = vld [vmem:[%s19243_s30 + $0x2ec] sm:$0xf]  ;;  %v20606_v27 = vrot.slane %v14531_v43, 1  ;;  %v14532_v40 = vcombine.low %v660_v1, %v20528_v58  ;;  %v1974_v46 = vrot.slane %v1972_v44, 1 }
  0xed   : > { %24198 = vst [vmem:[#allocation25_spill] sm:$0xff] %v20602_v55  ;;  %v20611_v26 = vcombine.low %v508_v21, %v20592_v20  ;;  %v1989_v39 = vshll.u32 %v20584_v15, 16  ;;  %v2641_v58 = vsel %vm2473_vm0, %v20479_v57, %v2640_v51  ;;  %v24200_v1 = vrot.slane %v20407_v29, 1  ;;  %v662_v43 = vld [vmem:[%s19243_s30 + $0x2e8] sm:$0xe] }
  0xee   : > { %v2172_v52 = vpop.permute.xlu1 %2171  ;;  %v2136_v19 = vpop.permute.xlu0 %2135  ;;  %v20628_v44 = vld [vmem:[%s19243_s30 + $0x2f8] sm:$0xf]  ;;  %v1956_v48 = vsel %vm1248_vm1, %v1951_v8, %v20558_v23  ;;  %v20637_v29 = vsel %vm2473_vm0, %v2645_v36, %v2646_v28  ;;  %v1984_v51 = vshll.u32 %v20602_v55, 16  ;;  %v20641_v57 = vld [vmem:[%s19243_s30 + $0x2f0] ss:$0 sps:$4 sm:$0x11]   ;;  %v14533_v28 = vcombine.low %v661_v7, %v20581_v59 }
  0xef   : > { %v4797_v4 = vld [vmem:[#allocation2 + $0x48] sm:$0xff]  ;;  %v8379_v30 = vld [vmem:[#allocation2 + $0xd8] sm:$0xff]  ;;  %24199 = vst [vmem:[#allocation26_spill] sm:$0xff] %v20611_v26  ;;  %v2644_v63 = vsel %vm2473_vm0, %v20481_v16, %v24200_v1  ;;  %v24201_v16 = vrot.slane %v20490_v18, 1  ;;  %v20650_v23 = vrot.slane %v14532_v40, 1  ;;  %v1996_v31 = vshll.u32 %v20611_v26, 16 }
  0xf0   : > { %16301 = vmatprep.mubr.msk.bf16.mxu1 %vm3196_vm4, %v4797_v4  ;;  %16861 = vmatprep.mubr.msk.bf16.mxu0 %vm3196_vm4, %v8379_v30  ;;  %v1944_v4 = vsel %vm1248_vm1, %v1939_v62, %v20552_v5  ;;  %v20655_v36 = vld [vmem:[%s19243_s30 + $0x2fc] ss:$0 sps:$4 sm:$0x11]   ;;  %v512_v62 = vld [vmem:[%s19243_s30 + $0x300] sm:$0xf]  ;;  %v1963_v8 = vor.u32 %v1962_v13, %v1958_v3  ;;  %v1982_v1 = vshrl.u32 %v20602_v55, 16  ;;  %v14534_v18 = vcombine.low %v662_v43, %v20592_v20 }
  0xf1   : > { %2223 = vrot.lane.b32.xlu0 %v1920_v41, %s19111_s26  ;;  %2225 = vrot.lane.b32.xlu1 %v1932_v53, %s19111_s26  ;;  %v510_v41 = vld [vmem:[%s19243_s30 + $0x2f4] sm:$0xf]  ;;  %v20648_v5 = vsel %vm2473_vm0, %v2648_v24, %v24201_v16  ;;  %v20666_v40 = vld [vmem:[%s19243_s30 + $0x304] sm:$0xf]  ;;  %v2894_v59 = vsel %vm2834_vm2, %v19618_v0, %v2172_v52  ;;  %v1975_v13 = vor.u32 %v1974_v46, %v1970_v60  ;;  %v1986_v16 = vrot.slane %v1984_v51, 1 }
  0xf2   : > { %v2174_v30 = vpop.permute.xlu1 %2173  ;;  %v2138_v17 = vpop.permute.xlu0 %2137  ;;  %v20663_v24 = vcombine.low %v510_v41, %v20628_v44  ;;  %v24203_v7 = vld [vmem:[#allocation8_spill] sm:$0xff]  ;;  %v18848_v20 = vld [vmem:[%s24094_s3 + $0x18] sm:$0xff]   ;;  %v1998_v60 = vrot.slane %v1996_v31, 1  ;;  %v2001_v46 = vshll.u32 %v20641_v57, 16  ;;  %v663_v51 = vld [vmem:[%s19243_s30 + $0x2f4] sm:$0xe]  ;;  %v20701_v31 = vcombine.low %v512_v62, %v20666_v40 }
  0xf3   : > { %v4798_v53 = vld [vmem:[#allocation2 + $0x50] sm:$0xff]  ;;  %v8380_v21 = vld [vmem:[#allocation2 + $0xe0] sm:$0xff]  ;;  %16419 = vmatprep.subr.bf16.mxu1 %v18848_v20 }
  0xf4   : > { %16302 = vmatmul.mubr.msk.bf16.gmra.mrb[16].mxu1 %vm3196_vm4, %v4798_v53  ;;  %16862 = vmatmul.mubr.msk.bf16.gmra.mrb[16].mxu0 %vm3196_vm4, %v8380_v21  ;;  %24202 = vst [vmem:[#allocation27_spill] sm:$0xff] %v20663_v24  ;;  %v20669_v53 = vld [vmem:[%s19243_s30 + $0x308] ss:$0 sps:$4 sm:$0x11]   ;;  %v18849_v52 = vld [vmem:[%s24094_s3 + $0x120] sm:$0xff]   ;;  %24204 = vst [vmem:[#allocation8_spill] sm:$0xff] %v20701_v31 }
  0xf5   : > { %2800 = vrot.lane.b32.xlu0 %v2641_v58, %s19110_s28  ;;  %2802 = vrot.lane.b32.xlu1 %v2644_v63, %s19110_s28  ;;  %v2858_v58 = vsel %vm2834_vm2, %v24203_v7, %v2136_v19  ;;  %v20675_v63 = vrot.slane %v1989_v39, 1  ;;  %v1994_v19 = vshrl.u32 %v20611_v26, 16  ;;  %v20690_v39 = vrot.slane %v14533_v28, 1  ;;  %v664_v28 = vld [vmem:[%s19243_s30 + $0x300] sm:$0xe] }
  0xf6   : > { %v2749_v21 = vpop.permute.xlu1 %2748  ;;  %v2713_v3 = vpop.permute.xlu0 %2712  ;;  %v20697_v7 = vrot.slane %v14534_v18, 1  ;;  %v514_v18 = vld [vmem:[%s19243_s30 + $0x30c] sm:$0xf]  ;;  %v20712_v0 = vld [vmem:[%s19243_s30 + $0x310] sm:$0xf]  ;;  %17113 = vmatprep.subr.bf16.mxu0 %v18849_v52  ;;  %16420 = vmatpush3.bf16.msra.mxu1 %v18848_v20  ;;  %v2003_v37 = vrot.slane %v2001_v46, 1 }
  0xf7   : > { %v3068_v43 = vsel %vm2979_vm3, %v2894_v59, %v2749_v21  ;;  %v3014_v41 = vsel %vm2979_vm3, %v2858_v58, %v2713_v3  ;;  %v1968_v59 = vsel %vm1248_vm1, %v1963_v8, %v20596_v9  ;;  %v2008_v58 = vshll.u32 %v20663_v24, 16  ;;  %v24205_v21 = vld [vmem:[#allocation9_spill] sm:$0xff]  ;;  %v518_v20 = vld [vmem:[%s19243_s30 + $0x324] sm:$0xf] }
  0xf8   : > { %3226 = vst.msk [vmem:[#allocation2 + $0xe8] sm:$0xff] %vm3196_vm4, %v3068_v43  ;;  %3208 = vst.msk [vmem:[#allocation2 + $0x58] sm:$0xff] %vm3196_vm4, %v3014_v41  ;;  %v2896_v3 = vsel %vm2834_vm2, %v24205_v21, %v2174_v30  ;;  %v24206_v43 = vld [vmem:[#allocation10_spill] sm:$0xff]  ;;  %v2013_v9 = vshll.u32 %v20655_v36, 16  ;;  %v2025_v8 = vshll.u32 %v20669_v53, 16  ;;  %v1980_v30 = vsel %vm1248_vm1, %v1975_v13, %v20599_v6 }
  0xf9   : > { %2227 = vrot.lane.b32.xlu0 %v1944_v4, %s19111_s26  ;;  %2229 = vrot.lane.b32.xlu1 %v1956_v48, %s19111_s26  ;;  %v2860_v4 = vsel %vm2834_vm2, %v24206_v43, %v2138_v17  ;;  %v14535_v17 = vcombine.low %v663_v51, %v20628_v44  ;;  %v516_v21 = vld [vmem:[%s19243_s30 + $0x318] sm:$0xf]  ;;  %v20721_v43 = vld [vmem:[%s19243_s30 + $0x31c] sm:$0xf]  ;;  %v20735_v6 = vrot.slane %v2008_v58, 1  ;;  %v20740_v13 = vcombine.low %v514_v18, %v20712_v0 }
  0xfa   : > { %v2751_v48 = vpop.permute.xlu1 %2750  ;;  %v2715_v41 = vpop.permute.xlu0 %2714  ;;  %v20742_v51 = vrot.slane %v2013_v9, 1  ;;  %v20753_v18 = vld [vmem:[%s19243_s30 + $0x320] ss:$0 sps:$4 sm:$0x11]   ;;  %v1987_v9 = vor.u32 %v1986_v16, %v1982_v1  ;;  %v665_v44 = vld [vmem:[%s19243_s30 + $0x30c] sm:$0xe] }
  0xfb   : > { %v3071_v62 = vsel %vm2979_vm3, %v2896_v3, %v2751_v48  ;;  %v3017_v32 = vsel %vm2979_vm3, %v2860_v4, %v2715_v41  ;;  %v14536_v3 = vcombine.low %v664_v28, %v20666_v40  ;;  %v20729_v4 = vld [vmem:[%s19243_s30 + $0x314] ss:$0 sps:$4 sm:$0x11]   ;;  %24207 = vst [vmem:[#allocation9_spill] sm:$0xff] %v20740_v13  ;;  %v20745_v28 = vrot.slane %v2025_v8, 1 }
  0xfc   : > { %3227 = vst.msk [vmem:[#allocation2 + $0xf0] sm:$0xff] %vm3196_vm4, %v3071_v62  ;;  %3209 = vst.msk [vmem:[#allocation2 + $0x60] sm:$0xff] %vm3196_vm4, %v3017_v32  ;;  %v2020_v32 = vshll.u32 %v20701_v31, 16  ;;  %v20750_v41 = vrot.slane %v14535_v17, 1  ;;  %v1999_v62 = vor.u32 %v1998_v60, %v1994_v19  ;;  %v24209_v1 = vrot.slane %v20540_v61, 1 }
  0xfd   : > { %2804 = vrot.lane.b32.xlu0 %v20637_v29, %s19110_s28  ;;  %2806 = vrot.lane.b32.xlu1 %v20648_v5, %s19110_s28  ;;  %v20748_v5 = vcombine.low %v516_v21, %v20721_v43  ;;  %v20759_v8 = vrot.slane %v14536_v3, 1  ;;  %v2037_v21 = vshll.u32 %v20729_v4, 16  ;;  %v666_v29 = vld [vmem:[%s19243_s30 + $0x318] sm:$0xe]  ;;  %v24210_v19 = vrot.slane %v20546_v10, 1 }
  0xfe   : > { %v2176_v46 = vpop.permute.xlu1 %2175  ;;  %v2140_v40 = vpop.permute.xlu0 %2139  ;;  %v2022_v17 = vrot.slane %v2020_v32, 1  ;;  %v2653_v16 = vsel %vm2473_vm0, %v20606_v27, %v24209_v1  ;;  %v20779_v3 = vld [vmem:[%s19243_s30 + $0x328] sm:$0xf]  ;;  %v2049_v61 = vshll.u32 %v20753_v18, 16  ;;  %v14537_v27 = vcombine.low %v665_v44, %v20712_v0  ;;  %v24212_v44 = vld [vmem:[#allocation11_spill] sm:$0xff] }
  0xff   : > { %24208 = vst [vmem:[#allocation10_spill] sm:$0xff] %v20748_v5  ;;  %v4799_v58 = vld [vmem:[#allocation2 + $0x58] sm:$0xff]  ;;  %v8381_v48 = vld [vmem:[#allocation2 + $0xe8] sm:$0xff]  ;;  %v2656_v60 = vsel %vm2473_vm0, %v20650_v23, %v24210_v19  ;;  %v1992_v10 = vsel %vm1248_vm1, %v1987_v9, %v20675_v63  ;;  %v2004_v23 = vsel %vm1248_vm1, %v1999_v62, %v2003_v37  ;;  %v20789_v1 = vrot.slane %v2037_v21, 1  ;;  %v24213_v62 = vld [vmem:[#allocation12_spill] sm:$0xff] }
 0x100   : > { %16305 = vmatprep.mubr.msk.bf16.mxu1 %vm3196_vm4, %v4799_v58  ;;  %16865 = vmatprep.mubr.msk.bf16.mxu0 %vm3196_vm4, %v8381_v48  ;;  %v2032_v58 = vshll.u32 %v20740_v13, 16  ;;  %v14538_v19 = vcombine.low %v666_v29, %v20721_v43  ;;  %v20802_v37 = vcombine.low %v518_v20, %v20779_v3  ;;  %v2898_v9 = vsel %vm2834_vm2, %v24212_v44, %v2176_v46  ;;  %v667_v55 = vld [vmem:[%s19243_s30 + $0x324] sm:$0xe] }
 0x101   : > { %2231 = vrot.lane.b32.xlu0 %v1968_v59, %s19111_s26  ;;  %2233 = vrot.lane.b32.xlu1 %v1980_v30, %s19111_s26  ;;  %v2044_v30 = vshll.u32 %v20748_v5, 16  ;;  %v20793_v59 = vld [vmem:[%s19243_s30 + $0x32c] ss:$0 sps:$4 sm:$0x11]   ;;  %v2862_v43 = vsel %vm2834_vm2, %v24213_v62, %v2140_v40  ;;  %v20819_v46 = vrot.slane %v14537_v27, 1  ;;  %v24214_v40 = vrot.slane %v20584_v15, 1 }
 0x102   : > { %v2178_v48 = vpop.permute.xlu1 %2177  ;;  %v2142_v52 = vpop.permute.xlu0 %2141  ;;  %v20797_v0 = vrot.slane %v2032_v58, 1  ;;  %24211 = vst [vmem:[#allocation28_spill] sm:$0xff] %v20802_v37  ;;  %v20827_v44 = vrot.slane %v14538_v19, 1  ;;  %v522_v62 = vld [vmem:[%s19243_s30 + $0x33c] sm:$0xf] }
 0x103   : > { %v4800_v32 = vld [vmem:[#allocation2 + $0x60] sm:$0xff]  ;;  %v8382_v26 = vld [vmem:[#allocation2 + $0xf0] sm:$0xff] }
 0x104   : > { %16306 = vmatmul.mubr.msk.bf16.gmra.mrb[20].mxu1 %vm3196_vm4, %v4800_v32  ;;  %16866 = vmatmul.mubr.msk.bf16.gmra.mrb[20].mxu0 %vm3196_vm4, %v8382_v26  ;;  %v20813_v32 = vld [vmem:[%s19243_s30 + $0x334] sm:$0xf]  ;;  %v20817_v26 = vrot.slane %v2049_v61, 1  ;;  %v24215_v61 = vrot.slane %v20641_v57, 1 }
 0x105   : > { %2808 = vrot.lane.b32.xlu0 %v2653_v16, %s19110_s28  ;;  %2810 = vrot.lane.b32.xlu1 %v2656_v60, %s19110_s28  ;;  %v20808_v16 = vrot.slane %v2044_v30, 1  ;;  %v520_v60 = vld [vmem:[%s19243_s30 + $0x330] sm:$0xf]  ;;  %v2659_v30 = vsel %vm2473_vm0, %v20690_v39, %v24214_v40  ;;  %v2056_v39 = vshll.u32 %v20802_v37, 16  ;;  %v24220_v40 = vshrl.u32 %v20701_v31, 16 }
 0x106   : > { %v2753_v29 = vpop.permute.xlu1 %2752  ;;  %v2717_v21 = vpop.permute.xlu0 %2716  ;;  %v2662_v27 = vsel %vm2473_vm0, %v20697_v7, %v24215_v61  ;;  %v20839_v19 = vcombine.low %v520_v60, %v20813_v32  ;;  %v24219_v7 = vshrl.u32 %v20663_v24, 16  ;;  %v20855_v60 = vld [vmem:[%s19243_s30 + $0x340] sm:$0xf] }
 0x107   : > { %v3074_v63 = vsel %vm2979_vm3, %v2898_v9, %v2753_v29  ;;  %v3020_v20 = vsel %vm2979_vm3, %v2862_v43, %v2717_v21  ;;  %v2061_v9 = vshll.u32 %v20793_v59, 16  ;;  %v24218_v43 = vld [vmem:[#allocation14_spill] sm:$0xff]  ;;  %v2023_v61 = vor.u32 %v2022_v17, %v24220_v40 }
 0x108   : > { %3228 = vst.msk [vmem:[#allocation2 + $0xf8] sm:$0xff] %vm3196_vm4, %v3074_v63  ;;  %3210 = vst.msk [vmem:[#allocation2 + $0x68] sm:$0xff] %vm3196_vm4, %v3020_v20  ;;  %v20842_v63 = vld [vmem:[%s19243_s30 + $0x338] ss:$0 sps:$4 sm:$0x11]   ;;  %v2864_v57 = vsel %vm2834_vm2, %v24218_v43, %v2142_v52  ;;  %v2011_v20 = vor.u32 %v20735_v6, %v24219_v7  ;;  %v2068_v6 = vshll.u32 %v20839_v19, 16  ;;  %v20869_v17 = vcombine.low %v522_v62, %v20855_v60 }
 0x109   : > { %2235 = vrot.lane.b32.xlu0 %v1992_v10, %s19111_s26  ;;  %2237 = vrot.lane.b32.xlu1 %v2004_v23, %s19111_s26  ;;  %24216 = vst [vmem:[#allocation11_spill] sm:$0xff] %v20839_v19  ;;  %v24217_v10 = vld [vmem:[#allocation13_spill] sm:$0xff]  ;;  %v20865_v52 = vrot.slane %v2061_v9, 1  ;;  %v2073_v9 = vshll.u32 %v20842_v63, 16  ;;  %v14539_v62 = vcombine.low %v667_v55, %v20779_v3  ;;  %v2066_v7 = vshrl.u32 %v20839_v19, 16 }
 0x10a   : > { %v2900_v23 = vsel %vm2834_vm2, %v24217_v10, %v2178_v48  ;;  %v2755_v29 = vpop.permute.xlu1 %2754  ;;  %v2719_v21 = vpop.permute.xlu0 %2718  ;;  %v668_v48 = vld [vmem:[%s19243_s30 + $0x330] sm:$0xe]  ;;  %24221 = vst [vmem:[#allocation12_spill] sm:$0xff] %v20869_v17  ;;  %v24223_v55 = vrot.slane %v20655_v36, 1  ;;  %v2070_v19 = vrot.slane %v2068_v6, 1 }
 0x10b   : > { %v3077_v15 = vsel %vm2979_vm3, %v2900_v23, %v2755_v29  ;;  %v3023_v58 = vsel %vm2979_vm3, %v2864_v57, %v2719_v21  ;;  %v14540_v57 = vcombine.low %v668_v48, %v20813_v32  ;;  %v20888_v29 = vld [vmem:[%s19243_s30 + $0x280] sm:$0xf]  ;;  %v24224_v32 = vrot.slane %v20669_v53, 1 }
 0x10c   : > { %3229 = vst.msk [vmem:[#allocation2 + $0x100] sm:$0xff] %vm3196_vm4, %v3077_v15  ;;  %3211 = vst.msk [vmem:[#allocation2 + $0x70] sm:$0xff] %vm3196_vm4, %v3023_v58  ;;  %v2016_v15 = vsel %vm1248_vm1, %v2011_v20, %v20742_v51  ;;  %v2028_v58 = vsel %vm1248_vm1, %v2023_v61, %v20745_v28  ;;  %v490_v51 = vld [vmem:[%s19243_s30 + $0x27c] sm:$0xf]  ;;  %v24222_v28 = vshrl.u32 %v20740_v13, 16  ;;  %v2080_v20 = vshll.u32 %v20869_v17, 16 }
 0x10d   : > { %2812 = vrot.lane.b32.xlu0 %v2659_v30, %s19110_s28  ;;  %2814 = vrot.lane.b32.xlu1 %v2662_v27, %s19110_s28  ;;  %v20879_v27 = vld [vmem:[%s19243_s30 + $0x344] ss:$0 sps:$4 sm:$0x11]   ;;  %v2665_v3 = vsel %vm2473_vm0, %v20750_v41, %v24223_v55  ;;  %v2668_v48 = vsel %vm2473_vm0, %v20759_v8, %v24224_v32  ;;  %v2075_v36 = vrot.slane %v2073_v9, 1  ;;  %v2676_v13 = vrot.slane %v20793_v59, 1 }
 0x10e   : > { %v2180_v10 = vpop.permute.xlu1 %2179  ;;  %v2144_v23 = vpop.permute.xlu0 %2143  ;;  %v2035_v21 = vor.u32 %v20797_v0, %v24222_v28  ;;  %v2058_v28 = vrot.slane %v2056_v39, 1  ;;  %v2675_v53 = vrot.slane %v14539_v62, 1  ;;  %v20914_v41 = vrot.slane %v14540_v57, 1  ;;  %v20927_v9 = vld [vmem:[%s19243_s30 + $0x284] ss:$0 sps:$4 sm:$0x11]  }
 0x10f   : > { %v4801_v30 = vld [vmem:[#allocation2 + $0x68] sm:$0xff]  ;;  %v20875_v43 = vld [vmem:[#allocation2 + $0xf8] sm:$0xff]  ;;  %v2085_v39 = vshll.u32 %v20879_v27, 16  ;;  %v20924_v6 = vcombine.low %v490_v51, %v20888_v29  ;;  %v24228_v32 = vld [vmem:[#allocation16_spill] sm:$0xff] }
 0x110   : > { %16309 = vmatprep.mubr.msk.bf16.mxu1 %vm3196_vm4, %v4801_v30  ;;  %16869 = vmatprep.mubr.msk.bf16.mxu0 %vm3196_vm4, %v20875_v43  ;;  %v2040_v59 = vsel %vm1248_vm1, %v2035_v21, %v20789_v1  ;;  %v524_v62 = vld [vmem:[%s19243_s30 + $0x348] sm:$0xf]  ;;  %v24227_v57 = vld [vmem:[#allocation15_spill] sm:$0xff]  ;;  %v2082_v1 = vrot.slane %v2080_v20, 1  ;;  %v20937_v21 = vld [vmem:[%s19243_s30 + $0x34c] sm:$0xf] }
 0x111   : > { %2239 = vrot.lane.b32.xlu0 %v2016_v15, %s19111_s26  ;;  %2241 = vrot.lane.b32.xlu1 %v2028_v58, %s19111_s26  ;;  %v24225_v15 = vshrl.u32 %v20748_v5, 16  ;;  %24226 = vst [vmem:[#allocation13_spill] sm:$0xff] %v20924_v6  ;;  %v2902_v55 = vsel %vm2834_vm2, %v24227_v57, %v2180_v10  ;;  %v18853_v51 = vld [vmem:[%s24094_s3 + $0x20] sm:$0xff]   ;;  %v24229_v10 = vrot.slane %v20729_v4, 1  ;;  %v20959_v4 = vcombine.low %v524_v62, %v20937_v21 }
 0x112   : > { %v2182_v40 = vpop.permute.xlu1 %2181  ;;  %v2146_v61 = vpop.permute.xlu0 %2145  ;;  %16421 = vmatprep.subr.bf16.mxu1 %v18853_v51 }
 0x113   : > { %v2047_v0 = vor.u32 %v20808_v16, %v24225_v15  ;;  %v4802_v58 = vld [vmem:[#allocation2 + $0x70] sm:$0xff]  ;;  %v20908_v30 = vld [vmem:[#allocation2 + $0x100] sm:$0xff]  ;;  %v2078_v16 = vshrl.u32 %v20869_v17, 16  ;;  %v2866_v15 = vsel %vm2834_vm2, %v24228_v32, %v2144_v23  ;;  %v24230_v23 = vrot.slane %v20753_v18, 1  ;;  %24231 = vst [vmem:[#allocation14_spill] sm:$0xff] %v20959_v4  ;;  %16422 = vmatpush3.bf16.msra.mxu1 %v18853_v51 }
 0x114   : > { %16310 = vmatmul.mubr.msk.bf16.gmra.mrb[24].mxu1 %vm3196_vm4, %v4802_v58  ;;  %16870 = vmatmul.mubr.msk.bf16.gmra.mrb[24].mxu0 %vm3196_vm4, %v20908_v30 }
 0x115   : > { %2816 = vrot.lane.b32.xlu0 %v2665_v3, %s19110_s28  ;;  %2818 = vrot.lane.b32.xlu1 %v2668_v48, %s19110_s28  ;;  %v2052_v48 = vsel %vm1248_vm1, %v2047_v0, %v20817_v26  ;;  %v2671_v26 = vsel %vm2473_vm0, %v20819_v46, %v24229_v10  ;;  %v2674_v20 = vsel %vm2473_vm0, %v20827_v44, %v24230_v23  ;;  %v1888_v0 = vshll.u32 %v20924_v6, 16  ;;  %v24232_v46 = vld [vmem:[#allocation17_spill] sm:$0xff] }
 0x116   : > { %v2757_v3 = vpop.permute.xlu1 %2756  ;;  %v2721_v58 = vpop.permute.xlu0 %2720  ;;  %v24234_v44 = vshrl.u32 %v20802_v37, 16  ;;  %v24248_v37 = vld [vmem:[#allocation24_spill] sm:$0xff] }
 0x117   : > { %v3080_v8 = vsel %vm2979_vm3, %v2902_v55, %v2757_v3  ;;  %v3026_v17 = vsel %vm2979_vm3, %v2866_v15, %v2721_v58  ;;  %v2071_v15 = vor.u32 %v2070_v19, %v2066_v7  ;;  %v384_v3 = vld [vmem:[%s19243_s30] sm:$0xf]  ;;  %v2092_v19 = vshll.u32 %v20959_v4, 16  ;;  %v653_v7 = vld [vmem:[%s19243_s30 + $0x27c] sm:$0xe] }
 0x118   : > { %3230 = vst.msk [vmem:[#allocation2 + $0x108] sm:$0xff] %vm3196_vm4, %v3080_v8  ;;  %3212 = vst.msk [vmem:[#allocation2 + $0x78] sm:$0xff] %vm3196_vm4, %v3026_v17  ;;  %v1893_v17 = vshll.u32 %v20927_v9, 16  ;;  %v2904_v8 = vsel %vm2834_vm2, %v24232_v46, %v2182_v40  ;;  %v2059_v32 = vor.u32 %v2058_v28, %v24234_v44  ;;  %v20974_v40 = vld [vmem:[%s19243_s30 + $0x4] sm:$0xf]  ;;  %v2087_v46 = vrot.slane %v2085_v39, 1 }
 0x119   : > { %2243 = vrot.lane.b32.xlu0 %v2040_v59, %s19111_s26  ;;  %2245 = vrot.lane.b32.xlu1 %v2052_v48, %s19111_s26  ;;  %v24233_v59 = vld [vmem:[#allocation18_spill] sm:$0xff]  ;;  %v669_v48 = vld [vmem:[%s19243_s30 + $0x33c] sm:$0xe]  ;;  %v2076_v23 = vsel %vm1248_vm1, %v2071_v15, %v2075_v36  ;;  %v20992_v44 = vcombine.low %v384_v3, %v20974_v40  ;;  %v2682_v39 = vrot.slane %v20879_v27, 1  ;;  %v24239_v3 = vrot.slane %v20842_v63, 1 }
 0x11a   : > { %v2868_v57 = vsel %vm2834_vm2, %v24233_v59, %v2146_v61  ;;  %v2759_v55 = vpop.permute.xlu1 %2758  ;;  %v2723_v18 = vpop.permute.xlu0 %2722  ;;  %v20979_v61 = vld [vmem:[%s19243_s30 + $0x350] ss:$0 sps:$4 sm:$0x11]   ;;  %v2064_v10 = vsel %vm1248_vm1, %v2059_v32, %v20865_v52  ;;  %v1895_v52 = vrot.slane %v1893_v17, 1  ;;  %v14541_v36 = vcombine.low %v669_v48, %v20855_v60  ;;  %v24237_v27 = vld [vmem:[#allocation19_spill] sm:$0xff] }
 0x11b   : > { %v3083_v58 = vsel %vm2979_vm3, %v2904_v8, %v2759_v55  ;;  %v3029_v62 = vsel %vm2979_vm3, %v2868_v57, %v2723_v18  ;;  %v1886_v8 = vshrl.u32 %v20924_v6, 16  ;;  %v2083_v57 = vor.u32 %v2082_v1, %v2078_v16  ;;  %v670_v18 = vld [vmem:[%s19243_s30 + $0x348] sm:$0xe]  ;;  %24235 = vst [vmem:[#allocation15_spill] sm:$0xff] %v20992_v44  ;;  %v21144_v6 = vld [vmem:[%s21067_s29 + $0x34] sm:$0xf] }
 0x11c   : > { %3231 = vst.msk [vmem:[#allocation2 + $0x110] sm:$0xff] %vm3196_vm4, %v3083_v58  ;;  %3213 = vst.msk [vmem:[#allocation2 + $0x80] sm:$0xff] %vm3196_vm4, %v3029_v62  ;;  %v1890_v55 = vrot.slane %v1888_v0, 1  ;;  %v2094_v16 = vrot.slane %v2092_v19, 1  ;;  %v2097_v60 = vshll.u32 %v20979_v61, 16  ;;  %v2634_v1 = vrot.slane %v20927_v9, 1 }
 0x11d   : > { %2820 = vrot.lane.b32.xlu0 %v2671_v26, %s19110_s28  ;;  %2822 = vrot.lane.b32.xlu1 %v2674_v20, %s19110_s28  ;;  %v2677_v20 = vsel %vm2473_vm0, %v2675_v53, %v2676_v13  ;;  %v14525_v13 = vcombine.low %v653_v7, %v20888_v29  ;;  %v2090_v53 = vshrl.u32 %v20959_v4, 16  ;;  %v24238_v0 = vld [vmem:[#allocation20_spill] sm:$0xff]  ;;  %v2680_v58 = vsel %vm2473_vm0, %v20914_v41, %v24239_v3  ;;  %v21020_v48 = vld [vmem:[%s19243_s30 + $0x8] ss:$0 sps:$4 sm:$0x11]  }
 0x11e   : > { %v2190_v28 = vpop.permute.xlu1 %2189  ;;  %v2188_v51 = vpop.permute.xlu0 %2187  ;;  %v14542_v62 = vcombine.low %v670_v18, %v20937_v21  ;;  %v526_v19 = vld [vmem:[%s19243_s30 + $0x354] sm:$0xf]  ;;  %v1252_v41 = vshll.u32 %v20992_v44, 16  ;;  %v21033_v21 = vld [vmem:[%s19243_s30 + $0x358] sm:$0xf]  ;;  %v1257_v3 = vshll.u32 %v21020_v48, 16 }
 0x11f   : > { %v4803_v26 = vld [vmem:[#allocation2 + $0x78] sm:$0xff]  ;;  %v20987_v59 = vld [vmem:[#allocation2 + $0x108] sm:$0xff]  ;;  %v2912_v29 = vsel %vm2834_vm2, %v24237_v27, %v2190_v28  ;;  %v2910_v17 = vsel %vm2834_vm2, %v24238_v0, %v2188_v51  ;;  %v2633_v0 = vrot.slane %v14525_v13, 1  ;;  %v21057_v13 = vcombine.low %v526_v19, %v21033_v21 }
 0x120   : > { %16313 = vmatprep.mubr.msk.bf16.mxu1 %vm3196_vm4, %v4803_v26  ;;  %16873 = vmatprep.mubr.msk.bf16.mxu0 %vm3196_vm4, %v20987_v59  ;;  %v2681_v26 = vrot.slane %v14541_v36, 1  ;;  %v420_v18 = vld [vmem:[%s19243_s30 + $0xd8] sm:$0xf]  ;;  %v21043_v27 = vld [vmem:[%s19243_s30 + $0xdc] sm:$0xf]  ;;  %v1250_v36 = vshrl.u32 %v20992_v44, 16 }
 0x121   : > { %2247 = vrot.lane.b32.xlu0 %v2064_v10, %s19111_s26  ;;  %2249 = vrot.lane.b32.xlu1 %v2076_v23, %s19111_s26  ;;  %v1891_v10 = vor.u32 %v1890_v55, %v1886_v8  ;;  %v2088_v23 = vsel %vm1248_vm1, %v2083_v57, %v2087_v46  ;;  %v18993_v8 = vld [vmem:[#allocation2 + $0x98] sm:$0xff]  ;;  %v2095_v55 = vor.u32 %v2094_v16, %v2090_v53  ;;  %v2684_v57 = vrot.slane %v14542_v62, 1 }
 0x122   : > { %v2767_v32 = vpop.permute.xlu1 %2766  ;;  %v2765_v15 = vpop.permute.xlu0 %2764  ;;  %v1254_v53 = vrot.slane %v1252_v41, 1  ;;  %24240 = vst [vmem:[#allocation16_spill] sm:$0xff] %v21057_v13  ;;  %v21061_v16 = vcombine.low %v420_v18, %v21043_v27  ;;  %v2683_v62 = vsel %vm2473_vm0, %v2681_v26, %v2682_v39  ;;  %v3273_v19 = vld [vmem:[%s21067_s29 + $0x18] sm:$0xf]  ;;  %v2102_v9 = vshrl.u32 %v21057_v13, 16 }
 0x123   : > { %v3095_v7 = vsel %vm2979_vm3, %v2912_v29, %v2767_v32  ;;  %v3092_v28 = vsel %vm2979_vm3, %v2910_v17, %v2765_v15  ;;  %v4804_v51 = vld [vmem:[#allocation2 + $0x80] sm:$0xff]  ;;  %v21029_v63 = vld [vmem:[#allocation2 + $0x110] sm:$0xff]  ;;  %v2099_v29 = vrot.slane %v2097_v60, 1  ;;  %v2685_v17 = vrot.slane %v20979_v61, 1 }
 0x124   : > { %3235 = vst.msk [vmem:[#allocation2 + $0x130] sm:$0xff] %vm3196_vm4, %v3095_v7  ;;  %3234 = vst.msk [vmem:[#allocation2 + $0x128] sm:$0xff] %vm3196_vm4, %v3092_v28  ;;  %16314 = vmatmul.mubr.msk.bf16.gmra.mrb[28].mxu1 %vm3196_vm4, %v4804_v51  ;;  %16874 = vmatmul.mubr.msk.bf16.gmra.mrb[28].mxu0 %vm3196_vm4, %v21029_v63  ;;  %v600_v32 = vld [vmem:[%s19243_s30] sm:$0xe]  ;;  %v671_v61 = vld [vmem:[%s19243_s30 + $0x354] sm:$0xe] }
 0x125   : > { %16317 = vmatprep.mubr.msk.bf16.mxu1 %vm3196_vm4, %v18993_v8  ;;  %2824 = vrot.lane.b32.xlu0 %v2677_v20, %s19110_s28  ;;  %v1896_v20 = vsel %vm1248_vm1, %v1891_v10, %v1895_v52  ;;  %24241 = vst [vmem:[#allocation17_spill] sm:$0xff] %v21061_v16  ;;  %v14472_v60 = vcombine.low %v600_v32, %v20974_v40  ;;  %v21069_v52 = vld [vmem:[#allocation2 + $0xa0] sm:$0xff]  ;;  %v21076_v28 = vld [vmem:[%s21067_s29 + $0x1c] sm:$0xf]  ;;  %v24242_v51 = vld [vmem:[#allocation21_spill] sm:$0xff] }
 0x126   : > { %v2194_v15 = vpop.permute.xlu1 %2193  ;;  %v2192_v46 = vpop.permute.xlu0 %2191  ;;  %2826 = vrot.lane.b32.xlu1 %v2680_v58, %s19110_s28  ;;  %v2100_v58 = vsel %vm1248_vm1, %v2095_v55, %v2099_v29  ;;  %v24243_v10 = vld [vmem:[#allocation22_spill] sm:$0xff]  ;;  %v21084_v32 = vld [vmem:[%s19243_s30 + $0x35c] ss:$0 sps:$4 sm:$0x11]   ;;  %v21091_v39 = vcombine.low %v3273_v19, %v21076_v28  ;;  %v2686_v19 = vsel %vm2473_vm0, %v2684_v57, %v2685_v17 }
 0x127   : > { %v2916_v40 = vsel %vm2834_vm2, %v24242_v51, %v2194_v15  ;;  %v2914_v41 = vsel %vm2834_vm2, %v24243_v10, %v2192_v46  ;;  %v21088_v55 = vld [vmem:[%s19243_s30 + $0xe0] ss:$0 sps:$4 sm:$0x11]   ;;  %v1468_v51 = vshll.u32 %v21061_v16, 16  ;;  %v2109_v57 = vshll.u32 %v21084_v32, 16 }
 0x128   : > { %24244 = vst [vmem:[#allocation18_spill] sm:$0xff] %v21091_v39  ;;  %v21113_v10 = vld [vmem:[%s21067_s29 + $0x20] ss:$0 sps:$4 sm:$0x11]   ;;  %v1473_v7 = vshll.u32 %v21088_v55, 16 }
 0x129   : > { %2251 = vrot.lane.b32.xlu0 %v2088_v23, %s19111_s26  ;;  %v14543_v23 = vcombine.low %v671_v61, %v21033_v21  ;;  %v3275_v21 = vld [vmem:[%s21067_s29 + $0x24] sm:$0xf]  ;;  %v2635_v61 = vsel %vm2473_vm0, %v2633_v0, %v2634_v1  ;;  %v3512_v1 = vshll.u32 %v21091_v39, 16 }
 0x12a   : > { %v2771_v18 = vpop.permute.xlu1 %2770  ;;  %v2769_v8 = vpop.permute.xlu0 %2768  ;;  %2219 = vrot.lane.b32.xlu1 %v1896_v20, %s19111_s26  ;;  %v2104_v20 = vshll.u32 %v21057_v13, 16  ;;  %v618_v13 = vld [vmem:[%s19243_s30 + $0xd8] sm:$0xe] }
 0x12b   : > { %v3101_v26 = vsel %vm2979_vm3, %v2916_v40, %v2771_v18  ;;  %v3098_v29 = vsel %vm2979_vm3, %v2914_v41, %v2769_v8  ;;  %v21095_v15 = vld [vmem:[#allocation2 + $0x128] sm:$0xff]  ;;  %v21097_v46 = vld [vmem:[#allocation2 + $0x130] sm:$0xff]  ;;  %v2474_v40 = vrot.slane %v14472_v60, 1  ;;  %v1255_v8 = vor.u32 %v1254_v53, %v1250_v36 }
 0x12c   : > { %3237 = vst.msk [vmem:[#allocation2 + $0x140] sm:$0xff] %vm3196_vm4, %v3101_v26  ;;  %3236 = vst.msk [vmem:[#allocation2 + $0x138] sm:$0xff] %vm3196_vm4, %v3098_v29  ;;  %16318 = vmatmul.mubr.msk.bf16.gmra.mrb[32].mxu1 %vm3196_vm4, %v21069_v52  ;;  %16877 = vmatprep.mubr.msk.bf16.mxu0 %vm3196_vm4, %v21095_v15  ;;  %v21116_v41 = vld [vmem:[%s21067_s29 + $0x28] sm:$0xf]  ;;  %v1259_v26 = vrot.slane %v1257_v3, 1  ;;  %v2687_v60 = vrot.slane %v14543_v23, 1 }
 0x12d   : > { %v18994_v18 = vld [vmem:[#allocation2 + $0xa8] sm:$0xff]  ;;  %16878 = vmatmul.mubr.msk.bf16.gmra.mrb[32].mxu0 %vm3196_vm4, %v21097_v46  ;;  %2253 = vrot.lane.b32.xlu0 %v2100_v58, %s19111_s26  ;;  %v2688_v36 = vrot.slane %v21084_v32, 1  ;;  %v21128_v3 = vcombine.low %v3275_v21, %v21116_v41  ;;  %v2106_v53 = vrot.slane %v2104_v20, 1  ;;  %v1466_v29 = vshrl.u32 %v21061_v16, 16  ;;  %v3277_v20 = vld [vmem:[%s21067_s29 + $0x30] sm:$0xf] }
 0x12e   : > { %16321 = vmatprep.mubr.msk.bf16.mxu1 %vm3196_vm4, %v18994_v18  ;;  %v2198_v0 = vpop.permute.xlu1 %2197  ;;  %v2196_v17 = vpop.permute.xlu0 %2195  ;;  %2828 = vrot.lane.b32.xlu1 %v2683_v62, %s19110_s28  ;;  %v1470_v18 = vrot.slane %v1468_v51, 1  ;;  %v3517_v58 = vshll.u32 %v21113_v10, 16  ;;  %v21135_v62 = vld [vmem:[%s21067_s29 + $0x2c] ss:$0 sps:$4 sm:$0x11]   ;;  %v1260_v44 = vsel %vm1248_vm1, %v1255_v8, %v1259_v26  ;;  %v24246_v23 = vrot.slane %v21020_v48, 1 }
 0x12f   : > { %24245 = vst [vmem:[#allocation19_spill] sm:$0xff] %v21128_v3  ;;  %v3510_v21 = vshrl.u32 %v21091_v39, 16  ;;  %v3514_v4 = vrot.slane %v3512_v1, 1  ;;  %v24247_v51 = vld [vmem:[#allocation23_spill] sm:$0xff]  ;;  %v2918_v5 = vsel %vm2834_vm2, %v24248_v37, %v2196_v17  ;;  %v2111_v48 = vrot.slane %v2109_v57, 1 }
 0x130   : > { %v2476_v32 = vsel %vm2473_vm0, %v2474_v40, %v24246_v23  ;;  %v2920_v16 = vsel %vm2834_vm2, %v24247_v51, %v2198_v0  ;;  %v3524_v40 = vshll.u32 %v21128_v3, 16  ;;  %v2107_v37 = vor.u32 %v2106_v53, %v2102_v9  ;;  %v18996_v9 = vld [vmem:[#allocation2 + $0xb8] sm:$0xff] }
 0x131   : > { %2796 = vrot.lane.b32.xlu0 %v2635_v61, %s19110_s28  ;;  %v1475_v17 = vrot.slane %v1473_v7, 1  ;;  %v18995_v61 = vld [vmem:[#allocation2 + $0xb0] sm:$0xff]  ;;  %v3279_v7 = vld [vmem:[%s21067_s29 + $0x3c] sm:$0xf]  ;;  %v1471_v57 = vor.u32 %v1470_v18, %v1466_v29  ;;  %v3515_v53 = vor.u32 %v3514_v4, %v3510_v21  ;;  %v2689_v4 = vsel %vm2473_vm0, %v2687_v60, %v2688_v36  ;;  %v3281_v36 = vld [vmem:[%s21067_s29 + $0x48] sm:$0xf] }
 0x132   : > { %v2775_v31 = vpop.permute.xlu1 %2774  ;;  %v2773_v24 = vpop.permute.xlu0 %2772  ;;  %2830 = vrot.lane.b32.xlu1 %v2686_v19, %s19110_s28  ;;  %v21171_v19 = vld [vmem:[%s21067_s29 + $0x40] sm:$0xf]  ;;  %v3526_v51 = vrot.slane %v3524_v40, 1  ;;  %v2529_v29 = vrot.slane %v21088_v55, 1  ;;  %v3798_v40 = vrot.slane %v21113_v10, 1 }
 0x133   : > { %v3107_v8 = vsel %vm2979_vm3, %v2920_v16, %v2775_v31  ;;  %v3104_v26 = vsel %vm2979_vm3, %v2918_v5, %v2773_v24  ;;  %v21155_v1 = vld [vmem:[#allocation2 + $0x138] sm:$0xff]  ;;  %v21157_v0 = vld [vmem:[#allocation2 + $0x140] sm:$0xff]  ;;  %v3519_v31 = vrot.slane %v3517_v58, 1  ;;  %v14490_v24 = vcombine.low %v618_v13, %v21043_v27 }
 0x134   : > { %3239 = vst.msk [vmem:[#allocation2 + $0x150] sm:$0xff] %vm3196_vm4, %v3107_v8  ;;  %3238 = vst.msk [vmem:[#allocation2 + $0x148] sm:$0xff] %vm3196_vm4, %v3104_v26  ;;  %16322 = vmatmul.mubr.msk.bf16.gmra.mrb[36].mxu1 %vm3196_vm4, %v18995_v61  ;;  %16881 = vmatprep.mubr.msk.bf16.mxu0 %vm3196_vm4, %v21155_v1  ;;  %v3529_v5 = vshll.u32 %v21135_v62, 16  ;;  %v21167_v16 = vcombine.low %v3277_v20, %v21144_v6  ;;  %v3325_v58 = vld [vmem:[%s21067_s29 + $0x18] sm:$0xe]  ;;  %v3522_v20 = vshrl.u32 %v21128_v3, 16 }
 0x135   : > { %16325 = vmatprep.mubr.msk.bf16.mxu1 %vm3196_vm4, %v18996_v9  ;;  %16882 = vmatmul.mubr.msk.bf16.gmra.mrb[36].mxu0 %vm3196_vm4, %v21157_v0  ;;  %v3326_v27 = vld [vmem:[%s21067_s29 + $0x24] sm:$0xe]  ;;  %v21182_v8 = vld [vmem:[%s21067_s29 + $0x38] ss:$0 sps:$4 sm:$0x11]   ;;  %v2112_v26 = vsel %vm1248_vm1, %v2107_v37, %v2111_v48  ;;  %v21188_v18 = vcombine.low %v3279_v7, %v21171_v19  ;;  %v1476_v3 = vsel %vm1248_vm1, %v1471_v57, %v1475_v17 }
 0x136   : > { %24249 = vst [vmem:[#allocation20_spill] sm:$0xff] %v21167_v16  ;;  %v2202_v13 = vpop.permute.xlu1 %2201  ;;  %v2200_v23 = vpop.permute.xlu0 %2199  ;;  %2113 = vrot.lane.b32.xlu0 %v1260_v44, %s19111_s26  ;;  %2690 = vrot.lane.b32.xlu1 %v2476_v32, %s19110_s28  ;;  %v21191_v44 = vld [vmem:[%s21067_s29 + $0x44] ss:$0 sps:$4 sm:$0x11]   ;;  %v2528_v32 = vrot.slane %v14490_v24, 1  ;;  %v3531_v21 = vrot.slane %v3529_v5, 1  ;;  %v3520_v48 = vsel %vm1248_vm1, %v3515_v53, %v3519_v31  ;;  %v14582_v60 = vcombine.low %v3325_v58, %v21076_v28 }
 0x137   : > { %24250 = vst [vmem:[#allocation21_spill] sm:$0xff] %v21188_v18  ;;  %v3536_v61 = vshll.u32 %v21167_v16, 16  ;;  %v3327_v9 = vld [vmem:[%s21067_s29 + $0x30] sm:$0xe]  ;;  %v14583_v55 = vcombine.low %v3326_v27, %v21116_v41  ;;  %v21202_v37 = vld [vmem:[%s21067_s29 + $0x4c] sm:$0xf]  ;;  %v2924_v24 = vsel %vm2834_vm2, %v20018_v56, %v2202_v13  ;;  %v2922_v10 = vsel %vm2834_vm2, %v20049_v2, %v2200_v23 }
 0x138   : > { %v3283_v7 = vld [vmem:[%s21067_s29 + $0x54] sm:$0xf]  ;;  %v3527_v28 = vor.u32 %v3526_v51, %v3522_v20  ;;  %v3541_v41 = vshll.u32 %v21182_v8, 16  ;;  %v3548_v2 = vshll.u32 %v21188_v18, 16  ;;  %v3553_v53 = vshll.u32 %v21191_v44, 16  ;;  %v18997_v27 = vld [vmem:[#allocation2 + $0xc0] sm:$0xff] }
 0x139   : > { %v21221_v58 = vld [vmem:[%s21067_s29 + $0x58] sm:$0xf]  ;;  %v3801_v13 = vrot.slane %v21135_v62, 1  ;;  %v14584_v23 = vcombine.low %v3327_v9, %v21144_v6  ;;  %v3328_v20 = vld [vmem:[%s21067_s29 + $0x3c] sm:$0xe]  ;;  %v21233_v51 = vcombine.low %v3281_v36, %v21202_v37  ;;  %v3538_v62 = vrot.slane %v3536_v61, 1 }
 0x13a   : > { %v2779_v5 = vpop.permute.xlu1 %2778  ;;  %v2777_v39 = vpop.permute.xlu0 %2776  ;;  %2255 = vrot.lane.b32.xlu0 %v2112_v26, %s19111_s26  ;;  %2832 = vrot.lane.b32.xlu1 %v2689_v4, %s19110_s28  ;;  %v21236_v26 = vld [vmem:[%s21067_s29 + $0x50] ss:$0 sps:$4 sm:$0x11]   ;;  %v18998_v4 = vld [vmem:[#allocation2 + $0xc8] sm:$0xff]  ;;  %v3532_v9 = vsel %vm1248_vm1, %v3527_v28, %v3531_v21  ;;  %v21245_v36 = vrot.slane %v3541_v41, 1  ;;  %v3546_v61 = vshrl.u32 %v21188_v18, 16 }
 0x13b   : > { %v3113_v17 = vsel %vm2979_vm3, %v2924_v24, %v2779_v5  ;;  %v3110_v31 = vsel %vm2979_vm3, %v2922_v10, %v2777_v39  ;;  %v21214_v57 = vld [vmem:[#allocation2 + $0x148] sm:$0xff]  ;;  %v21216_v56 = vld [vmem:[#allocation2 + $0x150] sm:$0xff]  ;;  %v2530_v39 = vsel %vm2473_vm0, %v2528_v32, %v2529_v29  ;;  %24251 = vst [vmem:[#allocation22_spill] sm:$0xff] %v21233_v51  ;;  %v3797_v24 = vrot.slane %v14582_v60, 1 }
 0x13c   : > { %3241 = vst.msk [vmem:[#allocation2 + $0x160] sm:$0xff] %vm3196_vm4, %v3113_v17  ;;  %3240 = vst.msk [vmem:[#allocation2 + $0x158] sm:$0xff] %vm3196_vm4, %v3110_v31  ;;  %16326 = vmatmul.mubr.msk.bf16.gmra.mrb[40].mxu1 %vm3196_vm4, %v18997_v27  ;;  %16885 = vmatprep.mubr.msk.bf16.mxu0 %vm3196_vm4, %v21214_v57  ;;  %v3800_v10 = vrot.slane %v14583_v55, 1  ;;  %v3534_v29 = vshrl.u32 %v21167_v16, 16  ;;  %v21249_v60 = vcombine.low %v3283_v7, %v21221_v58  ;;  %v3550_v17 = vrot.slane %v3548_v2, 1  ;;  %v18873_v21 = vld [vmem:[%s24094_s3 + $0x28] sm:$0xff]  }
 0x13d   : > { %16329 = vmatprep.mubr.msk.bf16.mxu1 %vm3196_vm4, %v18998_v4  ;;  %16886 = vmatmul.mubr.msk.bf16.gmra.mrb[40].mxu0 %vm3196_vm4, %v21216_v56  ;;  %v21252_v55 = vld [vmem:[%s21067_s29 + $0x5c] ss:$0 sps:$4 sm:$0x11]   ;;  %v3803_v28 = vrot.slane %v14584_v23, 1  ;;  %v3807_v41 = vrot.slane %v21191_v44, 1  ;;  %v3560_v31 = vshll.u32 %v21233_v51, 16  ;;  %v3799_v27 = vsel %vm2473_vm0, %v3797_v24, %v3798_v40 }
 0x13e   : > { %v2206_v32 = vpop.permute.xlu1 %2205  ;;  %v2204_v6 = vpop.permute.xlu0 %2203  ;;  %2149 = vrot.lane.b32.xlu0 %v1476_v3, %s19111_s26  ;;  %3705 = vrot.lane.b32.xlu1 %v3520_v48, %s19111_s26  ;;  %24252 = vst [vmem:[#allocation23_spill] sm:$0xff] %v21249_v60  ;;  %v3555_v3 = vrot.slane %v3553_v53, 1  ;;  %v14585_v48 = vcombine.low %v3328_v20, %v21171_v19  ;;  %v3565_v7 = vshll.u32 %v21236_v26, 16  ;;  %v3802_v2 = vsel %vm2473_vm0, %v3800_v10, %v3801_v13  ;;  %v3329_v4 = vld [vmem:[%s21067_s29 + $0x48] sm:$0xe] }
 0x13f   : > { %v3539_v53 = vor.u32 %v3538_v62, %v3534_v29  ;;  %v3285_v19 = vld [vmem:[%s21067_s29 + $0x60] sm:$0xf]  ;;  %v21267_v20 = vld [vmem:[%s21067_s29 + $0x64] sm:$0xf]  ;;  %16423 = vmatprep.subr.bf16.mxu1 %v18873_v21  ;;  %v2928_v23 = vsel %vm2834_vm2, %v20069_v50, %v2206_v32  ;;  %v2926_v44 = vsel %vm2834_vm2, %v20097_v34, %v2204_v6  ;;  %v3572_v40 = vshll.u32 %v21249_v60, 16 }
 0x140   : > { %v3577_v13 = vshll.u32 %v21252_v55, 16  ;;  %v3330_v24 = vld [vmem:[%s21067_s29 + $0x54] sm:$0xe]  ;;  %v3287_v10 = vld [vmem:[%s21067_s29 + $0x6c] sm:$0xf]  ;;  %v3551_v34 = vor.u32 %v3550_v17, %v3546_v61  ;;  %v3806_v6 = vrot.slane %v14585_v48, 1  ;;  %16424 = vmatpush3.bf16.msra.mxu1 %v18873_v21  ;;  %v21298_v61 = vcombine.low %v3285_v19, %v21267_v20 }
 0x141   : > { %v21286_v16 = vld [vmem:[%s21067_s29 + $0x70] sm:$0xf]  ;;  %v19000_v17 = vld [vmem:[#allocation2 + $0xd8] sm:$0xff]  ;;  %v3562_v48 = vrot.slane %v3560_v31, 1  ;;  %v3570_v21 = vshrl.u32 %v21249_v60, 16  ;;  %v3574_v19 = vrot.slane %v3572_v40, 1 }
 0x142   : > { %v2783_v5 = vpop.permute.xlu1 %2782  ;;  %v2781_v18 = vpop.permute.xlu0 %2780  ;;  %2726 = vrot.lane.b32.xlu0 %v2530_v39, %s19110_s28  ;;  %3707 = vrot.lane.b32.xlu1 %v3532_v9, %s19111_s26  ;;  %v18999_v39 = vld [vmem:[#allocation2 + $0xd0] sm:$0xff]  ;;  %v21294_v9 = vrot.slane %v3565_v7, 1  ;;  %v14587_v7 = vcombine.low %v3330_v24, %v21221_v58  ;;  %v3813_v31 = vrot.slane %v21252_v55, 1  ;;  %v3544_v58 = vsel %vm1248_vm1, %v3539_v53, %v21245_v36  ;;  %v3289_v60 = vld [vmem:[%s21067_s29 + $0x78] sm:$0xf] }
 0x143   : > { %v3119_v29 = vsel %vm2979_vm3, %v2928_v23, %v2783_v5  ;;  %v3116_v50 = vsel %vm2979_vm3, %v2926_v44, %v2781_v18  ;;  %v21281_v62 = vld [vmem:[#allocation2 + $0x158] sm:$0xff]  ;;  %v21283_v32 = vld [vmem:[#allocation2 + $0x160] sm:$0xff]  ;;  %v3558_v18 = vshrl.u32 %v21233_v51, 16  ;;  %v14586_v5 = vcombine.low %v3329_v4, %v21202_v37 }
 0x144   : > { %3243 = vst.msk [vmem:[#allocation2 + $0x170] sm:$0xff] %vm3196_vm4, %v3119_v29  ;;  %3242 = vst.msk [vmem:[#allocation2 + $0x168] sm:$0xff] %vm3196_vm4, %v3116_v50  ;;  %16330 = vmatmul.mubr.msk.bf16.gmra.mrb[44].mxu1 %vm3196_vm4, %v18999_v39  ;;  %16889 = vmatprep.mubr.msk.bf16.mxu0 %vm3196_vm4, %v21281_v62  ;;  %v3579_v44 = vrot.slane %v3577_v13, 1  ;;  %v21310_v29 = vcombine.low %v3287_v10, %v21286_v16  ;;  %v3556_v24 = vsel %vm1248_vm1, %v3551_v34, %v3555_v3  ;;  %v21316_v50 = vld [vmem:[%s21067_s29 + $0x68] ss:$0 sps:$4 sm:$0x11]  }
 0x145   : > { %16333 = vmatprep.mubr.msk.bf16.mxu1 %vm3196_vm4, %v19000_v17  ;;  %16890 = vmatmul.mubr.msk.bf16.gmra.mrb[44].mxu0 %vm3196_vm4, %v21283_v32  ;;  %v3584_v40 = vshll.u32 %v21298_v61, 16  ;;  %v3331_v39 = vld [vmem:[%s21067_s29 + $0x60] sm:$0xe]  ;;  %v3332_v13 = vld [vmem:[%s21067_s29 + $0x6c] sm:$0xe]  ;;  %v24253_v17 = vrot.slane %v21182_v8, 1  ;;  %v3808_v10 = vsel %vm2473_vm0, %v3806_v6, %v3807_v41  ;;  %v3563_v23 = vor.u32 %v3562_v48, %v3558_v18 }
 0x146   : > { %v2210_v37 = vpop.permute.xlu1 %2209  ;;  %v2208_v4 = vpop.permute.xlu0 %2207  ;;  %3849 = vrot.lane.b32.xlu0 %v3799_v27, %s19110_s28  ;;  %3851 = vrot.lane.b32.xlu1 %v3802_v2, %s19110_s28  ;;  %v21319_v27 = vld [vmem:[%s21067_s29 + $0x74] ss:$0 sps:$4 sm:$0x11]   ;;  %v3809_v2 = vrot.slane %v14586_v5, 1  ;;  %v21330_v36 = vld [vmem:[%s21067_s29 + $0x7c] sm:$0xf] }
 0x147   : > { %v3805_v55 = vsel %vm2473_vm0, %v3803_v28, %v24253_v17  ;;  %v3291_v3 = vld [vmem:[%s21067_s29 + $0x84] sm:$0xf]  ;;  %v2932_v53 = vsel %vm2834_vm2, %v20157_v33, %v2210_v37  ;;  %v2930_v34 = vsel %vm2834_vm2, %v20171_v25, %v2208_v4  ;;  %v3812_v8 = vrot.slane %v14587_v7, 1  ;;  %v21348_v37 = vld [vmem:[%s21067_s29 + $0x88] sm:$0xf] }
 0x148   : > { %v3596_v28 = vshll.u32 %v21310_v29, 16  ;;  %v3575_v33 = vor.u32 %v3574_v19, %v3570_v21  ;;  %v3589_v25 = vshll.u32 %v21316_v50, 16  ;;  %v19001_v7 = vld [vmem:[#allocation2 + $0xe0] sm:$0xff]  ;;  %v3586_v4 = vrot.slane %v3584_v40, 1  ;;  %v19002_v19 = vld [vmem:[#allocation2 + $0xe8] sm:$0xff] }
 0x149   : > { %v3601_v21 = vshll.u32 %v21319_v27, 16  ;;  %v21363_v17 = vcombine.low %v3289_v60, %v21330_v36  ;;  %v24256_v60 = vrot.slane %v21236_v26, 1 }
 0x14a   : > { %v2787_v5 = vpop.permute.xlu1 %2786  ;;  %v2785_v51 = vpop.permute.xlu0 %2784  ;;  %3709 = vrot.lane.b32.xlu0 %v3544_v58, %s19111_s26  ;;  %3711 = vrot.lane.b32.xlu1 %v3556_v24, %s19111_s26  ;;  %v14588_v58 = vcombine.low %v3331_v39, %v21267_v20  ;;  %v14589_v24 = vcombine.low %v3332_v13, %v21286_v16  ;;  %v3598_v20 = vrot.slane %v3596_v28, 1  ;;  %v21374_v39 = vcombine.low %v3291_v3, %v21348_v37 }
 0x14b   : > { %v3125_v41 = vsel %vm2979_vm3, %v2932_v53, %v2787_v5  ;;  %v3122_v6 = vsel %vm2979_vm3, %v2930_v34, %v2785_v51  ;;  %v21342_v18 = vld [vmem:[#allocation2 + $0x168] sm:$0xff]  ;;  %v21344_v48 = vld [vmem:[#allocation2 + $0x170] sm:$0xff]  ;;  %v3582_v51 = vshrl.u32 %v21298_v61, 16  ;;  %24254 = vst [vmem:[#allocation24_spill] sm:$0xff] %v21363_v17  ;;  %v3568_v5 = vsel %vm1248_vm1, %v3563_v23, %v21294_v9 }
 0x14c   : > { %3245 = vst.msk [vmem:[#allocation2 + $0x180] sm:$0xff] %vm3196_vm4, %v3125_v41  ;;  %3244 = vst.msk [vmem:[#allocation2 + $0x178] sm:$0xff] %vm3196_vm4, %v3122_v6  ;;  %16334 = vmatmul.mubr.msk.bf16.gmra.mrb[48].mxu1 %vm3196_vm4, %v19001_v7  ;;  %16893 = vmatprep.mubr.msk.bf16.mxu0 %vm3196_vm4, %v21342_v18  ;;  %v21366_v53 = vld [vmem:[%s21067_s29 + $0x80] ss:$0 sps:$4 sm:$0x11]   ;;  %v3594_v41 = vshrl.u32 %v21310_v29, 16  ;;  %v3580_v16 = vsel %vm1248_vm1, %v3575_v33, %v3579_v44  ;;  %v3811_v13 = vsel %vm2473_vm0, %v3809_v2, %v24256_v60 }
 0x14d   : > { %16337 = vmatprep.mubr.msk.bf16.mxu1 %vm3196_vm4, %v19002_v19  ;;  %16894 = vmatmul.mubr.msk.bf16.gmra.mrb[48].mxu0 %vm3196_vm4, %v21344_v48  ;;  %24255 = vst [vmem:[#allocation29_spill] sm:$0xff] %v21374_v39  ;;  %v3814_v6 = vsel %vm2473_vm0, %v3812_v8, %v3813_v31  ;;  %v21382_v7 = vld [vmem:[%s21067_s29 + $0x8c] ss:$0 sps:$4 sm:$0x11]   ;;  %v3603_v9 = vrot.slane %v3601_v21, 1  ;;  %v3816_v23 = vrot.slane %v21316_v50, 1 }
 0x14e   : > { %v2214_v34 = vpop.permute.xlu1 %2213  ;;  %v2212_v40 = vpop.permute.xlu0 %2211  ;;  %3853 = vrot.lane.b32.xlu0 %v3805_v55, %s19110_s28  ;;  %3855 = vrot.lane.b32.xlu1 %v3808_v10, %s19110_s28  ;;  %v3591_v55 = vrot.slane %v3589_v25, 1  ;;  %v3587_v10 = vor.u32 %v3586_v4, %v3582_v51  ;;  %v3819_v28 = vrot.slane %v21319_v27, 1  ;;  %v3815_v3 = vrot.slane %v14588_v58, 1  ;;  %v3293_v25 = vld [vmem:[%s21067_s29 + $0x90] sm:$0xf] }
 0x14f   : > { %v3818_v19 = vrot.slane %v14589_v24, 1  ;;  %v3608_v44 = vshll.u32 %v21363_v17, 16  ;;  %v3613_v26 = vshll.u32 %v21366_v53, 16  ;;  %v2936_v31 = vsel %vm2834_vm2, %v20230_v47, %v2214_v34  ;;  %v21405_v24 = vld [vmem:[%s21067_s29 + $0x94] sm:$0xf] }
 0x150   : > { %v2934_v2 = vsel %vm2834_vm2, %v20242_v14, %v2212_v40  ;;  %v3599_v50 = vor.u32 %v3598_v20, %v3594_v41  ;;  %v3620_v27 = vshll.u32 %v21374_v39, 16  ;;  %v3606_v21 = vshrl.u32 %v21363_v17, 16  ;;  %v19003_v34 = vld [vmem:[#allocation2 + $0xf0] sm:$0xff]  ;;  %v3295_v40 = vld [vmem:[%s21067_s29 + $0x9c] sm:$0xf] }
 0x151   : > { %v3625_v58 = vshll.u32 %v21382_v7, 16  ;;  %v3610_v41 = vrot.slane %v3608_v44, 1  ;;  %v3618_v20 = vshrl.u32 %v21374_v39, 16  ;;  %v21431_v44 = vcombine.low %v3293_v25, %v21405_v24 }
 0x152   : > { %v2791_v8 = vpop.permute.xlu1 %2790  ;;  %v2789_v33 = vpop.permute.xlu0 %2788  ;;  %3713 = vrot.lane.b32.xlu0 %v3568_v5, %s19111_s26  ;;  %3715 = vrot.lane.b32.xlu1 %v3580_v16, %s19111_s26  ;;  %v21414_v5 = vld [vmem:[%s21067_s29 + $0xa0] sm:$0xf]  ;;  %v3333_v16 = vld [vmem:[%s21067_s29 + $0x78] sm:$0xe] }
 0x153   : > { %v3131_v51 = vsel %vm2979_vm3, %v2936_v31, %v2791_v8  ;;  %v3128_v4 = vsel %vm2979_vm3, %v2934_v2, %v2789_v33  ;;  %v21398_v47 = vld [vmem:[#allocation2 + $0x178] sm:$0xff]  ;;  %v21400_v14 = vld [vmem:[#allocation2 + $0x180] sm:$0xff]  ;;  %v3622_v2 = vrot.slane %v3620_v27, 1  ;;  %v3822_v27 = vrot.slane %v21366_v53, 1 }
 0x154   : > { %3247 = vst.msk [vmem:[#allocation2 + $0x190] sm:$0xff] %vm3196_vm4, %v3131_v51  ;;  %3246 = vst.msk [vmem:[#allocation2 + $0x188] sm:$0xff] %vm3196_vm4, %v3128_v4  ;;  %16338 = vmatmul.mubr.msk.bf16.gmra.mrb[52].mxu1 %vm3196_vm4, %v19003_v34  ;;  %16897 = vmatprep.mubr.msk.bf16.mxu0 %vm3196_vm4, %v21398_v47  ;;  %v3334_v8 = vld [vmem:[%s21067_s29 + $0x84] sm:$0xe]  ;;  %v3604_v51 = vsel %vm1248_vm1, %v3599_v50, %v3603_v9  ;;  %v21434_v4 = vcombine.low %v3295_v40, %v21414_v5  ;;  %v3627_v17 = vrot.slane %v3625_v58, 1 }
 0x155   : > { %16341 = vmatprep.mubr.msk.bf16.mxu1 %vm3196_vm4, %v20875_v43  ;;  %16898 = vmatmul.mubr.msk.bf16.gmra.mrb[52].mxu0 %vm3196_vm4, %v21400_v14  ;;  %v21426_v33 = vld [vmem:[%s21067_s29 + $0x98] ss:$0 sps:$4 sm:$0x11]   ;;  %v3592_v43 = vsel %vm1248_vm1, %v3587_v10, %v3591_v55  ;;  %v3817_v34 = vsel %vm2473_vm0, %v3815_v3, %v3816_v23  ;;  %v3611_v39 = vor.u32 %v3610_v41, %v3606_v21  ;;  %v21442_v9 = vld [vmem:[%s21067_s29 + $0xa4] ss:$0 sps:$4 sm:$0x11]  }
 0x156   : > { %v2218_v60 = vpop.permute.xlu1 %2217  ;;  %v2216_v31 = vpop.permute.xlu0 %2215  ;;  %3857 = vrot.lane.b32.xlu0 %v3811_v13, %s19110_s28  ;;  %3859 = vrot.lane.b32.xlu1 %v3814_v6, %s19110_s28  ;;  %v3820_v13 = vsel %vm2473_vm0, %v3818_v19, %v3819_v28  ;;  %v3615_v6 = vrot.slane %v3613_v26, 1  ;;  %v14590_v55 = vcombine.low %v3333_v16, %v21330_v36  ;;  %v14591_v10 = vcombine.low %v3334_v8, %v21348_v37  ;;  %v3335_v19 = vld [vmem:[%s21067_s29 + $0x90] sm:$0xe]  ;;  %v3336_v40 = vld [vmem:[%s21067_s29 + $0x9c] sm:$0xe] }
 0x157   : > { %v2940_v50 = vsel %vm2834_vm2, %v20301_v38, %v2218_v60  ;;  %v2938_v23 = vsel %vm2834_vm2, %v20314_v54, %v2216_v31  ;;  %v3623_v36 = vor.u32 %v3622_v2, %v3618_v20  ;;  %v3637_v37 = vshll.u32 %v21426_v33, 16  ;;  %v3297_v41 = vld [vmem:[%s21067_s29 + $0xa8] sm:$0xf]  ;;  %v21469_v20 = vld [vmem:[%s21067_s29 + $0xac] sm:$0xf] }
 0x158   : > { %v3632_v21 = vshll.u32 %v21431_v44, 16  ;;  %v3644_v58 = vshll.u32 %v21434_v4, 16  ;;  %v3821_v16 = vrot.slane %v14590_v55, 1  ;;  %v3825_v60 = vrot.slane %v21382_v7, 1  ;;  %v21485_v7 = vld [vmem:[%s21067_s29 + $0xb8] sm:$0xf] }
 0x159   : > { %v14592_v31 = vcombine.low %v3335_v19, %v21405_v24  ;;  %v3630_v55 = vshrl.u32 %v21431_v44, 16  ;;  %v21509_v19 = vld [vmem:[%s21067_s29 + $0xbc] ss:$0 sps:$4 sm:$0x11]  }
 0x15a   : > { %v2795_v3 = vpop.permute.xlu1 %2794  ;;  %v2793_v28 = vpop.permute.xlu0 %2792  ;;  %3717 = vrot.lane.b32.xlu0 %v3592_v43, %s19111_s26  ;;  %3719 = vrot.lane.b32.xlu1 %v3604_v51, %s19111_s26  ;;  %v3616_v43 = vsel %vm1248_vm1, %v3611_v39, %v3615_v6  ;;  %v3824_v51 = vrot.slane %v14591_v10, 1  ;;  %v3642_v6 = vshrl.u32 %v21434_v4, 16  ;;  %v3646_v10 = vrot.slane %v3644_v58, 1 }
 0x15b   : > { %v3137_v26 = vsel %vm2979_vm3, %v2940_v50, %v2795_v3  ;;  %v3134_v38 = vsel %vm2979_vm3, %v2938_v23, %v2793_v28  ;;  %v21454_v25 = vld [vmem:[#allocation2 + $0x188] sm:$0xff]  ;;  %v21456_v54 = vld [vmem:[#allocation2 + $0x190] sm:$0xff]  ;;  %v3634_v23 = vrot.slane %v3632_v21, 1  ;;  %v21496_v28 = vrot.slane %v14592_v31, 1 }
 0x15c   : > { %3249 = vst.msk [vmem:[#allocation2 + $0x1a0] sm:$0xff] %vm3196_vm4, %v3137_v26  ;;  %3248 = vst.msk [vmem:[#allocation2 + $0x198] sm:$0xff] %vm3196_vm4, %v3134_v38  ;;  %16342 = vmatmul.mubr.msk.bf16.gmra.mrb[56].mxu1 %vm3196_vm4, %v20908_v30  ;;  %16901 = vmatprep.mubr.msk.bf16.mxu0 %vm3196_vm4, %v21454_v25  ;;  %v3649_v30 = vshll.u32 %v21442_v9, 16  ;;  %v3299_v50 = vld [vmem:[%s21067_s29 + $0xb4] sm:$0xf] }
 0x15d   : > { %16345 = vmatprep.mubr.msk.bf16.mxu1 %vm3196_vm4, %v20987_v59  ;;  %16902 = vmatmul.mubr.msk.bf16.gmra.mrb[56].mxu0 %vm3196_vm4, %v21456_v54  ;;  %v3628_v59 = vsel %vm1248_vm1, %v3623_v36, %v3627_v17  ;;  %v3639_v17 = vrot.slane %v3637_v37, 1  ;;  %v21500_v36 = vld [vmem:[%s21067_s29 + $0xb0] ss:$0 sps:$4 sm:$0x11]   ;;  %v3831_v37 = vrot.slane %v21442_v9, 1  ;;  %v3826_v9 = vsel %vm2473_vm0, %v3824_v51, %v3825_v60 }
 0x15e   : > { %v2184_v2 = vpop.permute.xlu0 %2183  ;;  %v2761_v8 = vpop.permute.xlu1 %2760  ;;  %3861 = vrot.lane.b32.xlu0 %v3817_v34, %s19110_s28  ;;  %3863 = vrot.lane.b32.xlu1 %v3820_v13, %s19110_s28  ;;  %v14593_v34 = vcombine.low %v3336_v40, %v21414_v5  ;;  %v21491_v13 = vcombine.low %v3297_v41, %v21469_v20  ;;  %v3651_v3 = vrot.slane %v3649_v30, 1  ;;  %v21503_v5 = vcombine.low %v3299_v50, %v21485_v7  ;;  %v21543_v60 = vld [vmem:[%s21067_s29 + $0xd0] sm:$0xf]  ;;  %v3337_v50 = vld [vmem:[%s21067_s29 + $0xa8] sm:$0xe] }
 0x15f   : > { %v2906_v24 = vsel %vm2834_vm2, %v20359_v22, %v2184_v2  ;;  %v3828_v22 = vrot.slane %v21426_v33, 1  ;;  %v3823_v40 = vsel %vm2473_vm0, %v3821_v16, %v3822_v27  ;;  %v3635_v41 = vor.u32 %v3634_v23, %v3630_v55  ;;  %v3301_v2 = vld [vmem:[%s21067_s29 + $0xc0] sm:$0xf] }
 0x160   : > { %v3086_v39 = vsel %vm2979_vm3, %v2906_v24, %v2761_v8  ;;  %v3830_v30 = vrot.slane %v14593_v34, 1  ;;  %v3656_v31 = vshll.u32 %v21491_v13, 16  ;;  %v3647_v8 = vor.u32 %v3646_v10, %v3642_v6  ;;  %v3338_v24 = vld [vmem:[%s21067_s29 + $0xb4] sm:$0xe] }
 0x161   : > { %3232 = vst.msk [vmem:[#allocation2 + $0x118] sm:$0xff] %vm3196_vm4, %v3086_v39  ;;  %v3661_v27 = vshll.u32 %v21500_v36, 16  ;;  %v3668_v16 = vshll.u32 %v21503_v5, 16  ;;  %v3673_v6 = vshll.u32 %v21509_v19, 16 }
 0x162   : > { %3721 = vrot.lane.b32.xlu0 %v3616_v43, %s19111_s26  ;;  %3723 = vrot.lane.b32.xlu1 %v3628_v59, %s19111_s26  ;;  %v21526_v43 = vld [vmem:[%s21067_s29 + $0xc4] sm:$0xf]  ;;  %v3658_v55 = vrot.slane %v3656_v31, 1  ;;  %v3652_v39 = vsel %vm1248_vm1, %v3647_v8, %v3651_v3  ;;  %v14595_v3 = vcombine.low %v3338_v24, %v21485_v7  ;;  %v18854_v31 = vld [vmem:[%s24094_s3 + $0x128] sm:$0xff]   ;;  %v3832_v7 = vsel %vm2473_vm0, %v3830_v30, %v3831_v37 }
 0x163   : > { %v21511_v26 = vld [vmem:[#allocation2 + $0x198] sm:$0xff]  ;;  %v21513_v38 = vld [vmem:[#allocation2 + $0x1a0] sm:$0xff]  ;;  %v2224_v21 = vpop.permute.xlu0 %2223  ;;  %v2226_v58 = vpop.permute.xlu1 %2225  ;;  %v21551_v23 = vcombine.low %v3301_v2, %v21526_v43  ;;  %v3670_v10 = vrot.slane %v3668_v16, 1  ;;  %v3675_v16 = vrot.slane %v3673_v6, 1 }
 0x164   : > { %16346 = vmatmul.mubr.msk.bf16.gmra.mrb[60].mxu1 %vm3196_vm4, %v21029_v63  ;;  %16905 = vmatprep.mubr.msk.bf16.mxu0 %vm3196_vm4, %v21511_v26  ;;  %v2946_v53 = vsel %vm2834_vm2, %v20385_v45, %v2224_v21  ;;  %v2948_v63 = vsel %vm2834_vm2, %v20434_v42, %v2226_v58  ;;  %v3640_v45 = vsel %vm1248_vm1, %v3635_v41, %v3639_v17  ;;  %v3654_v42 = vshrl.u32 %v21491_v13, 16  ;;  %v21561_v21 = vld [vmem:[%s21067_s29 + $0xc8] ss:$0 sps:$4 sm:$0x11]   ;;  %v19004_v37 = vld [vmem:[%s24094_s3 + $0x120] sm:$0xff]  }
 0x165   : > { %16349 = vmatprep.mubr.msk.bf16.mxu1 %vm3196_vm4, %v21095_v15  ;;  %16906 = vmatmul.mubr.msk.bf16.gmra.mrb[60].mxu0 %vm3196_vm4, %v21513_v38  ;;  %v3303_v15 = vld [vmem:[%s21067_s29 + $0xcc] sm:$0xf]  ;;  %v3666_v17 = vshrl.u32 %v21503_v5, 16  ;;  %v3836_v30 = vrot.slane %v14595_v3, 1 }
 0x166   : > { %16985 = vmatprep.mubr.msk.bf16.mxu0 %vm3196_vm4, %v21069_v52  ;;  %3865 = vrot.lane.b32.xlu0 %v3823_v40, %s19110_s28  ;;  %v21564_v58 = vcombine.low %v3303_v15, %v21543_v60  ;;  %v14594_v40 = vcombine.low %v3337_v50, %v21469_v20  ;;  %v9351_v41 = vld [vmem:[#allocation2 + $0xa8] sm:$0xff]  ;;  %v3659_v8 = vor.u32 %v3658_v55, %v3654_v42  ;;  %v3834_v15 = vrot.slane %v21500_v36, 1 }
 0x167   : > { %v2801_v59 = vpop.permute.xlu0 %2800  ;;  %v2803_v51 = vpop.permute.xlu1 %2802  ;;  %3867 = vrot.lane.b32.xlu1 %v3826_v9, %s19110_s28  ;;  %v3829_v20 = vsel %vm2473_vm0, %v21496_v28, %v3828_v22  ;;  %v3671_v22 = vor.u32 %v3670_v10, %v3666_v17  ;;  %v3678_v50 = vshrl.u32 %v21551_v23, 16  ;;  %v3339_v17 = vld [vmem:[%s21067_s29 + $0xc0] sm:$0xe]  ;;  %v3340_v10 = vld [vmem:[%s21067_s29 + $0xcc] sm:$0xe] }
 0x168   : > { %v3146_v52 = vsel %vm2979_vm3, %v2946_v53, %v2801_v59  ;;  %v3149_v34 = vsel %vm2979_vm3, %v2948_v63, %v2803_v51  ;;  %v3663_v53 = vrot.slane %v3661_v27, 1  ;;  %v3680_v63 = vshll.u32 %v21551_v23, 16  ;;  %v21583_v59 = vld [vmem:[%s21067_s29 + $0xd4] ss:$0 sps:$4 sm:$0x11]   ;;  %v21588_v27 = vld [vmem:[%s24094_s3 + $0x60] sm:$0xff]  }
 0x169   : > { %3252 = vst.msk [vmem:[#allocation2 + $0x1b8] sm:$0xff] %vm3196_vm4, %v3146_v52  ;;  %3253 = vst.msk [vmem:[#allocation2 + $0x1c0] sm:$0xff] %vm3196_vm4, %v3149_v34  ;;  %v3692_v36 = vshll.u32 %v21564_v58, 16  ;;  %v3685_v51 = vshll.u32 %v21561_v21, 16  ;;  %v456_v52 = vld [vmem:[%s19243_s30 + $0x1b0] sm:$0xf]  ;;  %16553 = vmatprep.subr.bf16.mxu1 %v21588_v27  ;;  %v3676_v3 = vsel %vm1248_vm1, %v3671_v22, %v3675_v16  ;;  %v14596_v16 = vcombine.low %v3339_v17, %v21526_v43 }
 0x16a   : > { %3725 = vrot.lane.b32.xlu0 %v3640_v45, %s19111_s26  ;;  %v3664_v55 = vsel %vm1248_vm1, %v3659_v8, %v3663_v53  ;;  %v3682_v24 = vrot.slane %v3680_v63, 1  ;;  %v21612_v34 = vld [vmem:[%s19243_s30 + $0x1b4] sm:$0xf]  ;;  %v3697_v6 = vshll.u32 %v21583_v59, 16  ;;  %v3840_v53 = vrot.slane %v21561_v21, 1  ;;  %v18898_v21 = vld [vmem:[%s24094_s3 + $0x138] sm:$0xff]  }
 0x16b   : > { %v2228_v2 = vpop.permute.xlu0 %2227  ;;  %v2230_v9 = vpop.permute.xlu1 %2229  ;;  %3727 = vrot.lane.b32.xlu1 %v3652_v39, %s19111_s26  ;;  %v3687_v8 = vrot.slane %v3685_v51, 1  ;;  %v21630_v63 = vld [vmem:[%s19243_s30 + $0x1b8] ss:$0 sps:$4 sm:$0x11]   ;;  %v3843_v22 = vrot.slane %v21583_v59, 1 }
 0x16c   : > { %16350 = vmatmul.mubr.msk.bf16.gmra.mrb[64].mxu1 %vm3196_vm4, %v21097_v46  ;;  %v9352_v46 = vld [vmem:[#allocation2 + $0xb0] sm:$0xff]  ;;  %v2950_v33 = vsel %vm2834_vm2, %v20484_v49, %v2228_v2  ;;  %v2952_v28 = vsel %vm2834_vm2, %v20487_v35, %v2230_v9  ;;  %v3833_v49 = vrot.slane %v14594_v40, 1  ;;  %v3837_v35 = vrot.slane %v21509_v19, 1  ;;  %v9353_v9 = vld [vmem:[#allocation2 + $0xb8] sm:$0xff] }
 0x16d   : > { %16353 = vmatprep.mubr.msk.bf16.mxu1 %vm3196_vm4, %v21155_v1  ;;  %16986 = vmatmul.mubr.msk.bf16.vlgmr.msra.gmra.mrb[0].mxu0 %vm3196_vm4, %v9351_v41  ;;  %v18874_v1 = vld [vmem:[%s24094_s3 + $0x130] sm:$0xff]   ;;  %v21622_v40 = vcombine.low %v456_v52, %v21612_v34  ;;  %v3690_v41 = vshrl.u32 %v21564_v58, 16  ;;  %v3694_v2 = vrot.slane %v3692_v36, 1 }
 0x16e   : > { %17114 = vmatpush3.bf16.msra.mxu0 %v19004_v37  ;;  %16989 = vmatprep.mubr.msk.bf16.mxu0 %vm3196_vm4, %v9352_v46  ;;  %v3838_v36 = vsel %vm2473_vm0, %v3836_v30, %v3837_v35  ;;  %v3699_v37 = vrot.slane %v3697_v6, 1  ;;  %v636_v51 = vld [vmem:[%s19243_s30 + $0x1b0] sm:$0xe]  ;;  %v3839_v35 = vrot.slane %v14596_v16, 1 }
 0x16f   : > { %17115 = vmatprep.subr.bf16.mxu0 %v18854_v31  ;;  %v2805_v45 = vpop.permute.xlu0 %2804  ;;  %v2807_v42 = vpop.permute.xlu1 %2806  ;;  %3869 = vrot.lane.b32.xlu0 %v3829_v20, %s19110_s28  ;;  %v9354_v20 = vld [vmem:[#allocation2 + $0xc0] sm:$0xff]  ;;  %v1684_v43 = vshll.u32 %v21622_v40, 16  ;;  %v3695_v59 = vor.u32 %v3694_v2, %v3690_v41  ;;  %v24258_v2 = vld [vmem:[#allocation26_spill] sm:$0xff] }
 0x170   : > { %v3152_v39 = vsel %vm2979_vm3, %v2950_v33, %v2805_v45  ;;  %v3155_v19 = vsel %vm2979_vm3, %v2952_v28, %v2807_v42  ;;  %3871 = vrot.lane.b32.xlu1 %v3832_v7, %s19110_s28  ;;  %v3683_v33 = vor.u32 %v3682_v24, %v3678_v50  ;;  %v14597_v28 = vcombine.low %v3340_v10, %v21543_v60 }
 0x171   : > { %3254 = vst.msk [vmem:[#allocation2 + $0x1c8] sm:$0xff] %vm3196_vm4, %v3152_v39  ;;  %3255 = vst.msk [vmem:[#allocation2 + $0x1d0] sm:$0xff] %vm3196_vm4, %v3155_v19  ;;  %v1682_v45 = vshrl.u32 %v21622_v40, 16  ;;  %v14508_v50 = vcombine.low %v636_v51, %v21612_v34  ;;  %v9355_v39 = vld [vmem:[#allocation2 + $0xc8] sm:$0xff]  ;;  %v3841_v19 = vsel %vm2473_vm0, %v3839_v35, %v3840_v53  ;;  %v9356_v34 = vld [vmem:[#allocation2 + $0xd0] sm:$0xff] }
 0x172   : > { %17116 = vmatpush3.bf16.msra.mxu0 %v18854_v31  ;;  %v3835_v31 = vsel %vm2473_vm0, %v3833_v49, %v3834_v15  ;;  %v3688_v30 = vsel %vm1248_vm1, %v3683_v33, %v3687_v8  ;;  %v2583_v8 = vrot.slane %v21630_v63, 1  ;;  %v24262_v35 = vld [vmem:[#allocation10_spill] sm:$0xff] }
 0x173   : > { %v2232_v7 = vpop.permute.xlu0 %2231  ;;  %v2234_v46 = vpop.permute.xlu1 %2233  ;;  %17117 = vmatprep.subr.bf16.mxu0 %v18874_v1  ;;  %3729 = vrot.lane.b32.xlu0 %v3664_v55, %s19111_s26  ;;  %v3700_v55 = vsel %vm1248_vm1, %v3695_v59, %v3699_v37  ;;  %v9359_v59 = vld [vmem:[#allocation2 + $0xe8] sm:$0xff] }
 0x174   : > { %16354 = vmatmul.mubr.msk.bf16.gmra.mrb[68].mxu1 %vm3196_vm4, %v21157_v0  ;;  %3731 = vrot.lane.b32.xlu1 %v3676_v3, %s19111_s26  ;;  %v2954_v60 = vsel %vm2834_vm2, %v20537_v11, %v2232_v7  ;;  %v2956_v0 = vsel %vm2834_vm2, %v20556_v12, %v2234_v46  ;;  %v1686_v12 = vrot.slane %v1684_v43, 1  ;;  %v24257_v3 = vld [vmem:[#allocation25_spill] sm:$0xff] }
 0x175   : > { %16357 = vmatprep.mubr.msk.bf16.mxu1 %vm3196_vm4, %v21214_v57  ;;  %16990 = vmatmul.mubr.msk.bf16.gmra.mrb[4].mxu0 %vm3196_vm4, %v9353_v9  ;;  %v3842_v57 = vrot.slane %v14597_v28, 1  ;;  %v2582_v9 = vrot.slane %v14508_v50, 1  ;;  %v9357_v28 = vld [vmem:[#allocation2 + $0xd8] sm:$0xff]  ;;  %v24263_v50 = vld [vmem:[#allocation28_spill] sm:$0xff] }
 0x176   : > { %16993 = vmatprep.mubr.msk.bf16.mxu0 %vm3196_vm4, %v9354_v20  ;;  %17118 = vmatpush3.bf16.msra.mxu0 %v18874_v1  ;;  %v1689_v1 = vshll.u32 %v21630_v63, 16  ;;  %v1687_v17 = vor.u32 %v1686_v12, %v1682_v45 }
 0x177   : > { %v2809_v15 = vpop.permute.xlu0 %2808  ;;  %v2811_v49 = vpop.permute.xlu1 %2810  ;;  %3873 = vrot.lane.b32.xlu0 %v3835_v31, %s19110_s28  ;;  %17119 = vmatprep.subr.bf16.mxu0 %v18898_v21  ;;  %v3844_v6 = vsel %vm2473_vm0, %v3842_v57, %v3843_v22  ;;  %v2584_v63 = vsel %vm2473_vm0, %v2582_v9, %v2583_v8  ;;  %v9358_v22 = vld [vmem:[#allocation2 + $0xe0] sm:$0xff] }
 0x178   : > { %v3158_v11 = vsel %vm2979_vm3, %v2954_v60, %v2809_v15  ;;  %v3161_v42 = vsel %vm2979_vm3, %v2956_v0, %v2811_v49  ;;  %3875 = vrot.lane.b32.xlu1 %v3838_v36, %s19110_s28  ;;  %v1691_v10 = vrot.slane %v1689_v1, 1  ;;  %v24260_v36 = vld [vmem:[#allocation8_spill] sm:$0xff]  ;;  %v9360_v15 = vld [vmem:[#allocation2 + $0xf0] sm:$0xff]  ;;  %v24261_v49 = vld [vmem:[#allocation9_spill] sm:$0xff] }
 0x179   : > { %3256 = vst.msk [vmem:[#allocation2 + $0x1d8] sm:$0xff] %vm3196_vm4, %v3158_v11  ;;  %3257 = vst.msk [vmem:[#allocation2 + $0x1e0] sm:$0xff] %vm3196_vm4, %v3161_v42  ;;  %v9361_v1 = vld [vmem:[#allocation2 + $0xf8] sm:$0xff] }
 0x17a   : > { %17120 = vmatpush3.bf16.msra.mxu0 %v18898_v21  ;;  %v1692_v46 = vsel %vm1248_vm1, %v1687_v17, %v1691_v10  ;;  %v24259_v21 = vld [vmem:[#allocation27_spill] sm:$0xff] }
 0x17b   : > { %v2236_v24 = vpop.permute.xlu0 %2235  ;;  %v2238_v52 = vpop.permute.xlu1 %2237  ;;  %3733 = vrot.lane.b32.xlu0 %v3688_v30, %s19111_s26 }
 0x17c   : > { %16358 = vmatmul.mubr.msk.bf16.gmra.mrb[72].mxu1 %vm3196_vm4, %v21216_v56  ;;  %3735 = vrot.lane.b32.xlu1 %v3700_v55, %s19111_s26  ;;  %v2958_v41 = vsel %vm2834_vm2, %v24257_v3, %v2236_v24  ;;  %v2960_v56 = vsel %vm2834_vm2, %v24258_v2, %v2238_v52  ;;  %v9362_v55 = vld [vmem:[#allocation2 + $0x100] sm:$0xff]  ;;  %v24264_v52 = vld [vmem:[#allocation11_spill] sm:$0xff] }
 0x17d   : > { %16361 = vmatprep.mubr.msk.bf16.mxu1 %vm3196_vm4, %v21281_v62  ;;  %16994 = vmatmul.mubr.msk.bf16.gmra.mrb[8].mxu0 %vm3196_vm4, %v9355_v39  ;;  %v24265_v2 = vld [vmem:[#allocation12_spill] sm:$0xff] }
 0x17e   : > { %16997 = vmatprep.mubr.msk.bf16.mxu0 %vm3196_vm4, %v9356_v34  ;;  %v9363_v34 = vld [vmem:[#allocation2 + $0x108] sm:$0xff] }
 0x17f   : > { %v2813_v53 = vpop.permute.xlu0 %2812  ;;  %v2815_v20 = vpop.permute.xlu1 %2814  ;;  %3877 = vrot.lane.b32.xlu0 %v3841_v19, %s19110_s28 }
 0x180   : > { %v3164_v62 = vsel %vm2979_vm3, %v2958_v41, %v2813_v53  ;;  %v3167_v7 = vsel %vm2979_vm3, %v2960_v56, %v2815_v20  ;;  %3879 = vrot.lane.b32.xlu1 %v3844_v6, %s19110_s28  ;;  %v9364_v41 = vld [vmem:[#allocation2 + $0x110] sm:$0xff]  ;;  %v4837_v20 = vld [vmem:[#allocation2 + $0x1b8] sm:$0xff] }
 0x181   : > { %3258 = vst.msk [vmem:[#allocation2 + $0x1e8] sm:$0xff] %vm3196_vm4, %v3164_v62  ;;  %3259 = vst.msk [vmem:[#allocation2 + $0x1f0] sm:$0xff] %vm3196_vm4, %v3167_v7  ;;  %v24266_v62 = vld [vmem:[#allocation13_spill] sm:$0xff]  ;;  %v24267_v7 = vld [vmem:[#allocation14_spill] sm:$0xff] }
 0x183   : > { %v2240_v33 = vpop.permute.xlu0 %2239  ;;  %v2242_v16 = vpop.permute.xlu1 %2241  ;;  %2185 = vrot.lane.b32.xlu0 %v1692_v46, %s19111_s26 }
 0x184   : > { %16362 = vmatmul.mubr.msk.bf16.gmra.mrb[76].mxu1 %vm3196_vm4, %v21283_v32  ;;  %2762 = vrot.lane.b32.xlu1 %v2584_v63, %s19110_s28  ;;  %v2962_v31 = vsel %vm2834_vm2, %v24259_v21, %v2240_v33  ;;  %v2964_v37 = vsel %vm2834_vm2, %v24260_v36, %v2242_v16  ;;  %v9366_v16 = vld [vmem:[#allocation2 + $0x130] sm:$0xff] }
 0x185   : > { %16365 = vmatprep.mubr.msk.bf16.mxu1 %vm3196_vm4, %v21342_v18  ;;  %16998 = vmatmul.mubr.msk.bf16.gmra.mrb[12].mxu0 %vm3196_vm4, %v9357_v28 }
 0x186   : > { %17001 = vmatprep.mubr.msk.bf16.mxu0 %vm3196_vm4, %v9358_v22 }
 0x187   : > { %v2817_v43 = vpop.permute.xlu0 %2816  ;;  %v2819_v51 = vpop.permute.xlu1 %2818 }
 0x188   : > { %v3170_v32 = vsel %vm2979_vm3, %v2962_v31, %v2817_v43  ;;  %v3173_v60 = vsel %vm2979_vm3, %v2964_v37, %v2819_v51  ;;  %v24268_v31 = vld [vmem:[#allocation15_spill] sm:$0xff]  ;;  %v21760_v37 = vld [vmem:[#allocation2 + $0x1c8] sm:$0xff]  ;;  %v21763_v51 = vld [vmem:[#allocation2 + $0x1c0] sm:$0xff] }
 0x189   : > { %3260 = vst.msk [vmem:[#allocation2 + $0x1f8] sm:$0xff] %vm3196_vm4, %v3170_v32  ;;  %3261 = vst.msk [vmem:[#allocation2 + $0x200] sm:$0xff] %vm3196_vm4, %v3173_v60  ;;  %v9367_v32 = vld [vmem:[#allocation2 + $0x138] sm:$0xff] }
 0x18b   : > { %v2244_v18 = vpop.permute.xlu0 %2243  ;;  %v2246_v0 = vpop.permute.xlu1 %2245 }
 0x18c   : > { %16366 = vmatmul.mubr.msk.bf16.gmra.mrb[80].mxu1 %vm3196_vm4, %v21344_v48  ;;  %v2966_v30 = vsel %vm2834_vm2, %v24261_v49, %v2244_v18  ;;  %v2968_v57 = vsel %vm2834_vm2, %v24262_v35, %v2246_v0  ;;  %v9368_v0 = vld [vmem:[#allocation2 + $0x140] sm:$0xff]  ;;  %v493_v35 = vld [vmem:[%s19243_s30 + $0x28c] sm:$0xf] }
 0x18d   : > { %16369 = vmatprep.mubr.msk.bf16.mxu1 %vm3196_vm4, %v21398_v47  ;;  %17002 = vmatmul.mubr.msk.bf16.gmra.mrb[16].mxu0 %vm3196_vm4, %v9359_v59  ;;  %v24269_v59 = vld [vmem:[#allocation16_spill] sm:$0xff] }
 0x18e   : > { %17005 = vmatprep.mubr.msk.bf16.mxu0 %vm3196_vm4, %v9360_v15 }
 0x18f   : > { %v2821_v45 = vpop.permute.xlu0 %2820  ;;  %v2823_v11 = vpop.permute.xlu1 %2822 }
 0x190   : > { %v3176_v42 = vsel %vm2979_vm3, %v2966_v30, %v2821_v45  ;;  %v3179_v48 = vsel %vm2979_vm3, %v2968_v57, %v2823_v11  ;;  %v492_v30 = vld [vmem:[%s19243_s30 + $0x288] sm:$0xf]  ;;  %v18905_v11 = vld [vmem:[%s19243_s30 + $0x290] ss:$0 sps:$4 sm:$0x11]  }
 0x191   : > { %3262 = vst.msk [vmem:[#allocation2 + $0x208] sm:$0xff] %vm3196_vm4, %v3176_v42  ;;  %3263 = vst.msk [vmem:[#allocation2 + $0x210] sm:$0xff] %vm3196_vm4, %v3179_v48  ;;  %v654_v57 = vld [vmem:[%s19243_s30 + $0x288] sm:$0xe]  ;;  %v21779_v45 = vcombine.low %v492_v30, %v493_v35 }
 0x192   : > { %v14526_v42 = vcombine.low %v654_v57, %v493_v35  ;;  %v9373_v30 = vld [vmem:[#allocation2 + $0x168] sm:$0xff] }
 0x193   : > { %v2248_v47 = vpop.permute.xlu0 %2247  ;;  %v2250_v12 = vpop.permute.xlu1 %2249 }
 0x194   : > { %16370 = vmatmul.mubr.msk.bf16.gmra.mrb[84].mxu1 %vm3196_vm4, %v21400_v14  ;;  %v2970_v24 = vsel %vm2834_vm2, %v24263_v50, %v2248_v47  ;;  %v2972_v39 = vsel %vm2834_vm2, %v24264_v52, %v2250_v12  ;;  %v18903_v14 = vld [vmem:[%s24094_s3 + $0x140] sm:$0xff]   ;;  %v1898_v12 = vshrl.u32 %v21779_v45, 16  ;;  %v24270_v50 = vld [vmem:[#allocation17_spill] sm:$0xff]  ;;  %v1905_v52 = vshll.u32 %v18905_v11, 16 }
 0x195   : > { %16373 = vmatprep.mubr.msk.bf16.mxu1 %vm3196_vm4, %v21454_v25  ;;  %17006 = vmatmul.mubr.msk.bf16.gmra.mrb[20].mxu0 %vm3196_vm4, %v9361_v1  ;;  %v1900_v1 = vshll.u32 %v21779_v45, 16 }
 0x196   : > { %17009 = vmatprep.mubr.msk.bf16.mxu0 %vm3196_vm4, %v9362_v55  ;;  %17121 = vmatprep.subr.bf16.mxu0 %v18903_v14  ;;  %v21784_v55 = vld [vmem:[#allocation2 + $0x1d8] sm:$0xff] }
 0x197   : > { %v2825_v19 = vpop.permute.xlu0 %2824  ;;  %17122 = vmatpush3.bf16.msra.mxu0 %v18903_v14  ;;  %v21788_v14 = vld [vmem:[#allocation2 + $0x1d0] sm:$0xff] }
 0x198   : > { %v3182_v6 = vsel %vm2979_vm3, %v2970_v24, %v2825_v19  ;;  %v2827_v17 = vpop.permute.xlu1 %2826  ;;  %v2637_v19 = vrot.slane %v18905_v11, 1  ;;  %v9374_v11 = vld [vmem:[#allocation2 + $0x170] sm:$0xff] }
 0x199   : > { %3264 = vst.msk [vmem:[#allocation2 + $0x218] sm:$0xff] %vm3196_vm4, %v3182_v6  ;;  %v3185_v25 = vsel %vm2979_vm3, %v2972_v39, %v2827_v17  ;;  %v2636_v39 = vrot.slane %v14526_v42, 1  ;;  %v1902_v6 = vrot.slane %v1900_v1, 1  ;;  %v9369_v17 = vld [vmem:[#allocation2 + $0x148] sm:$0xff]  ;;  %v24275_v42 = vld [vmem:[#allocation22_spill] sm:$0xff] }
 0x19a   : > { %3265 = vst.msk [vmem:[#allocation2 + $0x220] sm:$0xff] %vm3196_vm4, %v3185_v25 }
 0x19b   : > { %v2252_v10 = vpop.permute.xlu0 %2251 }
 0x19c   : > { %16374 = vmatmul.mubr.msk.bf16.gmra.mrb[88].mxu1 %vm3196_vm4, %v21456_v54  ;;  %v2220_v3 = vpop.permute.xlu1 %2219  ;;  %v2974_v56 = vsel %vm2834_vm2, %v24265_v2, %v2252_v10 }
 0x19d   : > { %16377 = vmatprep.mubr.msk.bf16.mxu1 %vm3196_vm4, %v21511_v26  ;;  %17010 = vmatmul.mubr.msk.bf16.gmra.mrb[24].mxu0 %vm3196_vm4, %v9363_v34  ;;  %v2942_v54 = vsel %vm2834_vm2, %v24266_v62, %v2220_v3  ;;  %v9365_v26 = vld [vmem:[#allocation2 + $0x118] sm:$0xff]  ;;  %v1907_v34 = vrot.slane %v1905_v52, 1  ;;  %v2638_v3 = vsel %vm2473_vm0, %v2636_v39, %v2637_v19  ;;  %v21847_v39 = vld [vmem:[#allocation2 + $0x208] sm:$0xff]  ;;  %v21851_v19 = vld [vmem:[#allocation2 + $0x200] sm:$0xff] }
 0x19e   : > { %17013 = vmatprep.mubr.msk.bf16.mxu0 %vm3196_vm4, %v9364_v41  ;;  %v9370_v41 = vld [vmem:[#allocation2 + $0x150] sm:$0xff]  ;;  %2798 = vrot.lane.b32.xlu1 %v2638_v3, %s19110_s28 }
 0x19f   : > { %v2254_v9 = vpop.permute.xlu0 %2253 }
 0x1a0   : > { %v2829_v8 = vpop.permute.xlu1 %2828  ;;  %v2976_v46 = vsel %vm2834_vm2, %v24267_v7, %v2254_v9  ;;  %v24271_v9 = vld [vmem:[#allocation18_spill] sm:$0xff] }
 0x1a1   : > { %v3188_v53 = vsel %vm2979_vm3, %v2974_v56, %v2829_v8  ;;  %v1903_v56 = vor.u32 %v1902_v6, %v1898_v12  ;;  %v9375_v6 = vld [vmem:[#allocation2 + $0x178] sm:$0xff] }
 0x1a2   : > { %3266 = vst.msk [vmem:[#allocation2 + $0x228] sm:$0xff] %vm3196_vm4, %v3188_v53  ;;  %v24272_v53 = vld [vmem:[#allocation19_spill] sm:$0xff] }
 0x1a3   : > { %v2797_v63 = vpop.permute.xlu0 %2796  ;;  %v1908_v62 = vsel %vm1248_vm1, %v1903_v56, %v1907_v34 }
 0x1a4   : > { %16378 = vmatmul.mubr.msk.bf16.gmra.mrb[92].mxu1 %vm3196_vm4, %v21513_v38  ;;  %v2831_v33 = vpop.permute.xlu1 %2830  ;;  %v3140_v28 = vsel %vm2979_vm3, %v2942_v54, %v2797_v63  ;;  %2221 = vrot.lane.b32.xlu0 %v1908_v62, %s19111_s26  ;;  %v21808_v63 = vld [vmem:[#allocation2 + $0x1e8] sm:$0xff]  ;;  %v9378_v62 = vld [vmem:[#allocation2 + $0x190] sm:$0xff] }
 0x1a5   : > { %17014 = vmatmul.mubr.msk.bf16.gmra.mrb[28].mxu0 %vm3196_vm4, %v9365_v26  ;;  %16381 = vmatprep.mubr.msk.bf16.mxu1 %vm3196_vm4, %v4837_v20  ;;  %v3191_v22 = vsel %vm2979_vm3, %v2976_v46, %v2831_v33  ;;  %3250 = vst.msk [vmem:[#allocation2 + $0x1a8] sm:$0xff] %vm3196_vm4, %v3140_v28  ;;  %v21812_v33 = vld [vmem:[#allocation2 + $0x1e0] sm:$0xff] }
 0x1a6   : > { %17017 = vmatprep.mubr.msk.bf16.mxu0 %vm3196_vm4, %v9366_v16  ;;  %3267 = vst.msk [vmem:[#allocation2 + $0x230] sm:$0xff] %vm3196_vm4, %v3191_v22  ;;  %v9371_v16 = vld [vmem:[#allocation2 + $0x158] sm:$0xff] }
 0x1a8   : > { %v2114_v21 = vpop.permute.xlu0 %2113  ;;  %v2691_v38 = vpop.permute.xlu1 %2690 }
 0x1a9   : > { %v2836_v36 = vsel %vm2834_vm2, %v24268_v31, %v2114_v21  ;;  %v9372_v21 = vld [vmem:[#allocation2 + $0x160] sm:$0xff] }
 0x1aa   : > { %v2981_v43 = vsel %vm2979_vm3, %v2836_v36, %v2691_v38  ;;  %v24273_v38 = vld [vmem:[#allocation20_spill] sm:$0xff]  ;;  %v24274_v36 = vld [vmem:[#allocation21_spill] sm:$0xff] }
 0x1ab   : > { %3197 = vst.msk [vmem:[#allocation2] sm:$0xff] %vm3196_vm4, %v2981_v43 }
 0x1ac   : > { %16382 = vmatmul.mubr.msk.bf16.gmra.mrb[96].mxu1 %vm3196_vm4, %v21763_v51  ;;  %v2256_v60 = vpop.permute.xlu0 %2255  ;;  %v2833_v18 = vpop.permute.xlu1 %2832 }
 0x1ad   : > { %17018 = vmatmul.mubr.msk.bf16.gmra.mrb[32].mxu0 %vm3196_vm4, %v9367_v32  ;;  %16385 = vmatprep.mubr.msk.bf16.mxu1 %vm3196_vm4, %v21760_v37  ;;  %v2978_v15 = vsel %vm2834_vm2, %v24269_v59, %v2256_v60  ;;  %v18908_v32 = vld [vmem:[%s24094_s3 + $0x148] sm:$0xff]  }
 0x1ae   : > { %17021 = vmatprep.mubr.msk.bf16.mxu0 %vm3196_vm4, %v9368_v0  ;;  %v3194_v49 = vsel %vm2979_vm3, %v2978_v15, %v2833_v18  ;;  %17123 = vmatprep.subr.bf16.mxu0 %v18908_v32  ;;  %v21829_v15 = vld [vmem:[#allocation2 + $0x1f8] sm:$0xff] }
 0x1af   : > { %3268 = vst.msk [vmem:[#allocation2 + $0x238] sm:$0xff] %vm3196_vm4, %v3194_v49  ;;  %17124 = vmatpush3.bf16.msra.mxu0 %v18908_v32  ;;  %v21833_v49 = vld [vmem:[#allocation2 + $0x1f0] sm:$0xff]  ;;  %v9380_v32 = vld [vmem:[#allocation2 + $0x1a0] sm:$0xff] }
 0x1b0   : > { %v2150_v48 = vpop.permute.xlu0 %2149  ;;  %v3706_v47 = vpop.permute.xlu1 %3705 }
 0x1b1   : > { %v2872_v24 = vsel %vm2834_vm2, %v24270_v50, %v2150_v48  ;;  %v3886_v8 = vsel %vm2834_vm2, %v24271_v9, %v3706_v47  ;;  %v24276_v47 = vld [vmem:[#allocation23_spill] sm:$0xff] }
 0x1b4   : > { %16386 = vmatmul.mubr.msk.bf16.gmra.mrb[100].mxu1 %vm3196_vm4, %v21788_v14  ;;  %v2727_v25 = vpop.permute.xlu0 %2726  ;;  %v3708_v10 = vpop.permute.xlu1 %3707 }
 0x1b5   : > { %17022 = vmatmul.mubr.msk.bf16.gmra.mrb[36].mxu0 %vm3196_vm4, %v9369_v17  ;;  %16389 = vmatprep.mubr.msk.bf16.mxu1 %vm3196_vm4, %v21784_v55  ;;  %v3035_v2 = vsel %vm2979_vm3, %v2872_v24, %v2727_v25  ;;  %v3888_v20 = vsel %vm2834_vm2, %v24272_v53, %v3708_v10  ;;  %v9376_v10 = vld [vmem:[#allocation2 + $0x180] sm:$0xff]  ;;  %v21869_v53 = vld [vmem:[#allocation2 + $0x210] sm:$0xff] }
 0x1b6   : > { %17025 = vmatprep.mubr.msk.bf16.mxu0 %vm3196_vm4, %v9370_v41  ;;  %3215 = vst.msk [vmem:[#allocation2 + $0x90] sm:$0xff] %vm3196_vm4, %v3035_v2 }
 0x1b8   : > { %v3850_v54 = vpop.permute.xlu0 %3849  ;;  %v3852_v7 = vpop.permute.xlu1 %3851 }
 0x1b9   : > { %v3924_v46 = vsel %vm2979_vm3, %v3886_v8, %v3850_v54  ;;  %v3927_v26 = vsel %vm2979_vm3, %v3888_v20, %v3852_v7  ;;  %v21865_v8 = vld [vmem:[#allocation2 + $0x218] sm:$0xff]  ;;  %v24277_v54 = vld [vmem:[#allocation24_spill] sm:$0xff] }
 0x1ba   : > { %3974 = vst.msk [vmem:[#allocation2 + $0x250] sm:$0xff] %vm3196_vm4, %v3924_v46  ;;  %3975 = vst.msk [vmem:[#allocation2 + $0x258] sm:$0xff] %vm3196_vm4, %v3927_v26  ;;  %v24278_v46 = vld [vmem:[#allocation29_spill] sm:$0xff] }
 0x1bc   : > { %16390 = vmatmul.mubr.msk.bf16.gmra.mrb[104].mxu1 %vm3196_vm4, %v21812_v33  ;;  %v3710_v28 = vpop.permute.xlu0 %3709  ;;  %v3712_v22 = vpop.permute.xlu1 %3711 }
 0x1bd   : > { %17026 = vmatmul.mubr.msk.bf16.gmra.mrb[40].mxu0 %vm3196_vm4, %v9371_v16  ;;  %16393 = vmatprep.mubr.msk.bf16.mxu1 %vm3196_vm4, %v21808_v63  ;;  %v3890_v31 = vsel %vm2834_vm2, %v24273_v38, %v3710_v28  ;;  %v3892_v43 = vsel %vm2834_vm2, %v24274_v36, %v3712_v22  ;;  %v9379_v36 = vld [vmem:[#allocation2 + $0x198] sm:$0xff] }
 0x1be   : > { %17029 = vmatprep.mubr.msk.bf16.mxu0 %vm3196_vm4, %v9372_v21  ;;  %v21882_v21 = vld [vmem:[#allocation2 + $0x228] sm:$0xff] }
 0x1c0   : > { %v3854_v60 = vpop.permute.xlu0 %3853  ;;  %v3856_v18 = vpop.permute.xlu1 %3855 }
 0x1c1   : > { %v3930_v0 = vsel %vm2979_vm3, %v3890_v31, %v3854_v60  ;;  %v3933_v59 = vsel %vm2979_vm3, %v3892_v43, %v3856_v18  ;;  %v21886_v31 = vld [vmem:[#allocation2 + $0x220] sm:$0xff] }
 0x1c2   : > { %3976 = vst.msk [vmem:[#allocation2 + $0x260] sm:$0xff] %vm3196_vm4, %v3930_v0  ;;  %3977 = vst.msk [vmem:[#allocation2 + $0x268] sm:$0xff] %vm3196_vm4, %v3933_v59 }
 0x1c4   : > { %16394 = vmatmul.mubr.msk.bf16.gmra.mrb[108].mxu1 %vm3196_vm4, %v21833_v49  ;;  %v3714_v35 = vpop.permute.xlu0 %3713  ;;  %v3716_v57 = vpop.permute.xlu1 %3715 }
 0x1c5   : > { %17030 = vmatmul.mubr.msk.bf16.gmra.mrb[44].mxu0 %vm3196_vm4, %v9373_v30  ;;  %16397 = vmatprep.mubr.msk.bf16.mxu1 %vm3196_vm4, %v21829_v15  ;;  %v3894_v48 = vsel %vm2834_vm2, %v24275_v42, %v3714_v35  ;;  %v3896_v12 = vsel %vm2834_vm2, %v24276_v47, %v3716_v57  ;;  %v4712_v30 = vld [vmem:[#allocation2] sm:$0xff] }
 0x1c6   : > { %17033 = vmatprep.mubr.msk.bf16.mxu0 %vm3196_vm4, %v9374_v11  ;;  %v21900_v11 = vld [vmem:[#allocation2 + $0x230] sm:$0xff]  ;;  %v3269_v47 = vld [vmem:[%s21067_s29] sm:$0xf] }
 0x1c8   : > { %v3858_v1 = vpop.permute.xlu0 %3857  ;;  %v3860_v50 = vpop.permute.xlu1 %3859 }
 0x1c9   : > { %v3936_v24 = vsel %vm2979_vm3, %v3894_v48, %v3858_v1  ;;  %v3939_v52 = vsel %vm2979_vm3, %v3896_v12, %v3860_v50  ;;  %v3270_v12 = vld [vmem:[%s21067_s29 + $0x4] sm:$0xf]  ;;  %v3271_v1 = vld [vmem:[%s21067_s29 + $0xc] sm:$0xf] }
 0x1ca   : > { %3978 = vst.msk [vmem:[#allocation2 + $0x270] sm:$0xff] %vm3196_vm4, %v3936_v24  ;;  %3979 = vst.msk [vmem:[#allocation2 + $0x278] sm:$0xff] %vm3196_vm4, %v3939_v52  ;;  %v21916_v24 = vcombine.low %v3269_v47, %v3270_v12  ;;  %v18910_v52 = vld [vmem:[%s21067_s29 + $0x8] ss:$0 sps:$4 sm:$0x11]   ;;  %v4715_v47 = vld [vmem:[#allocation2 + $0x18] sm:$0xff] }
 0x1cc   : > { %16398 = vmatmul.mubr.msk.bf16.gmra.mrb[112].mxu1 %vm3196_vm4, %v21851_v19  ;;  %v3718_v17 = vpop.permute.xlu0 %3717  ;;  %v3720_v25 = vpop.permute.xlu1 %3719 }
 0x1cd   : > { %17034 = vmatmul.mubr.msk.bf16.gmra.mrb[48].mxu0 %vm3196_vm4, %v9375_v6  ;;  %16401 = vmatprep.mubr.msk.bf16.mxu1 %vm3196_vm4, %v21847_v39  ;;  %v3898_v34 = vsel %vm2834_vm2, %v21298_v61, %v3718_v17  ;;  %v3900_v3 = vsel %vm2834_vm2, %v21310_v29, %v3720_v25  ;;  %v9377_v61 = vld [vmem:[#allocation2 + $0x188] sm:$0xff]  ;;  %v3272_v6 = vld [vmem:[%s21067_s29 + $0x10] sm:$0xf] }
 0x1ce   : > { %17037 = vmatprep.mubr.msk.bf16.mxu0 %vm3196_vm4, %v9376_v10  ;;  %v21922_v25 = vcombine.low %v3271_v1, %v3272_v6  ;;  %v21925_v10 = vld [vmem:[%s21067_s29 + $0x14] ss:$0 sps:$4 sm:$0x11]   ;;  %v4716_v1 = vld [vmem:[#allocation2 + $0x20] sm:$0xff] }
 0x1d0   : > { %v3862_v41 = vpop.permute.xlu0 %3861  ;;  %v3864_v2 = vpop.permute.xlu1 %3863 }
 0x1d1   : > { %v3942_v56 = vsel %vm2979_vm3, %v3898_v34, %v3862_v41  ;;  %v3945_v9 = vsel %vm2979_vm3, %v3900_v3, %v3864_v2  ;;  %v3488_v3 = vshll.u32 %v21916_v24, 16  ;;  %v3493_v41 = vshll.u32 %v18910_v52, 16 }
 0x1d2   : > { %3980 = vst.msk [vmem:[#allocation2 + $0x280] sm:$0xff] %vm3196_vm4, %v3942_v56  ;;  %3981 = vst.msk [vmem:[#allocation2 + $0x288] sm:$0xff] %vm3196_vm4, %v3945_v9  ;;  %v3500_v9 = vshll.u32 %v21922_v25, 16 }
 0x1d4   : > { %16402 = vmatmul.mubr.msk.bf16.gmra.mrb[116].mxu1 %vm3196_vm4, %v21869_v53  ;;  %v3722_v20 = vpop.permute.xlu0 %3721  ;;  %v3724_v29 = vpop.permute.xlu1 %3723 }
 0x1d5   : > { %17038 = vmatmul.mubr.msk.bf16.gmra.mrb[52].mxu0 %vm3196_vm4, %v9377_v61  ;;  %16405 = vmatprep.mubr.msk.bf16.mxu1 %vm3196_vm4, %v21865_v8  ;;  %v3902_v7 = vsel %vm2834_vm2, %v24277_v54, %v3722_v20  ;;  %v3904_v26 = vsel %vm2834_vm2, %v24278_v46, %v3724_v29  ;;  %v3505_v61 = vshll.u32 %v21925_v10, 16  ;;  %v4713_v20 = vld [vmem:[#allocation2 + $0x8] sm:$0xff]  ;;  %v3495_v54 = vrot.slane %v3493_v41, 1 }
 0x1d6   : > { %17041 = vmatprep.mubr.msk.bf16.mxu0 %vm3196_vm4, %v9378_v62  ;;  %v3490_v62 = vrot.slane %v3488_v3, 1  ;;  %v3502_v46 = vrot.slane %v3500_v9, 1  ;;  %v4722_v3 = vld [vmem:[#allocation2 + $0x50] sm:$0xff]  ;;  %v418_v41 = vld [vmem:[%s19243_s30 + $0xcc] sm:$0xf] }
 0x1d7   : > { %v617_v9 = vld [vmem:[%s19243_s30 + $0xcc] sm:$0xe] }
 0x1d8   : > { %v3866_v16 = vpop.permute.xlu0 %3865 }
 0x1d9   : > { %v3948_v28 = vsel %vm2979_vm3, %v3902_v7, %v3866_v16  ;;  %v3868_v22 = vpop.permute.xlu1 %3867  ;;  %v4714_v7 = vld [vmem:[#allocation2 + $0x10] sm:$0xff] }
 0x1da   : > { %3982 = vst.msk [vmem:[#allocation2 + $0x290] sm:$0xff] %vm3196_vm4, %v3948_v28  ;;  %v3951_v38 = vsel %vm2979_vm3, %v3904_v26, %v3868_v22  ;;  %v3507_v26 = vrot.slane %v3505_v61, 1  ;;  %v21943_v16 = vld [vmem:[%s24094_s3 + $0x150] sm:$0xff]   ;;  %v3323_v28 = vld [vmem:[%s21067_s29] sm:$0xe] }
 0x1db   : > { %3983 = vst.msk [vmem:[#allocation2 + $0x298] sm:$0xff] %vm3196_vm4, %v3951_v38  ;;  %17253 = vmatprep.subr.bf16.mxu0 %v21943_v16 }
 0x1dc   : > { %16406 = vmatmul.mubr.msk.bf16.gmra.mrb[120].mxu1 %vm3196_vm4, %v21886_v31  ;;  %v3726_v43 = vpop.permute.xlu0 %3725 }
 0x1dd   : > { %17042 = vmatmul.mubr.msk.bf16.gmra.mrb[56].mxu0 %vm3196_vm4, %v9379_v36  ;;  %16409 = vmatprep.mubr.msk.bf16.mxu1 %vm3196_vm4, %v21882_v21  ;;  %v3728_v60 = vpop.permute.xlu1 %3727  ;;  %v3906_v18 = vsel %vm2834_vm2, %v21431_v44, %v3726_v43  ;;  %v9381_v44 = vld [vmem:[#allocation2 + $0x1a8] sm:$0xff]  ;;  %v14580_v36 = vcombine.low %v3323_v28, %v3270_v12  ;;  %v3792_v43 = vrot.slane %v18910_v52, 1  ;;  %v4729_v28 = vld [vmem:[#allocation2 + $0x98] sm:$0xff] }
 0x1de   : > { %17045 = vmatprep.mubr.msk.bf16.mxu0 %vm3196_vm4, %v9380_v32  ;;  %v3908_v0 = vsel %vm2834_vm2, %v21434_v4, %v3728_v60  ;;  %v18907_v32 = vld [vmem:[%s24094_s3 + $0x70] sm:$0xff]  }
 0x1e1   : > { %v3870_v59 = vpop.permute.xlu0 %3869 }
 0x1e2   : > { %v3954_v35 = vsel %vm2979_vm3, %v3906_v18, %v3870_v59  ;;  %v3872_v57 = vpop.permute.xlu1 %3871  ;;  %v3791_v59 = vrot.slane %v14580_v36, 1 }
 0x1e3   : > { %3984 = vst.msk [vmem:[#allocation2 + $0x2a0] sm:$0xff] %vm3196_vm4, %v3954_v35  ;;  %v3957_v42 = vsel %vm2979_vm3, %v3908_v0, %v3872_v57 }
 0x1e4   : > { %16410 = vmatmul.mubr.msk.bf16.gmra.mrb[124].mxu1 %vm3196_vm4, %v21900_v11  ;;  %3985 = vst.msk [vmem:[#allocation2 + $0x2a8] sm:$0xff] %vm3196_vm4, %v3957_v42  ;;  %v3795_v42 = vrot.slane %v21925_v10, 1 }
 0x1e5   : > { %17046 = vmatmul.mubr.msk.bf16.gmra.mrb[60].mxu0 %vm3196_vm4, %v9381_v44  ;;  %16425 = vmatprep.mubr.msk.bf16.mxu1 %vm3196_vm4, %v4712_v30  ;;  %v3730_v4 = vpop.permute.xlu0 %3729  ;;  %v3324_v30 = vld [vmem:[%s21067_s29 + $0xc] sm:$0xe] }
 0x1e6   : > { %17049 = vmatprep.mubr.msk.bf16.mxu0 %vm3196_vm4, %v21763_v51  ;;  %v3732_v48 = vpop.permute.xlu1 %3731  ;;  %v3910_v50 = vsel %vm2834_vm2, %v21491_v13, %v3730_v4  ;;  %v3486_v51 = vshrl.u32 %v21916_v24, 16  ;;  %v18902_v13 = vld [vmem:[%s24094_s3 + $0x68] sm:$0xff]   ;;  %v14581_v57 = vcombine.low %v3324_v30, %v3272_v6 }
 0x1e7   : > { %v3912_v17 = vsel %vm2834_vm2, %v21503_v5, %v3732_v48  ;;  %v3498_v5 = vshrl.u32 %v21922_v25, 16 }
 0x1e8   : > { %v3491_v38 = vor.u32 %v3490_v62, %v3486_v51  ;;  %v3794_v48 = vrot.slane %v14581_v57, 1  ;;  %v4718_v51 = vld [vmem:[#allocation2 + $0x30] sm:$0xff] }
 0x1e9   : > { %v3874_v34 = vpop.permute.xlu0 %3873  ;;  %v3503_v18 = vor.u32 %v3502_v46, %v3498_v5  ;;  %v18920_v5 = vld [vmem:[%s19243_s30 + $0xd4] ss:$0 sps:$4 sm:$0x11]  }
 0x1ea   : > { %v3960_v2 = vsel %vm2979_vm3, %v3910_v50, %v3874_v34  ;;  %v3876_v56 = vpop.permute.xlu1 %3875  ;;  %v3496_v0 = vsel %vm1248_vm1, %v3491_v38, %v3495_v54  ;;  %v3796_v50 = vsel %vm2473_vm0, %v3794_v48, %v3795_v42  ;;  %v4717_v34 = vld [vmem:[#allocation2 + $0x28] sm:$0xff]  ;;  %v1461_v61 = vshll.u32 %v18920_v5, 16  ;;  %v4732_v57 = vld [vmem:[#allocation2 + $0xb0] sm:$0xff] }
 0x1eb   : > { %3986 = vst.msk [vmem:[#allocation2 + $0x2b0] sm:$0xff] %vm3196_vm4, %v3960_v2  ;;  %v3963_v29 = vsel %vm2979_vm3, %v3912_v17, %v3876_v56  ;;  %3701 = vrot.lane.b32.xlu0 %v3496_v0, %s19111_s26  ;;  %v3508_v35 = vsel %vm1248_vm1, %v3503_v18, %v3507_v26  ;;  %v9397_v2 = vld [vmem:[#allocation2 + $0x238] sm:$0xff] }
 0x1ec   : > { %16426 = vmatmul.mubr.msk.bf16.vlgmr.msra.gmra.mrb[0].mxu1 %vm3196_vm4, %v4713_v20  ;;  %3987 = vst.msk [vmem:[#allocation2 + $0x2b8] sm:$0xff] %vm3196_vm4, %v3963_v29  ;;  %3703 = vrot.lane.b32.xlu1 %v3508_v35, %s19111_s26  ;;  %v2526_v29 = vrot.slane %v18920_v5, 1  ;;  %v9399_v18 = vld [vmem:[#allocation2 + $0x258] sm:$0xff] }
 0x1ed   : > { %16429 = vmatprep.mubr.msk.bf16.mxu1 %vm3196_vm4, %v4714_v7  ;;  %16554 = vmatpush3.bf16.msra.mxu1 %v21588_v27  ;;  %v3734_v22 = vpop.permute.xlu0 %3733  ;;  %v1463_v7 = vrot.slane %v1461_v61, 1 }
 0x1ee   : > { %17050 = vmatmul.mubr.msk.bf16.gmra.mrb[64].mxu0 %vm3196_vm4, %v21760_v37  ;;  %16555 = vmatprep.subr.bf16.mxu1 %v18902_v13  ;;  %v3736_v60 = vpop.permute.xlu1 %3735  ;;  %v3914_v27 = vsel %vm2834_vm2, %v21551_v23, %v3734_v22  ;;  %v3793_v23 = vsel %vm2473_vm0, %v3791_v59, %v3792_v43  ;;  %v4730_v43 = vld [vmem:[#allocation2 + $0xa0] sm:$0xff]  ;;  %v4731_v59 = vld [vmem:[#allocation2 + $0xa8] sm:$0xff] }
 0x1ef   : > { %17053 = vmatprep.mubr.msk.bf16.mxu0 %vm3196_vm4, %v21788_v14  ;;  %v3916_v37 = vsel %vm2834_vm2, %v21564_v58, %v3736_v60  ;;  %v18913_v58 = vld [vmem:[%s24094_s3 + $0x78] sm:$0xff]   ;;  %3845 = vrot.lane.b32.xlu0 %v3793_v23, %s19110_s28  ;;  %v9401_v23 = vld [vmem:[#allocation2 + $0x268] sm:$0xff] }
 0x1f0   : > { %3847 = vrot.lane.b32.xlu1 %v3796_v50, %s19110_s28 }
 0x1f1   : > { %16556 = vmatpush3.bf16.msra.mxu1 %v18902_v13  ;;  %v3878_v14 = vpop.permute.xlu0 %3877  ;;  %v419_v13 = vld [vmem:[%s19243_s30 + $0xd0] sm:$0xf]  ;;  %s377_s30 = sadd.s32 %s18572_s12, %s19225_s17  ;;  %s15511_s17 = sshll.u32 %s14182_s21, 6 }
 0x1f2   : > { %16557 = vmatprep.subr.bf16.mxu1 %v18907_v32  ;;  %v3966_v44 = vsel %vm2979_vm3, %v3914_v27, %v3878_v14  ;;  %v3880_v4 = vpop.permute.xlu1 %3879  ;;  %v22024_v56 = vcombine.low %v418_v41, %v419_v13  ;;  %v14489_v20 = vcombine.low %v617_v9, %v419_v13  ;;  %s14327_s9 = sshll.u32 %s377_s30, 2  ;;  %s24029_s27 = scalar_lea.hbm %s24096_s5, %s15511_s17 }
 0x1f3   : > { %3988 = vst.msk [vmem:[#allocation2 + $0x2c0] sm:$0xff] %vm3196_vm4, %v3966_v44  ;;  %v3969_v12 = vsel %vm2979_vm3, %v3916_v37, %v3880_v4  ;;  %s22049_s14 = scalar_lea.vmem %s24093_s2, %s14327_s9 }
 0x1f4   : > { %16430 = vmatmul.mubr.msk.bf16.gmra.mrb[4].mxu1 %vm3196_vm4, %v4715_v47  ;;  %3989 = vst.msk [vmem:[#allocation2 + $0x2c8] sm:$0xff] %vm3196_vm4, %v3969_v12  ;;  %v2525_v46 = vrot.slane %v14489_v20, 1  ;;  %v3991_v0 = vld [vmem:[%s22049_s14 + $0x4] sm:$0xf]  ;;  %v3992_v35 = vld [vmem:[%s22049_s14 + $0xc] sm:$0xf] }
 0x1f5   : > { %16433 = vmatprep.mubr.msk.bf16.mxu1 %vm3196_vm4, %v4716_v1  ;;  %16558 = vmatpush3.bf16.msra.mxu1 %v18907_v32  ;;  %v2186_v52 = vpop.permute.xlu0 %2185  ;;  %v9400_v32 = vld [vmem:[#allocation2 + $0x260] sm:$0xff]  ;;  %v18923_v37 = vld [vmem:[%s22049_s14 + $0x8] ss:$0 sps:$4 sm:$0x11]   ;;  %v3993_v42 = vld [vmem:[%s22049_s14 + $0x10] sm:$0xf] }
 0x1f6   : > { %17054 = vmatmul.mubr.msk.bf16.gmra.mrb[68].mxu0 %vm3196_vm4, %v21784_v55  ;;  %v2908_v6 = vsel %vm2834_vm2, %v21622_v40, %v2186_v52  ;;  %v2763_v17 = vpop.permute.xlu1 %2762  ;;  %16559 = vmatprep.subr.bf16.mxu1 %v18913_v58  ;;  %v4719_v40 = vld [vmem:[#allocation2 + $0x38] sm:$0xff]  ;;  %v4720_v55 = vld [vmem:[#allocation2 + $0x40] sm:$0xff]  ;;  %v2527_v36 = vsel %vm2473_vm0, %v2525_v46, %v2526_v29  ;;  %v22061_v48 = vcombine.low %v3992_v35, %v3993_v42  ;;  %v18925_v47 = vld [vmem:[%s22049_s14 + $0x14] ss:$0 sps:$4 sm:$0x11]   ;;  %v4513_v50 = vrot.slane %v18923_v37, 1 }
 0x1f7   : > { %17057 = vmatprep.mubr.msk.bf16.mxu0 %vm3196_vm4, %v21812_v33  ;;  %v3089_v10 = vsel %vm2979_vm3, %v2908_v6, %v2763_v17  ;;  %v4721_v33 = vld [vmem:[#allocation2 + $0x48] sm:$0xff]  ;;  %2724 = vrot.lane.b32.xlu1 %v2527_v36, %s19110_s28  ;;  %v4044_v14 = vld [vmem:[%s22049_s14] sm:$0xe]  ;;  %v9402_v12 = vld [vmem:[#allocation2 + $0x270] sm:$0xff] }
 0x1f8   : > { %3233 = vst.msk [vmem:[#allocation2 + $0x120] sm:$0xff] %vm3196_vm4, %v3089_v10  ;;  %v14634_v1 = vcombine.low %v4044_v14, %v3991_v0  ;;  %v4045_v52 = vld [vmem:[%s22049_s14 + $0xc] sm:$0xe]  ;;  %v3994_v6 = vld [vmem:[%s22049_s14 + $0x18] sm:$0xf]  ;;  %v4734_v20 = vld [vmem:[#allocation2 + $0xc0] sm:$0xff] }
 0x1f9   : > { %16560 = vmatpush3.bf16.msra.mxu1 %v18913_v58  ;;  %v4214_v58 = vshll.u32 %v18923_v37, 16  ;;  %v3997_v13 = vld [vmem:[%s22049_s14 + $0x28] sm:$0xf]  ;;  %v22085_v61 = vld [vmem:[%s22049_s14 + $0x2c] ss:$0 sps:$4 sm:$0x11]  }
 0x1fa   : > { %v4250_v36 = vshll.u32 %v22085_v61, 16  ;;  %v22108_v14 = vld [vmem:[%s22049_s14 + $0x38] ss:$0 sps:$4 sm:$0x11]  }
 0x1fb   : > { %v4216_v10 = vrot.slane %v4214_v58, 1  ;;  %v4000_v58 = vld [vmem:[%s22049_s14 + $0x3c] sm:$0xf] }
 0x1fc   : > { %16434 = vmatmul.mubr.msk.bf16.gmra.mrb[8].mxu1 %vm3196_vm4, %v4717_v34  ;;  %v4219_v34 = vshrl.u32 %v22061_v48, 16  ;;  %v4252_v35 = vrot.slane %v4250_v36, 1 }
 0x1fd   : > { %16437 = vmatprep.mubr.msk.bf16.mxu1 %vm3196_vm4, %v4718_v51  ;;  %v4221_v51 = vshll.u32 %v22061_v48, 16 }
 0x1fe   : > { %17058 = vmatmul.mubr.msk.bf16.gmra.mrb[72].mxu0 %vm3196_vm4, %v21808_v63  ;;  %v4723_v63 = vld [vmem:[#allocation2 + $0x58] sm:$0xff] }
 0x1ff   : > { %17061 = vmatprep.mubr.msk.bf16.mxu0 %vm3196_vm4, %v21833_v49  ;;  %v4724_v49 = vld [vmem:[#allocation2 + $0x60] sm:$0xff] }
 0x204   : > { %16438 = vmatmul.mubr.msk.bf16.gmra.mrb[12].mxu1 %vm3196_vm4, %v4719_v40  ;;  %v3995_v40 = vld [vmem:[%s22049_s14 + $0x1c] sm:$0xf] }
 0x205   : > { %16441 = vmatprep.mubr.msk.bf16.mxu1 %vm3196_vm4, %v4720_v55  ;;  %v4226_v55 = vshll.u32 %v18925_v47, 16 }
 0x206   : > { %17062 = vmatmul.mubr.msk.bf16.gmra.mrb[76].mxu0 %vm3196_vm4, %v21829_v15  ;;  %v18917_v15 = vld [vmem:[%s24094_s3 + $0x80] sm:$0xff]  }
 0x207   : > { %17065 = vmatprep.mubr.msk.bf16.mxu0 %vm3196_vm4, %v21851_v19  ;;  %16561 = vmatprep.subr.bf16.mxu1 %v18917_v15  ;;  %v4726_v19 = vld [vmem:[#allocation2 + $0x70] sm:$0xff] }
 0x208   : > { %16562 = vmatpush3.bf16.msra.mxu1 %v18917_v15  ;;  %v4223_v15 = vrot.slane %v4221_v51, 1  ;;  %v4049_v51 = vld [vmem:[%s22049_s14 + $0x3c] sm:$0xe] }
 0x20a   : > { %v4224_v9 = vor.u32 %v4223_v15, %v4219_v34  ;;  %v4048_v34 = vld [vmem:[%s22049_s14 + $0x30] sm:$0xe] }
 0x20c   : > { %16442 = vmatmul.mubr.msk.bf16.gmra.mrb[16].mxu1 %vm3196_vm4, %v4721_v33  ;;  %v4512_v33 = vrot.slane %v14634_v1, 1  ;;  %v4262_v1 = vshll.u32 %v22108_v14, 16 }
 0x20d   : > { %16445 = vmatprep.mubr.msk.bf16.mxu1 %vm3196_vm4, %v4722_v3  ;;  %v14635_v3 = vcombine.low %v4045_v52, %v3993_v42  ;;  %v4522_v42 = vrot.slane %v22085_v61, 1  ;;  %v22123_v52 = vld [vmem:[%s22049_s14 + $0x44] ss:$0 sps:$4 sm:$0x11]  }
 0x20e   : > { %17066 = vmatmul.mubr.msk.bf16.gmra.mrb[80].mxu0 %vm3196_vm4, %v21847_v39  ;;  %v4725_v39 = vld [vmem:[#allocation2 + $0x68] sm:$0xff]  ;;  %v4528_v36 = vrot.slane %v22123_v52, 1 }
 0x20f   : > { %17069 = vmatprep.mubr.msk.bf16.mxu0 %vm3196_vm4, %v21869_v53  ;;  %v4727_v53 = vld [vmem:[#allocation2 + $0x78] sm:$0xff]  ;;  %v4515_v41 = vrot.slane %v14635_v3, 1  ;;  %v4274_v3 = vshll.u32 %v22123_v52, 16  ;;  %v4738_v52 = vld [vmem:[#allocation2 + $0xe0] sm:$0xff] }
 0x210   : > { %v2799_v62 = vpop.permute.xlu1 %2798 }
 0x214   : > { %16446 = vmatmul.mubr.msk.bf16.gmra.mrb[20].mxu1 %vm3196_vm4, %v4723_v63  ;;  %v4516_v63 = vrot.slane %v18925_v47, 1  ;;  %v4001_v47 = vld [vmem:[%s22049_s14 + $0x40] sm:$0xf] }
 0x215   : > { %16449 = vmatprep.mubr.msk.bf16.mxu1 %vm3196_vm4, %v4724_v49 }
 0x216   : > { %17070 = vmatmul.mubr.msk.bf16.gmra.mrb[84].mxu0 %vm3196_vm4, %v21865_v8  ;;  %v4728_v8 = vld [vmem:[#allocation2 + $0x90] sm:$0xff]  ;;  %v2222_v26 = vpop.permute.xlu0 %2221  ;;  %v4517_v29 = vsel %vm2473_vm0, %v4515_v41, %v4516_v63  ;;  %v4002_v63 = vld [vmem:[%s22049_s14 + $0x48] sm:$0xf] }
 0x217   : > { %17073 = vmatprep.mubr.msk.bf16.mxu0 %vm3196_vm4, %v21886_v31  ;;  %v9398_v31 = vld [vmem:[#allocation2 + $0x250] sm:$0xff]  ;;  %v2944_v22 = vsel %vm2834_vm2, %v21779_v45, %v2222_v26  ;;  %v3990_v45 = vld [vmem:[%s22049_s14] sm:$0xf]  ;;  %v4047_v26 = vld [vmem:[%s22049_s14 + $0x24] sm:$0xe] }
 0x218   : > { %v3143_v60 = vsel %vm2979_vm3, %v2944_v22, %v2799_v62  ;;  %v22053_v30 = vcombine.low %v3990_v45, %v3991_v0 }
 0x219   : > { %3251 = vst.msk [vmem:[#allocation2 + $0x1b0] sm:$0xff] %vm3196_vm4, %v3143_v60  ;;  %v22099_v60 = vld [vmem:[%s22049_s14 + $0x34] sm:$0xf] }
 0x21a   : > { %v4207_v44 = vshrl.u32 %v22053_v30, 16  ;;  %v4209_v4 = vshll.u32 %v22053_v30, 16 }
 0x21c   : > { %16450 = vmatmul.mubr.msk.bf16.gmra.mrb[24].mxu1 %vm3196_vm4, %v4725_v39  ;;  %v4211_v17 = vrot.slane %v4209_v4, 1  ;;  %v22073_v39 = vcombine.low %v3994_v6, %v3995_v40 }
 0x21d   : > { %16453 = vmatprep.mubr.msk.bf16.mxu1 %vm3196_vm4, %v4726_v19  ;;  %v22076_v19 = vld [vmem:[%s22049_s14 + $0x20] ss:$0 sps:$4 sm:$0x11]  }
 0x21e   : > { %17074 = vmatmul.mubr.msk.bf16.gmra.mrb[88].mxu0 %vm3196_vm4, %v21882_v21  ;;  %v1454_v21 = vshrl.u32 %v22024_v56, 16  ;;  %v4212_v49 = vor.u32 %v4211_v17, %v4207_v44  ;;  %v4238_v62 = vshll.u32 %v22076_v19, 16  ;;  %v4519_v46 = vrot.slane %v22076_v19, 1 }
 0x21f   : > { %17077 = vmatprep.mubr.msk.bf16.mxu0 %vm3196_vm4, %v21900_v11  ;;  %v1456_v11 = vshll.u32 %v22024_v56, 16 }
 0x220   : > { %v4217_v5 = vsel %vm1248_vm1, %v4212_v49, %v4216_v10  ;;  %v4736_v49 = vld [vmem:[#allocation2 + $0xd0] sm:$0xff] }
 0x221   : > { %v1458_v54 = vrot.slane %v1456_v11, 1  ;;  %v4233_v11 = vshll.u32 %v22073_v39, 16 }
 0x223   : > { %v1459_v38 = vor.u32 %v1458_v54, %v1454_v21  ;;  %v4231_v21 = vshrl.u32 %v22073_v39, 16 }
 0x224   : > { %16454 = vmatmul.mubr.msk.bf16.gmra.mrb[28].mxu1 %vm3196_vm4, %v4727_v53  ;;  %v4228_v53 = vrot.slane %v4226_v55, 1 }
 0x225   : > { %16457 = vmatprep.mubr.msk.bf16.mxu1 %vm3196_vm4, %v4728_v8  ;;  %v1464_v27 = vsel %vm1248_vm1, %v1459_v38, %v1463_v7  ;;  %v3996_v8 = vld [vmem:[%s22049_s14 + $0x24] sm:$0xf]  ;;  %v4046_v7 = vld [vmem:[%s22049_s14 + $0x18] sm:$0xe]  ;;  %v4235_v38 = vrot.slane %v4233_v11, 1 }
 0x226   : > { %17078 = vmatmul.mubr.msk.bf16.gmra.mrb[92].mxu0 %vm3196_vm4, %v9397_v2  ;;  %2147 = vrot.lane.b32.xlu0 %v1464_v27, %s19111_s26  ;;  %v4733_v2 = vld [vmem:[#allocation2 + $0xb8] sm:$0xff]  ;;  %v22090_v54 = vcombine.low %v3996_v8, %v3997_v13  ;;  %v4229_v22 = vsel %vm1248_vm1, %v4224_v9, %v4228_v53  ;;  %v4240_v27 = vrot.slane %v4238_v62, 1  ;;  %v14638_v8 = vcombine.low %v4048_v34, %v22099_v60  ;;  %v22138_v53 = vld [vmem:[%s22049_s14 + $0x4c] sm:$0xf] }
 0x227   : > { %17081 = vmatprep.mubr.msk.bf16.mxu0 %vm3196_vm4, %v9398_v31  ;;  %v4514_v31 = vsel %vm2473_vm0, %v4512_v33, %v4513_v50  ;;  %4424 = vrot.lane.b32.xlu1 %v4229_v22, %s19111_s26  ;;  %v4236_v37 = vor.u32 %v4235_v38, %v4231_v21  ;;  %v22120_v50 = vcombine.low %v4000_v58, %v4001_v47  ;;  %v22142_v9 = vld [vmem:[%s22049_s14 + $0x50] ss:$0 sps:$4 sm:$0x11]   ;;  %v18944_v62 = vld [vmem:[%s24094_s3 + $0x88] sm:$0xff]   ;;  %v4737_v58 = vld [vmem:[#allocation2 + $0xd8] sm:$0xff] }
 0x228   : > { %v4243_v45 = vshrl.u32 %v22090_v54, 16  ;;  %v4245_v0 = vshll.u32 %v22090_v54, 16  ;;  %v22148_v61 = vcombine.low %v4002_v63, %v22138_v53  ;;  %v4524_v38 = vrot.slane %v14638_v8, 1  ;;  %16563 = vmatprep.subr.bf16.mxu1 %v18944_v62  ;;  %v22202_v63 = vld [vmem:[%s22049_s14 + $0x74] ss:$0 sps:$4 sm:$0x11]  }
 0x229   : > { %v4267_v55 = vshrl.u32 %v22120_v50, 16  ;;  %v4269_v33 = vshll.u32 %v22120_v50, 16  ;;  %16564 = vmatpush3.bf16.msra.mxu1 %v18944_v62 }
 0x22a   : > { %4422 = vrot.lane.b32.xlu0 %v4217_v5, %s19111_s26  ;;  %v14639_v5 = vcombine.low %v4049_v51, %v4001_v47  ;;  %v4008_v51 = vld [vmem:[%s22049_s14 + $0x6c] sm:$0xf] }
 0x22b   : > { %4568 = vrot.lane.b32.xlu1 %v4517_v29, %s19110_s28  ;;  %v22152_v29 = vld [vmem:[%s22049_s14 + $0x58] sm:$0xf] }
 0x22c   : > { %16458 = vmatmul.mubr.msk.bf16.gmra.mrb[32].mxu1 %vm3196_vm4, %v4729_v28  ;;  %v9403_v28 = vld [vmem:[#allocation2 + $0x278] sm:$0xff] }
 0x22d   : > { %16461 = vmatprep.mubr.msk.bf16.mxu1 %vm3196_vm4, %v4730_v43  ;;  %v14636_v43 = vcombine.low %v4046_v7, %v3995_v40  ;;  %v4735_v40 = vld [vmem:[#allocation2 + $0xc8] sm:$0xff] }
 0x22e   : > { %17082 = vmatmul.mubr.msk.bf16.gmra.mrb[96].mxu0 %vm3196_vm4, %v9399_v18  ;;  %v9404_v18 = vld [vmem:[#allocation2 + $0x280] sm:$0xff]  ;;  %4566 = vrot.lane.b32.xlu0 %v4514_v31, %s19110_s28  ;;  %v9406_v31 = vld [vmem:[#allocation2 + $0x290] sm:$0xff]  ;;  %v9405_v7 = vld [vmem:[#allocation2 + $0x288] sm:$0xff] }
 0x22f   : > { %17085 = vmatprep.mubr.msk.bf16.mxu0 %vm3196_vm4, %v9400_v32  ;;  %v3998_v32 = vld [vmem:[%s22049_s14 + $0x30] sm:$0xf] }
 0x230   : > { %v22113_v4 = vcombine.low %v3998_v32, %v22099_v60  ;;  %v22167_v32 = vld [vmem:[%s22049_s14 + $0x5c] ss:$0 sps:$4 sm:$0x11]  }
 0x231   : > { %v4534_v62 = vrot.slane %v22167_v32, 1 }
 0x232   : > { %v4255_v17 = vshrl.u32 %v22113_v4, 16  ;;  %v4257_v10 = vshll.u32 %v22113_v4, 16 }
 0x234   : > { %16462 = vmatmul.mubr.msk.bf16.gmra.mrb[36].mxu1 %vm3196_vm4, %v4731_v59  ;;  %v14637_v59 = vcombine.low %v4047_v26, %v3997_v13  ;;  %v4259_v19 = vrot.slane %v4257_v10, 1  ;;  %v4264_v13 = vrot.slane %v4262_v1, 1  ;;  %v4276_v26 = vrot.slane %v4274_v3, 1  ;;  %v22187_v1 = vld [vmem:[%s22049_s14 + $0x68] ss:$0 sps:$4 sm:$0x11]  }
 0x235   : > { %16465 = vmatprep.mubr.msk.bf16.mxu1 %vm3196_vm4, %v4732_v57  ;;  %v4518_v57 = vrot.slane %v14636_v43, 1  ;;  %v4281_v43 = vshll.u32 %v22148_v61, 16 }
 0x236   : > { %17086 = vmatmul.mubr.msk.bf16.gmra.mrb[100].mxu0 %vm3196_vm4, %v9401_v23  ;;  %v4247_v23 = vrot.slane %v4245_v0, 1  ;;  %v4521_v44 = vrot.slane %v14637_v59, 1  ;;  %v4260_v11 = vor.u32 %v4259_v19, %v4255_v17  ;;  %v4050_v0 = vld [vmem:[%s22049_s14 + $0x48] sm:$0xe] }
 0x237   : > { %17089 = vmatprep.mubr.msk.bf16.mxu0 %vm3196_vm4, %v9402_v12  ;;  %v4241_v12 = vsel %vm1248_vm1, %v4236_v37, %v4240_v27  ;;  %v4520_v41 = vsel %vm2473_vm0, %v4518_v57, %v4519_v46  ;;  %v4279_v27 = vshrl.u32 %v22148_v61, 16  ;;  %v4283_v59 = vrot.slane %v4281_v43, 1  ;;  %v4006_v57 = vld [vmem:[%s22049_s14 + $0x60] sm:$0xf]  ;;  %v4053_v43 = vld [vmem:[%s22049_s14 + $0x6c] sm:$0xe] }
 0x238   : > { %v4248_v6 = vor.u32 %v4247_v23, %v4243_v45  ;;  %4426 = vrot.lane.b32.xlu0 %v4241_v12, %s19111_s26  ;;  %v4523_v21 = vsel %vm2473_vm0, %v4521_v44, %v4522_v42  ;;  %v4265_v60 = vsel %vm1248_vm1, %v4260_v11, %v4264_v13  ;;  %v4286_v45 = vshll.u32 %v22142_v9, 16  ;;  %v22182_v44 = vld [vmem:[%s22049_s14 + $0x64] sm:$0xf] }
 0x239   : > { %v4298_v23 = vshll.u32 %v22167_v32, 16  ;;  %v14640_v12 = vcombine.low %v4050_v0, %v22138_v53  ;;  %v4284_v17 = vor.u32 %v4283_v59, %v4279_v27  ;;  %v22191_v34 = vcombine.low %v4006_v57, %v22182_v44  ;;  %v4740_v27 = vld [vmem:[#allocation2 + $0xf0] sm:$0xff]  ;;  %v22238_v0 = vld [vmem:[%s22049_s14 + $0x88] sm:$0xf] }
 0x23a   : > { %v4253_v15 = vsel %vm1248_vm1, %v4248_v6, %v4252_v35  ;;  %v4051_v35 = vld [vmem:[%s22049_s14 + $0x54] sm:$0xe]  ;;  %v4288_v10 = vrot.slane %v4286_v45, 1  ;;  %v22235_v45 = vld [vmem:[%s22049_s14 + $0x80] ss:$0 sps:$4 sm:$0x11]  }
 0x23b   : > { %4428 = vrot.lane.b32.xlu1 %v4253_v15, %s19111_s26  ;;  %v14641_v3 = vcombine.low %v4051_v35, %v22152_v29  ;;  %v4300_v19 = vrot.slane %v4298_v23, 1  ;;  %v4305_v8 = vshll.u32 %v22191_v34, 16  ;;  %v4303_v13 = vshrl.u32 %v22191_v34, 16 }
 0x23c   : > { %16466 = vmatmul.mubr.msk.bf16.gmra.mrb[40].mxu1 %vm3196_vm4, %v4733_v2  ;;  %v4271_v2 = vrot.slane %v4269_v33, 1  ;;  %4570 = vrot.lane.b32.xlu0 %v4520_v41, %s19110_s28  ;;  %v4531_v41 = vrot.slane %v22142_v9, 1 }
 0x23d   : > { %16469 = vmatprep.mubr.msk.bf16.mxu1 %vm3196_vm4, %v4734_v20  ;;  %v4004_v20 = vld [vmem:[%s22049_s14 + $0x54] sm:$0xf]  ;;  %v4533_v9 = vrot.slane %v14641_v3, 1  ;;  %v4334_v3 = vshll.u32 %v22235_v45, 16 }
 0x23e   : > { %17090 = vmatmul.mubr.msk.bf16.gmra.mrb[104].mxu0 %vm3196_vm4, %v9403_v28  ;;  %v4272_v46 = vor.u32 %v4271_v2, %v4267_v55  ;;  %v4525_v28 = vrot.slane %v22108_v14, 1  ;;  %v22160_v22 = vcombine.low %v4004_v20, %v22152_v29  ;;  %v9408_v55 = vld [vmem:[#allocation2 + $0x2a0] sm:$0xff]  ;;  %v4310_v2 = vshll.u32 %v22187_v1, 16  ;;  %v4010_v29 = vld [vmem:[%s22049_s14 + $0x78] sm:$0xf] }
 0x23f   : > { %17093 = vmatprep.mubr.msk.bf16.mxu0 %vm3196_vm4, %v9404_v18  ;;  %v4527_v18 = vrot.slane %v14639_v5, 1  ;;  %4572 = vrot.lane.b32.xlu1 %v4523_v21, %s19110_s28  ;;  %v4289_v5 = vsel %vm1248_vm1, %v4284_v17, %v4288_v10  ;;  %v4307_v21 = vrot.slane %v4305_v8, 1  ;;  %v4052_v20 = vld [vmem:[%s22049_s14 + $0x60] sm:$0xe]  ;;  %v4537_v17 = vrot.slane %v22187_v1, 1 }
 0x240   : > { %v4293_v37 = vshll.u32 %v22160_v22, 16  ;;  %v4277_v42 = vsel %vm1248_vm1, %v4272_v46, %v4276_v26  ;;  %v4291_v14 = vshrl.u32 %v22160_v22, 16  ;;  %4430 = vrot.lane.b32.xlu0 %v4265_v60, %s19111_s26  ;;  %v4526_v6 = vsel %vm2473_vm0, %v4524_v38, %v4525_v28  ;;  %v22223_v46 = vld [vmem:[%s22049_s14 + $0x7c] sm:$0xf]  ;;  %v4739_v26 = vld [vmem:[#allocation2 + $0xe8] sm:$0xff] }
 0x241   : > { %v4529_v33 = vsel %vm2473_vm0, %v4527_v18, %v4528_v36  ;;  %v22229_v60 = vcombine.low %v4010_v29, %v22223_v46  ;;  %v4012_v18 = vld [vmem:[%s22049_s14 + $0x84] sm:$0xf]  ;;  %v14642_v32 = vcombine.low %v4052_v20, %v22182_v44  ;;  %v4312_v35 = vrot.slane %v4310_v2, 1  ;;  %v22249_v44 = vld [vmem:[%s22049_s14 + $0x8c] ss:$0 sps:$4 sm:$0x11]  }
 0x242   : > { %v4295_v47 = vrot.slane %v4293_v37, 1  ;;  %v4308_v37 = vor.u32 %v4307_v21, %v4303_v13  ;;  %v22246_v23 = vcombine.low %v4012_v18, %v22238_v0  ;;  %v4346_v8 = vshll.u32 %v22249_v44, 16  ;;  %v4055_v21 = vld [vmem:[%s22049_s14 + $0x84] sm:$0xe] }
 0x243   : > { %4432 = vrot.lane.b32.xlu1 %v4277_v42, %s19111_s26  ;;  %v4329_v57 = vshll.u32 %v22229_v60, 16  ;;  %v9410_v42 = vld [vmem:[#allocation2 + $0x2b0] sm:$0xff]  ;;  %v4327_v10 = vshrl.u32 %v22229_v60, 16  ;;  %v22282_v29 = vld [vmem:[%s22049_s14 + $0x98] ss:$0 sps:$4 sm:$0x11]   ;;  %v14645_v18 = vcombine.low %v4055_v21, %v22238_v0 }
 0x244   : > { %16470 = vmatmul.mubr.msk.bf16.gmra.mrb[44].mxu1 %vm3196_vm4, %v4735_v40  ;;  %v22195_v40 = vld [vmem:[%s22049_s14 + $0x70] sm:$0xf]  ;;  %v4296_v15 = vor.u32 %v4295_v47, %v4291_v14  ;;  %4574 = vrot.lane.b32.xlu0 %v4526_v6, %s19110_s28  ;;  %v4535_v47 = vsel %vm2473_vm0, %v4533_v9, %v4534_v62  ;;  %v4536_v6 = vrot.slane %v14642_v32, 1  ;;  %v4339_v2 = vshrl.u32 %v22246_v23, 16  ;;  %v4741_v9 = vld [vmem:[#allocation2 + $0xf8] sm:$0xff] }
 0x245   : > { %16473 = vmatprep.mubr.msk.bf16.mxu1 %vm3196_vm4, %v4736_v49  ;;  %v9407_v49 = vld [vmem:[#allocation2 + $0x298] sm:$0xff]  ;;  %v22207_v53 = vcombine.low %v4008_v51, %v22195_v40  ;;  %v14643_v14 = vcombine.low %v4053_v43, %v22195_v40  ;;  %v4341_v51 = vshll.u32 %v22246_v23, 16  ;;  %v9412_v43 = vld [vmem:[#allocation2 + $0x2c0] sm:$0xff]  ;;  %v4348_v32 = vrot.slane %v4346_v8, 1 }
 0x246   : > { %17094 = vmatmul.mubr.msk.bf16.gmra.mrb[108].mxu0 %vm3196_vm4, %v9405_v7  ;;  %v4322_v7 = vshll.u32 %v22202_v63, 16  ;;  %v4301_v28 = vsel %vm1248_vm1, %v4296_v15, %v4300_v19  ;;  %v4054_v40 = vld [vmem:[%s22049_s14 + $0x78] sm:$0xe]  ;;  %v22264_v15 = vld [vmem:[%s22049_s14 + $0x94] sm:$0xf]  ;;  %v4540_v19 = vrot.slane %v22202_v63, 1  ;;  %v4538_v62 = vsel %vm2473_vm0, %v4536_v6, %v4537_v17 }
 0x247   : > { %17097 = vmatprep.mubr.msk.bf16.mxu0 %vm3196_vm4, %v9406_v31  ;;  %v4530_v31 = vrot.slane %v14640_v12, 1  ;;  %v4317_v11 = vshll.u32 %v22207_v53, 16  ;;  %4576 = vrot.lane.b32.xlu1 %v4529_v33, %s19110_s28  ;;  %v4315_v38 = vshrl.u32 %v22207_v53, 16  ;;  %v4331_v33 = vrot.slane %v4329_v57, 1 }
 0x248   : > { %4434 = vrot.lane.b32.xlu0 %v4289_v5, %s19111_s26  ;;  %v4539_v1 = vrot.slane %v14643_v14, 1  ;;  %v4343_v5 = vrot.slane %v4341_v51, 1  ;;  %v14644_v20 = vcombine.low %v4054_v40, %v22223_v46  ;;  %v4358_v14 = vshll.u32 %v22282_v29, 16 }
 0x249   : > { %v4319_v36 = vrot.slane %v4317_v11, 1  ;;  %v4532_v59 = vsel %vm2473_vm0, %v4530_v31, %v4531_v41  ;;  %v4016_v41 = vld [vmem:[%s22049_s14 + $0x9c] sm:$0xf]  ;;  %v22277_v11 = vld [vmem:[%s22049_s14 + $0xa0] sm:$0xf]  ;;  %v4546_v6 = vrot.slane %v22249_v44, 1 }
 0x24a   : > { %v4541_v46 = vsel %vm2473_vm0, %v4539_v1, %v4540_v19  ;;  %v4542_v57 = vrot.slane %v14644_v20, 1  ;;  %v4360_v19 = vrot.slane %v4358_v14, 1  ;;  %v22330_v20 = vld [vmem:[%s22049_s14 + $0xb0] ss:$0 sps:$4 sm:$0x11]  }
 0x24b   : > { %4436 = vrot.lane.b32.xlu1 %v4301_v28, %s19111_s26  ;;  %v4320_v12 = vor.u32 %v4319_v36, %v4315_v38  ;;  %v22287_v28 = vcombine.low %v4016_v41, %v22277_v11  ;;  %v4742_v38 = vld [vmem:[#allocation2 + $0x100] sm:$0xff]  ;;  %v9411_v36 = vld [vmem:[#allocation2 + $0x2b8] sm:$0xff] }
 0x24c   : > { %16474 = vmatmul.mubr.msk.bf16.gmra.mrb[48].mxu1 %vm3196_vm4, %v4737_v58  ;;  %v9409_v58 = vld [vmem:[#allocation2 + $0x2a8] sm:$0xff]  ;;  %4578 = vrot.lane.b32.xlu0 %v4532_v59, %s19110_s28  ;;  %v4543_v59 = vrot.slane %v22235_v45, 1  ;;  %v4057_v41 = vld [vmem:[%s22049_s14 + $0x9c] sm:$0xe] }
 0x24d   : > { %16477 = vmatprep.mubr.msk.bf16.mxu1 %vm3196_vm4, %v4738_v52  ;;  %v4324_v52 = vrot.slane %v4322_v7, 1  ;;  %v4332_v7 = vor.u32 %v4331_v33, %v4327_v10  ;;  %v4020_v10 = vld [vmem:[%s22049_s14 + $0xb4] sm:$0xf]  ;;  %v4363_v40 = vshrl.u32 %v22287_v28, 16 }
 0x24e   : > { %17098 = vmatmul.mubr.msk.bf16.gmra.mrb[112].mxu0 %vm3196_vm4, %v9407_v49  ;;  %v4014_v49 = vld [vmem:[%s22049_s14 + $0x90] sm:$0xf] }
 0x24f   : > { %17101 = vmatprep.mubr.msk.bf16.mxu0 %vm3196_vm4, %v9408_v55  ;;  %v4313_v55 = vsel %vm1248_vm1, %v4308_v37, %v4312_v35  ;;  %4580 = vrot.lane.b32.xlu1 %v4535_v47, %s19110_s28  ;;  %v22270_v31 = vcombine.low %v4014_v49, %v22264_v15  ;;  %v4325_v13 = vsel %vm1248_vm1, %v4320_v12, %v4324_v52  ;;  %v22296_v37 = vld [vmem:[%s22049_s14 + $0xa4] ss:$0 sps:$4 sm:$0x11]   ;;  %v4365_v35 = vshll.u32 %v22287_v28, 16  ;;  %v4018_v47 = vld [vmem:[%s22049_s14 + $0xa8] sm:$0xf] }
 0x250   : > { %4438 = vrot.lane.b32.xlu0 %v4313_v55, %s19111_s26  ;;  %v22308_v12 = vld [vmem:[%s22049_s14 + $0xac] sm:$0xf]  ;;  %v4545_v52 = vrot.slane %v14645_v18, 1  ;;  %v4370_v33 = vshll.u32 %v22296_v37, 16  ;;  %v4744_v49 = vld [vmem:[#allocation2 + $0x120] sm:$0xff]  ;;  %v4552_v14 = vrot.slane %v22296_v37, 1 }
 0x251   : > { %v4353_v63 = vshll.u32 %v22270_v31, 16  ;;  %v4351_v0 = vshrl.u32 %v22270_v31, 16  ;;  %v22313_v17 = vcombine.low %v4018_v47, %v22308_v12  ;;  %v4367_v55 = vrot.slane %v4365_v35, 1  ;;  %v4059_v37 = vld [vmem:[%s22049_s14 + $0xb4] sm:$0xe] }
 0x252   : > { %v4382_v35 = vshll.u32 %v22330_v20, 16 }
 0x253   : > { %4440 = vrot.lane.b32.xlu1 %v4325_v13, %s19111_s26 }
 0x254   : > { %16478 = vmatmul.mubr.msk.bf16.gmra.mrb[52].mxu1 %vm3196_vm4, %v4739_v26  ;;  %v4336_v26 = vrot.slane %v4334_v3, 1  ;;  %4582 = vrot.lane.b32.xlu0 %v4538_v62, %s19110_s28  ;;  %v22320_v3 = vld [vmem:[%s22049_s14 + $0xb8] sm:$0xf]  ;;  %v9413_v62 = vld [vmem:[#allocation2 + $0x2c8] sm:$0xff] }
 0x255   : > { %16481 = vmatprep.mubr.msk.bf16.mxu1 %vm3196_vm4, %v4740_v27  ;;  %v4344_v27 = vor.u32 %v4343_v5, %v4339_v2  ;;  %v22326_v13 = vcombine.low %v4020_v10, %v22320_v3  ;;  %v4743_v2 = vld [vmem:[#allocation2 + $0x108] sm:$0xff]  ;;  %v4544_v5 = vsel %vm2473_vm0, %v4542_v57, %v4543_v59 }
 0x256   : > { %17102 = vmatmul.mubr.msk.bf16.gmra.mrb[116].mxu0 %vm3196_vm4, %v9409_v58  ;;  %v4337_v45 = vsel %vm1248_vm1, %v4332_v7, %v4336_v26  ;;  %v4056_v58 = vld [vmem:[%s22049_s14 + $0x90] sm:$0xe]  ;;  %v4368_v7 = vor.u32 %v4367_v55, %v4363_v40  ;;  %v4372_v26 = vrot.slane %v4370_v33, 1  ;;  %v4058_v57 = vld [vmem:[%s22049_s14 + $0xa8] sm:$0xe]  ;;  %v4384_v40 = vrot.slane %v4382_v35, 1 }
 0x257   : > { %17105 = vmatprep.mubr.msk.bf16.mxu0 %vm3196_vm4, %v9410_v42  ;;  %v4355_v42 = vrot.slane %v4353_v63, 1  ;;  %4584 = vrot.lane.b32.xlu1 %v4541_v46, %s19110_s28  ;;  %v4349_v51 = vsel %vm1248_vm1, %v4344_v27, %v4348_v32  ;;  %v14646_v8 = vcombine.low %v4056_v58, %v22264_v15  ;;  %v4377_v63 = vshll.u32 %v22313_v17, 16  ;;  %v22346_v27 = vld [vmem:[%s22049_s14 + $0xbc] ss:$0 sps:$4 sm:$0x11]   ;;  %v4746_v33 = vld [vmem:[#allocation2 + $0x130] sm:$0xff] }
 0x258   : > { %4442 = vrot.lane.b32.xlu0 %v4337_v45, %s19111_s26  ;;  %v4389_v32 = vshll.u32 %v22326_v13, 16  ;;  %v4387_v58 = vshrl.u32 %v22326_v13, 16  ;;  %v14648_v55 = vcombine.low %v4058_v57, %v22308_v12 }
 0x259   : > { %v4356_v1 = vor.u32 %v4355_v42, %v4351_v0  ;;  %v4548_v46 = vrot.slane %v14646_v8, 1  ;;  %v4379_v59 = vrot.slane %v4377_v63, 1  ;;  %v4373_v0 = vsel %vm1248_vm1, %v4368_v7, %v4372_v26  ;;  %v4749_v26 = vld [vmem:[#allocation2 + $0x148] sm:$0xff] }
 0x25a   : > { %v4391_v47 = vrot.slane %v4389_v32, 1  ;;  %v14649_v8 = vcombine.low %v4059_v37, %v22320_v3  ;;  %v4558_v63 = vrot.slane %v22346_v27, 1  ;;  %v18975_v32 = vld [vmem:[%s24094_s3 + $0x170] sm:$0xff]  }
 0x25b   : > { %4444 = vrot.lane.b32.xlu1 %v4349_v51, %s19111_s26  ;;  %v4764_v37 = vld [vmem:[#allocation2 + $0x1d0] sm:$0xff] }
 0x25c   : > { %16482 = vmatmul.mubr.msk.bf16.gmra.mrb[56].mxu1 %vm3196_vm4, %v4741_v9  ;;  %v4547_v9 = vsel %vm2473_vm0, %v4545_v52, %v4546_v6  ;;  %4586 = vrot.lane.b32.xlu0 %v4544_v5, %s19110_s28  ;;  %v4394_v52 = vshll.u32 %v22346_v27, 16  ;;  %v4745_v6 = vld [vmem:[#allocation2 + $0x128] sm:$0xff]  ;;  %v4392_v12 = vor.u32 %v4391_v47, %v4387_v58  ;;  %v4555_v5 = vrot.slane %v22330_v20, 1  ;;  %v4756_v27 = vld [vmem:[#allocation2 + $0x180] sm:$0xff] }
 0x25d   : > { %16485 = vmatprep.mubr.msk.bf16.mxu1 %vm3196_vm4, %v4742_v38  ;;  %v3702_v44 = vpop.permute.xlu0 %3701  ;;  %v4549_v38 = vrot.slane %v22282_v29, 1  ;;  %v4557_v3 = vrot.slane %v14649_v8, 1  ;;  %v4765_v8 = vld [vmem:[#allocation2 + $0x1d8] sm:$0xff] }
 0x25e   : > { %17106 = vmatmul.mubr.msk.bf16.gmra.mrb[120].mxu0 %vm3196_vm4, %v9411_v36  ;;  %v3704_v21 = vpop.permute.xlu1 %3703  ;;  %v3882_v15 = vsel %vm2834_vm2, %v21916_v24, %v3702_v44  ;;  %v14647_v36 = vcombine.low %v4057_v41, %v22277_v11  ;;  %v4375_v24 = vshrl.u32 %v22313_v17, 16  ;;  %v4396_v44 = vrot.slane %v4394_v52, 1 }
 0x25f   : > { %17109 = vmatprep.mubr.msk.bf16.mxu0 %vm3196_vm4, %v9412_v43  ;;  %v4361_v43 = vsel %vm1248_vm1, %v4356_v1, %v4360_v19  ;;  %v3884_v11 = vsel %vm2834_vm2, %v21922_v25, %v3704_v21  ;;  %4588 = vrot.lane.b32.xlu1 %v4547_v9, %s19110_s28  ;;  %v4550_v10 = vsel %vm2473_vm0, %v4548_v46, %v4549_v38  ;;  %v22377_v19 = vld [vmem:[%s24094_s3 + $0x90] sm:$0xff]   ;;  %v18945_v21 = vld [vmem:[%s24094_s3 + $0x160] sm:$0xff]   ;;  %v4747_v9 = vld [vmem:[#allocation2 + $0x138] sm:$0xff] }
 0x260   : > { %v4551_v42 = vrot.slane %v14647_v36, 1  ;;  %4446 = vrot.lane.b32.xlu0 %v4361_v43, %s19111_s26  ;;  %v4380_v51 = vor.u32 %v4379_v59, %v4375_v24  ;;  %16693 = vmatprep.subr.bf16.mxu1 %v22377_v19  ;;  %v4559_v7 = vsel %vm2473_vm0, %v4557_v3, %v4558_v63  ;;  %v4750_v38 = vld [vmem:[#allocation2 + $0x150] sm:$0xff]  ;;  %v4751_v36 = vld [vmem:[#allocation2 + $0x158] sm:$0xff]  ;;  %v4752_v43 = vld [vmem:[#allocation2 + $0x160] sm:$0xff] }
 0x261   : > { %v3846_v18 = vpop.permute.xlu0 %3845  ;;  %v4753_v46 = vld [vmem:[#allocation2 + $0x168] sm:$0xff]  ;;  %v4755_v24 = vld [vmem:[#allocation2 + $0x178] sm:$0xff] }
 0x262   : > { %v3918_v29 = vsel %vm2979_vm3, %v3882_v15, %v3846_v18  ;;  %v3848_v45 = vpop.permute.xlu1 %3847  ;;  %v4553_v1 = vsel %vm2473_vm0, %v4551_v42, %v4552_v14  ;;  %v4385_v41 = vsel %vm1248_vm1, %v4380_v51, %v4384_v40  ;;  %v4748_v15 = vld [vmem:[#allocation2 + $0x140] sm:$0xff]  ;;  %v4754_v18 = vld [vmem:[#allocation2 + $0x170] sm:$0xff]  ;;  %v19006_v14 = vld [vmem:[#allocation2 + $0x198] sm:$0xff] }
 0x263   : > { %3972 = vst.msk [vmem:[#allocation2 + $0x240] sm:$0xff] %vm3196_vm4, %v3918_v29  ;;  %v3921_v25 = vsel %vm2979_vm3, %v3884_v11, %v3848_v45  ;;  %4448 = vrot.lane.b32.xlu1 %v4373_v0, %s19111_s26  ;;  %v4757_v11 = vld [vmem:[#allocation2 + $0x188] sm:$0xff]  ;;  %v19005_v29 = vld [vmem:[#allocation2 + $0x190] sm:$0xff]  ;;  %v4761_v45 = vld [vmem:[#allocation2 + $0x1b8] sm:$0xff] }
 0x264   : > { %16486 = vmatmul.mubr.msk.bf16.gmra.mrb[60].mxu1 %vm3196_vm4, %v4743_v2  ;;  %3973 = vst.msk [vmem:[#allocation2 + $0x248] sm:$0xff] %vm3196_vm4, %v3921_v25  ;;  %4590 = vrot.lane.b32.xlu0 %v4550_v10, %s19110_s28  ;;  %v4554_v2 = vrot.slane %v14648_v55, 1  ;;  %v4760_v0 = vld [vmem:[#allocation2 + $0x1b0] sm:$0xff]  ;;  %v4762_v25 = vld [vmem:[#allocation2 + $0x1c0] sm:$0xff]  ;;  %v4763_v40 = vld [vmem:[#allocation2 + $0x1c8] sm:$0xff] }
 0x265   : > { %16489 = vmatprep.mubr.msk.bf16.mxu1 %vm3196_vm4, %v4744_v49 }
 0x266   : > { %17110 = vmatmul.mubr.msk.bf16.gmra.mrb[124].mxu0 %vm3196_vm4, %v9413_v62  ;;  %v4556_v20 = vsel %vm2473_vm0, %v4554_v2, %v4555_v5  ;;  %v18973_v62 = vld [vmem:[%s24094_s3 + $0x168] sm:$0xff]   ;;  %v4766_v2 = vld [vmem:[#allocation2 + $0x1e0] sm:$0xff] }
 0x267   : > { %17125 = vmatprep.mubr.msk.bf16.mxu0 %vm3196_vm4, %v4744_v49  ;;  %v18918_v49 = vld [vmem:[%s24094_s3 + $0x158] sm:$0xff]   ;;  %4592 = vrot.lane.b32.xlu1 %v4553_v1, %s19110_s28 }
 0x268   : > { %4450 = vrot.lane.b32.xlu0 %v4385_v41, %s19111_s26 }
 0x269   : > { %v2725_v57 = vpop.permute.xlu1 %2724 }
 0x26c   : > { %16490 = vmatmul.mubr.msk.bf16.gmra.mrb[64].mxu1 %vm3196_vm4, %v4745_v6  ;;  %4594 = vrot.lane.b32.xlu0 %v4556_v20, %s19110_s28  ;;  %v4767_v20 = vld [vmem:[#allocation2 + $0x1e8] sm:$0xff] }
 0x26d   : > { %16493 = vmatprep.mubr.msk.bf16.mxu1 %vm3196_vm4, %v4746_v33 }
 0x26e   : > { %17126 = vmatmul.mubr.msk.bf16.vlgmr.msra.gmra.mrb[0].mxu0 %vm3196_vm4, %v4745_v6 }
 0x26f   : > { %17254 = vmatpush3.bf16.msra.mxu0 %v21943_v16  ;;  %17129 = vmatprep.mubr.msk.bf16.mxu0 %vm3196_vm4, %v4746_v33  ;;  %v4397_v16 = vsel %vm1248_vm1, %v4392_v12, %v4396_v44 }
 0x270   : > { %17255 = vmatprep.subr.bf16.mxu0 %v18918_v49  ;;  %4452 = vrot.lane.b32.xlu1 %v4397_v16, %s19111_s26 }
 0x273   : > { %17256 = vmatpush3.bf16.msra.mxu0 %v18918_v49 }
 0x274   : > { %16494 = vmatmul.mubr.msk.bf16.gmra.mrb[68].mxu1 %vm3196_vm4, %v4747_v9  ;;  %17257 = vmatprep.subr.bf16.mxu0 %v18945_v21 }
 0x275   : > { %16497 = vmatprep.mubr.msk.bf16.mxu1 %vm3196_vm4, %v4748_v15  ;;  %4596 = vrot.lane.b32.xlu1 %v4559_v7, %s19110_s28 }
 0x276   : > { %17130 = vmatmul.mubr.msk.bf16.gmra.mrb[4].mxu0 %vm3196_vm4, %v4747_v9 }
 0x277   : > { %17133 = vmatprep.mubr.msk.bf16.mxu0 %vm3196_vm4, %v4748_v15  ;;  %17258 = vmatpush3.bf16.msra.mxu0 %v18945_v21  ;;  %v18977_v21 = vld [vmem:[%s24094_s3 + $0x178] sm:$0xff]   ;;  %v4768_v15 = vld [vmem:[#allocation2 + $0x1f0] sm:$0xff] }
 0x278   : > { %17259 = vmatprep.subr.bf16.mxu0 %v18973_v62 }
 0x27b   : > { %17260 = vmatpush3.bf16.msra.mxu0 %v18973_v62 }
 0x27c   : > { %16498 = vmatmul.mubr.msk.bf16.gmra.mrb[72].mxu1 %vm3196_vm4, %v4749_v26  ;;  %17261 = vmatprep.subr.bf16.mxu0 %v18975_v32 }
 0x27d   : > { %16501 = vmatprep.mubr.msk.bf16.mxu1 %vm3196_vm4, %v4750_v38 }
 0x27e   : > { %17134 = vmatmul.mubr.msk.bf16.gmra.mrb[8].mxu0 %vm3196_vm4, %v4749_v26 }
 0x27f   : > { %17137 = vmatprep.mubr.msk.bf16.mxu0 %vm3196_vm4, %v4750_v38  ;;  %17262 = vmatpush3.bf16.msra.mxu0 %v18975_v32 }
 0x280   : > { %17263 = vmatprep.subr.bf16.mxu0 %v18977_v21 }
 0x283   : > { %17264 = vmatpush3.bf16.msra.mxu0 %v18977_v21  ;;  %v18976_v21 = vld [vmem:[%s24094_s3 + $0xa0] sm:$0xff]  }
 0x284   : > { %16502 = vmatmul.mubr.msk.bf16.gmra.mrb[76].mxu1 %vm3196_vm4, %v4751_v36 }
 0x285   : > { %16505 = vmatprep.mubr.msk.bf16.mxu1 %vm3196_vm4, %v4752_v43 }
 0x286   : > { %17138 = vmatmul.mubr.msk.bf16.gmra.mrb[12].mxu0 %vm3196_vm4, %v4751_v36 }
 0x287   : > { %17141 = vmatprep.mubr.msk.bf16.mxu0 %vm3196_vm4, %v4752_v43 }
 0x28c   : > { %16506 = vmatmul.mubr.msk.bf16.gmra.mrb[80].mxu1 %vm3196_vm4, %v4753_v46 }
 0x28d   : > { %16509 = vmatprep.mubr.msk.bf16.mxu1 %vm3196_vm4, %v4754_v18 }
 0x28e   : > { %17142 = vmatmul.mubr.msk.bf16.gmra.mrb[16].mxu0 %vm3196_vm4, %v4753_v46  ;;  %v4769_v46 = vld [vmem:[#allocation2 + $0x1f8] sm:$0xff] }
 0x28f   : > { %17145 = vmatprep.mubr.msk.bf16.mxu0 %vm3196_vm4, %v4754_v18 }
 0x294   : > { %16510 = vmatmul.mubr.msk.bf16.gmra.mrb[84].mxu1 %vm3196_vm4, %v4755_v24 }
 0x295   : > { %16513 = vmatprep.mubr.msk.bf16.mxu1 %vm3196_vm4, %v4756_v27 }
 0x296   : > { %17146 = vmatmul.mubr.msk.bf16.gmra.mrb[20].mxu0 %vm3196_vm4, %v4755_v24  ;;  %v4770_v24 = vld [vmem:[#allocation2 + $0x200] sm:$0xff] }
 0x297   : > { %17149 = vmatprep.mubr.msk.bf16.mxu0 %vm3196_vm4, %v4756_v27 }
 0x298   : > { %v2148_v59 = vpop.permute.xlu0 %2147 }
 0x299   : > { %v2870_v35 = vsel %vm2834_vm2, %v22024_v56, %v2148_v59  ;;  %v4425_v47 = vpop.permute.xlu1 %4424 }
 0x29a   : > { %v3032_v42 = vsel %vm2979_vm3, %v2870_v35, %v2725_v57  ;;  %v4605_v52 = vsel %vm2834_vm2, %v22061_v48, %v4425_v47  ;;  %v22498_v35 = vld [vmem:[#allocation2 + $0x208] sm:$0xff] }
 0x29b   : > { %3214 = vst.msk [vmem:[#allocation2 + $0x88] sm:$0xff] %vm3196_vm4, %v3032_v42 }
 0x29c   : > { %16514 = vmatmul.mubr.msk.bf16.gmra.mrb[88].mxu1 %vm3196_vm4, %v4757_v11  ;;  %v4423_v56 = vpop.permute.xlu0 %4422 }
 0x29d   : > { %16517 = vmatprep.mubr.msk.bf16.mxu1 %vm3196_vm4, %v19005_v29  ;;  %v4603_v58 = vsel %vm2834_vm2, %v22053_v30, %v4423_v56  ;;  %v4569_v51 = vpop.permute.xlu1 %4568 }
 0x29e   : > { %17150 = vmatmul.mubr.msk.bf16.gmra.mrb[24].mxu0 %vm3196_vm4, %v4757_v11  ;;  %v4642_v55 = vsel %vm2979_vm3, %v4605_v52, %v4569_v51 }
 0x29f   : > { %17153 = vmatprep.mubr.msk.bf16.mxu0 %vm3196_vm4, %v19005_v29  ;;  %4694 = vst.msk [vmem:[#allocation2 + $0x2d8] sm:$0xff] %vm3196_vm4, %v4642_v55 }
 0x2a0   : > { %v4567_v6 = vpop.permute.xlu0 %4566 }
 0x2a1   : > { %v4639_v10 = vsel %vm2979_vm3, %v4603_v58, %v4567_v6  ;;  %v22518_v58 = vld [vmem:[#allocation2 + $0x218] sm:$0xff] }
 0x2a2   : > { %4693 = vst.msk [vmem:[#allocation2 + $0x2d0] sm:$0xff] %vm3196_vm4, %v4639_v10 }
 0x2a4   : > { %16518 = vmatmul.mubr.msk.bf16.gmra.mrb[92].mxu1 %vm3196_vm4, %v19006_v14 }
 0x2a5   : > { %16521 = vmatprep.mubr.msk.bf16.mxu1 %vm3196_vm4, %v4760_v0 }
 0x2a6   : > { %17154 = vmatmul.mubr.msk.bf16.gmra.mrb[28].mxu0 %vm3196_vm4, %v19006_v14 }
 0x2a7   : > { %17157 = vmatprep.mubr.msk.bf16.mxu0 %vm3196_vm4, %v4760_v0 }
 0x2aa   : > { %v4427_v30 = vpop.permute.xlu0 %4426 }
 0x2ab   : > { %v4607_v48 = vsel %vm2834_vm2, %v22073_v39, %v4427_v30 }
 0x2ac   : > { %16522 = vmatmul.mubr.msk.bf16.gmra.mrb[96].mxu1 %vm3196_vm4, %v4761_v45 }
 0x2ad   : > { %16525 = vmatprep.mubr.msk.bf16.mxu1 %vm3196_vm4, %v4762_v25  ;;  %v4429_v33 = vpop.permute.xlu1 %4428 }
 0x2ae   : > { %17158 = vmatmul.mubr.msk.bf16.gmra.mrb[32].mxu0 %vm3196_vm4, %v4761_v45  ;;  %v4609_v49 = vsel %vm2834_vm2, %v22090_v54, %v4429_v33  ;;  %v4571_v1 = vpop.permute.xlu0 %4570 }
 0x2af   : > { %17161 = vmatprep.mubr.msk.bf16.mxu0 %vm3196_vm4, %v4762_v25  ;;  %v4645_v12 = vsel %vm2979_vm3, %v4607_v48, %v4571_v1  ;;  %v10361_v48 = vld [vmem:[#allocation2 + $0x240] sm:$0xff] }
 0x2b0   : > { %4695 = vst.msk [vmem:[#allocation2 + $0x2e0] sm:$0xff] %vm3196_vm4, %v4645_v12 }
 0x2b1   : > { %v4573_v44 = vpop.permute.xlu1 %4572 }
 0x2b2   : > { %v4648_v41 = vsel %vm2979_vm3, %v4609_v49, %v4573_v44  ;;  %v4431_v39 = vpop.permute.xlu0 %4430 }
 0x2b3   : > { %4696 = vst.msk [vmem:[#allocation2 + $0x2e8] sm:$0xff] %vm3196_vm4, %v4648_v41  ;;  %v4611_v54 = vsel %vm2834_vm2, %v22113_v4, %v4431_v39  ;;  %v6414_v41 = vld [vmem:[#allocation2 + $0x18] sm:$0xff] }
 0x2b4   : > { %16526 = vmatmul.mubr.msk.bf16.gmra.mrb[100].mxu1 %vm3196_vm4, %v4763_v40 }
 0x2b5   : > { %16529 = vmatprep.mubr.msk.bf16.mxu1 %vm3196_vm4, %v4764_v37  ;;  %v4433_v5 = vpop.permute.xlu1 %4432 }
 0x2b6   : > { %17162 = vmatmul.mubr.msk.bf16.gmra.mrb[36].mxu0 %vm3196_vm4, %v4763_v40  ;;  %v4613_v16 = vsel %vm2834_vm2, %v22120_v50, %v4433_v5  ;;  %v4575_v3 = vpop.permute.xlu0 %4574  ;;  %v22571_v5 = vld [vmem:[#allocation2 + $0x250] sm:$0xff] }
 0x2b7   : > { %17165 = vmatprep.mubr.msk.bf16.mxu0 %vm3196_vm4, %v4764_v37  ;;  %v4651_v63 = vsel %vm2979_vm3, %v4611_v54, %v4575_v3  ;;  %v22538_v37 = vld [vmem:[#allocation2 + $0x228] sm:$0xff]  ;;  %v22562_v54 = vld [vmem:[%s24094_s3 + $0x180] sm:$0xff]   ;;  %v6417_v3 = vld [vmem:[#allocation2 + $0x30] sm:$0xff] }
 0x2b8   : > { %4697 = vst.msk [vmem:[#allocation2 + $0x2f0] sm:$0xff] %vm3196_vm4, %v4651_v63  ;;  %17393 = vmatprep.subr.bf16.mxu0 %v22562_v54  ;;  %v22584_v63 = vld [vmem:[#allocation2 + $0x258] sm:$0xff] }
 0x2b9   : > { %v4577_v9 = vpop.permute.xlu1 %4576 }
 0x2ba   : > { %v4654_v4 = vsel %vm2979_vm3, %v4613_v16, %v4577_v9  ;;  %v4435_v62 = vpop.permute.xlu0 %4434  ;;  %v6416_v16 = vld [vmem:[#allocation2 + $0x28] sm:$0xff]  ;;  %v22588_v9 = vld [vmem:[#allocation2 + $0x260] sm:$0xff] }
 0x2bb   : > { %4698 = vst.msk [vmem:[#allocation2 + $0x2f8] sm:$0xff] %vm3196_vm4, %v4654_v4  ;;  %v4615_v50 = vsel %vm2834_vm2, %v22148_v61, %v4435_v62  ;;  %v6419_v4 = vld [vmem:[#allocation2 + $0x40] sm:$0xff]  ;;  %v22598_v62 = vld [vmem:[#allocation2 + $0x270] sm:$0xff] }
 0x2bc   : > { %16530 = vmatmul.mubr.msk.bf16.gmra.mrb[104].mxu1 %vm3196_vm4, %v4765_v8 }
 0x2bd   : > { %16533 = vmatprep.mubr.msk.bf16.mxu1 %vm3196_vm4, %v4766_v2  ;;  %v4437_v7 = vpop.permute.xlu1 %4436 }
 0x2be   : > { %17166 = vmatmul.mubr.msk.bf16.gmra.mrb[40].mxu0 %vm3196_vm4, %v4765_v8  ;;  %v4617_v26 = vsel %vm2834_vm2, %v22160_v22, %v4437_v7  ;;  %v4579_v38 = vpop.permute.xlu0 %4578  ;;  %v18974_v8 = vld [vmem:[%s24094_s3 + $0x98] sm:$0xff]   ;;  %v6421_v7 = vld [vmem:[#allocation2 + $0x50] sm:$0xff] }
 0x2bf   : > { %17169 = vmatprep.mubr.msk.bf16.mxu0 %vm3196_vm4, %v4766_v2  ;;  %v4657_v36 = vsel %vm2979_vm3, %v4615_v50, %v4579_v38  ;;  %v6420_v50 = vld [vmem:[#allocation2 + $0x48] sm:$0xff]  ;;  %v22608_v38 = vld [vmem:[#allocation2 + $0x280] sm:$0xff] }
 0x2c0   : > { %4699 = vst.msk [vmem:[#allocation2 + $0x300] sm:$0xff] %vm3196_vm4, %v4657_v36  ;;  %v6422_v36 = vld [vmem:[#allocation2 + $0x58] sm:$0xff] }
 0x2c1   : > { %v4581_v43 = vpop.permute.xlu1 %4580 }
 0x2c2   : > { %v4660_v18 = vsel %vm2979_vm3, %v4617_v26, %v4581_v43  ;;  %v4439_v61 = vpop.permute.xlu0 %4438  ;;  %v22604_v26 = vld [vmem:[#allocation2 + $0x278] sm:$0xff]  ;;  %v6423_v43 = vld [vmem:[#allocation2 + $0x60] sm:$0xff] }
 0x2c3   : > { %4700 = vst.msk [vmem:[#allocation2 + $0x308] sm:$0xff] %vm3196_vm4, %v4660_v18  ;;  %v4619_v22 = vsel %vm2834_vm2, %v22191_v34, %v4439_v61  ;;  %v22503_v34 = vld [vmem:[#allocation2 + $0x210] sm:$0xff] }
 0x2c4   : > { %16534 = vmatmul.mubr.msk.bf16.gmra.mrb[108].mxu1 %vm3196_vm4, %v4767_v20  ;;  %v22618_v18 = vld [vmem:[#allocation2 + $0x290] sm:$0xff] }
 0x2c5   : > { %16537 = vmatprep.mubr.msk.bf16.mxu1 %vm3196_vm4, %v4768_v15  ;;  %v4441_v27 = vpop.permute.xlu1 %4440  ;;  %v6425_v61 = vld [vmem:[#allocation2 + $0x70] sm:$0xff] }
 0x2c6   : > { %17170 = vmatmul.mubr.msk.bf16.gmra.mrb[44].mxu0 %vm3196_vm4, %v4767_v20  ;;  %v4621_v32 = vsel %vm2834_vm2, %v22207_v53, %v4441_v27  ;;  %v4583_v11 = vpop.permute.xlu0 %4582  ;;  %v6418_v20 = vld [vmem:[#allocation2 + $0x38] sm:$0xff]  ;;  %v22628_v27 = vld [vmem:[#allocation2 + $0x2a0] sm:$0xff] }
 0x2c7   : > { %17173 = vmatprep.mubr.msk.bf16.mxu0 %vm3196_vm4, %v4768_v15  ;;  %v4663_v29 = vsel %vm2979_vm3, %v4619_v22, %v4583_v11  ;;  %v22594_v15 = vld [vmem:[#allocation2 + $0x268] sm:$0xff]  ;;  %v22624_v22 = vld [vmem:[#allocation2 + $0x298] sm:$0xff] }
 0x2c8   : > { %4701 = vst.msk [vmem:[#allocation2 + $0x310] sm:$0xff] %vm3196_vm4, %v4663_v29  ;;  %v6426_v11 = vld [vmem:[#allocation2 + $0x78] sm:$0xff]  ;;  %v6427_v29 = vld [vmem:[#allocation2 + $0x80] sm:$0xff] }
 0x2c9   : > { %v4585_v59 = vpop.permute.xlu1 %4584 }
 0x2ca   : > { %v4666_v57 = vsel %vm2979_vm3, %v4621_v32, %v4585_v59  ;;  %v4443_v0 = vpop.permute.xlu0 %4442  ;;  %v18980_v32 = vld [vmem:[%s24094_s3 + $0xb0] sm:$0xff]   ;;  %v22637_v59 = vld [vmem:[#allocation2 + $0x2a8] sm:$0xff] }
 0x2cb   : > { %4702 = vst.msk [vmem:[#allocation2 + $0x318] sm:$0xff] %vm3196_vm4, %v4666_v57  ;;  %v4623_v53 = vsel %vm2834_vm2, %v22229_v60, %v4443_v0  ;;  %v22523_v60 = vld [vmem:[#allocation2 + $0x220] sm:$0xff]  ;;  %v22641_v57 = vld [vmem:[#allocation2 + $0x2b0] sm:$0xff]  ;;  %v6428_v0 = vld [vmem:[#allocation2 + $0x88] sm:$0xff] }
 0x2cc   : > { %16538 = vmatmul.mubr.msk.bf16.gmra.mrb[112].mxu1 %vm3196_vm4, %v4769_v46 }
 0x2cd   : > { %16541 = vmatprep.mubr.msk.bf16.mxu1 %vm3196_vm4, %v4770_v24  ;;  %v4445_v42 = vpop.permute.xlu1 %4444 }
 0x2ce   : > { %17174 = vmatmul.mubr.msk.bf16.gmra.mrb[48].mxu0 %vm3196_vm4, %v4769_v46  ;;  %v4625_v14 = vsel %vm2834_vm2, %v22246_v23, %v4445_v42  ;;  %v4587_v45 = vpop.permute.xlu0 %4586  ;;  %v22614_v46 = vld [vmem:[#allocation2 + $0x288] sm:$0xff]  ;;  %v10377_v42 = vld [vmem:[#allocation2 + $0x2d0] sm:$0xff] }
 0x2cf   : > { %17177 = vmatprep.mubr.msk.bf16.mxu0 %vm3196_vm4, %v4770_v24  ;;  %v4669_v25 = vsel %vm2979_vm3, %v4623_v53, %v4587_v45  ;;  %v6424_v24 = vld [vmem:[#allocation2 + $0x68] sm:$0xff]  ;;  %v22646_v53 = vld [vmem:[#allocation2 + $0xa0] sm:$0xff] }
 0x2d0   : > { %4703 = vst.msk [vmem:[#allocation2 + $0x320] sm:$0xff] %vm3196_vm4, %v4669_v25  ;;  %v22655_v45 = vld [vmem:[#allocation2 + $0xa8] sm:$0xff]  ;;  %v22659_v25 = vld [vmem:[#allocation2 + $0xb0] sm:$0xff] }
 0x2d1   : > { %v4589_v56 = vpop.permute.xlu1 %4588 }
 0x2d2   : > { %v4672_v47 = vsel %vm2979_vm3, %v4625_v14, %v4589_v56  ;;  %v4447_v52 = vpop.permute.xlu0 %4446  ;;  %v22650_v14 = vld [vmem:[#allocation2 + $0x2b8] sm:$0xff]  ;;  %v22661_v56 = vld [vmem:[#allocation2 + $0x2e0] sm:$0xff] }
 0x2d3   : > { %4704 = vst.msk [vmem:[#allocation2 + $0x328] sm:$0xff] %vm3196_vm4, %v4672_v47  ;;  %v4627_v23 = vsel %vm2834_vm2, %v22270_v31, %v4447_v52  ;;  %v6413_v31 = vld [vmem:[#allocation2 + $0x10] sm:$0xff]  ;;  %v22665_v47 = vld [vmem:[#allocation2 + $0x2d8] sm:$0xff] }
 0x2d4   : > { %16542 = vmatmul.mubr.msk.bf16.gmra.mrb[116].mxu1 %vm3196_vm4, %v22498_v35  ;;  %v22671_v52 = vld [vmem:[#allocation2 + $0xb8] sm:$0xff] }
 0x2d5   : > { %16545 = vmatprep.mubr.msk.bf16.mxu1 %vm3196_vm4, %v22503_v34  ;;  %v4449_v6 = vpop.permute.xlu1 %4448 }
 0x2d6   : > { %17178 = vmatmul.mubr.msk.bf16.gmra.mrb[52].mxu0 %vm3196_vm4, %v22498_v35  ;;  %v4629_v10 = vsel %vm2834_vm2, %v22287_v28, %v4449_v6  ;;  %v4591_v51 = vpop.permute.xlu0 %4590  ;;  %v22677_v6 = vld [vmem:[#allocation2 + $0x2f0] sm:$0xff] }
 0x2d7   : > { %17181 = vmatprep.mubr.msk.bf16.mxu0 %vm3196_vm4, %v22503_v34  ;;  %v4675_v40 = vsel %vm2979_vm3, %v4627_v23, %v4591_v51  ;;  %v22675_v23 = vld [vmem:[#allocation2 + $0xc0] sm:$0xff]  ;;  %v22687_v51 = vld [vmem:[#allocation2 + $0xc8] sm:$0xff] }
 0x2d8   : > { %4705 = vst.msk [vmem:[#allocation2 + $0x330] sm:$0xff] %vm3196_vm4, %v4675_v40  ;;  %v22691_v40 = vld [vmem:[#allocation2 + $0xd0] sm:$0xff] }
 0x2d9   : > { %v4593_v55 = vpop.permute.xlu1 %4592 }
 0x2da   : > { %v4678_v30 = vsel %vm2979_vm3, %v4629_v10, %v4593_v55  ;;  %v4451_v33 = vpop.permute.xlu0 %4450  ;;  %v22681_v10 = vld [vmem:[#allocation2 + $0x2e8] sm:$0xff]  ;;  %v22693_v55 = vld [vmem:[#allocation2 + $0x300] sm:$0xff] }
 0x2db   : > { %4706 = vst.msk [vmem:[#allocation2 + $0x338] sm:$0xff] %vm3196_vm4, %v4678_v30  ;;  %v4631_v28 = vsel %vm2834_vm2, %v22313_v17, %v4451_v33  ;;  %v6415_v17 = vld [vmem:[#allocation2 + $0x20] sm:$0xff]  ;;  %v22697_v30 = vld [vmem:[#allocation2 + $0x2f8] sm:$0xff] }
 0x2dc   : > { %16546 = vmatmul.mubr.msk.bf16.gmra.mrb[120].mxu1 %vm3196_vm4, %v22518_v58  ;;  %v22711_v33 = vld [vmem:[%s24094_s3 + $0xc0] sm:$0xff]  }
 0x2dd   : > { %16549 = vmatprep.mubr.msk.bf16.mxu1 %vm3196_vm4, %v22523_v60 }
 0x2de   : > { %17182 = vmatmul.mubr.msk.bf16.gmra.mrb[56].mxu0 %vm3196_vm4, %v22518_v58  ;;  %v4595_v1 = vpop.permute.xlu0 %4594 }
 0x2df   : > { %17185 = vmatprep.mubr.msk.bf16.mxu0 %vm3196_vm4, %v22523_v60  ;;  %v4681_v44 = vsel %vm2979_vm3, %v4631_v28, %v4595_v1  ;;  %v22716_v28 = vld [vmem:[#allocation2 + $0xe0] sm:$0xff]  ;;  %v22722_v1 = vld [vmem:[#allocation2 + $0x308] sm:$0xff] }
 0x2e0   : > { %4707 = vst.msk [vmem:[#allocation2 + $0x340] sm:$0xff] %vm3196_vm4, %v4681_v44  ;;  %v22732_v44 = vld [vmem:[#allocation2 + $0xf0] sm:$0xff] }
 0x2e2   : > { %v4453_v49 = vpop.permute.xlu1 %4452 }
 0x2e3   : > { %v4633_v12 = vsel %vm2834_vm2, %v22326_v13, %v4453_v49  ;;  %v22566_v13 = vld [vmem:[#allocation2 + $0x248] sm:$0xff]  ;;  %v22718_v49 = vld [vmem:[#allocation2 + $0x310] sm:$0xff] }
 0x2e4   : > { %16550 = vmatmul.mubr.msk.bf16.gmra.mrb[124].mxu1 %vm3196_vm4, %v22538_v37 }
 0x2e5   : > { %16565 = vmatprep.mubr.msk.bf16.mxu1 %vm3196_vm4, %v6413_v31  ;;  %v18982_v31 = vld [vmem:[%s24094_s3 + $0xb8] sm:$0xff]  }
 0x2e6   : > { %17186 = vmatmul.mubr.msk.bf16.gmra.mrb[60].mxu0 %vm3196_vm4, %v22538_v37 }
 0x2e7   : > { %17189 = vmatprep.mubr.msk.bf16.mxu0 %vm3196_vm4, %v10361_v48  ;;  %v4597_v2 = vpop.permute.xlu1 %4596  ;;  %v22706_v48 = vld [vmem:[#allocation2 + $0xd8] sm:$0xff] }
 0x2e8   : > { %v4684_v39 = vsel %vm2979_vm3, %v4633_v12, %v4597_v2  ;;  %v22728_v12 = vld [vmem:[#allocation2 + $0xe8] sm:$0xff]  ;;  %v22744_v2 = vld [vmem:[#allocation2 + $0xf8] sm:$0xff] }
 0x2e9   : > { %4708 = vst.msk [vmem:[#allocation2 + $0x348] sm:$0xff] %vm3196_vm4, %v4684_v39  ;;  %v22750_v39 = vld [vmem:[#allocation2 + $0x330] sm:$0xff] }
 0x2ea   : > { %24279 = vst [vmem:[#allocation25_spill] sm:$0xff] %v22750_v39 }
 0x2ec   : > { %16566 = vmatmul.mubr.msk.bf16.vlgmr.msra.gmra.mrb[0].mxu1 %vm3196_vm4, %v6414_v41  ;;  %v22738_v41 = vld [vmem:[#allocation2 + $0x318] sm:$0xff] }
 0x2ed   : > { %16569 = vmatprep.mubr.msk.bf16.mxu1 %vm3196_vm4, %v6415_v17  ;;  %16694 = vmatpush3.bf16.msra.mxu1 %v22377_v19  ;;  %v18978_v19 = vld [vmem:[%s24094_s3 + $0xa8] sm:$0xff]   ;;  %v22748_v17 = vld [vmem:[#allocation2 + $0x100] sm:$0xff] }
 0x2ee   : > { %17190 = vmatmul.mubr.msk.bf16.gmra.mrb[64].mxu0 %vm3196_vm4, %v22566_v13  ;;  %16695 = vmatprep.subr.bf16.mxu1 %v18974_v8 }
 0x2ef   : > { %17193 = vmatprep.mubr.msk.bf16.mxu0 %vm3196_vm4, %v22571_v5 }
 0x2f1   : > { %16696 = vmatpush3.bf16.msra.mxu1 %v18974_v8  ;;  %v22734_v8 = vld [vmem:[#allocation2 + $0x320] sm:$0xff] }
 0x2f2   : > { %16697 = vmatprep.subr.bf16.mxu1 %v18976_v21 }
 0x2f4   : > { %16570 = vmatmul.mubr.msk.bf16.gmra.mrb[4].mxu1 %vm3196_vm4, %v6416_v16  ;;  %v6443_v16 = vld [vmem:[#allocation2 + $0x110] sm:$0xff] }
 0x2f5   : > { %16573 = vmatprep.mubr.msk.bf16.mxu1 %vm3196_vm4, %v6417_v3  ;;  %16698 = vmatpush3.bf16.msra.mxu1 %v18976_v21  ;;  %v22754_v21 = vld [vmem:[#allocation2 + $0x328] sm:$0xff]  ;;  %v22764_v3 = vld [vmem:[#allocation2 + $0x340] sm:$0xff] }
 0x2f6   : > { %17194 = vmatmul.mubr.msk.bf16.gmra.mrb[68].mxu0 %vm3196_vm4, %v22584_v63  ;;  %16699 = vmatprep.subr.bf16.mxu1 %v18978_v19  ;;  %24280 = vst [vmem:[#allocation26_spill] sm:$0xff] %v22764_v3 }
 0x2f7   : > { %17197 = vmatprep.mubr.msk.bf16.mxu0 %vm3196_vm4, %v22588_v9 }
 0x2f9   : > { %16700 = vmatpush3.bf16.msra.mxu1 %v18978_v19  ;;  %v22760_v19 = vld [vmem:[#allocation2 + $0x108] sm:$0xff] }
 0x2fa   : > { %16701 = vmatprep.subr.bf16.mxu1 %v18980_v32 }
 0x2fc   : > { %16574 = vmatmul.mubr.msk.bf16.gmra.mrb[8].mxu1 %vm3196_vm4, %v6418_v20  ;;  %v22767_v20 = vld [vmem:[#allocation2 + $0x338] sm:$0xff] }
 0x2fd   : > { %16577 = vmatprep.mubr.msk.bf16.mxu1 %vm3196_vm4, %v6419_v4  ;;  %16702 = vmatpush3.bf16.msra.mxu1 %v18980_v32  ;;  %24281 = vst [vmem:[#allocation27_spill] sm:$0xff] %v22767_v20  ;;  %v6444_v4 = vld [vmem:[#allocation2 + $0x118] sm:$0xff] }
 0x2fe   : > { %17198 = vmatmul.mubr.msk.bf16.gmra.mrb[72].mxu0 %vm3196_vm4, %v22594_v15  ;;  %16703 = vmatprep.subr.bf16.mxu1 %v18982_v31 }
 0x2ff   : > { %17201 = vmatprep.mubr.msk.bf16.mxu0 %vm3196_vm4, %v22598_v62 }
 0x301   : > { %16704 = vmatpush3.bf16.msra.mxu1 %v18982_v31 }
 0x302   : > { %17533 = vmatprep.subr.bf16.mxu1 %v22711_v33 }
 0x304   : > { %16578 = vmatmul.mubr.msk.bf16.gmra.mrb[12].mxu1 %vm3196_vm4, %v6420_v50  ;;  %v22774_v50 = vld [vmem:[#allocation2 + $0x130] sm:$0xff] }
 0x305   : > { %16581 = vmatprep.mubr.msk.bf16.mxu1 %vm3196_vm4, %v6421_v7  ;;  %v22778_v7 = vld [vmem:[#allocation2 + $0x348] sm:$0xff] }
 0x306   : > { %17202 = vmatmul.mubr.msk.bf16.gmra.mrb[76].mxu0 %vm3196_vm4, %v22604_v26  ;;  %24282 = vst [vmem:[#allocation8_spill] sm:$0xff] %v22778_v7 }
 0x307   : > { %17205 = vmatprep.mubr.msk.bf16.mxu0 %vm3196_vm4, %v22608_v38 }
 0x30c   : > { %16582 = vmatmul.mubr.msk.bf16.gmra.mrb[16].mxu1 %vm3196_vm4, %v6422_v36  ;;  %v22782_v36 = vld [vmem:[#allocation2 + $0x128] sm:$0xff] }
 0x30d   : > { %16585 = vmatprep.mubr.msk.bf16.mxu1 %vm3196_vm4, %v6423_v43  ;;  %v4022_v43 = vld [vmem:[%s22049_s14 + $0xc0] sm:$0xf] }
 0x30e   : > { %17206 = vmatmul.mubr.msk.bf16.gmra.mrb[80].mxu0 %vm3196_vm4, %v22614_v46 }
 0x30f   : > { %17209 = vmatprep.mubr.msk.bf16.mxu0 %vm3196_vm4, %v22618_v18 }
 0x314   : > { %16586 = vmatmul.mubr.msk.bf16.gmra.mrb[20].mxu1 %vm3196_vm4, %v6424_v24  ;;  %v4023_v24 = vld [vmem:[%s22049_s14 + $0xc4] sm:$0xf] }
 0x315   : > { %16589 = vmatprep.mubr.msk.bf16.mxu1 %vm3196_vm4, %v6425_v61  ;;  %v4060_v61 = vld [vmem:[%s22049_s14 + $0xc0] sm:$0xe]  ;;  %v22789_v32 = vcombine.low %v4022_v43, %v4023_v24  ;;  %v18981_v43 = vld [vmem:[%s24094_s3 + $0x188] sm:$0xff]  }
 0x316   : > { %17210 = vmatmul.mubr.msk.bf16.gmra.mrb[84].mxu0 %vm3196_vm4, %v22624_v22 }
 0x317   : > { %17213 = vmatprep.mubr.msk.bf16.mxu0 %vm3196_vm4, %v22628_v27 }
 0x31c   : > { %16590 = vmatmul.mubr.msk.bf16.gmra.mrb[24].mxu1 %vm3196_vm4, %v6426_v11  ;;  %v18985_v11 = vld [vmem:[%s22049_s14 + $0xc8] ss:$0 sps:$4 sm:$0x11]  }
 0x31d   : > { %16593 = vmatprep.mubr.msk.bf16.mxu1 %vm3196_vm4, %v6427_v29  ;;  %v14650_v29 = vcombine.low %v4060_v61, %v4023_v24  ;;  %v4406_v31 = vshll.u32 %v18985_v11, 16 }
 0x31e   : > { %17214 = vmatmul.mubr.msk.bf16.gmra.mrb[88].mxu0 %vm3196_vm4, %v22637_v59 }
 0x31f   : > { %17217 = vmatprep.mubr.msk.bf16.mxu0 %vm3196_vm4, %v22641_v57  ;;  %v4408_v24 = vrot.slane %v4406_v31, 1  ;;  %v22836_v31 = vld [vmem:[#allocation2 + $0x160] sm:$0xff] }
 0x324   : > { %16594 = vmatmul.mubr.msk.bf16.gmra.mrb[28].mxu1 %vm3196_vm4, %v6428_v0  ;;  %v4399_v0 = vshrl.u32 %v22789_v32, 16 }
 0x325   : > { %16597 = vmatprep.mubr.msk.bf16.mxu1 %vm3196_vm4, %v22646_v53 }
 0x326   : > { %17218 = vmatmul.mubr.msk.bf16.gmra.mrb[92].mxu0 %vm3196_vm4, %v22650_v14 }
 0x327   : > { %17221 = vmatprep.mubr.msk.bf16.mxu0 %vm3196_vm4, %v10377_v42  ;;  %v4401_v42 = vshll.u32 %v22789_v32, 16 }
 0x32c   : > { %16598 = vmatmul.mubr.msk.bf16.gmra.mrb[32].mxu1 %vm3196_vm4, %v22655_v45 }
 0x32d   : > { %16601 = vmatprep.mubr.msk.bf16.mxu1 %vm3196_vm4, %v22659_v25 }
 0x32e   : > { %17222 = vmatmul.mubr.msk.bf16.gmra.mrb[96].mxu0 %vm3196_vm4, %v22665_v47 }
 0x32f   : > { %17225 = vmatprep.mubr.msk.bf16.mxu0 %vm3196_vm4, %v22661_v56 }
 0x334   : > { %16602 = vmatmul.mubr.msk.bf16.gmra.mrb[36].mxu1 %vm3196_vm4, %v22671_v52 }
 0x335   : > { %16605 = vmatprep.mubr.msk.bf16.mxu1 %vm3196_vm4, %v22675_v23 }
 0x336   : > { %17226 = vmatmul.mubr.msk.bf16.gmra.mrb[100].mxu0 %vm3196_vm4, %v22681_v10 }
 0x337   : > { %17229 = vmatprep.mubr.msk.bf16.mxu0 %vm3196_vm4, %v22677_v6 }
 0x33c   : > { %16606 = vmatmul.mubr.msk.bf16.gmra.mrb[40].mxu1 %vm3196_vm4, %v22687_v51 }
 0x33d   : > { %16609 = vmatprep.mubr.msk.bf16.mxu1 %vm3196_vm4, %v22691_v40 }
 0x33e   : > { %17230 = vmatmul.mubr.msk.bf16.gmra.mrb[104].mxu0 %vm3196_vm4, %v22697_v30 }
 0x33f   : > { %17233 = vmatprep.mubr.msk.bf16.mxu0 %vm3196_vm4, %v22693_v55 }
 0x344   : > { %16610 = vmatmul.mubr.msk.bf16.gmra.mrb[44].mxu1 %vm3196_vm4, %v22706_v48 }
 0x345   : > { %16613 = vmatprep.mubr.msk.bf16.mxu1 %vm3196_vm4, %v22716_v28 }
 0x346   : > { %17234 = vmatmul.mubr.msk.bf16.gmra.mrb[108].mxu0 %vm3196_vm4, %v22722_v1 }
 0x347   : > { %17237 = vmatprep.mubr.msk.bf16.mxu0 %vm3196_vm4, %v22718_v49 }
 0x34c   : > { %16614 = vmatmul.mubr.msk.bf16.gmra.mrb[48].mxu1 %vm3196_vm4, %v22728_v12 }
 0x34d   : > { %16617 = vmatprep.mubr.msk.bf16.mxu1 %vm3196_vm4, %v22732_v44 }
 0x34e   : > { %17238 = vmatmul.mubr.msk.bf16.gmra.mrb[112].mxu0 %vm3196_vm4, %v22738_v41 }
 0x34f   : > { %17241 = vmatprep.mubr.msk.bf16.mxu0 %vm3196_vm4, %v22734_v8 }
 0x354   : > { %16618 = vmatmul.mubr.msk.bf16.gmra.mrb[52].mxu1 %vm3196_vm4, %v22744_v2 }
 0x355   : > { %16621 = vmatprep.mubr.msk.bf16.mxu1 %vm3196_vm4, %v22748_v17 }
 0x356   : > { %17242 = vmatmul.mubr.msk.bf16.gmra.mrb[116].mxu0 %vm3196_vm4, %v22754_v21 }
 0x357   : > { %17245 = vmatprep.mubr.msk.bf16.mxu0 %vm3196_vm4, %v22750_v39  ;;  %v22887_v39 = vld [vmem:[#allocation2 + $0x1a0] sm:$0xff] }
 0x358   : > { %24287 = vst [vmem:[#allocation12_spill] sm:$0xff] %v22887_v39 }
 0x35c   : > { %16622 = vmatmul.mubr.msk.bf16.gmra.mrb[56].mxu1 %vm3196_vm4, %v22760_v19 }
 0x35d   : > { %16625 = vmatprep.mubr.msk.bf16.mxu1 %vm3196_vm4, %v6443_v16  ;;  %v4560_v16 = vrot.slane %v14650_v29, 1  ;;  %v18983_v29 = vld [vmem:[%s24094_s3 + $0x190] sm:$0xff]  }
 0x35e   : > { %17246 = vmatmul.mubr.msk.bf16.gmra.mrb[120].mxu0 %vm3196_vm4, %v22767_v20  ;;  %v4403_v20 = vrot.slane %v4401_v42, 1 }
 0x35f   : > { %17249 = vmatprep.mubr.msk.bf16.mxu0 %vm3196_vm4, %v22764_v3  ;;  %v22798_v3 = vld [vmem:[#allocation2 + $0x140] sm:$0xff] }
 0x364   : > { %16626 = vmatmul.mubr.msk.bf16.gmra.mrb[60].mxu1 %vm3196_vm4, %v6444_v4  ;;  %v22794_v4 = vld [vmem:[#allocation2 + $0x138] sm:$0xff] }
 0x365   : > { %16629 = vmatprep.mubr.msk.bf16.mxu1 %vm3196_vm4, %v22774_v50 }
 0x366   : > { %17250 = vmatmul.mubr.msk.bf16.gmra.mrb[124].mxu0 %vm3196_vm4, %v22778_v7  ;;  %v4561_v7 = vrot.slane %v18985_v11, 1  ;;  %v4404_v11 = vor.u32 %v4403_v20, %v4399_v0  ;;  %v22821_v20 = vld [vmem:[#allocation2 + $0x150] sm:$0xff]  ;;  %v22832_v0 = vld [vmem:[#allocation2 + $0x158] sm:$0xff] }
 0x367   : > { %17265 = vmatprep.mubr.msk.bf16.mxu0 %vm3196_vm4, %v22782_v36 }
 0x368   : > { %v4562_v61 = vsel %vm2473_vm0, %v4560_v16, %v4561_v7  ;;  %v4409_v42 = vsel %vm1248_vm1, %v4404_v11, %v4408_v24  ;;  %v22817_v7 = vld [vmem:[#allocation2 + $0x148] sm:$0xff]  ;;  %v22856_v24 = vld [vmem:[#allocation2 + $0x178] sm:$0xff] }
 0x369   : > { %4598 = vrot.lane.b32.xlu1 %v4562_v61, %s19110_s28  ;;  %4454 = vrot.lane.b32.xlu0 %v4409_v42, %s19111_s26  ;;  %v22844_v16 = vld [vmem:[#allocation2 + $0x168] sm:$0xff]  ;;  %v22860_v61 = vld [vmem:[#allocation2 + $0x180] sm:$0xff] }
 0x36a   : > { %24283 = vst [vmem:[#allocation9_spill] sm:$0xff] %v22860_v61  ;;  %v22868_v11 = vld [vmem:[#allocation2 + $0x188] sm:$0xff]  ;;  %v18988_v42 = vld [vmem:[%s24094_s3 + $0x1a0] sm:$0xff]  }
 0x36b   : > { %24284 = vst [vmem:[#allocation10_spill] sm:$0xff] %v22868_v11 }
 0x36c   : > { %16630 = vmatmul.mubr.msk.bf16.gmra.mrb[64].mxu1 %vm3196_vm4, %v22794_v4 }
 0x36d   : > { %16633 = vmatprep.mubr.msk.bf16.mxu1 %vm3196_vm4, %v22798_v3 }
 0x36e   : > { %17266 = vmatmul.mubr.msk.bf16.vlgmr.msra.gmra.mrb[0].mxu0 %vm3196_vm4, %v22774_v50 }
 0x36f   : > { %17394 = vmatpush3.bf16.msra.mxu0 %v22562_v54  ;;  %17269 = vmatprep.mubr.msk.bf16.mxu0 %vm3196_vm4, %v22794_v4  ;;  %v18987_v54 = vld [vmem:[%s24094_s3 + $0x198] sm:$0xff]  }
 0x370   : > { %17395 = vmatprep.subr.bf16.mxu0 %v18981_v43 }
 0x373   : > { %17396 = vmatpush3.bf16.msra.mxu0 %v18981_v43  ;;  %v22848_v43 = vld [vmem:[#allocation2 + $0x170] sm:$0xff] }
 0x374   : > { %16634 = vmatmul.mubr.msk.bf16.gmra.mrb[68].mxu1 %vm3196_vm4, %v22817_v7  ;;  %17397 = vmatprep.subr.bf16.mxu0 %v18983_v29 }
 0x375   : > { %16637 = vmatprep.mubr.msk.bf16.mxu1 %vm3196_vm4, %v22821_v20 }
 0x376   : > { %17270 = vmatmul.mubr.msk.bf16.gmra.mrb[4].mxu0 %vm3196_vm4, %v22798_v3 }
 0x377   : > { %17273 = vmatprep.mubr.msk.bf16.mxu0 %vm3196_vm4, %v22817_v7  ;;  %17398 = vmatpush3.bf16.msra.mxu0 %v18983_v29  ;;  %v22872_v29 = vld [vmem:[#allocation2 + $0x190] sm:$0xff] }
 0x378   : > { %17399 = vmatprep.subr.bf16.mxu0 %v18987_v54  ;;  %24285 = vst [vmem:[#allocation28_spill] sm:$0xff] %v22872_v29 }
 0x37b   : > { %17400 = vmatpush3.bf16.msra.mxu0 %v18987_v54  ;;  %v22883_v54 = vld [vmem:[#allocation2 + $0x198] sm:$0xff] }
 0x37c   : > { %16638 = vmatmul.mubr.msk.bf16.gmra.mrb[72].mxu1 %vm3196_vm4, %v22832_v0  ;;  %17401 = vmatprep.subr.bf16.mxu0 %v18988_v42  ;;  %24286 = vst [vmem:[#allocation11_spill] sm:$0xff] %v22883_v54 }
 0x37d   : > { %16641 = vmatprep.mubr.msk.bf16.mxu1 %vm3196_vm4, %v22836_v31 }
 0x37e   : > { %17274 = vmatmul.mubr.msk.bf16.gmra.mrb[8].mxu0 %vm3196_vm4, %v22821_v20 }
 0x37f   : > { %17277 = vmatprep.mubr.msk.bf16.mxu0 %vm3196_vm4, %v22832_v0  ;;  %17402 = vmatpush3.bf16.msra.mxu0 %v18988_v42  ;;  %v22899_v42 = vld [vmem:[#allocation2 + $0x1c0] sm:$0xff] }
 0x380   : > { %24289 = vst [vmem:[#allocation14_spill] sm:$0xff] %v22899_v42 }
 0x384   : > { %16642 = vmatmul.mubr.msk.bf16.gmra.mrb[76].mxu1 %vm3196_vm4, %v22844_v16 }
 0x385   : > { %16645 = vmatprep.mubr.msk.bf16.mxu1 %vm3196_vm4, %v22848_v43 }
 0x386   : > { %17278 = vmatmul.mubr.msk.bf16.gmra.mrb[12].mxu0 %vm3196_vm4, %v22836_v31 }
 0x387   : > { %17281 = vmatprep.mubr.msk.bf16.mxu0 %vm3196_vm4, %v22844_v16 }
 0x38c   : > { %16646 = vmatmul.mubr.msk.bf16.gmra.mrb[80].mxu1 %vm3196_vm4, %v22856_v24 }
 0x38d   : > { %16649 = vmatprep.mubr.msk.bf16.mxu1 %vm3196_vm4, %v22860_v61 }
 0x38e   : > { %17282 = vmatmul.mubr.msk.bf16.gmra.mrb[16].mxu0 %vm3196_vm4, %v22848_v43 }
 0x38f   : > { %17285 = vmatprep.mubr.msk.bf16.mxu0 %vm3196_vm4, %v22856_v24 }
 0x394   : > { %16650 = vmatmul.mubr.msk.bf16.gmra.mrb[84].mxu1 %vm3196_vm4, %v22868_v11 }
 0x395   : > { %16653 = vmatprep.mubr.msk.bf16.mxu1 %vm3196_vm4, %v22872_v29 }
 0x396   : > { %17286 = vmatmul.mubr.msk.bf16.gmra.mrb[20].mxu0 %vm3196_vm4, %v22860_v61  ;;  %v22905_v61 = vld [vmem:[#allocation2 + $0x1b8] sm:$0xff] }
 0x397   : > { %17289 = vmatprep.mubr.msk.bf16.mxu0 %vm3196_vm4, %v22868_v11  ;;  %v22895_v11 = vld [vmem:[#allocation2 + $0x1a8] sm:$0xff]  ;;  %24290 = vst [vmem:[#allocation15_spill] sm:$0xff] %v22905_v61 }
 0x398   : > { %24288 = vst [vmem:[#allocation13_spill] sm:$0xff] %v22895_v11 }
 0x39c   : > { %16654 = vmatmul.mubr.msk.bf16.gmra.mrb[88].mxu1 %vm3196_vm4, %v22883_v54 }
 0x39d   : > { %16657 = vmatprep.mubr.msk.bf16.mxu1 %vm3196_vm4, %v22887_v39 }
 0x39e   : > { %17290 = vmatmul.mubr.msk.bf16.gmra.mrb[24].mxu0 %vm3196_vm4, %v22872_v29  ;;  %v22909_v29 = vld [vmem:[#allocation2 + $0x1c8] sm:$0xff] }
 0x39f   : > { %17293 = vmatprep.mubr.msk.bf16.mxu0 %vm3196_vm4, %v22883_v54  ;;  %24291 = vst [vmem:[#allocation16_spill] sm:$0xff] %v22909_v29  ;;  %v22913_v54 = vld [vmem:[#allocation2 + $0x1d0] sm:$0xff] }
 0x3a0   : > { %24292 = vst [vmem:[#allocation17_spill] sm:$0xff] %v22913_v54 }
 0x3a4   : > { %16658 = vmatmul.mubr.msk.bf16.gmra.mrb[92].mxu1 %vm3196_vm4, %v22895_v11  ;;  %v22921_v11 = vld [vmem:[#allocation2 + $0x1d8] sm:$0xff] }
 0x3a5   : > { %16661 = vmatprep.mubr.msk.bf16.mxu1 %vm3196_vm4, %v22899_v42  ;;  %24293 = vst [vmem:[#allocation18_spill] sm:$0xff] %v22921_v11 }
 0x3a6   : > { %17294 = vmatmul.mubr.msk.bf16.gmra.mrb[28].mxu0 %vm3196_vm4, %v22887_v39  ;;  %v22925_v39 = vld [vmem:[#allocation2 + $0x1e0] sm:$0xff] }
 0x3a7   : > { %17297 = vmatprep.mubr.msk.bf16.mxu0 %vm3196_vm4, %v22905_v61  ;;  %v22952_v61 = vld [vmem:[#allocation2 + $0x200] sm:$0xff] }
 0x3a8   : > { %24296 = vst [vmem:[#allocation21_spill] sm:$0xff] %v22952_v61 }
 0x3ac   : > { %16662 = vmatmul.mubr.msk.bf16.gmra.mrb[96].mxu1 %vm3196_vm4, %v22909_v29 }
 0x3ad   : > { %16665 = vmatprep.mubr.msk.bf16.mxu1 %vm3196_vm4, %v22913_v54 }
 0x3ae   : > { %17298 = vmatmul.mubr.msk.bf16.gmra.mrb[32].mxu0 %vm3196_vm4, %v22899_v42  ;;  %v22933_v42 = vld [vmem:[#allocation2 + $0x1e8] sm:$0xff] }
 0x3af   : > { %17301 = vmatprep.mubr.msk.bf16.mxu0 %vm3196_vm4, %v22909_v29  ;;  %v22937_v29 = vld [vmem:[#allocation2 + $0x1f0] sm:$0xff] }
 0x3b0   : > { %24294 = vst [vmem:[#allocation19_spill] sm:$0xff] %v22937_v29 }
 0x3b4   : > { %16666 = vmatmul.mubr.msk.bf16.gmra.mrb[100].mxu1 %vm3196_vm4, %v22921_v11 }
 0x3b5   : > { %16669 = vmatprep.mubr.msk.bf16.mxu1 %vm3196_vm4, %v22925_v39 }
 0x3b6   : > { %17302 = vmatmul.mubr.msk.bf16.gmra.mrb[36].mxu0 %vm3196_vm4, %v22913_v54  ;;  %v22948_v54 = vld [vmem:[#allocation2 + $0x1f8] sm:$0xff] }
 0x3b7   : > { %17305 = vmatprep.mubr.msk.bf16.mxu0 %vm3196_vm4, %v22921_v11  ;;  %v18989_v11 = vld [vmem:[%s24094_s3 + $0x1a8] sm:$0xff]   ;;  %24295 = vst [vmem:[#allocation20_spill] sm:$0xff] %v22948_v54 }
 0x3b8   : > { %17403 = vmatprep.subr.bf16.mxu0 %v18989_v11 }
 0x3b9   : > { %17404 = vmatpush3.bf16.msra.mxu0 %v18989_v11  ;;  %v22978_v11 = vld [vmem:[#allocation2 + $0x230] sm:$0xff] }
 0x3bc   : > { %16670 = vmatmul.mubr.msk.bf16.gmra.mrb[104].mxu1 %vm3196_vm4, %v22933_v42 }
 0x3bd   : > { %16673 = vmatprep.mubr.msk.bf16.mxu1 %vm3196_vm4, %v22937_v29 }
 0x3be   : > { %17306 = vmatmul.mubr.msk.bf16.gmra.mrb[40].mxu0 %vm3196_vm4, %v22925_v39 }
 0x3bf   : > { %17309 = vmatprep.mubr.msk.bf16.mxu0 %vm3196_vm4, %v22933_v42 }
 0x3c4   : > { %16674 = vmatmul.mubr.msk.bf16.gmra.mrb[108].mxu1 %vm3196_vm4, %v22948_v54 }
 0x3c5   : > { %16677 = vmatprep.mubr.msk.bf16.mxu1 %vm3196_vm4, %v22952_v61 }
 0x3c6   : > { %17310 = vmatmul.mubr.msk.bf16.gmra.mrb[44].mxu0 %vm3196_vm4, %v22937_v29 }
 0x3c7   : > { %17313 = vmatprep.mubr.msk.bf16.mxu0 %vm3196_vm4, %v22948_v54 }
 0x3cc   : > { %16678 = vmatmul.mubr.msk.bf16.gmra.mrb[112].mxu1 %vm3196_vm4, %v22498_v35 }
 0x3cd   : > { %16681 = vmatprep.mubr.msk.bf16.mxu1 %vm3196_vm4, %v22503_v34 }
 0x3ce   : > { %17314 = vmatmul.mubr.msk.bf16.gmra.mrb[48].mxu0 %vm3196_vm4, %v22952_v61  ;;  %v22986_v61 = vld [vmem:[#allocation2 + $0x238] sm:$0xff] }
 0x3cf   : > { %17317 = vmatprep.mubr.msk.bf16.mxu0 %vm3196_vm4, %v22498_v35 }
 0x3d4   : > { %16682 = vmatmul.mubr.msk.bf16.gmra.mrb[116].mxu1 %vm3196_vm4, %v22518_v58 }
 0x3d5   : > { %16685 = vmatprep.mubr.msk.bf16.mxu1 %vm3196_vm4, %v22523_v60 }
 0x3d6   : > { %17318 = vmatmul.mubr.msk.bf16.gmra.mrb[52].mxu0 %vm3196_vm4, %v22503_v34 }
 0x3d7   : > { %17321 = vmatprep.mubr.msk.bf16.mxu0 %vm3196_vm4, %v22518_v58  ;;  %v7392_v58 = vld [vmem:[#allocation2 + $0x90] sm:$0xff] }
 0x3db   : > { %v4599_v35 = vpop.permute.xlu1 %4598  ;;  %v4455_v34 = vpop.permute.xlu0 %4454 }
 0x3dc   : > { %16686 = vmatmul.mubr.msk.bf16.gmra.mrb[120].mxu1 %vm3196_vm4, %v22538_v37  ;;  %v4635_v54 = vsel %vm2834_vm2, %v22789_v32, %v4455_v34  ;;  %v24313_v32 = vld [vmem:[#allocation12_spill] sm:$0xff] }
 0x3dd   : > { %16689 = vmatprep.mubr.msk.bf16.mxu1 %vm3196_vm4, %v22978_v11  ;;  %v4687_v29 = vsel %vm2979_vm3, %v4635_v54, %v4599_v35 }
 0x3de   : > { %17322 = vmatmul.mubr.msk.bf16.gmra.mrb[56].mxu0 %vm3196_vm4, %v22523_v60  ;;  %4709 = vst.msk [vmem:[#allocation2 + $0x350] sm:$0xff] %vm3196_vm4, %v4687_v29  ;;  %v7393_v60 = vld [vmem:[#allocation2 + $0x98] sm:$0xff]  ;;  %v23257_v29 = vld [vmem:[#allocation2 + $0x270] sm:$0xff] }
 0x3df   : > { %17325 = vmatprep.mubr.msk.bf16.mxu0 %vm3196_vm4, %v22538_v37  ;;  %v19008_v37 = vld [vmem:[%s24094_s3 + $0xc8] sm:$0xff]  }
 0x3e4   : > { %16690 = vmatmul.mubr.msk.bf16.gmra.mrb[124].mxu1 %vm3196_vm4, %v22986_v61 }
 0x3e5   : > { %16705 = vmatprep.mubr.msk.bf16.mxu1 %vm3196_vm4, %v7392_v58 }
 0x3e6   : > { %17326 = vmatmul.mubr.msk.bf16.gmra.mrb[60].mxu0 %vm3196_vm4, %v22978_v11 }
 0x3e7   : > { %17329 = vmatprep.mubr.msk.bf16.mxu0 %vm3196_vm4, %v22566_v13  ;;  %v19009_v13 = vld [vmem:[%s24094_s3 + $0xd0] sm:$0xff]  }
 0x3ec   : > { %16706 = vmatmul.mubr.msk.bf16.vlgmr.msra.gmra.mrb[0].mxu1 %vm3196_vm4, %v7393_v60  ;;  %v23273_v60 = vld [vmem:[#allocation2 + $0x278] sm:$0xff] }
 0x3ed   : > { %16709 = vmatprep.mubr.msk.bf16.mxu1 %vm3196_vm4, %v22646_v53  ;;  %17539 = vmatpush3.bf16.msra.mxu1 %v22711_v33  ;;  %v24304_v53 = vld [vmem:[#allocation11_spill] sm:$0xff] }
 0x3ee   : > { %17330 = vmatmul.mubr.msk.bf16.gmra.mrb[64].mxu0 %vm3196_vm4, %v22571_v5  ;;  %17534 = vmatprep.subr.bf16.mxu1 %v19008_v37  ;;  %v19010_v5 = vld [vmem:[%s24094_s3 + $0xd8] sm:$0xff]  }
 0x3ef   : > { %17333 = vmatprep.mubr.msk.bf16.mxu0 %vm3196_vm4, %v22584_v63  ;;  %v19011_v63 = vld [vmem:[%s24094_s3 + $0xe0] sm:$0xff]  }
 0x3f1   : > { %17540 = vmatpush3.bf16.msra.mxu1 %v19008_v37  ;;  %v23277_v37 = vld [vmem:[#allocation2 + $0x280] sm:$0xff] }
 0x3f2   : > { %17535 = vmatprep.subr.bf16.mxu1 %v19009_v13 }
 0x3f4   : > { %16710 = vmatmul.mubr.msk.bf16.gmra.mrb[4].mxu1 %vm3196_vm4, %v22655_v45  ;;  %v4024_v45 = vld [vmem:[%s22049_s14 + $0xcc] sm:$0xf] }
 0x3f5   : > { %16713 = vmatprep.mubr.msk.bf16.mxu1 %vm3196_vm4, %v22659_v25  ;;  %17541 = vmatpush3.bf16.msra.mxu1 %v19009_v13  ;;  %v4025_v25 = vld [vmem:[%s22049_s14 + $0xd0] sm:$0xf] }
 0x3f6   : > { %17334 = vmatmul.mubr.msk.bf16.gmra.mrb[68].mxu0 %vm3196_vm4, %v22588_v9  ;;  %17536 = vmatprep.subr.bf16.mxu1 %v19010_v5  ;;  %v19012_v9 = vld [vmem:[%s24094_s3 + $0xe8] sm:$0xff]  }
 0x3f7   : > { %17337 = vmatprep.mubr.msk.bf16.mxu0 %vm3196_vm4, %v22594_v15  ;;  %v7408_v15 = vld [vmem:[#allocation2 + $0x120] sm:$0xff] }
 0x3f9   : > { %17542 = vmatpush3.bf16.msra.mxu1 %v19010_v5 }
 0x3fa   : > { %17537 = vmatprep.subr.bf16.mxu1 %v19011_v63 }
 0x3fc   : > { %16714 = vmatmul.mubr.msk.bf16.gmra.mrb[8].mxu1 %vm3196_vm4, %v22671_v52  ;;  %v4061_v52 = vld [vmem:[%s22049_s14 + $0xcc] sm:$0xe] }
 0x3fd   : > { %16717 = vmatprep.mubr.msk.bf16.mxu1 %vm3196_vm4, %v22675_v23  ;;  %17543 = vmatpush3.bf16.msra.mxu1 %v19011_v63  ;;  %v14651_v23 = vcombine.low %v4061_v52, %v4025_v25  ;;  %v23337_v52 = vld [vmem:[#allocation2 + $0x2b0] sm:$0xff] }
 0x3fe   : > { %17338 = vmatmul.mubr.msk.bf16.gmra.mrb[72].mxu0 %vm3196_vm4, %v22598_v62  ;;  %17538 = vmatprep.subr.bf16.mxu1 %v19012_v9  ;;  %v23073_v62 = vld [vmem:[#allocation2 + $0x2c0] sm:$0xff] }
 0x3ff   : > { %17341 = vmatprep.mubr.msk.bf16.mxu0 %vm3196_vm4, %v22604_v26  ;;  %v24297_v26 = vld [vmem:[#allocation9_spill] sm:$0xff] }
 0x401   : > { %17544 = vmatpush3.bf16.msra.mxu1 %v19012_v9 }
 0x404   : > { %16718 = vmatmul.mubr.msk.bf16.gmra.mrb[12].mxu1 %vm3196_vm4, %v22687_v51 }
 0x405   : > { %16721 = vmatprep.mubr.msk.bf16.mxu1 %vm3196_vm4, %v22691_v40 }
 0x406   : > { %17342 = vmatmul.mubr.msk.bf16.gmra.mrb[76].mxu0 %vm3196_vm4, %v22608_v38  ;;  %v24298_v38 = vld [vmem:[#allocation25_spill] sm:$0xff] }
 0x407   : > { %17345 = vmatprep.mubr.msk.bf16.mxu0 %vm3196_vm4, %v22614_v46  ;;  %v24299_v46 = vld [vmem:[#allocation27_spill] sm:$0xff] }
 0x40c   : > { %16722 = vmatmul.mubr.msk.bf16.gmra.mrb[16].mxu1 %vm3196_vm4, %v22706_v48 }
 0x40d   : > { %16725 = vmatprep.mubr.msk.bf16.mxu1 %vm3196_vm4, %v22716_v28  ;;  %v24306_v28 = vld [vmem:[#allocation14_spill] sm:$0xff] }
 0x40e   : > { %17346 = vmatmul.mubr.msk.bf16.gmra.mrb[80].mxu0 %vm3196_vm4, %v22618_v18  ;;  %v24300_v18 = vld [vmem:[#allocation10_spill] sm:$0xff] }
 0x40f   : > { %17349 = vmatprep.mubr.msk.bf16.mxu0 %vm3196_vm4, %v22624_v22  ;;  %v24301_v22 = vld [vmem:[#allocation28_spill] sm:$0xff] }
 0x414   : > { %16726 = vmatmul.mubr.msk.bf16.gmra.mrb[20].mxu1 %vm3196_vm4, %v22728_v12 }
 0x415   : > { %16729 = vmatprep.mubr.msk.bf16.mxu1 %vm3196_vm4, %v22732_v44  ;;  %v24307_v44 = vld [vmem:[#allocation16_spill] sm:$0xff] }
 0x416   : > { %17350 = vmatmul.mubr.msk.bf16.gmra.mrb[84].mxu0 %vm3196_vm4, %v22628_v27  ;;  %v24302_v27 = vld [vmem:[#allocation26_spill] sm:$0xff] }
 0x417   : > { %17353 = vmatprep.mubr.msk.bf16.mxu0 %vm3196_vm4, %v22637_v59  ;;  %v24303_v59 = vld [vmem:[#allocation8_spill] sm:$0xff] }
 0x41c   : > { %16730 = vmatmul.mubr.msk.bf16.gmra.mrb[24].mxu1 %vm3196_vm4, %v22744_v2  ;;  %v24310_v2 = vld [vmem:[#allocation19_spill] sm:$0xff] }
 0x41d   : > { %16733 = vmatprep.mubr.msk.bf16.mxu1 %vm3196_vm4, %v22748_v17  ;;  %v24311_v17 = vld [vmem:[#allocation20_spill] sm:$0xff] }
 0x41e   : > { %17354 = vmatmul.mubr.msk.bf16.gmra.mrb[88].mxu0 %vm3196_vm4, %v22641_v57  ;;  %v23135_v57 = vld [vmem:[#allocation2 + $0x350] sm:$0xff] }
 0x41f   : > { %17357 = vmatprep.mubr.msk.bf16.mxu0 %vm3196_vm4, %v22650_v14  ;;  %v7424_v14 = vld [vmem:[#allocation2 + $0x1b0] sm:$0xff] }
 0x424   : > { %16734 = vmatmul.mubr.msk.bf16.gmra.mrb[28].mxu1 %vm3196_vm4, %v22760_v19  ;;  %v23196_v19 = vld [vmem:[#allocation2 + $0x208] sm:$0xff] }
 0x425   : > { %16737 = vmatprep.mubr.msk.bf16.mxu1 %vm3196_vm4, %v7408_v15  ;;  %v23293_v15 = vld [vmem:[#allocation2 + $0x288] sm:$0xff] }
 0x426   : > { %17358 = vmatmul.mubr.msk.bf16.gmra.mrb[92].mxu0 %vm3196_vm4, %v23073_v62 }
 0x427   : > { %17361 = vmatprep.mubr.msk.bf16.mxu0 %vm3196_vm4, %v22665_v47  ;;  %v18991_v47 = vld [vmem:[%s22049_s14 + $0xd4] ss:$0 sps:$4 sm:$0x11]  }
 0x428   : > { %v4418_v51 = vshll.u32 %v18991_v47, 16  ;;  %v4564_v40 = vrot.slane %v18991_v47, 1  ;;  %v23333_v47 = vld [vmem:[#allocation2 + $0x2a8] sm:$0xff] }
 0x42a   : > { %v4420_v33 = vrot.slane %v4418_v51, 1 }
 0x42c   : > { %16738 = vmatmul.mubr.msk.bf16.gmra.mrb[32].mxu1 %vm3196_vm4, %v22782_v36  ;;  %v23212_v36 = vld [vmem:[#allocation2 + $0x220] sm:$0xff] }
 0x42d   : > { %16741 = vmatprep.mubr.msk.bf16.mxu1 %vm3196_vm4, %v22774_v50 }
 0x42e   : > { %17362 = vmatmul.mubr.msk.bf16.gmra.mrb[96].mxu0 %vm3196_vm4, %v22661_v56  ;;  %v23146_v56 = vcombine.low %v4024_v45, %v4025_v25 }
 0x42f   : > { %17365 = vmatprep.mubr.msk.bf16.mxu0 %vm3196_vm4, %v22681_v10 }
 0x430   : > { %v4413_v10 = vshll.u32 %v23146_v56, 16 }
 0x432   : > { %v4415_v48 = vrot.slane %v4413_v10, 1 }
 0x434   : > { %16742 = vmatmul.mubr.msk.bf16.gmra.mrb[36].mxu1 %vm3196_vm4, %v22794_v4 }
 0x435   : > { %16745 = vmatprep.mubr.msk.bf16.mxu1 %vm3196_vm4, %v22798_v3 }
 0x436   : > { %17366 = vmatmul.mubr.msk.bf16.gmra.mrb[100].mxu0 %vm3196_vm4, %v22677_v6  ;;  %v4411_v6 = vshrl.u32 %v23146_v56, 16 }
 0x437   : > { %17369 = vmatprep.mubr.msk.bf16.mxu0 %vm3196_vm4, %v22697_v30  ;;  %v24305_v30 = vld [vmem:[#allocation15_spill] sm:$0xff] }
 0x43c   : > { %16746 = vmatmul.mubr.msk.bf16.gmra.mrb[40].mxu1 %vm3196_vm4, %v22817_v7 }
 0x43d   : > { %16749 = vmatprep.mubr.msk.bf16.mxu1 %vm3196_vm4, %v22821_v20 }
 0x43e   : > { %17370 = vmatmul.mubr.msk.bf16.gmra.mrb[104].mxu0 %vm3196_vm4, %v22693_v55  ;;  %v4563_v55 = vrot.slane %v14651_v23, 1 }
 0x43f   : > { %17373 = vmatprep.mubr.msk.bf16.mxu0 %vm3196_vm4, %v22722_v1  ;;  %v4416_v1 = vor.u32 %v4415_v48, %v4411_v6 }
 0x441   : > { %v4421_v12 = vsel %vm1248_vm1, %v4416_v1, %v4420_v33 }
 0x442   : > { %4456 = vrot.lane.b32.xlu0 %v4421_v12, %s19111_s26  ;;  %s330_s26 = sand.u32 1, %s19084_s19  }
 0x443   : > { %s14321_s8 = sshll.u32 %s330_s26, 9  ;;  %s24037_s14 = scalar_lea.sflag [#allocation4], %s330_s26 }
 0x444   : > { %16750 = vmatmul.mubr.msk.bf16.gmra.mrb[44].mxu1 %vm3196_vm4, %v22832_v0  ;;  %s23557_s12 = scalar_lea.vmem [#allocation3], %s14321_s8  ;;  %s19112_s8 = smov [#allocation3]  }
 0x445   : > { %16753 = vmatprep.mubr.msk.bf16.mxu1 %vm3196_vm4, %v22836_v31  ;;  %s14185_s22 = sshll.u32 %s23557_s12, 4  ;;  %s19018_s30 = sshll.u32 %s19112_s8, 4  ;;  %s24022_s22 = int_to_ptr.vmem [resolvable:$true] %s14185_s22  ;;  %s19019_s30 = int_to_ptr.vmem [resolvable:$false] %s19018_s30 }
 0x446   : > { %17374 = vmatmul.mubr.msk.bf16.gmra.mrb[108].mxu0 %vm3196_vm4, %v22718_v49  ;;  %v4565_v49 = vsel %vm2473_vm0, %v4563_v55, %v4564_v40  ;;  %v23353_v40 = vld [vmem:[#allocation2 + $0x2b8] sm:$0xff]  ;;  %s19014_s16 = scalar_lea.vmem %s24022_s22, 8192  ;;  %s19020_s9 = scalar_lea.vmem %s19019_s30, 16384 }
 0x447   : > { %17377 = vmatprep.mubr.msk.bf16.mxu0 %vm3196_vm4, %v22738_v41  ;;  %4600 = vrot.lane.b32.xlu1 %v4565_v49, %s19110_s28  ;;  %v24309_v41 = vld [vmem:[#allocation18_spill] sm:$0xff]  ;;  %p19015_p2 = scmp.ne.s32.totalorder %s24022_s22, %s19014_s16  ;;  %p19021_p6 = scmp.lt.s32.totalorder %s24022_s22, %s19019_s30 }
 0x448   : > { %p19022_p7 = scmp.lt.s32.totalorder %s19020_s9, %s19014_s16 }
 0x449   : > { %p19016_p4 = pnand %p19015_p2, %p19195_p3 }
 0x44a   : > { %p19023_p9 = por %p19022_p7, %p19021_p6 }
 0x44b   : > { %p19017_p5 = pneg %p19016_p4 }
 0x44c   : > { %16754 = vmatmul.mubr.msk.bf16.gmra.mrb[48].mxu1 %vm3196_vm4, %v22844_v16 }
 0x44d   : > { %16757 = vmatprep.mubr.msk.bf16.mxu1 %vm3196_vm4, %v22848_v43  ;;  %p19024_p10 = pnand %p19023_p9, %p19017_p5 }
 0x44e   : > { %17378 = vmatmul.mubr.msk.bf16.gmra.mrb[112].mxu0 %vm3196_vm4, %v22734_v8  ;;  %v24308_v8 = vld [vmem:[#allocation17_spill] sm:$0xff] }
 0x44f   : > { %17381 = vmatprep.mubr.msk.bf16.mxu0 %vm3196_vm4, %v22754_v21  ;;  %v24312_v21 = vld [vmem:[#allocation21_spill] sm:$0xff] }
 0x454   : > { %16758 = vmatmul.mubr.msk.bf16.gmra.mrb[52].mxu1 %vm3196_vm4, %v22856_v24 }
 0x455   : > { %16761 = vmatprep.mubr.msk.bf16.mxu1 %vm3196_vm4, %v24297_v26 }
 0x456   : > { %17382 = vmatmul.mubr.msk.bf16.gmra.mrb[116].mxu0 %vm3196_vm4, %v24298_v38 }
 0x457   : > { %17385 = vmatprep.mubr.msk.bf16.mxu0 %vm3196_vm4, %v24299_v46 }
 0x45c   : > { %16762 = vmatmul.mubr.msk.bf16.gmra.mrb[56].mxu1 %vm3196_vm4, %v24300_v18 }
 0x45d   : > { %16765 = vmatprep.mubr.msk.bf16.mxu1 %vm3196_vm4, %v24301_v22 }
 0x45e   : > { %17386 = vmatmul.mubr.msk.bf16.gmra.mrb[120].mxu0 %vm3196_vm4, %v24302_v27  ;;  %v23313_v27 = vld [vmem:[#allocation2 + $0x298] sm:$0xff] }
 0x45f   : > { %17389 = vmatprep.mubr.msk.bf16.mxu0 %vm3196_vm4, %v24303_v59  ;;  %v23317_v59 = vld [vmem:[#allocation2 + $0x2a0] sm:$0xff] }
 0x464   : > { %16766 = vmatmul.mubr.msk.bf16.gmra.mrb[60].mxu1 %vm3196_vm4, %v24304_v53 }
 0x465   : > { %16769 = vmatprep.mubr.msk.bf16.mxu1 %vm3196_vm4, %v7424_v14 }
 0x466   : > { %17390 = vmatmul.mubr.msk.bf16.gmra.mrb[124].mxu0 %vm3196_vm4, %v23135_v57 }
 0x467   : > { %17405 = vmatprep.mubr.msk.bf16.mxu0 %vm3196_vm4, %v22774_v50  ;;  %v23208_v50 = vld [vmem:[#allocation2 + $0x218] sm:$0xff] }
 0x46c   : > { %16770 = vmatmul.mubr.msk.bf16.gmra.mrb[64].mxu1 %vm3196_vm4, %v24305_v30 }
 0x46d   : > { %16773 = vmatprep.mubr.msk.bf16.mxu1 %vm3196_vm4, %v24306_v28 }
 0x46e   : > { %17406 = vmatmul.mubr.msk.bf16.vlgmr.msra.gmra.mrb[0].mxu0 %vm3196_vm4, %v22794_v4  ;;  %v23220_v4 = vld [vmem:[#allocation2 + $0x228] sm:$0xff] }
 0x46f   : > { %17409 = vmatprep.mubr.msk.bf16.mxu0 %vm3196_vm4, %v22798_v3  ;;  %v23200_v3 = vld [vmem:[#allocation2 + $0x210] sm:$0xff] }
 0x474   : > { %16774 = vmatmul.mubr.msk.bf16.gmra.mrb[68].mxu1 %vm3196_vm4, %v24307_v44 }
 0x475   : > { %16777 = vmatprep.mubr.msk.bf16.mxu1 %vm3196_vm4, %v24308_v8 }
 0x476   : > { %17410 = vmatmul.mubr.msk.bf16.gmra.mrb[4].mxu0 %vm3196_vm4, %v22817_v7  ;;  %v7440_v7 = vld [vmem:[#allocation2 + $0x240] sm:$0xff] }
 0x477   : > { %17413 = vmatprep.mubr.msk.bf16.mxu0 %vm3196_vm4, %v22821_v20  ;;  %v24314_v20 = vld [vmem:[#allocation13_spill] sm:$0xff] }
 0x47c   : > { %16778 = vmatmul.mubr.msk.bf16.gmra.mrb[72].mxu1 %vm3196_vm4, %v24309_v41 }
 0x47d   : > { %16781 = vmatprep.mubr.msk.bf16.mxu1 %vm3196_vm4, %v22925_v39 }
 0x47e   : > { %17414 = vmatmul.mubr.msk.bf16.gmra.mrb[8].mxu0 %vm3196_vm4, %v22832_v0  ;;  %v23229_v0 = vld [vmem:[#allocation2 + $0x248] sm:$0xff] }
 0x47f   : > { %17417 = vmatprep.mubr.msk.bf16.mxu0 %vm3196_vm4, %v22836_v31  ;;  %v23233_v31 = vld [vmem:[#allocation2 + $0x250] sm:$0xff] }
 0x484   : > { %16782 = vmatmul.mubr.msk.bf16.gmra.mrb[76].mxu1 %vm3196_vm4, %v22933_v42 }
 0x485   : > { %16785 = vmatprep.mubr.msk.bf16.mxu1 %vm3196_vm4, %v24310_v2 }
 0x486   : > { %17418 = vmatmul.mubr.msk.bf16.gmra.mrb[12].mxu0 %vm3196_vm4, %v22844_v16  ;;  %v23241_v16 = vld [vmem:[#allocation2 + $0x258] sm:$0xff] }
 0x487   : > { %17421 = vmatprep.mubr.msk.bf16.mxu0 %vm3196_vm4, %v22848_v43  ;;  %v23245_v43 = vld [vmem:[#allocation2 + $0x260] sm:$0xff] }
 0x48c   : > { %16786 = vmatmul.mubr.msk.bf16.gmra.mrb[80].mxu1 %vm3196_vm4, %v24311_v17 }
 0x48d   : > { %16789 = vmatprep.mubr.msk.bf16.mxu1 %vm3196_vm4, %v24312_v21 }
 0x48e   : > { %17422 = vmatmul.mubr.msk.bf16.gmra.mrb[16].mxu0 %vm3196_vm4, %v22856_v24  ;;  %v23253_v24 = vld [vmem:[#allocation2 + $0x268] sm:$0xff] }
 0x48f   : > { %17425 = vmatprep.mubr.msk.bf16.mxu0 %vm3196_vm4, %v24297_v26  ;;  %v23297_v26 = vld [vmem:[#allocation2 + $0x290] sm:$0xff] }
 0x494   : > { %16790 = vmatmul.mubr.msk.bf16.gmra.mrb[84].mxu1 %vm3196_vm4, %v23196_v19 }
 0x495   : > { %16793 = vmatprep.mubr.msk.bf16.mxu1 %vm3196_vm4, %v23200_v3 }
 0x496   : > { %17426 = vmatmul.mubr.msk.bf16.gmra.mrb[20].mxu0 %vm3196_vm4, %v24300_v18 }
 0x497   : > { %17429 = vmatprep.mubr.msk.bf16.mxu0 %vm3196_vm4, %v24301_v22 }
 0x49c   : > { %16794 = vmatmul.mubr.msk.bf16.gmra.mrb[88].mxu1 %vm3196_vm4, %v23208_v50 }
 0x49d   : > { %16797 = vmatprep.mubr.msk.bf16.mxu1 %vm3196_vm4, %v23212_v36 }
 0x49e   : > { %17430 = vmatmul.mubr.msk.bf16.gmra.mrb[24].mxu0 %vm3196_vm4, %v24304_v53 }
 0x49f   : > { %17433 = vmatprep.mubr.msk.bf16.mxu0 %vm3196_vm4, %v24313_v32 }
 0x4a4   : > { %16798 = vmatmul.mubr.msk.bf16.gmra.mrb[92].mxu1 %vm3196_vm4, %v23220_v4 }
 0x4a5   : > { %16801 = vmatprep.mubr.msk.bf16.mxu1 %vm3196_vm4, %v7440_v7 }
 0x4a6   : > { %17434 = vmatmul.mubr.msk.bf16.gmra.mrb[28].mxu0 %vm3196_vm4, %v24314_v20 }
 0x4a7   : > { %17437 = vmatprep.mubr.msk.bf16.mxu0 %vm3196_vm4, %v24306_v28 }
 0x4ac   : > { %16802 = vmatmul.mubr.msk.bf16.gmra.mrb[96].mxu1 %vm3196_vm4, %v23229_v0 }
 0x4ad   : > { %16805 = vmatprep.mubr.msk.bf16.mxu1 %vm3196_vm4, %v23233_v31 }
 0x4ae   : > { %17438 = vmatmul.mubr.msk.bf16.gmra.mrb[32].mxu0 %vm3196_vm4, %v24307_v44 }
 0x4af   : > { %17441 = vmatprep.mubr.msk.bf16.mxu0 %vm3196_vm4, %v24308_v8 }
 0x4b4   : > { %16806 = vmatmul.mubr.msk.bf16.gmra.mrb[100].mxu1 %vm3196_vm4, %v23241_v16  ;;  %v4457_v55 = vpop.permute.xlu0 %4456 }
 0x4b5   : > { %16809 = vmatprep.mubr.msk.bf16.mxu1 %vm3196_vm4, %v23245_v43  ;;  %v4637_v33 = vsel %vm2834_vm2, %v23146_v56, %v4457_v55 }
 0x4b6   : > { %17442 = vmatmul.mubr.msk.bf16.gmra.mrb[36].mxu0 %vm3196_vm4, %v24309_v41 }
 0x4b7   : > { %17445 = vmatprep.mubr.msk.bf16.mxu0 %vm3196_vm4, %v22925_v39 }
 0x4b9   : > { %v4601_v48 = vpop.permute.xlu1 %4600 }
 0x4ba   : > { %v4690_v49 = vsel %vm2979_vm3, %v4637_v33, %v4601_v48 }
 0x4bb   : > { %4710 = vst.msk [vmem:[#allocation2 + $0x358] sm:$0xff] %vm3196_vm4, %v4690_v49 }
 0x4bc   : > { %16810 = vmatmul.mubr.msk.bf16.gmra.mrb[104].mxu1 %vm3196_vm4, %v23253_v24 }
 0x4bd   : > { %16813 = vmatprep.mubr.msk.bf16.mxu1 %vm3196_vm4, %v23257_v29 }
 0x4be   : > { %17446 = vmatmul.mubr.msk.bf16.gmra.mrb[40].mxu0 %vm3196_vm4, %v22933_v42 }
 0x4bf   : > { %17449 = vmatprep.mubr.msk.bf16.mxu0 %vm3196_vm4, %v24310_v2  ;;  %v23265_v54 = vpop.f32.mrb[0].mxu1 }
 0x4c0   : > { %v23267_v35 = vpop.f32.mrb[1].mxu1 }
 0x4c1   : > { %v23269_v34 = vpop.f32.mrb[2].mxu1 }
 0x4c2   : > { %v23271_v58 = vpop.f32.mrb[3].mxu1 }
 0x4c4   : > { %16814 = vmatmul.mubr.msk.bf16.gmra.mrb[108].mxu1 %vm3196_vm4, %v23273_v60 }
 0x4c5   : > { %16817 = vmatprep.mubr.msk.bf16.mxu1 %vm3196_vm4, %v23277_v37 }
 0x4c6   : > { %17450 = vmatmul.mubr.msk.bf16.gmra.mrb[44].mxu0 %vm3196_vm4, %v24311_v17 }
 0x4c7   : > { %17453 = vmatprep.mubr.msk.bf16.mxu0 %vm3196_vm4, %v24312_v21  ;;  %v23285_v13 = vpop.f32.mrb[4].mxu1 }
 0x4c8   : > { %v23287_v5 = vpop.f32.mrb[5].mxu1 }
 0x4c9   : > { %v23289_v63 = vpop.f32.mrb[6].mxu1 }
 0x4ca   : > { %v23291_v9 = vpop.f32.mrb[7].mxu1 }
 0x4cc   : > { %16818 = vmatmul.mubr.msk.bf16.gmra.mrb[112].mxu1 %vm3196_vm4, %v23293_v15 }
 0x4cd   : > { %16821 = vmatprep.mubr.msk.bf16.mxu1 %vm3196_vm4, %v23297_v26 }
 0x4ce   : > { %17454 = vmatmul.mubr.msk.bf16.gmra.mrb[48].mxu0 %vm3196_vm4, %v23196_v19 }
 0x4cf   : > { %17457 = vmatprep.mubr.msk.bf16.mxu0 %vm3196_vm4, %v23200_v3  ;;  %v23305_v38 = vpop.f32.mrb[8].mxu1 }
 0x4d0   : > { %v23307_v46 = vpop.f32.mrb[9].mxu1 }
 0x4d1   : > { %v23309_v18 = vpop.f32.mrb[10].mxu1 }
 0x4d2   : > { %v23311_v22 = vpop.f32.mrb[11].mxu1 }
 0x4d4   : > { %16822 = vmatmul.mubr.msk.bf16.gmra.mrb[116].mxu1 %vm3196_vm4, %v23313_v27 }
 0x4d5   : > { %16825 = vmatprep.mubr.msk.bf16.mxu1 %vm3196_vm4, %v23317_v59 }
 0x4d6   : > { %17458 = vmatmul.mubr.msk.bf16.gmra.mrb[52].mxu0 %vm3196_vm4, %v23208_v50 }
 0x4d7   : > { %17461 = vmatprep.mubr.msk.bf16.mxu0 %vm3196_vm4, %v23212_v36  ;;  %v23325_v53 = vpop.f32.mrb[12].mxu1 }
 0x4d8   : > { %v23327_v14 = vpop.f32.mrb[13].mxu1 }
 0x4d9   : > { %v23329_v45 = vpop.f32.mrb[14].mxu1 }
 0x4da   : > { %v23331_v25 = vpop.f32.mrb[15].mxu1 }
 0x4dc   : > { %16826 = vmatmul.mubr.msk.bf16.gmra.mrb[120].mxu1 %vm3196_vm4, %v23333_v47 }
 0x4dd   : > { %16829 = vmatprep.mubr.msk.bf16.mxu1 %vm3196_vm4, %v23337_v52 }
 0x4de   : > { %17462 = vmatmul.mubr.msk.bf16.gmra.mrb[56].mxu0 %vm3196_vm4, %v23220_v4 }
 0x4df   : > { %17465 = vmatprep.mubr.msk.bf16.mxu0 %vm3196_vm4, %v22978_v11  ;;  %v23345_v23 = vpop.f32.mrb[16].mxu1 }
 0x4e0   : > { %v23347_v6 = vpop.f32.mrb[17].mxu1 }
 0x4e1   : > { %v23349_v10 = vpop.f32.mrb[18].mxu1 }
 0x4e2   : > { %v23351_v51 = vpop.f32.mrb[19].mxu1 }
 0x4e4   : > { %16830 = vmatmul.mubr.msk.bf16.gmra.mrb[124].mxu1 %vm3196_vm4, %v23353_v40 }
 0x4e5   : > { %16909 = vmatprep.mubr.msk.bf16.mxu1 %vm3196_vm4, %v24305_v30 }
 0x4e6   : > { %17466 = vmatmul.mubr.msk.bf16.gmra.mrb[60].mxu0 %vm3196_vm4, %v22986_v61 }
 0x4e7   : > { %17469 = vmatprep.mubr.msk.bf16.mxu0 %vm3196_vm4, %v23233_v31  ;;  %v23366_v1 = vpop.f32.mrb[20].mxu1 }
 0x4e8   : > { %v23369_v12 = vpop.f32.mrb[21].mxu1 }
 0x4e9   : > { %v23371_v32 = vpop.f32.mrb[22].mxu1 }
 0x4ea   : > { %v23373_v30 = vpop.f32.mrb[23].mxu1 }
 0x4ec   : > { %16910 = vmatmul.mubr.msk.bf16.vlgmr.msra.gmra.mrb[64].mxu1 %vm3196_vm4, %v24306_v28 }
 0x4ed   : > { %16913 = vmatprep.mubr.msk.bf16.mxu1 %vm3196_vm4, %v24307_v44 }
 0x4ee   : > { %17470 = vmatmul.mubr.msk.bf16.gmra.mrb[64].mxu0 %vm3196_vm4, %v23241_v16 }
 0x4ef   : > { %17473 = vmatprep.mubr.msk.bf16.mxu0 %vm3196_vm4, %v23245_v43  ;;  %v23383_v61 = vpop.f32.mrb[24].mxu1 }
 0x4f0   : > { %v23385_v56 = vpop.f32.mrb[25].mxu1 }
 0x4f1   : > { %v23387_v7 = vpop.f32.mrb[26].mxu1 }
 0x4f2   : > { %v23389_v20 = vpop.f32.mrb[27].mxu1 }
 0x4f4   : > { %16914 = vmatmul.mubr.msk.bf16.gmra.mrb[68].mxu1 %vm3196_vm4, %v24308_v8 }
 0x4f5   : > { %16917 = vmatprep.mubr.msk.bf16.mxu1 %vm3196_vm4, %v24309_v41 }
 0x4f6   : > { %17474 = vmatmul.mubr.msk.bf16.gmra.mrb[68].mxu0 %vm3196_vm4, %v23253_v24 }
 0x4f7   : > { %17477 = vmatprep.mubr.msk.bf16.mxu0 %vm3196_vm4, %v23257_v29  ;;  %v23399_v28 = vpop.f32.mrb[28].mxu1 }
 0x4f8   : > { %v23401_v44 = vpop.f32.mrb[29].mxu1 }
 0x4f9   : > { %v23403_v55 = vpop.f32.mrb[30].mxu1 }
 0x4fa   : > { %v23405_v48 = vpop.f32.mrb[31].mxu1 }
 0x4fc   : > { %16918 = vmatmul.mubr.msk.bf16.gmra.mrb[72].mxu1 %vm3196_vm4, %v22925_v39 }
 0x4fd   : > { %16921 = vmatprep.mubr.msk.bf16.mxu1 %vm3196_vm4, %v22933_v42 }
 0x4fe   : > { %17478 = vmatmul.mubr.msk.bf16.gmra.mrb[72].mxu0 %vm3196_vm4, %v23273_v60 }
 0x4ff   : > { %17481 = vmatprep.mubr.msk.bf16.mxu0 %vm3196_vm4, %v23277_v37  ;;  %v23415_v8 = vpop.f32.mrb[32].mxu1 }
 0x500   : > { %v23417_v41 = vpop.f32.mrb[33].mxu1 }
 0x501   : > { %24315 = vst [vmem:[#allocation22_spill] sm:$0xff] %v23417_v41  ;;  %v23419_v33 = vpop.f32.mrb[34].mxu1 }
 0x502   : > { %24316 = vst [vmem:[#allocation23_spill] sm:$0xff] %v23419_v33  ;;  %v23421_v49 = vpop.f32.mrb[35].mxu1 }
 0x504   : > { %16922 = vmatmul.mubr.msk.bf16.gmra.mrb[76].mxu1 %vm3196_vm4, %v24310_v2 }
 0x505   : > { %16925 = vmatprep.mubr.msk.bf16.mxu1 %vm3196_vm4, %v24311_v17 }
 0x506   : > { %17482 = vmatmul.mubr.msk.bf16.gmra.mrb[76].mxu0 %vm3196_vm4, %v23293_v15 }
 0x507   : > { %17485 = vmatprep.mubr.msk.bf16.mxu0 %vm3196_vm4, %v23297_v26  ;;  %v23431_v39 = vpop.f32.mrb[36].mxu1 }
 0x508   : > { %v23433_v42 = vpop.f32.mrb[37].mxu1 }
 0x509   : > { %24317 = vst [vmem:[#allocation24_spill] sm:$0xff] %v23433_v42  ;;  %v23435_v41 = vpop.f32.mrb[38].mxu1 }
 0x50a   : > { %24318 = vst [vmem:[#allocation29_spill] sm:$0xff] %v23435_v41  ;;  %v23437_v33 = vpop.f32.mrb[39].mxu1 }
 0x50c   : > { %16926 = vmatmul.mubr.msk.bf16.gmra.mrb[80].mxu1 %vm3196_vm4, %v24312_v21 }
 0x50d   : > { %16929 = vmatprep.mubr.msk.bf16.mxu1 %vm3196_vm4, %v23196_v19 }
 0x50e   : > { %17486 = vmatmul.mubr.msk.bf16.gmra.mrb[80].mxu0 %vm3196_vm4, %v23313_v27 }
 0x50f   : > { %17489 = vmatprep.mubr.msk.bf16.mxu0 %vm3196_vm4, %v23317_v59  ;;  %v23447_v2 = vpop.f32.mrb[40].mxu1 }
 0x510   : > { %v23449_v17 = vpop.f32.mrb[41].mxu1 }
 0x511   : > { %24319 = vst [vmem:[#allocation9_spill] sm:$0xff] %v23449_v17  ;;  %v23451_v42 = vpop.f32.mrb[42].mxu1 }
 0x512   : > { %24320 = vst [vmem:[#allocation25_spill] sm:$0xff] %v23451_v42  ;;  %v23453_v41 = vpop.f32.mrb[43].mxu1 }
 0x514   : > { %16930 = vmatmul.mubr.msk.bf16.gmra.mrb[84].mxu1 %vm3196_vm4, %v23200_v3 }
 0x515   : > { %16933 = vmatprep.mubr.msk.bf16.mxu1 %vm3196_vm4, %v23208_v50 }
 0x516   : > { %17490 = vmatmul.mubr.msk.bf16.gmra.mrb[84].mxu0 %vm3196_vm4, %v23333_v47 }
 0x517   : > { %17493 = vmatprep.mubr.msk.bf16.mxu0 %vm3196_vm4, %v23337_v52  ;;  %v23463_v21 = vpop.f32.mrb[44].mxu1 }
 0x518   : > { %v23465_v19 = vpop.f32.mrb[45].mxu1 }
 0x519   : > { %24321 = vst [vmem:[#allocation27_spill] sm:$0xff] %v23465_v19  ;;  %v23467_v17 = vpop.f32.mrb[46].mxu1 }
 0x51a   : > { %24322 = vst [vmem:[#allocation10_spill] sm:$0xff] %v23467_v17  ;;  %v23469_v42 = vpop.f32.mrb[47].mxu1 }
 0x51c   : > { %16934 = vmatmul.mubr.msk.bf16.gmra.mrb[88].mxu1 %vm3196_vm4, %v23212_v36  ;;  %v12334_v36 = vld [vmem:[#allocation2 + $0x2c8] sm:$0xff] }
 0x51d   : > { %16937 = vmatprep.mubr.msk.bf16.mxu1 %vm3196_vm4, %v23220_v4  ;;  %v12335_v4 = vld [vmem:[#allocation2 + $0x2e0] sm:$0xff] }
 0x51e   : > { %17494 = vmatmul.mubr.msk.bf16.gmra.mrb[88].mxu0 %vm3196_vm4, %v23353_v40 }
 0x51f   : > { %17497 = vmatprep.mubr.msk.bf16.mxu0 %vm3196_vm4, %v23073_v62  ;;  %v23479_v3 = vpop.f32.mrb[48].mxu1 }
 0x520   : > { %24323 = vst [vmem:[#allocation28_spill] sm:$0xff] %v23479_v3  ;;  %v23481_v50 = vpop.f32.mrb[49].mxu1 }
 0x521   : > { %24324 = vst [vmem:[#allocation26_spill] sm:$0xff] %v23481_v50  ;;  %v23483_v19 = vpop.f32.mrb[50].mxu1 }
 0x522   : > { %24325 = vst [vmem:[#allocation8_spill] sm:$0xff] %v23483_v19  ;;  %v23485_v17 = vpop.f32.mrb[51].mxu1 }
 0x524   : > { %16938 = vmatmul.mubr.msk.bf16.gmra.mrb[92].mxu1 %vm3196_vm4, %v22978_v11  ;;  %v12336_v11 = vld [vmem:[#allocation2 + $0x2e8] sm:$0xff] }
 0x525   : > { %16941 = vmatprep.mubr.msk.bf16.mxu1 %vm3196_vm4, %v23229_v0  ;;  %v12337_v0 = vld [vmem:[#allocation2 + $0x2f0] sm:$0xff] }
 0x526   : > { %17498 = vmatmul.mubr.msk.bf16.gmra.mrb[92].mxu0 %vm3196_vm4, %v12334_v36 }
 0x527   : > { %17501 = vmatprep.mubr.msk.bf16.mxu0 %vm3196_vm4, %v12335_v4  ;;  %v23493_v62 = vpop.f32.mrb[52].mxu1 }
 0x528   : > { %v23495_v3 = vpop.f32.mrb[53].mxu1 }
 0x529   : > { %24326 = vst [vmem:[#allocation11_spill] sm:$0xff] %v23495_v3  ;;  %v23497_v50 = vpop.f32.mrb[54].mxu1 }
 0x52a   : > { %24327 = vst [vmem:[#allocation15_spill] sm:$0xff] %v23497_v50  ;;  %v23499_v19 = vpop.f32.mrb[55].mxu1 }
 0x52c   : > { %16942 = vmatmul.mubr.msk.bf16.gmra.mrb[96].mxu1 %vm3196_vm4, %v23233_v31  ;;  %v12338_v31 = vld [vmem:[#allocation2 + $0x2f8] sm:$0xff] }
 0x52d   : > { %16945 = vmatprep.mubr.msk.bf16.mxu1 %vm3196_vm4, %v23241_v16  ;;  %v12339_v16 = vld [vmem:[#allocation2 + $0x300] sm:$0xff] }
 0x52e   : > { %17502 = vmatmul.mubr.msk.bf16.gmra.mrb[96].mxu0 %vm3196_vm4, %v12336_v11 }
 0x52f   : > { %17505 = vmatprep.mubr.msk.bf16.mxu0 %vm3196_vm4, %v12337_v0  ;;  %v23507_v36 = vpop.f32.mrb[56].mxu1 }
 0x530   : > { %v23509_v4 = vpop.f32.mrb[57].mxu1 }
 0x531   : > { %24328 = vst [vmem:[#allocation14_spill] sm:$0xff] %v23509_v4  ;;  %v23511_v3 = vpop.f32.mrb[58].mxu1 }
 0x532   : > { %24329 = vst [vmem:[#allocation16_spill] sm:$0xff] %v23511_v3  ;;  %v23513_v50 = vpop.f32.mrb[59].mxu1 }
 0x533   : > { %24330 = vst [vmem:[#allocation17_spill] sm:$0xff] %v23513_v50 }
 0x534   : > { %16946 = vmatmul.mubr.msk.bf16.gmra.mrb[100].mxu1 %vm3196_vm4, %v23245_v43  ;;  %v12340_v43 = vld [vmem:[#allocation2 + $0x308] sm:$0xff] }
 0x535   : > { %16949 = vmatprep.mubr.msk.bf16.mxu1 %vm3196_vm4, %v23253_v24  ;;  %v12341_v24 = vld [vmem:[#allocation2 + $0x310] sm:$0xff] }
 0x536   : > { %17506 = vmatmul.mubr.msk.bf16.gmra.mrb[100].mxu0 %vm3196_vm4, %v12338_v31  ;;  %v23539_v31 = vld [vmem:[%s24095_s4] ss:$0 sm:$0xff] }
 0x537   : > { %17509 = vmatprep.mubr.msk.bf16.mxu0 %vm3196_vm4, %v12339_v16  ;;  %v23521_v11 = vpop.f32.mrb[60].mxu1 }
 0x538   : > { %24331 = vst [vmem:[#allocation18_spill] sm:$0xff] %v23521_v11  ;;  %v23523_v0 = vpop.f32.mrb[61].mxu1 }
 0x539   : > { %24332 = vst [vmem:[#allocation19_spill] sm:$0xff] %v23523_v0  ;;  %v23525_v3 = vpop.f32.mrb[62].mxu1 }
 0x53a   : > { %24333 = vst [vmem:[#allocation20_spill] sm:$0xff] %v23525_v3  ;;  %v23527_v50 = vpop.f32.mrb[63].mxu1 }
 0x53b   : > { %24334 = vst [vmem:[#allocation21_spill] sm:$0xff] %v23527_v50 }
 0x53c   : > { %16950 = vmatmul.mubr.msk.bf16.gmra.mrb[104].mxu1 %vm3196_vm4, %v23257_v29 }
 0x53d   : > { %16953 = vmatprep.mubr.msk.bf16.mxu1 %vm3196_vm4, %v23273_v60 }
 0x53e   : > { %17510 = vmatmul.mubr.msk.bf16.gmra.mrb[104].mxu0 %vm3196_vm4, %v12340_v43 }
 0x53f   : > { %17513 = vmatprep.mubr.msk.bf16.mxu0 %vm3196_vm4, %v12341_v24 }
 0x541   : > { %v17407_v16 = vpop.f32.mrb[0].mxu0 }
 0x542   : > { %v17545_v50 = vadd.f32 %v17407_v16, %v23265_v54  ;;  %v12626_v3 = vpop.f32.mrb[1].mxu0  ;;  %v12342_v54 = vld [vmem:[#allocation2 + $0x318] sm:$0xff] }
 0x543   : > { %v17546_v29 = vadd.f32 %v12626_v3, %v23267_v35  ;;  %v17408_v0 = vpop.f32.mrb[2].mxu0 }
 0x544   : > { %v13273_v60 = vadd.f32 %v17545_v50, %v23539_v31  ;;  %v17547_v43 = vadd.f32 %v17408_v0, %v23269_v34  ;;  %v12629_v24 = vpop.f32.mrb[3].mxu0  ;;  %16954 = vmatmul.mubr.msk.bf16.gmra.mrb[108].mxu1 %vm3196_vm4, %v23277_v37  ;;  %v12343_v50 = vld [vmem:[#allocation2 + $0x320] sm:$0xff] }
 0x545   : > { %v13271_v11 = vadd.f32 %v17546_v29, %v23539_v31  ;;  %v17548_v4 = vadd.f32 %v12629_v24, %v23271_v58  ;;  %16957 = vmatprep.mubr.msk.bf16.mxu1 %vm3196_vm4, %v23293_v15 }
 0x546   : > { %v13401_v35 = vmax.f32 %v13273_v60, 0.0  ;;  %v13274_v3 = vadd.f32 %v17547_v43, %v23539_v31  ;;  %17514 = vmatmul.mubr.msk.bf16.gmra.mrb[108].mxu0 %vm3196_vm4, %v12342_v54 }
 0x547   : > { %v13399_v34 = vmax.f32 %v13271_v11, 0.0  ;;  %v13272_v0 = vadd.f32 %v17548_v4, %v23539_v31  ;;  %17517 = vmatprep.mubr.msk.bf16.mxu0 %vm3196_vm4, %v12343_v50 }
 0x548   : > { %v15516_v37 = vpack.c.bf16 %v13401_v35, %v13401_v35  ;;  %v13402_v16 = vmax.f32 %v13274_v3, 0.0 }
 0x549   : > { %v15514_v29 = vpack.c.bf16 %v13399_v34, %v13399_v34  ;;  %v13400_v58 = vmax.f32 %v13272_v0, 0.0  ;;  %v17411_v24 = vpop.f32.mrb[4].mxu0 }
 0x54a   : > { %14042 = vst.msk [vmem:[%s23557_s12 + $0x8] sm:$0xf] %vm14039_vm5, %v15516_v37  ;;  %v15517_v15 = vpack.c.bf16 %v13402_v16, %v13402_v16  ;;  %v17549_v11 = vadd.f32 %v17411_v24, %v23285_v13  ;;  %v12642_v60 = vpop.f32.mrb[5].mxu0 }
 0x54b   : > { %14040 = vst.msk [vmem:[%s23557_s12] sm:$0xf] %vm14039_vm5, %v15514_v29  ;;  %v15515_v4 = vpack.c.bf16 %v13400_v58, %v13400_v58  ;;  %v17550_v43 = vadd.f32 %v12642_v60, %v23287_v5  ;;  %v17412_v54 = vpop.f32.mrb[6].mxu0  ;;  %v12344_v5 = vld [vmem:[#allocation2 + $0x328] sm:$0xff] }
 0x54c   : > { %14043 = vst.msk [vmem:[%s23557_s12 + $0xc] sm:$0xf] %vm14039_vm5, %v15517_v15  ;;  %v13277_v35 = vadd.f32 %v17549_v11, %v23539_v31  ;;  %v17551_v3 = vadd.f32 %v17412_v54, %v23289_v63  ;;  %v12645_v50 = vpop.f32.mrb[7].mxu0  ;;  %16958 = vmatmul.mubr.msk.bf16.gmra.mrb[112].mxu1 %vm3196_vm4, %v23297_v26  ;;  %v12345_v63 = vld [vmem:[#allocation2 + $0x330] sm:$0xff] }
 0x54d   : > { %14041 = vst.msk [vmem:[%s23557_s12 + $0x4] sm:$0xf] %vm14039_vm5, %v15515_v4  ;;  %v13275_v13 = vadd.f32 %v17550_v43, %v23539_v31  ;;  %v17552_v34 = vadd.f32 %v12645_v50, %v23291_v9  ;;  %16961 = vmatprep.mubr.msk.bf16.mxu1 %vm3196_vm4, %v23313_v27 }
 0x54e   : > { %v13405_v0 = vmax.f32 %v13277_v35, 0.0  ;;  %v13278_v37 = vadd.f32 %v17551_v3, %v23539_v31  ;;  %17518 = vmatmul.mubr.msk.bf16.gmra.mrb[112].mxu0 %vm3196_vm4, %v12344_v5 }
 0x54f   : > { %v13403_v16 = vmax.f32 %v13275_v13, 0.0  ;;  %v13276_v26 = vadd.f32 %v17552_v34, %v23539_v31  ;;  %17521 = vmatprep.mubr.msk.bf16.mxu0 %vm3196_vm4, %v12345_v63 }
 0x550   : > { %v15520_v29 = vpack.c.bf16 %v13405_v0, %v13405_v0  ;;  %v13406_v58 = vmax.f32 %v13278_v37, 0.0 }
 0x551   : > { %v15518_v9 = vpack.c.bf16 %v13403_v16, %v13403_v16  ;;  %v13404_v24 = vmax.f32 %v13276_v26, 0.0  ;;  %v17415_v27 = vpop.f32.mrb[8].mxu0 }
 0x552   : > { %14046 = vst.msk [vmem:[%s23557_s12 + $0x18] sm:$0xf] %vm14039_vm5, %v15520_v29  ;;  %v15521_v15 = vpack.c.bf16 %v13406_v58, %v13406_v58  ;;  %v17553_v11 = vadd.f32 %v17415_v27, %v23305_v38  ;;  %v12658_v60 = vpop.f32.mrb[9].mxu0 }
 0x553   : > { %14044 = vst.msk [vmem:[%s23557_s12 + $0x10] sm:$0xf] %vm14039_vm5, %v15518_v9  ;;  %v15519_v4 = vpack.c.bf16 %v13404_v24, %v13404_v24  ;;  %v17554_v43 = vadd.f32 %v12658_v60, %v23307_v46  ;;  %v17416_v54 = vpop.f32.mrb[10].mxu0  ;;  %v12346_v46 = vld [vmem:[#allocation2 + $0x338] sm:$0xff] }
 0x554   : > { %14047 = vst.msk [vmem:[%s23557_s12 + $0x1c] sm:$0xf] %vm14039_vm5, %v15521_v15  ;;  %v13281_v35 = vadd.f32 %v17553_v11, %v23539_v31  ;;  %v17555_v3 = vadd.f32 %v17416_v54, %v23309_v18  ;;  %v12661_v50 = vpop.f32.mrb[11].mxu0  ;;  %16962 = vmatmul.mubr.msk.bf16.gmra.mrb[116].mxu1 %vm3196_vm4, %v23317_v59  ;;  %v12347_v18 = vld [vmem:[#allocation2 + $0x340] sm:$0xff] }
 0x555   : > { %14045 = vst.msk [vmem:[%s23557_s12 + $0x14] sm:$0xf] %vm14039_vm5, %v15519_v4  ;;  %v13279_v38 = vadd.f32 %v17554_v43, %v23539_v31  ;;  %v17556_v13 = vadd.f32 %v12661_v50, %v23311_v22  ;;  %16965 = vmatprep.mubr.msk.bf16.mxu1 %vm3196_vm4, %v23333_v47 }
 0x556   : > { %v13409_v34 = vmax.f32 %v13281_v35, 0.0  ;;  %v13282_v5 = vadd.f32 %v17555_v3, %v23539_v31  ;;  %17522 = vmatmul.mubr.msk.bf16.gmra.mrb[116].mxu0 %vm3196_vm4, %v12346_v46 }
 0x557   : > { %v13407_v0 = vmax.f32 %v13279_v38, 0.0  ;;  %v13280_v59 = vadd.f32 %v17556_v13, %v23539_v31  ;;  %17525 = vmatprep.mubr.msk.bf16.mxu0 %vm3196_vm4, %v12347_v18 }
 0x558   : > { %v15524_v37 = vpack.c.bf16 %v13409_v34, %v13409_v34  ;;  %v13410_v63 = vmax.f32 %v13282_v5, 0.0 }
 0x559   : > { %v15522_v22 = vpack.c.bf16 %v13407_v0, %v13407_v0  ;;  %v13408_v16 = vmax.f32 %v13280_v59, 0.0  ;;  %v17419_v47 = vpop.f32.mrb[12].mxu0  ;;  %v12350_v0 = vld [vmem:[#allocation2 + $0x358] sm:$0xff] }
 0x55a   : > { %14050 = vst.msk [vmem:[%s23557_s12 + $0x28] sm:$0xf] %vm14039_vm5, %v15524_v37  ;;  %v15525_v26 = vpack.c.bf16 %v13410_v63, %v13410_v63  ;;  %v17557_v29 = vadd.f32 %v17419_v47, %v23325_v53  ;;  %v12674_v58 = vpop.f32.mrb[13].mxu0 }
 0x55b   : > { %14048 = vst.msk [vmem:[%s23557_s12 + $0x20] sm:$0xf] %vm14039_vm5, %v15522_v22  ;;  %v15523_v9 = vpack.c.bf16 %v13408_v16, %v13408_v16  ;;  %v17558_v24 = vadd.f32 %v12674_v58, %v23327_v14  ;;  %v17420_v27 = vpop.f32.mrb[14].mxu0  ;;  %v12348_v14 = vld [vmem:[#allocation2 + $0x348] sm:$0xff] }
 0x55c   : > { %14051 = vst.msk [vmem:[%s23557_s12 + $0x2c] sm:$0xf] %vm14039_vm5, %v15525_v26  ;;  %v13285_v15 = vadd.f32 %v17557_v29, %v23539_v31  ;;  %v17559_v11 = vadd.f32 %v17420_v27, %v23329_v45  ;;  %v12677_v60 = vpop.f32.mrb[15].mxu0  ;;  %16966 = vmatmul.mubr.msk.bf16.gmra.mrb[120].mxu1 %vm3196_vm4, %v23337_v52 }
 0x55d   : > { %14049 = vst.msk [vmem:[%s23557_s12 + $0x24] sm:$0xf] %vm14039_vm5, %v15523_v9  ;;  %v13283_v53 = vadd.f32 %v17558_v24, %v23539_v31  ;;  %v17560_v4 = vadd.f32 %v12677_v60, %v23331_v25  ;;  %16969 = vmatprep.mubr.msk.bf16.mxu1 %vm3196_vm4, %v23353_v40 }
 0x55e   : > { %v13413_v43 = vmax.f32 %v13285_v15, 0.0  ;;  %v13286_v54 = vadd.f32 %v17559_v11, %v23539_v31  ;;  %17526 = vmatmul.mubr.msk.bf16.gmra.mrb[120].mxu0 %vm3196_vm4, %v12348_v14 }
 0x55f   : > { %v13411_v45 = vmax.f32 %v13283_v53, 0.0  ;;  %v13284_v52 = vadd.f32 %v17560_v4, %v23539_v31  ;;  %17529 = vmatprep.mubr.msk.bf16.mxu0 %vm3196_vm4, %v23135_v57  ;;  %v8434_v57 = vld [vmem:[#allocation2 + $0x2c0] sm:$0xff] }
 0x560   : > { %v15528_v35 = vpack.c.bf16 %v13413_v43, %v13413_v43  ;;  %v13414_v3 = vmax.f32 %v13286_v54, 0.0 }
 0x561   : > { %v15526_v25 = vpack.c.bf16 %v13411_v45, %v13411_v45  ;;  %v13412_v50 = vmax.f32 %v13284_v52, 0.0  ;;  %v17423_v38 = vpop.f32.mrb[16].mxu0 }
 0x562   : > { %14054 = vst.msk [vmem:[%s23557_s12 + $0x38] sm:$0xf] %vm14039_vm5, %v15528_v35  ;;  %v15529_v40 = vpack.c.bf16 %v13414_v3, %v13414_v3  ;;  %v17561_v13 = vadd.f32 %v17423_v38, %v23345_v23  ;;  %v12690_v46 = vpop.f32.mrb[17].mxu0 }
 0x563   : > { %14052 = vst.msk [vmem:[%s23557_s12 + $0x30] sm:$0xf] %vm14039_vm5, %v15526_v25  ;;  %v15527_v34 = vpack.c.bf16 %v13412_v50, %v13412_v50  ;;  %v17562_v5 = vadd.f32 %v12690_v46, %v23347_v6  ;;  %v17424_v18 = vpop.f32.mrb[18].mxu0 }
 0x564   : > { %14055 = vst.msk [vmem:[%s23557_s12 + $0x3c] sm:$0xf] %vm14039_vm5, %v15529_v40  ;;  %v13289_v59 = vadd.f32 %v17561_v13, %v23539_v31  ;;  %v17563_v37 = vadd.f32 %v17424_v18, %v23349_v10  ;;  %v12693_v63 = vpop.f32.mrb[19].mxu0  ;;  %16970 = vmatmul.mubr.msk.bf16.gmra.mrb[124].mxu1 %vm3196_vm4, %v8434_v57 }
 0x565   : > { %14053 = vst.msk [vmem:[%s23557_s12 + $0x34] sm:$0xf] %vm14039_vm5, %v15527_v34  ;;  %v13287_v23 = vadd.f32 %v17562_v5, %v23539_v31  ;;  %v17564_v6 = vadd.f32 %v12693_v63, %v23351_v51 }
 0x566   : > { %v13417_v22 = vmax.f32 %v13289_v59, 0.0  ;;  %v13290_v16 = vadd.f32 %v17563_v37, %v23539_v31  ;;  %17530 = vmatmul.mubr.msk.bf16.gmra.mrb[124].mxu0 %vm3196_vm4, %v12350_v0 }
 0x567   : > { %v13415_v47 = vmax.f32 %v13287_v23, 0.0  ;;  %v13288_v10 = vadd.f32 %v17564_v6, %v23539_v31 }
 0x568   : > { %v15532_v26 = vpack.c.bf16 %v13417_v22, %v13417_v22  ;;  %v13418_v29 = vmax.f32 %v13290_v16, 0.0 }
 0x569   : > { %v15530_v58 = vpack.c.bf16 %v13415_v47, %v13415_v47  ;;  %v13416_v9 = vmax.f32 %v13288_v10, 0.0  ;;  %v17427_v24 = vpop.f32.mrb[20].mxu0 }
 0x56a   : > { %14058 = vst.msk [vmem:[%s23557_s12 + $0x48] sm:$0xf] %vm14039_vm5, %v15532_v26  ;;  %v15533_v27 = vpack.c.bf16 %v13418_v29, %v13418_v29  ;;  %v17565_v51 = vadd.f32 %v17427_v24, %v23366_v1  ;;  %v12706_v15 = vpop.f32.mrb[21].mxu0 }
 0x56b   : > { %14056 = vst.msk [vmem:[%s23557_s12 + $0x40] sm:$0xf] %vm14039_vm5, %v15530_v58  ;;  %v15531_v11 = vpack.c.bf16 %v13416_v9, %v13416_v9  ;;  %v17566_v60 = vadd.f32 %v12706_v15, %v23369_v12  ;;  %v17428_v53 = vpop.f32.mrb[22].mxu0 }
 0x56c   : > { %14059 = vst.msk [vmem:[%s23557_s12 + $0x4c] sm:$0xf] %vm14039_vm5, %v15533_v27  ;;  %v13293_v4 = vadd.f32 %v17565_v51, %v23539_v31  ;;  %v17567_v14 = vadd.f32 %v17428_v53, %v23371_v32  ;;  %v12709_v43 = vpop.f32.mrb[23].mxu0 }
 0x56d   : > { %14057 = vst.msk [vmem:[%s23557_s12 + $0x44] sm:$0xf] %vm14039_vm5, %v15531_v11  ;;  %v13291_v1 = vadd.f32 %v17566_v60, %v23539_v31  ;;  %v17568_v54 = vadd.f32 %v12709_v43, %v23373_v30 }
 0x56e   : > { %v13421_v45 = vmax.f32 %v13293_v4, 0.0  ;;  %v13294_v52 = vadd.f32 %v17567_v14, %v23539_v31 }
 0x56f   : > { %v13419_v12 = vmax.f32 %v13291_v1, 0.0  ;;  %v13292_v35 = vadd.f32 %v17568_v54, %v23539_v31 }
 0x570   : > { %v15536_v3 = vpack.c.bf16 %v13421_v45, %v13421_v45  ;;  %v13422_v25 = vmax.f32 %v13294_v52, 0.0 }
 0x571   : > { %v15534_v50 = vpack.c.bf16 %v13419_v12, %v13419_v12  ;;  %v13420_v32 = vmax.f32 %v13292_v35, 0.0  ;;  %v17431_v38 = vpop.f32.mrb[24].mxu0  ;;  %v24335_v12 = vld [vmem:[#allocation22_spill] sm:$0xff] }
 0x572   : > { %14062 = vst.msk [vmem:[%s23557_s12 + $0x58] sm:$0xf] %vm14039_vm5, %v15536_v3  ;;  %v15537_v40 = vpack.c.bf16 %v13422_v25, %v13422_v25  ;;  %v17569_v13 = vadd.f32 %v17431_v38, %v23383_v61  ;;  %v12722_v46 = vpop.f32.mrb[25].mxu0 }
 0x573   : > { %14060 = vst.msk [vmem:[%s23557_s12 + $0x50] sm:$0xf] %vm14039_vm5, %v15534_v50  ;;  %v15535_v30 = vpack.c.bf16 %v13420_v32, %v13420_v32  ;;  %v17570_v34 = vadd.f32 %v12722_v46, %v23385_v56  ;;  %v17432_v5 = vpop.f32.mrb[26].mxu0  ;;  %v24336_v50 = vld [vmem:[#allocation23_spill] sm:$0xff] }
 0x574   : > { %14063 = vst.msk [vmem:[%s23557_s12 + $0x5c] sm:$0xf] %vm14039_vm5, %v15537_v40  ;;  %v13297_v18 = vadd.f32 %v17569_v13, %v23539_v31  ;;  %v17571_v57 = vadd.f32 %v17432_v5, %v23387_v7  ;;  %v12725_v0 = vpop.f32.mrb[27].mxu0 }
 0x575   : > { %14061 = vst.msk [vmem:[%s23557_s12 + $0x54] sm:$0xf] %vm14039_vm5, %v15535_v30  ;;  %v13295_v61 = vadd.f32 %v17570_v34, %v23539_v31  ;;  %v17572_v59 = vadd.f32 %v12725_v0, %v23389_v20 }
 0x576   : > { %v13425_v37 = vmax.f32 %v13297_v18, 0.0  ;;  %v13298_v63 = vadd.f32 %v17571_v57, %v23539_v31 }
 0x577   : > { %v13423_v56 = vmax.f32 %v13295_v61, 0.0  ;;  %v13296_v23 = vadd.f32 %v17572_v59, %v23539_v31 }
 0x578   : > { %v15540_v6 = vpack.c.bf16 %v13425_v37, %v13425_v37  ;;  %v13426_v22 = vmax.f32 %v13298_v63, 0.0 }
 0x579   : > { %v15538_v16 = vpack.c.bf16 %v13423_v56, %v13423_v56  ;;  %v13424_v7 = vmax.f32 %v13296_v23, 0.0  ;;  %v17435_v47 = vpop.f32.mrb[28].mxu0  ;;  %v24337_v56 = vld [vmem:[#allocation24_spill] sm:$0xff] }
 0x57a   : > { %14066 = vst.msk [vmem:[%s23557_s12 + $0x68] sm:$0xf] %vm14039_vm5, %v15540_v6  ;;  %v15541_v10 = vpack.c.bf16 %v13426_v22, %v13426_v22  ;;  %v17573_v26 = vadd.f32 %v17435_v47, %v23399_v28  ;;  %v12738_v29 = vpop.f32.mrb[29].mxu0 }
 0x57b   : > { %14064 = vst.msk [vmem:[%s23557_s12 + $0x60] sm:$0xf] %vm14039_vm5, %v15538_v16  ;;  %v15539_v20 = vpack.c.bf16 %v13424_v7, %v13424_v7  ;;  %v17574_v58 = vadd.f32 %v12738_v29, %v23401_v44  ;;  %v17436_v9 = vpop.f32.mrb[30].mxu0  ;;  %v24338_v16 = vld [vmem:[#allocation29_spill] sm:$0xff] }
 0x57c   : > { %14067 = vst.msk [vmem:[%s23557_s12 + $0x6c] sm:$0xf] %vm14039_vm5, %v15541_v10  ;;  %v13301_v24 = vadd.f32 %v17573_v26, %v23539_v31  ;;  %v17575_v27 = vadd.f32 %v17436_v9, %v23403_v55  ;;  %v12741_v51 = vpop.f32.mrb[31].mxu0 }
 0x57d   : > { %14065 = vst.msk [vmem:[%s23557_s12 + $0x64] sm:$0xf] %vm14039_vm5, %v15539_v20  ;;  %v13299_v28 = vadd.f32 %v17574_v58, %v23539_v31  ;;  %v17576_v15 = vadd.f32 %v12741_v51, %v23405_v48 }
 0x57e   : > { %v13429_v11 = vmax.f32 %v13301_v24, 0.0  ;;  %v13302_v60 = vadd.f32 %v17575_v27, %v23539_v31 }
 0x57f   : > { %v13427_v44 = vmax.f32 %v13299_v28, 0.0  ;;  %v13300_v53 = vadd.f32 %v17576_v15, %v23539_v31 }
 0x580   : > { %v15544_v4 = vpack.c.bf16 %v13429_v11, %v13429_v11  ;;  %v13430_v14 = vmax.f32 %v13302_v60, 0.0 }
 0x581   : > { %v15542_v43 = vpack.c.bf16 %v13427_v44, %v13427_v44  ;;  %v13428_v55 = vmax.f32 %v13300_v53, 0.0  ;;  %v17439_v1 = vpop.f32.mrb[32].mxu0  ;;  %v24339_v44 = vld [vmem:[#allocation9_spill] sm:$0xff] }
 0x582   : > { %14070 = vst.msk [vmem:[%s23557_s12 + $0x78] sm:$0xf] %vm14039_vm5, %v15544_v4  ;;  %v15545_v54 = vpack.c.bf16 %v13430_v14, %v13430_v14  ;;  %v17577_v45 = vadd.f32 %v17439_v1, %v23415_v8  ;;  %v12754_v52 = vpop.f32.mrb[33].mxu0 }
 0x583   : > { %14068 = vst.msk [vmem:[%s23557_s12 + $0x70] sm:$0xf] %vm14039_vm5, %v15542_v43  ;;  %v15543_v48 = vpack.c.bf16 %v13428_v55, %v13428_v55  ;;  %v17578_v35 = vadd.f32 %v12754_v52, %v24335_v12  ;;  %v17440_v3 = vpop.f32.mrb[34].mxu0  ;;  %v24340_v43 = vld [vmem:[#allocation25_spill] sm:$0xff] }
 0x584   : > { %14071 = vst.msk [vmem:[%s23557_s12 + $0x7c] sm:$0xf] %vm14039_vm5, %v15545_v54  ;;  %v13305_v25 = vadd.f32 %v17577_v45, %v23539_v31  ;;  %v17579_v32 = vadd.f32 %v17440_v3, %v24336_v50  ;;  %v12757_v38 = vpop.f32.mrb[35].mxu0 }
 0x585   : > { %14069 = vst.msk [vmem:[%s23557_s12 + $0x74] sm:$0xf] %vm14039_vm5, %v15543_v48  ;;  %v13303_v8 = vadd.f32 %v17578_v35, %v23539_v31  ;;  %v17580_v40 = vadd.f32 %v12757_v38, %v23421_v49 }
 0x586   : > { %v13433_v13 = vmax.f32 %v13305_v25, 0.0  ;;  %v13306_v46 = vadd.f32 %v17579_v32, %v23539_v31 }
 0x587   : > { %v13431_v30 = vmax.f32 %v13303_v8, 0.0  ;;  %v13304_v34 = vadd.f32 %v17580_v40, %v23539_v31 }
 0x588   : > { %v15548_v5 = vpack.c.bf16 %v13433_v13, %v13433_v13  ;;  %v13434_v18 = vmax.f32 %v13306_v46, 0.0  ;;  %v24341_v13 = vld [vmem:[#allocation27_spill] sm:$0xff] }
 0x589   : > { %v15546_v57 = vpack.c.bf16 %v13431_v30, %v13431_v30  ;;  %v13432_v0 = vmax.f32 %v13304_v34, 0.0  ;;  %v17443_v61 = vpop.f32.mrb[36].mxu0 }
 0x58a   : > { %14074 = vst.msk [vmem:[%s23557_s12 + $0x88] sm:$0xf] %vm14039_vm5, %v15548_v5  ;;  %v15549_v59 = vpack.c.bf16 %v13434_v18, %v13434_v18  ;;  %v17581_v37 = vadd.f32 %v17443_v61, %v23431_v39  ;;  %v12770_v63 = vpop.f32.mrb[37].mxu0  ;;  %v24342_v5 = vld [vmem:[#allocation10_spill] sm:$0xff] }
 0x58b   : > { %14072 = vst.msk [vmem:[%s23557_s12 + $0x80] sm:$0xf] %vm14039_vm5, %v15546_v57  ;;  %v15547_v49 = vpack.c.bf16 %v13432_v0, %v13432_v0  ;;  %v17582_v23 = vadd.f32 %v12770_v63, %v24337_v56  ;;  %v17444_v6 = vpop.f32.mrb[38].mxu0 }
 0x58c   : > { %14075 = vst.msk [vmem:[%s23557_s12 + $0x8c] sm:$0xf] %vm14039_vm5, %v15549_v59  ;;  %v13309_v22 = vadd.f32 %v17581_v37, %v23539_v31  ;;  %v17583_v7 = vadd.f32 %v17444_v6, %v24338_v16  ;;  %v12773_v47 = vpop.f32.mrb[39].mxu0 }
 0x58d   : > { %14073 = vst.msk [vmem:[%s23557_s12 + $0x84] sm:$0xf] %vm14039_vm5, %v15547_v49  ;;  %v13307_v39 = vadd.f32 %v17582_v23, %v23539_v31  ;;  %v17584_v10 = vadd.f32 %v12773_v47, %v23437_v33 }
 0x58e   : > { %v13437_v26 = vmax.f32 %v13309_v22, 0.0  ;;  %v13310_v29 = vadd.f32 %v17583_v7, %v23539_v31  ;;  %v24343_v7 = vld [vmem:[#allocation28_spill] sm:$0xff] }
 0x58f   : > { %v13435_v20 = vmax.f32 %v13307_v39, 0.0  ;;  %v13308_v58 = vadd.f32 %v17584_v10, %v23539_v31  ;;  %v24344_v10 = vld [vmem:[#allocation26_spill] sm:$0xff] }
 0x590   : > { %v15552_v9 = vpack.c.bf16 %v13437_v26, %v13437_v26  ;;  %v13438_v24 = vmax.f32 %v13310_v29, 0.0 }
 0x591   : > { %v15550_v27 = vpack.c.bf16 %v13435_v20, %v13435_v20  ;;  %v13436_v51 = vmax.f32 %v13308_v58, 0.0  ;;  %v17447_v28 = vpop.f32.mrb[40].mxu0  ;;  %v24345_v58 = vld [vmem:[#allocation8_spill] sm:$0xff] }
 0x592   : > { %14078 = vst.msk [vmem:[%s23557_s12 + $0x98] sm:$0xf] %vm14039_vm5, %v15552_v9  ;;  %v15553_v15 = vpack.c.bf16 %v13438_v24, %v13438_v24  ;;  %v17585_v11 = vadd.f32 %v17447_v28, %v23447_v2  ;;  %v12786_v60 = vpop.f32.mrb[41].mxu0 }
 0x593   : > { %14076 = vst.msk [vmem:[%s23557_s12 + $0x90] sm:$0xf] %vm14039_vm5, %v15550_v27  ;;  %v15551_v33 = vpack.c.bf16 %v13436_v51, %v13436_v51  ;;  %v17586_v53 = vadd.f32 %v12786_v60, %v24339_v44  ;;  %v17448_v4 = vpop.f32.mrb[42].mxu0 }
 0x594   : > { %14079 = vst.msk [vmem:[%s23557_s12 + $0x9c] sm:$0xf] %vm14039_vm5, %v15553_v15  ;;  %v13313_v14 = vadd.f32 %v17585_v11, %v23539_v31  ;;  %v17587_v55 = vadd.f32 %v17448_v4, %v24340_v43  ;;  %v12789_v1 = vpop.f32.mrb[43].mxu0 }
 0x595   : > { %14077 = vst.msk [vmem:[%s23557_s12 + $0x94] sm:$0xf] %vm14039_vm5, %v15551_v33  ;;  %v13311_v2 = vadd.f32 %v17586_v53, %v23539_v31  ;;  %v17588_v54 = vadd.f32 %v12789_v1, %v23453_v41 }
 0x596   : > { %v13441_v45 = vmax.f32 %v13313_v14, 0.0  ;;  %v13314_v52 = vadd.f32 %v17587_v55, %v23539_v31 }
 0x597   : > { %v13439_v48 = vmax.f32 %v13311_v2, 0.0  ;;  %v13312_v12 = vadd.f32 %v17588_v54, %v23539_v31  ;;  %v24346_v2 = vld [vmem:[#allocation11_spill] sm:$0xff] }
 0x598   : > { %v15556_v35 = vpack.c.bf16 %v13441_v45, %v13441_v45  ;;  %v13442_v3 = vmax.f32 %v13314_v52, 0.0 }
 0x599   : > { %v15554_v25 = vpack.c.bf16 %v13439_v48, %v13439_v48  ;;  %v13440_v50 = vmax.f32 %v13312_v12, 0.0  ;;  %v17451_v32 = vpop.f32.mrb[44].mxu0  ;;  %v24347_v48 = vld [vmem:[#allocation15_spill] sm:$0xff] }
 0x59a   : > { %14082 = vst.msk [vmem:[%s23557_s12 + $0xa8] sm:$0xf] %vm14039_vm5, %v15556_v35  ;;  %v15557_v38 = vpack.c.bf16 %v13442_v3, %v13442_v3  ;;  %v17589_v8 = vadd.f32 %v17451_v32, %v23463_v21  ;;  %v12802_v40 = vpop.f32.mrb[45].mxu0 }
 0x59b   : > { %14080 = vst.msk [vmem:[%s23557_s12 + $0xa0] sm:$0xf] %vm14039_vm5, %v15554_v25  ;;  %v15555_v41 = vpack.c.bf16 %v13440_v50, %v13440_v50  ;;  %v17590_v46 = vadd.f32 %v12802_v40, %v24341_v13  ;;  %v17452_v30 = vpop.f32.mrb[46].mxu0 }
 0x59c   : > { %14083 = vst.msk [vmem:[%s23557_s12 + $0xac] sm:$0xf] %vm14039_vm5, %v15557_v38  ;;  %v13317_v34 = vadd.f32 %v17589_v8, %v23539_v31  ;;  %v17591_v18 = vadd.f32 %v17452_v30, %v24342_v5  ;;  %v12805_v57 = vpop.f32.mrb[47].mxu0 }
 0x59d   : > { %14081 = vst.msk [vmem:[%s23557_s12 + $0xa4] sm:$0xf] %vm14039_vm5, %v15555_v41  ;;  %v13315_v21 = vadd.f32 %v17590_v46, %v23539_v31  ;;  %v17592_v0 = vadd.f32 %v12805_v57, %v23469_v42 }
 0x59e   : > { %v13445_v61 = vmax.f32 %v13317_v34, 0.0  ;;  %v13318_v59 = vadd.f32 %v17591_v18, %v23539_v31  ;;  %v24348_v18 = vld [vmem:[#allocation14_spill] sm:$0xff] }
 0x59f   : > { %v13443_v37 = vmax.f32 %v13315_v21, 0.0  ;;  %v13316_v63 = vadd.f32 %v17592_v0, %v23539_v31 }
 0x5a0   : > { %v15560_v49 = vpack.c.bf16 %v13445_v61, %v13445_v61  ;;  %v13446_v56 = vmax.f32 %v13318_v59, 0.0  ;;  %v24349_v61 = vld [vmem:[#allocation16_spill] sm:$0xff] }
 0x5a1   : > { %v15558_v23 = vpack.c.bf16 %v13443_v37, %v13443_v37  ;;  %v13444_v6 = vmax.f32 %v13316_v63, 0.0  ;;  %v17455_v22 = vpop.f32.mrb[48].mxu0  ;;  %v24350_v63 = vld [vmem:[#allocation17_spill] sm:$0xff] }
 0x5a2   : > { %14086 = vst.msk [vmem:[%s23557_s12 + $0xb8] sm:$0xf] %vm14039_vm5, %v15560_v49  ;;  %v15561_v16 = vpack.c.bf16 %v13446_v56, %v13446_v56  ;;  %v17593_v47 = vadd.f32 %v17455_v22, %v24343_v7  ;;  %v12818_v39 = vpop.f32.mrb[49].mxu0 }
 0x5a3   : > { %14084 = vst.msk [vmem:[%s23557_s12 + $0xb0] sm:$0xf] %vm14039_vm5, %v15558_v23  ;;  %v15559_v42 = vpack.c.bf16 %v13444_v6, %v13444_v6  ;;  %v17594_v26 = vadd.f32 %v12818_v39, %v24344_v10  ;;  %v17456_v29 = vpop.f32.mrb[50].mxu0 }
 0x5a4   : > { %14087 = vst.msk [vmem:[%s23557_s12 + $0xbc] sm:$0xf] %vm14039_vm5, %v15561_v16  ;;  %v13321_v20 = vadd.f32 %v17593_v47, %v23539_v31  ;;  %v17595_v9 = vadd.f32 %v17456_v29, %v24345_v58  ;;  %v12821_v24 = vpop.f32.mrb[51].mxu0 }
 0x5a5   : > { %14085 = vst.msk [vmem:[%s23557_s12 + $0xb4] sm:$0xf] %vm14039_vm5, %v15559_v42  ;;  %v13319_v27 = vadd.f32 %v17594_v26, %v23539_v31  ;;  %v17596_v51 = vadd.f32 %v12821_v24, %v23485_v17  ;;  %v24351_v26 = vld [vmem:[#allocation18_spill] sm:$0xff] }
 0x5a6   : > { %v13449_v28 = vmax.f32 %v13321_v20, 0.0  ;;  %v13322_v15 = vadd.f32 %v17595_v9, %v23539_v31  ;;  %v24352_v9 = vld [vmem:[#allocation19_spill] sm:$0xff] }
 0x5a7   : > { %v13447_v11 = vmax.f32 %v13319_v27, 0.0  ;;  %v13320_v60 = vadd.f32 %v17596_v51, %v23539_v31 }
 0x5a8   : > { %v15564_v33 = vpack.c.bf16 %v13449_v28, %v13449_v28  ;;  %v13450_v44 = vmax.f32 %v13322_v15, 0.0  ;;  %v24353_v28 = vld [vmem:[#allocation20_spill] sm:$0xff] }
 0x5a9   : > { %v15562_v53 = vpack.c.bf16 %v13447_v11, %v13447_v11  ;;  %v13448_v4 = vmax.f32 %v13320_v60, 0.0  ;;  %v17459_v14 = vpop.f32.mrb[52].mxu0 }
 0x5aa   : > { %14090 = vst.msk [vmem:[%s23557_s12 + $0xc8] sm:$0xf] %vm14039_vm5, %v15564_v33  ;;  %v15565_v43 = vpack.c.bf16 %v13450_v44, %v13450_v44  ;;  %v17597_v55 = vadd.f32 %v17459_v14, %v23493_v62  ;;  %v12834_v1 = vpop.f32.mrb[53].mxu0  ;;  %v24354_v33 = vld [vmem:[#allocation21_spill] sm:$0xff] }
 0x5ab   : > { %14088 = vst.msk [vmem:[%s23557_s12 + $0xc0] sm:$0xf] %vm14039_vm5, %v15562_v53  ;;  %v15563_v17 = vpack.c.bf16 %v13448_v4, %v13448_v4  ;;  %v17598_v54 = vadd.f32 %v12834_v1, %v24346_v2  ;;  %v17460_v45 = vpop.f32.mrb[54].mxu0 }
 0x5ac   : > { %14091 = vst.msk [vmem:[%s23557_s12 + $0xcc] sm:$0xf] %vm14039_vm5, %v15565_v43  ;;  %v13325_v52 = vadd.f32 %v17597_v55, %v23539_v31  ;;  %v17599_v12 = vadd.f32 %v17460_v45, %v24347_v48  ;;  %v12837_v35 = vpop.f32.mrb[55].mxu0 }
 0x5ad   : > { %14089 = vst.msk [vmem:[%s23557_s12 + $0xc4] sm:$0xf] %vm14039_vm5, %v15563_v17  ;;  %v13323_v62 = vadd.f32 %v17598_v54, %v23539_v31  ;;  %v17600_v3 = vadd.f32 %v12837_v35, %v23499_v19 }
 0x5ae   : > { %v13453_v25 = vmax.f32 %v13325_v52, 0.0  ;;  %v13326_v50 = vadd.f32 %v17599_v12, %v23539_v31 }
 0x5af   : > { %v13451_v32 = vmax.f32 %v13323_v62, 0.0  ;;  %v13324_v38 = vadd.f32 %v17600_v3, %v23539_v31 }
 0x5b0   : > { %v15568_v8 = vpack.c.bf16 %v13453_v25, %v13453_v25  ;;  %v13454_v40 = vmax.f32 %v13326_v50, 0.0 }
 0x5b1   : > { %v15566_v41 = vpack.c.bf16 %v13451_v32, %v13451_v32  ;;  %v13452_v13 = vmax.f32 %v13324_v38, 0.0  ;;  %v17463_v46 = vpop.f32.mrb[56].mxu0 }
 0x5b2   : > { %14094 = vst.msk [vmem:[%s23557_s12 + $0xd8] sm:$0xf] %vm14039_vm5, %v15568_v8  ;;  %v15569_v30 = vpack.c.bf16 %v13454_v40, %v13454_v40  ;;  %v17601_v34 = vadd.f32 %v17463_v46, %v23507_v36  ;;  %v12850_v5 = vpop.f32.mrb[57].mxu0 }
 0x5b3   : > { %14092 = vst.msk [vmem:[%s23557_s12 + $0xd0] sm:$0xf] %vm14039_vm5, %v15566_v41  ;;  %v15567_v19 = vpack.c.bf16 %v13452_v13, %v13452_v13  ;;  %v17602_v57 = vadd.f32 %v12850_v5, %v24348_v18  ;;  %v17464_v21 = vpop.f32.mrb[58].mxu0 }
 0x5b4   : > { %14095 = vst.msk [vmem:[%s23557_s12 + $0xdc] sm:$0xf] %vm14039_vm5, %v15569_v30  ;;  %v13329_v0 = vadd.f32 %v17601_v34, %v23539_v31  ;;  %v17603_v59 = vadd.f32 %v17464_v21, %v24349_v61  ;;  %v12853_v37 = vpop.f32.mrb[59].mxu0 }
 0x5b5   : > { %14093 = vst.msk [vmem:[%s23557_s12 + $0xd4] sm:$0xf] %vm14039_vm5, %v15567_v19  ;;  %v13327_v36 = vadd.f32 %v17602_v57, %v23539_v31  ;;  %v17604_v49 = vadd.f32 %v12853_v37, %v24350_v63 }
 0x5b6   : > { %v13457_v56 = vmax.f32 %v13329_v0, 0.0  ;;  %v13330_v23 = vadd.f32 %v17603_v59, %v23539_v31 }
 0x5b7   : > { %v13455_v6 = vmax.f32 %v13327_v36, 0.0  ;;  %v13328_v22 = vadd.f32 %v17604_v49, %v23539_v31 }
 0x5b8   : > { %v15572_v16 = vpack.c.bf16 %v13457_v56, %v13457_v56  ;;  %v13458_v7 = vmax.f32 %v13330_v23, 0.0 }
 0x5b9   : > { %v15570_v47 = vpack.c.bf16 %v13455_v6, %v13455_v6  ;;  %v13456_v39 = vmax.f32 %v13328_v22, 0.0  ;;  %v17467_v42 = vpop.f32.mrb[60].mxu0 }
 0x5ba   : > { %14098 = vst.msk [vmem:[%s23557_s12 + $0xe8] sm:$0xf] %vm14039_vm5, %v15572_v16  ;;  %v15573_v10 = vpack.c.bf16 %v13458_v7, %v13458_v7  ;;  %v17605_v29 = vadd.f32 %v17467_v42, %v24351_v26  ;;  %v12866_v20 = vpop.f32.mrb[61].mxu0 }
 0x5bb   : > { %14096 = vst.msk [vmem:[%s23557_s12 + $0xe0] sm:$0xf] %vm14039_vm5, %v15570_v47  ;;  %v15571_v58 = vpack.c.bf16 %v13456_v39, %v13456_v39  ;;  %v17606_v24 = vadd.f32 %v12866_v20, %v24352_v9  ;;  %v17468_v27 = vpop.f32.mrb[62].mxu0 }
 0x5bc   : > { %14099 = vst.msk [vmem:[%s23557_s12 + $0xec] sm:$0xf] %vm14039_vm5, %v15573_v10  ;;  %v13333_v51 = vadd.f32 %v17605_v29, %v23539_v31  ;;  %v17607_v15 = vadd.f32 %v17468_v27, %v24353_v28  ;;  %v12869_v11 = vpop.f32.mrb[63].mxu0 }
 0x5bd   : > { %14097 = vst.msk [vmem:[%s23557_s12 + $0xe4] sm:$0xf] %vm14039_vm5, %v15571_v58  ;;  %v13331_v60 = vadd.f32 %v17606_v24, %v23539_v31  ;;  %v17608_v44 = vadd.f32 %v12869_v11, %v24354_v33 }
 0x5be   : > { %v13461_v53 = vmax.f32 %v13333_v51, 0.0  ;;  %v13334_v4 = vadd.f32 %v17607_v15, %v23539_v31 }
 0x5bf   : > { %v13459_v14 = vmax.f32 %v13331_v60, 0.0  ;;  %v13332_v43 = vadd.f32 %v17608_v44, %v23539_v31  ;;  %v16911_v55 = vpop.f32.mrb[64].mxu1 }
 0x5c0   : > { %v15576_v1 = vpack.c.bf16 %v13461_v53, %v13461_v53  ;;  %v13462_v17 = vmax.f32 %v13334_v4, 0.0  ;;  %v8966_v2 = vpop.f32.mrb[65].mxu1 }
 0x5c1   : > { %v15574_v54 = vpack.c.bf16 %v13459_v14, %v13459_v14  ;;  %v13460_v45 = vmax.f32 %v13332_v43, 0.0  ;;  %v17471_v52 = vpop.f32.mrb[64].mxu0  ;;  %v16912_v48 = vpop.f32.mrb[66].mxu1 }
 0x5c2   : > { %14102 = vst.msk [vmem:[%s23557_s12 + $0xf8] sm:$0xf] %vm14039_vm5, %v15576_v1  ;;  %v15577_v12 = vpack.c.bf16 %v13462_v17, %v13462_v17  ;;  %v17609_v35 = vadd.f32 %v17471_v52, %v16911_v55  ;;  %v12882_v62 = vpop.f32.mrb[65].mxu0  ;;  %v8969_v3 = vpop.f32.mrb[67].mxu1 }
 0x5c3   : > { %14100 = vst.msk [vmem:[%s23557_s12 + $0xf0] sm:$0xf] %vm14039_vm5, %v15574_v54  ;;  %v15575_v25 = vpack.c.bf16 %v13460_v45, %v13460_v45  ;;  %v17610_v50 = vadd.f32 %v12882_v62, %v8966_v2  ;;  %v17472_v32 = vpop.f32.mrb[66].mxu0 }
 0x5c4   : > { %14103 = vst.msk [vmem:[%s23557_s12 + $0xfc] sm:$0xf] %vm14039_vm5, %v15577_v12  ;;  %v13337_v38 = vadd.f32 %v17609_v35, %v23539_v31  ;;  %v17611_v8 = vadd.f32 %v17472_v32, %v16912_v48  ;;  %v12885_v40 = vpop.f32.mrb[67].mxu0 }
 0x5c5   : > { %14101 = vst.msk [vmem:[%s23557_s12 + $0xf4] sm:$0xf] %vm14039_vm5, %v15575_v25  ;;  %v13335_v41 = vadd.f32 %v17610_v50, %v23539_v31  ;;  %v17612_v13 = vadd.f32 %v12885_v40, %v8969_v3 }
 0x5c6   : > { %v13465_v46 = vmax.f32 %v13337_v38, 0.0  ;;  %v13338_v30 = vadd.f32 %v17611_v8, %v23539_v31 }
 0x5c7   : > { %v13463_v34 = vmax.f32 %v13335_v41, 0.0  ;;  %v13336_v5 = vadd.f32 %v17612_v13, %v23539_v31  ;;  %v16915_v19 = vpop.f32.mrb[68].mxu1 }
 0x5c8   : > { %v15580_v18 = vpack.c.bf16 %v13465_v46, %v13465_v46  ;;  %v13466_v57 = vmax.f32 %v13338_v30, 0.0  ;;  %v8982_v21 = vpop.f32.mrb[69].mxu1 }
 0x5c9   : > { %v15578_v0 = vpack.c.bf16 %v13463_v34, %v13463_v34  ;;  %v13464_v61 = vmax.f32 %v13336_v5, 0.0  ;;  %v17475_v59 = vpop.f32.mrb[68].mxu0  ;;  %v16916_v37 = vpop.f32.mrb[70].mxu1 }
 0x5ca   : > { %14106 = vst.msk [vmem:[%s23557_s12 + $0x108] sm:$0xf] %vm14039_vm5, %v15580_v18  ;;  %v15581_v36 = vpack.c.bf16 %v13466_v57, %v13466_v57  ;;  %v17613_v63 = vadd.f32 %v17475_v59, %v16915_v19  ;;  %v12898_v49 = vpop.f32.mrb[69].mxu0  ;;  %v8985_v56 = vpop.f32.mrb[71].mxu1  ;;  %v23869_v59 = vld [vmem:[%s24095_s4] ss:$0 sm:$0xff] }
 0x5cb   : > { %14104 = vst.msk [vmem:[%s23557_s12 + $0x100] sm:$0xf] %vm14039_vm5, %v15578_v0  ;;  %v15579_v23 = vpack.c.bf16 %v13464_v61, %v13464_v61  ;;  %v17614_v6 = vadd.f32 %v12898_v49, %v8982_v21  ;;  %v17476_v22 = vpop.f32.mrb[70].mxu0 }
 0x5cc   : > { %14107 = vst.msk [vmem:[%s23557_s12 + $0x10c] sm:$0xf] %vm14039_vm5, %v15581_v36  ;;  %v13341_v16 = vadd.f32 %v17613_v63, %v23539_v31  ;;  %v17615_v7 = vadd.f32 %v17476_v22, %v16916_v37  ;;  %v12901_v47 = vpop.f32.mrb[71].mxu0 }
 0x5cd   : > { %14105 = vst.msk [vmem:[%s23557_s12 + $0x104] sm:$0xf] %vm14039_vm5, %v15579_v23  ;;  %v13339_v39 = vadd.f32 %v17614_v6, %v23539_v31  ;;  %v17616_v42 = vadd.f32 %v12901_v47, %v8985_v56 }
 0x5ce   : > { %v13469_v10 = vmax.f32 %v13341_v16, 0.0  ;;  %v13342_v26 = vadd.f32 %v17615_v7, %v23539_v31 }
 0x5cf   : > { %v13467_v29 = vmax.f32 %v13339_v39, 0.0  ;;  %v13340_v20 = vadd.f32 %v17616_v42, %v23539_v31  ;;  %v16919_v58 = vpop.f32.mrb[72].mxu1 }
 0x5d0   : > { %v15584_v9 = vpack.c.bf16 %v13469_v10, %v13469_v10  ;;  %v13470_v24 = vmax.f32 %v13342_v26, 0.0  ;;  %v8998_v27 = vpop.f32.mrb[73].mxu1 }
 0x5d1   : > { %v15582_v51 = vpack.c.bf16 %v13467_v29, %v13467_v29  ;;  %v13468_v28 = vmax.f32 %v13340_v20, 0.0  ;;  %v17479_v15 = vpop.f32.mrb[72].mxu0  ;;  %v16920_v11 = vpop.f32.mrb[74].mxu1 }
 0x5d2   : > { %14110 = vst.msk [vmem:[%s23557_s12 + $0x118] sm:$0xf] %vm14039_vm5, %v15584_v9  ;;  %v15585_v60 = vpack.c.bf16 %v13470_v24, %v13470_v24  ;;  %v17617_v33 = vadd.f32 %v17479_v15, %v16919_v58  ;;  %v12914_v44 = vpop.f32.mrb[73].mxu0  ;;  %v9001_v53 = vpop.f32.mrb[75].mxu1 }
 0x5d3   : > { %14108 = vst.msk [vmem:[%s23557_s12 + $0x110] sm:$0xf] %vm14039_vm5, %v15582_v51  ;;  %v15583_v4 = vpack.c.bf16 %v13468_v28, %v13468_v28  ;;  %v17618_v14 = vadd.f32 %v12914_v44, %v8998_v27  ;;  %v17480_v43 = vpop.f32.mrb[74].mxu0 }
 0x5d4   : > { %14111 = vst.msk [vmem:[%s23557_s12 + $0x11c] sm:$0xf] %vm14039_vm5, %v15585_v60  ;;  %v13345_v55 = vadd.f32 %v17617_v33, %v23539_v31  ;;  %v17619_v1 = vadd.f32 %v17480_v43, %v16920_v11  ;;  %v12917_v17 = vpop.f32.mrb[75].mxu0 }
 0x5d5   : > { %14109 = vst.msk [vmem:[%s23557_s12 + $0x114] sm:$0xf] %vm14039_vm5, %v15583_v4  ;;  %v13343_v2 = vadd.f32 %v17618_v14, %v23539_v31  ;;  %v17620_v54 = vadd.f32 %v12917_v17, %v9001_v53 }
 0x5d6   : > { %v13473_v45 = vmax.f32 %v13345_v55, 0.0  ;;  %v13346_v52 = vadd.f32 %v17619_v1, %v23539_v31 }
 0x5d7   : > { %v13471_v48 = vmax.f32 %v13343_v2, 0.0  ;;  %v13344_v12 = vadd.f32 %v17620_v54, %v23539_v31  ;;  %v16923_v35 = vpop.f32.mrb[76].mxu1 }
 0x5d8   : > { %v15588_v62 = vpack.c.bf16 %v13473_v45, %v13473_v45  ;;  %v13474_v3 = vmax.f32 %v13346_v52, 0.0  ;;  %v9014_v25 = vpop.f32.mrb[77].mxu1 }
 0x5d9   : > { %v15586_v50 = vpack.c.bf16 %v13471_v48, %v13471_v48  ;;  %v13472_v32 = vmax.f32 %v13344_v12, 0.0  ;;  %v17483_v38 = vpop.f32.mrb[76].mxu0  ;;  %v16924_v8 = vpop.f32.mrb[78].mxu1 }
 0x5da   : > { %14114 = vst.msk [vmem:[%s23557_s12 + $0x128] sm:$0xf] %vm14039_vm5, %v15588_v62  ;;  %v15589_v40 = vpack.c.bf16 %v13474_v3, %v13474_v3  ;;  %v17621_v41 = vadd.f32 %v17483_v38, %v16923_v35  ;;  %v12930_v13 = vpop.f32.mrb[77].mxu0  ;;  %v9017_v46 = vpop.f32.mrb[79].mxu1 }
 0x5db   : > { %14112 = vst.msk [vmem:[%s23557_s12 + $0x120] sm:$0xf] %vm14039_vm5, %v15586_v50  ;;  %v15587_v30 = vpack.c.bf16 %v13472_v32, %v13472_v32  ;;  %v17622_v34 = vadd.f32 %v12930_v13, %v9014_v25  ;;  %v17484_v5 = vpop.f32.mrb[78].mxu0 }
 0x5dc   : > { %14115 = vst.msk [vmem:[%s23557_s12 + $0x12c] sm:$0xf] %vm14039_vm5, %v15589_v40  ;;  %v13349_v19 = vadd.f32 %v17621_v41, %v23539_v31  ;;  %v17623_v18 = vadd.f32 %v17484_v5, %v16924_v8  ;;  %v12933_v57 = vpop.f32.mrb[79].mxu0 }
 0x5dd   : > { %14113 = vst.msk [vmem:[%s23557_s12 + $0x124] sm:$0xf] %vm14039_vm5, %v15587_v30  ;;  %v13347_v21 = vadd.f32 %v17622_v34, %v23539_v31  ;;  %v17624_v0 = vadd.f32 %v12933_v57, %v9017_v46 }
 0x5de   : > { %v13477_v61 = vmax.f32 %v13349_v19, 0.0  ;;  %v13350_v37 = vadd.f32 %v23869_v59, %v17623_v18 }
 0x5df   : > { %v13475_v36 = vmax.f32 %v13347_v21, 0.0  ;;  %v13348_v63 = vadd.f32 %v23869_v59, %v17624_v0  ;;  %v16927_v49 = vpop.f32.mrb[80].mxu1 }
 0x5e0   : > { %v15592_v56 = vpack.c.bf16 %v13477_v61, %v13477_v61  ;;  %v13478_v23 = vmax.f32 %v13350_v37, 0.0  ;;  %v9030_v6 = vpop.f32.mrb[81].mxu1 }
 0x5e1   : > { %v15590_v22 = vpack.c.bf16 %v13475_v36, %v13475_v36  ;;  %v13476_v31 = vmax.f32 %v13348_v63, 0.0  ;;  %v17487_v16 = vpop.f32.mrb[80].mxu0  ;;  %v16928_v7 = vpop.f32.mrb[82].mxu1 }
 0x5e2   : > { %14118 = vst.msk [vmem:[%s23557_s12 + $0x138] sm:$0xf] %vm14039_vm5, %v15592_v56  ;;  %v15593_v47 = vpack.c.bf16 %v13478_v23, %v13478_v23  ;;  %v17625_v39 = vadd.f32 %v17487_v16, %v16927_v49  ;;  %v12946_v42 = vpop.f32.mrb[81].mxu0  ;;  %v9033_v10 = vpop.f32.mrb[83].mxu1 }
 0x5e3   : > { %14116 = vst.msk [vmem:[%s23557_s12 + $0x130] sm:$0xf] %vm14039_vm5, %v15590_v22  ;;  %v15591_v26 = vpack.c.bf16 %v13476_v31, %v13476_v31  ;;  %v17626_v29 = vadd.f32 %v12946_v42, %v9030_v6  ;;  %v17488_v20 = vpop.f32.mrb[82].mxu0 }
 0x5e4   : > { %14119 = vst.msk [vmem:[%s23557_s12 + $0x13c] sm:$0xf] %vm14039_vm5, %v15593_v47  ;;  %v13353_v58 = vadd.f32 %v23869_v59, %v17625_v39  ;;  %v17627_v9 = vadd.f32 %v17488_v20, %v16928_v7  ;;  %v12949_v24 = vpop.f32.mrb[83].mxu0 }
 0x5e5   : > { %14117 = vst.msk [vmem:[%s23557_s12 + $0x134] sm:$0xf] %vm14039_vm5, %v15591_v26  ;;  %v13351_v27 = vadd.f32 %v23869_v59, %v17626_v29  ;;  %v17628_v51 = vadd.f32 %v12949_v24, %v9033_v10 }
 0x5e6   : > { %v13481_v28 = vmax.f32 %v13353_v58, 0.0  ;;  %v13354_v15 = vadd.f32 %v23869_v59, %v17627_v9 }
 0x5e7   : > { %v13479_v11 = vmax.f32 %v13351_v27, 0.0  ;;  %v13352_v60 = vadd.f32 %v23869_v59, %v17628_v51  ;;  %v16931_v33 = vpop.f32.mrb[84].mxu1 }
 0x5e8   : > { %v15596_v44 = vpack.c.bf16 %v13481_v28, %v13481_v28  ;;  %v13482_v53 = vmax.f32 %v13354_v15, 0.0  ;;  %v9046_v4 = vpop.f32.mrb[85].mxu1 }
 0x5e9   : > { %v15594_v14 = vpack.c.bf16 %v13479_v11, %v13479_v11  ;;  %v13480_v43 = vmax.f32 %v13352_v60, 0.0  ;;  %v17491_v55 = vpop.f32.mrb[84].mxu0  ;;  %v16932_v1 = vpop.f32.mrb[86].mxu1 }
 0x5ea   : > { %14122 = vst.msk [vmem:[%s23557_s12 + $0x148] sm:$0xf] %vm14039_vm5, %v15596_v44  ;;  %v15597_v17 = vpack.c.bf16 %v13482_v53, %v13482_v53  ;;  %v17629_v2 = vadd.f32 %v17491_v55, %v16931_v33  ;;  %v12962_v54 = vpop.f32.mrb[85].mxu0  ;;  %v9049_v45 = vpop.f32.mrb[87].mxu1 }
 0x5eb   : > { %14120 = vst.msk [vmem:[%s23557_s12 + $0x140] sm:$0xf] %vm14039_vm5, %v15594_v14  ;;  %v15595_v52 = vpack.c.bf16 %v13480_v43, %v13480_v43  ;;  %v17630_v48 = vadd.f32 %v12962_v54, %v9046_v4  ;;  %v17492_v12 = vpop.f32.mrb[86].mxu0 }
 0x5ec   : > { %14123 = vst.msk [vmem:[%s23557_s12 + $0x14c] sm:$0xf] %vm14039_vm5, %v15597_v17  ;;  %v13357_v35 = vadd.f32 %v23869_v59, %v17629_v2  ;;  %v17631_v62 = vadd.f32 %v17492_v12, %v16932_v1  ;;  %v12965_v3 = vpop.f32.mrb[87].mxu0 }
 0x5ed   : > { %14121 = vst.msk [vmem:[%s23557_s12 + $0x144] sm:$0xf] %vm14039_vm5, %v15595_v52  ;;  %v13355_v25 = vadd.f32 %v23869_v59, %v17630_v48  ;;  %v17632_v50 = vadd.f32 %v12965_v3, %v9049_v45 }
 0x5ee   : > { %v13485_v32 = vmax.f32 %v13357_v35, 0.0  ;;  %v13358_v38 = vadd.f32 %v23869_v59, %v17631_v62 }
 0x5ef   : > { %v13483_v8 = vmax.f32 %v13355_v25, 0.0  ;;  %v13356_v40 = vadd.f32 %v23869_v59, %v17632_v50  ;;  %v16935_v41 = vpop.f32.mrb[88].mxu1 }
 0x5f0   : > { %v15600_v13 = vpack.c.bf16 %v13485_v32, %v13485_v32  ;;  %v13486_v46 = vmax.f32 %v13358_v38, 0.0  ;;  %v9062_v30 = vpop.f32.mrb[89].mxu1 }
 0x5f1   : > { %v15598_v34 = vpack.c.bf16 %v13483_v8, %v13483_v8  ;;  %v13484_v5 = vmax.f32 %v13356_v40, 0.0  ;;  %v17495_v19 = vpop.f32.mrb[88].mxu0  ;;  %v16936_v18 = vpop.f32.mrb[90].mxu1 }
 0x5f2   : > { %14126 = vst.msk [vmem:[%s23557_s12 + $0x158] sm:$0xf] %vm14039_vm5, %v15600_v13  ;;  %v15601_v57 = vpack.c.bf16 %v13486_v46, %v13486_v46  ;;  %v17633_v21 = vadd.f32 %v17495_v19, %v16935_v41  ;;  %v12978_v0 = vpop.f32.mrb[89].mxu0  ;;  %v9065_v61 = vpop.f32.mrb[91].mxu1 }
 0x5f3   : > { %14124 = vst.msk [vmem:[%s23557_s12 + $0x150] sm:$0xf] %vm14039_vm5, %v15598_v34  ;;  %v15599_v37 = vpack.c.bf16 %v13484_v5, %v13484_v5  ;;  %v17634_v36 = vadd.f32 %v12978_v0, %v9062_v30  ;;  %v17496_v63 = vpop.f32.mrb[90].mxu0 }
 0x5f4   : > { %14127 = vst.msk [vmem:[%s23557_s12 + $0x15c] sm:$0xf] %vm14039_vm5, %v15601_v57  ;;  %v13361_v49 = vadd.f32 %v23869_v59, %v17633_v21  ;;  %v17635_v56 = vadd.f32 %v17496_v63, %v16936_v18  ;;  %v12981_v23 = vpop.f32.mrb[91].mxu0 }
 0x5f5   : > { %14125 = vst.msk [vmem:[%s23557_s12 + $0x154] sm:$0xf] %vm14039_vm5, %v15599_v37  ;;  %v13359_v6 = vadd.f32 %v23869_v59, %v17634_v36  ;;  %v17636_v22 = vadd.f32 %v12981_v23, %v9065_v61 }
 0x5f6   : > { %v13489_v31 = vmax.f32 %v13361_v49, 0.0  ;;  %v13362_v16 = vadd.f32 %v23869_v59, %v17635_v56 }
 0x5f7   : > { %v13487_v7 = vmax.f32 %v13359_v6, 0.0  ;;  %v13360_v47 = vadd.f32 %v23869_v59, %v17636_v22  ;;  %v16939_v39 = vpop.f32.mrb[92].mxu1 }
 0x5f8   : > { %v15604_v42 = vpack.c.bf16 %v13489_v31, %v13489_v31  ;;  %v13490_v10 = vmax.f32 %v13362_v16, 0.0  ;;  %v9078_v26 = vpop.f32.mrb[93].mxu1 }
 0x5f9   : > { %v15602_v29 = vpack.c.bf16 %v13487_v7, %v13487_v7  ;;  %v13488_v20 = vmax.f32 %v13360_v47, 0.0  ;;  %v17499_v58 = vpop.f32.mrb[92].mxu0  ;;  %v16940_v9 = vpop.f32.mrb[94].mxu1 }
 0x5fa   : > { %14130 = vst.msk [vmem:[%s23557_s12 + $0x168] sm:$0xf] %vm14039_vm5, %v15604_v42  ;;  %v15605_v24 = vpack.c.bf16 %v13490_v10, %v13490_v10  ;;  %v17637_v27 = vadd.f32 %v17499_v58, %v16939_v39  ;;  %v12994_v51 = vpop.f32.mrb[93].mxu0  ;;  %v9081_v28 = vpop.f32.mrb[95].mxu1 }
 0x5fb   : > { %14128 = vst.msk [vmem:[%s23557_s12 + $0x160] sm:$0xf] %vm14039_vm5, %v15602_v29  ;;  %v15603_v15 = vpack.c.bf16 %v13488_v20, %v13488_v20  ;;  %v17638_v11 = vadd.f32 %v12994_v51, %v9078_v26  ;;  %v17500_v60 = vpop.f32.mrb[94].mxu0 }
 0x5fc   : > { %14131 = vst.msk [vmem:[%s23557_s12 + $0x16c] sm:$0xf] %vm14039_vm5, %v15605_v24  ;;  %v13365_v33 = vadd.f32 %v23869_v59, %v17637_v27  ;;  %v17639_v44 = vadd.f32 %v17500_v60, %v16940_v9  ;;  %v12997_v53 = vpop.f32.mrb[95].mxu0 }
 0x5fd   : > { %14129 = vst.msk [vmem:[%s23557_s12 + $0x164] sm:$0xf] %vm14039_vm5, %v15603_v15  ;;  %v13363_v4 = vadd.f32 %v23869_v59, %v17638_v11  ;;  %v17640_v14 = vadd.f32 %v12997_v53, %v9081_v28 }
 0x5fe   : > { %v13493_v43 = vmax.f32 %v13365_v33, 0.0  ;;  %v13366_v55 = vadd.f32 %v23869_v59, %v17639_v44 }
 0x5ff   : > { %v13491_v1 = vmax.f32 %v13363_v4, 0.0  ;;  %v13364_v17 = vadd.f32 %v23869_v59, %v17640_v14  ;;  %v16943_v2 = vpop.f32.mrb[96].mxu1 }
 0x600   : > { %v15608_v54 = vpack.c.bf16 %v13493_v43, %v13493_v43  ;;  %v13494_v45 = vmax.f32 %v13366_v55, 0.0  ;;  %v9094_v52 = vpop.f32.mrb[97].mxu1 }
 0x601   : > { %v15606_v48 = vpack.c.bf16 %v13491_v1, %v13491_v1  ;;  %v13492_v12 = vmax.f32 %v13364_v17, 0.0  ;;  %v17503_v35 = vpop.f32.mrb[96].mxu0  ;;  %v16944_v62 = vpop.f32.mrb[98].mxu1 }
 0x602   : > { %14134 = vst.msk [vmem:[%s23557_s12 + $0x178] sm:$0xf] %vm14039_vm5, %v15608_v54  ;;  %v15609_v3 = vpack.c.bf16 %v13494_v45, %v13494_v45  ;;  %v17641_v25 = vadd.f32 %v17503_v35, %v16943_v2  ;;  %v13010_v50 = vpop.f32.mrb[97].mxu0  ;;  %v9097_v32 = vpop.f32.mrb[99].mxu1 }
 0x603   : > { %14132 = vst.msk [vmem:[%s23557_s12 + $0x170] sm:$0xf] %vm14039_vm5, %v15606_v48  ;;  %v15607_v38 = vpack.c.bf16 %v13492_v12, %v13492_v12  ;;  %v17642_v8 = vadd.f32 %v13010_v50, %v9094_v52  ;;  %v17504_v40 = vpop.f32.mrb[98].mxu0 }
 0x604   : > { %14135 = vst.msk [vmem:[%s23557_s12 + $0x17c] sm:$0xf] %vm14039_vm5, %v15609_v3  ;;  %v13369_v41 = vadd.f32 %v23869_v59, %v17641_v25  ;;  %v17643_v13 = vadd.f32 %v17504_v40, %v16944_v62  ;;  %v13013_v46 = vpop.f32.mrb[99].mxu0 }
 0x605   : > { %14133 = vst.msk [vmem:[%s23557_s12 + $0x174] sm:$0xf] %vm14039_vm5, %v15607_v38  ;;  %v13367_v30 = vadd.f32 %v23869_v59, %v17642_v8  ;;  %v17644_v34 = vadd.f32 %v13013_v46, %v9097_v32 }
 0x606   : > { %v13497_v5 = vmax.f32 %v13369_v41, 0.0  ;;  %v13370_v19 = vadd.f32 %v23869_v59, %v17643_v13 }
 0x607   : > { %v13495_v18 = vmax.f32 %v13367_v30, 0.0  ;;  %v13368_v57 = vadd.f32 %v23869_v59, %v17644_v34  ;;  %v16947_v21 = vpop.f32.mrb[100].mxu1 }
 0x608   : > { %v15612_v0 = vpack.c.bf16 %v13497_v5, %v13497_v5  ;;  %v13498_v61 = vmax.f32 %v13370_v19, 0.0  ;;  %v9110_v37 = vpop.f32.mrb[101].mxu1 }
 0x609   : > { %v15610_v36 = vpack.c.bf16 %v13495_v18, %v13495_v18  ;;  %v13496_v63 = vmax.f32 %v13368_v57, 0.0  ;;  %v17507_v49 = vpop.f32.mrb[100].mxu0  ;;  %v16948_v56 = vpop.f32.mrb[102].mxu1 }
 0x60a   : > { %14138 = vst.msk [vmem:[%s23557_s12 + $0x188] sm:$0xf] %vm14039_vm5, %v15612_v0  ;;  %v15613_v23 = vpack.c.bf16 %v13498_v61, %v13498_v61  ;;  %v17645_v6 = vadd.f32 %v17507_v49, %v16947_v21  ;;  %v13026_v22 = vpop.f32.mrb[101].mxu0  ;;  %v9113_v31 = vpop.f32.mrb[103].mxu1 }
 0x60b   : > { %14136 = vst.msk [vmem:[%s23557_s12 + $0x180] sm:$0xf] %vm14039_vm5, %v15610_v36  ;;  %v15611_v16 = vpack.c.bf16 %v13496_v63, %v13496_v63  ;;  %v17646_v7 = vadd.f32 %v13026_v22, %v9110_v37  ;;  %v17508_v47 = vpop.f32.mrb[102].mxu0 }
 0x60c   : > { %14139 = vst.msk [vmem:[%s23557_s12 + $0x18c] sm:$0xf] %vm14039_vm5, %v15613_v23  ;;  %v13373_v39 = vadd.f32 %v23869_v59, %v17645_v6  ;;  %v17647_v42 = vadd.f32 %v17508_v47, %v16948_v56  ;;  %v13029_v10 = vpop.f32.mrb[103].mxu0 }
 0x60d   : > { %14137 = vst.msk [vmem:[%s23557_s12 + $0x184] sm:$0xf] %vm14039_vm5, %v15611_v16  ;;  %v13371_v26 = vadd.f32 %v23869_v59, %v17646_v7  ;;  %v17648_v29 = vadd.f32 %v13029_v10, %v9113_v31 }
 0x60e   : > { %v13501_v20 = vmax.f32 %v13373_v39, 0.0  ;;  %v13374_v58 = vadd.f32 %v23869_v59, %v17647_v42 }
 0x60f   : > { %v13499_v9 = vmax.f32 %v13371_v26, 0.0  ;;  %v13372_v24 = vadd.f32 %v23869_v59, %v17648_v29  ;;  %v16951_v27 = vpop.f32.mrb[104].mxu1 }
 0x610   : > { %v15616_v51 = vpack.c.bf16 %v13501_v20, %v13501_v20  ;;  %v13502_v28 = vmax.f32 %v13374_v58, 0.0  ;;  %v9126_v15 = vpop.f32.mrb[105].mxu1 }
 0x611   : > { %v15614_v11 = vpack.c.bf16 %v13499_v9, %v13499_v9  ;;  %v13500_v60 = vmax.f32 %v13372_v24, 0.0  ;;  %v17511_v33 = vpop.f32.mrb[104].mxu0  ;;  %v16952_v44 = vpop.f32.mrb[106].mxu1 }
 0x612   : > { %14142 = vst.msk [vmem:[%s23557_s12 + $0x198] sm:$0xf] %vm14039_vm5, %v15616_v51  ;;  %v15617_v53 = vpack.c.bf16 %v13502_v28, %v13502_v28  ;;  %v17649_v4 = vadd.f32 %v17511_v33, %v16951_v27  ;;  %v13042_v14 = vpop.f32.mrb[105].mxu0  ;;  %v9129_v43 = vpop.f32.mrb[107].mxu1 }
 0x613   : > { %14140 = vst.msk [vmem:[%s23557_s12 + $0x190] sm:$0xf] %vm14039_vm5, %v15614_v11  ;;  %v15615_v55 = vpack.c.bf16 %v13500_v60, %v13500_v60  ;;  %v17650_v1 = vadd.f32 %v13042_v14, %v9126_v15  ;;  %v17512_v17 = vpop.f32.mrb[106].mxu0 }
 0x614   : > { %14143 = vst.msk [vmem:[%s23557_s12 + $0x19c] sm:$0xf] %vm14039_vm5, %v15617_v53  ;;  %v13377_v2 = vadd.f32 %v23869_v59, %v17649_v4  ;;  %v17651_v54 = vadd.f32 %v17512_v17, %v16952_v44  ;;  %v13045_v45 = vpop.f32.mrb[107].mxu0 }
 0x615   : > { %14141 = vst.msk [vmem:[%s23557_s12 + $0x194] sm:$0xf] %vm14039_vm5, %v15615_v55  ;;  %v13375_v52 = vadd.f32 %v23869_v59, %v17650_v1  ;;  %v17652_v48 = vadd.f32 %v13045_v45, %v9129_v43 }
 0x616   : > { %v13505_v12 = vmax.f32 %v13377_v2, 0.0  ;;  %v13378_v35 = vadd.f32 %v23869_v59, %v17651_v54 }
 0x617   : > { %v13503_v62 = vmax.f32 %v13375_v52, 0.0  ;;  %v13376_v3 = vadd.f32 %v23869_v59, %v17652_v48  ;;  %v16955_v25 = vpop.f32.mrb[108].mxu1 }
 0x618   : > { %v15620_v50 = vpack.c.bf16 %v13505_v12, %v13505_v12  ;;  %v13506_v32 = vmax.f32 %v13378_v35, 0.0  ;;  %v9142_v38 = vpop.f32.mrb[109].mxu1 }
 0x619   : > { %v15618_v8 = vpack.c.bf16 %v13503_v62, %v13503_v62  ;;  %v13504_v40 = vmax.f32 %v13376_v3, 0.0  ;;  %v17515_v41 = vpop.f32.mrb[108].mxu0  ;;  %v16956_v13 = vpop.f32.mrb[110].mxu1 }
 0x61a   : > { %14146 = vst.msk [vmem:[%s23557_s12 + $0x1a8] sm:$0xf] %vm14039_vm5, %v15620_v50  ;;  %v15621_v46 = vpack.c.bf16 %v13506_v32, %v13506_v32  ;;  %v17653_v30 = vadd.f32 %v17515_v41, %v16955_v25  ;;  %v13058_v34 = vpop.f32.mrb[109].mxu0  ;;  %v9145_v5 = vpop.f32.mrb[111].mxu1 }
 0x61b   : > { %14144 = vst.msk [vmem:[%s23557_s12 + $0x1a0] sm:$0xf] %vm14039_vm5, %v15618_v8  ;;  %v15619_v19 = vpack.c.bf16 %v13504_v40, %v13504_v40  ;;  %v17654_v18 = vadd.f32 %v13058_v34, %v9142_v38  ;;  %v17516_v57 = vpop.f32.mrb[110].mxu0 }
 0x61c   : > { %14147 = vst.msk [vmem:[%s23557_s12 + $0x1ac] sm:$0xf] %vm14039_vm5, %v15621_v46  ;;  %v13381_v21 = vadd.f32 %v23869_v59, %v17653_v30  ;;  %v17655_v0 = vadd.f32 %v17516_v57, %v16956_v13  ;;  %v13061_v61 = vpop.f32.mrb[111].mxu0 }
 0x61d   : > { %14145 = vst.msk [vmem:[%s23557_s12 + $0x1a4] sm:$0xf] %vm14039_vm5, %v15619_v19  ;;  %v13379_v37 = vadd.f32 %v23869_v59, %v17654_v18  ;;  %v17656_v36 = vadd.f32 %v13061_v61, %v9145_v5 }
 0x61e   : > { %v13509_v63 = vmax.f32 %v13381_v21, 0.0  ;;  %v13382_v49 = vadd.f32 %v23869_v59, %v17655_v0 }
 0x61f   : > { %v13507_v56 = vmax.f32 %v13379_v37, 0.0  ;;  %v13380_v23 = vadd.f32 %v23869_v59, %v17656_v36  ;;  %v16959_v6 = vpop.f32.mrb[112].mxu1 }
 0x620   : > { %v15624_v22 = vpack.c.bf16 %v13509_v63, %v13509_v63  ;;  %v13510_v31 = vmax.f32 %v13382_v49, 0.0  ;;  %v9158_v16 = vpop.f32.mrb[113].mxu1 }
 0x621   : > { %v15622_v7 = vpack.c.bf16 %v13507_v56, %v13507_v56  ;;  %v13508_v47 = vmax.f32 %v13380_v23, 0.0  ;;  %v17519_v39 = vpop.f32.mrb[112].mxu0  ;;  %v16960_v42 = vpop.f32.mrb[114].mxu1 }
 0x622   : > { %14150 = vst.msk [vmem:[%s23557_s12 + $0x1b8] sm:$0xf] %vm14039_vm5, %v15624_v22  ;;  %v15625_v10 = vpack.c.bf16 %v13510_v31, %v13510_v31  ;;  %v17657_v26 = vadd.f32 %v17519_v39, %v16959_v6  ;;  %v13074_v29 = vpop.f32.mrb[113].mxu0  ;;  %v9161_v20 = vpop.f32.mrb[115].mxu1 }
 0x623   : > { %14148 = vst.msk [vmem:[%s23557_s12 + $0x1b0] sm:$0xf] %vm14039_vm5, %v15622_v7  ;;  %v15623_v58 = vpack.c.bf16 %v13508_v47, %v13508_v47  ;;  %v17658_v9 = vadd.f32 %v13074_v29, %v9158_v16  ;;  %v17520_v24 = vpop.f32.mrb[114].mxu0 }
 0x624   : > { %14151 = vst.msk [vmem:[%s23557_s12 + $0x1bc] sm:$0xf] %vm14039_vm5, %v15625_v10  ;;  %v13385_v27 = vadd.f32 %v23869_v59, %v17657_v26  ;;  %v17659_v51 = vadd.f32 %v17520_v24, %v16960_v42  ;;  %v13077_v28 = vpop.f32.mrb[115].mxu0 }
 0x625   : > { %14149 = vst.msk [vmem:[%s23557_s12 + $0x1b4] sm:$0xf] %vm14039_vm5, %v15623_v58  ;;  %v13383_v15 = vadd.f32 %v23869_v59, %v17658_v9  ;;  %v17660_v11 = vadd.f32 %v13077_v28, %v9161_v20 }
 0x626   : > { %v13513_v60 = vmax.f32 %v13385_v27, 0.0  ;;  %v13386_v33 = vadd.f32 %v23869_v59, %v17659_v51 }
 0x627   : > { %v13511_v44 = vmax.f32 %v13383_v15, 0.0  ;;  %v13384_v53 = vadd.f32 %v23869_v59, %v17660_v11  ;;  %v16963_v4 = vpop.f32.mrb[116].mxu1 }
 0x628   : > { %v15628_v14 = vpack.c.bf16 %v13513_v60, %v13513_v60  ;;  %v13514_v43 = vmax.f32 %v13386_v33, 0.0  ;;  %v9174_v55 = vpop.f32.mrb[117].mxu1 }
 0x629   : > { %v15626_v1 = vpack.c.bf16 %v13511_v44, %v13511_v44  ;;  %v13512_v17 = vmax.f32 %v13384_v53, 0.0  ;;  %v17523_v2 = vpop.f32.mrb[116].mxu0  ;;  %v16964_v54 = vpop.f32.mrb[118].mxu1 }
 0x62a   : > { %14154 = vst.msk [vmem:[%s23557_s12 + $0x1c8] sm:$0xf] %vm14039_vm5, %v15628_v14  ;;  %v15629_v45 = vpack.c.bf16 %v13514_v43, %v13514_v43  ;;  %v17661_v52 = vadd.f32 %v17523_v2, %v16963_v4  ;;  %v13090_v48 = vpop.f32.mrb[117].mxu0  ;;  %v9177_v12 = vpop.f32.mrb[119].mxu1 }
 0x62b   : > { %14152 = vst.msk [vmem:[%s23557_s12 + $0x1c0] sm:$0xf] %vm14039_vm5, %v15626_v1  ;;  %v15627_v35 = vpack.c.bf16 %v13512_v17, %v13512_v17  ;;  %v17662_v62 = vadd.f32 %v13090_v48, %v9174_v55  ;;  %v17524_v3 = vpop.f32.mrb[118].mxu0 }
 0x62c   : > { %14155 = vst.msk [vmem:[%s23557_s12 + $0x1cc] sm:$0xf] %vm14039_vm5, %v15629_v45  ;;  %v13389_v25 = vadd.f32 %v23869_v59, %v17661_v52  ;;  %v17663_v50 = vadd.f32 %v17524_v3, %v16964_v54  ;;  %v13093_v32 = vpop.f32.mrb[119].mxu0 }
 0x62d   : > { %14153 = vst.msk [vmem:[%s23557_s12 + $0x1c4] sm:$0xf] %vm14039_vm5, %v15627_v35  ;;  %v13387_v38 = vadd.f32 %v23869_v59, %v17662_v62  ;;  %v17664_v8 = vadd.f32 %v13093_v32, %v9177_v12 }
 0x62e   : > { %v13517_v40 = vmax.f32 %v13389_v25, 0.0  ;;  %v13390_v41 = vadd.f32 %v23869_v59, %v17663_v50 }
 0x62f   : > { %v13515_v13 = vmax.f32 %v13387_v38, 0.0  ;;  %v13388_v46 = vadd.f32 %v23869_v59, %v17664_v8  ;;  %v16967_v30 = vpop.f32.mrb[120].mxu1 }
 0x630   : > { %v15632_v34 = vpack.c.bf16 %v13517_v40, %v13517_v40  ;;  %v13518_v5 = vmax.f32 %v13390_v41, 0.0  ;;  %v9190_v19 = vpop.f32.mrb[121].mxu1 }
 0x631   : > { %v15630_v18 = vpack.c.bf16 %v13515_v13, %v13515_v13  ;;  %v13516_v57 = vmax.f32 %v13388_v46, 0.0  ;;  %v17527_v21 = vpop.f32.mrb[120].mxu0  ;;  %v16968_v0 = vpop.f32.mrb[122].mxu1 }
 0x632   : > { %14158 = vst.msk [vmem:[%s23557_s12 + $0x1d8] sm:$0xf] %vm14039_vm5, %v15632_v34  ;;  %v15633_v61 = vpack.c.bf16 %v13518_v5, %v13518_v5  ;;  %v17665_v37 = vadd.f32 %v17527_v21, %v16967_v30  ;;  %v13106_v36 = vpop.f32.mrb[121].mxu0  ;;  %v9193_v63 = vpop.f32.mrb[123].mxu1 }
 0x633   : > { %14156 = vst.msk [vmem:[%s23557_s12 + $0x1d0] sm:$0xf] %vm14039_vm5, %v15630_v18  ;;  %v15631_v49 = vpack.c.bf16 %v13516_v57, %v13516_v57  ;;  %v17666_v56 = vadd.f32 %v13106_v36, %v9190_v19  ;;  %v17528_v23 = vpop.f32.mrb[122].mxu0 }
 0x634   : > { %14159 = vst.msk [vmem:[%s23557_s12 + $0x1dc] sm:$0xf] %vm14039_vm5, %v15633_v61  ;;  %v13393_v6 = vadd.f32 %v23869_v59, %v17665_v37  ;;  %v17667_v22 = vadd.f32 %v17528_v23, %v16968_v0  ;;  %v13109_v31 = vpop.f32.mrb[123].mxu0 }
 0x635   : > { %14157 = vst.msk [vmem:[%s23557_s12 + $0x1d4] sm:$0xf] %vm14039_vm5, %v15631_v49  ;;  %v13391_v16 = vadd.f32 %v23869_v59, %v17666_v56  ;;  %v17668_v7 = vadd.f32 %v13109_v31, %v9193_v63 }
 0x636   : > { %v13521_v47 = vmax.f32 %v13393_v6, 0.0  ;;  %v13394_v39 = vadd.f32 %v23869_v59, %v17667_v22 }
 0x637   : > { %v13519_v42 = vmax.f32 %v13391_v16, 0.0  ;;  %v13392_v10 = vadd.f32 %v23869_v59, %v17668_v7  ;;  %v16971_v26 = vpop.f32.mrb[124].mxu1 }
 0x638   : > { %v15636_v29 = vpack.c.bf16 %v13521_v47, %v13521_v47  ;;  %v13522_v20 = vmax.f32 %v13394_v39, 0.0  ;;  %v9206_v58 = vpop.f32.mrb[125].mxu1 }
 0x639   : > { %v15634_v9 = vpack.c.bf16 %v13519_v42, %v13519_v42  ;;  %v13520_v24 = vmax.f32 %v13392_v10, 0.0  ;;  %v17531_v27 = vpop.f32.mrb[124].mxu0  ;;  %v16972_v51 = vpop.f32.mrb[126].mxu1 }
 0x63a   : > { %14162 = vst.msk [vmem:[%s23557_s12 + $0x1e8] sm:$0xf] %vm14039_vm5, %v15636_v29  ;;  %v15637_v28 = vpack.c.bf16 %v13522_v20, %v13522_v20  ;;  %v17669_v15 = vadd.f32 %v17531_v27, %v16971_v26  ;;  %v13122_v11 = vpop.f32.mrb[125].mxu0  ;;  %v9209_v60 = vpop.f32.mrb[127].mxu1 }
 0x63b   : > { %14160 = vst.msk [vmem:[%s23557_s12 + $0x1e0] sm:$0xf] %vm14039_vm5, %v15634_v9  ;;  %v15635_v33 = vpack.c.bf16 %v13520_v24, %v13520_v24  ;;  %v17670_v44 = vadd.f32 %v13122_v11, %v9206_v58  ;;  %v17532_v53 = vpop.f32.mrb[126].mxu0 }
 0x63c   : > { %14163 = vst.msk [vmem:[%s23557_s12 + $0x1ec] sm:$0xf] %vm14039_vm5, %v15637_v28  ;;  %v13397_v4 = vadd.f32 %v23869_v59, %v17669_v15  ;;  %v17671_v14 = vadd.f32 %v17532_v53, %v16972_v51  ;;  %v13125_v43 = vpop.f32.mrb[127].mxu0 }
 0x63d   : > { %14161 = vst.msk [vmem:[%s23557_s12 + $0x1e4] sm:$0xf] %vm14039_vm5, %v15635_v33  ;;  %v13395_v55 = vadd.f32 %v23869_v59, %v17670_v44  ;;  %v17672_v1 = vadd.f32 %v13125_v43, %v9209_v60 }
 0x63e   : > { %v13525_v17 = vmax.f32 %v13397_v4, 0.0  ;;  %v13398_v2 = vadd.f32 %v23869_v59, %v17671_v14 }
 0x63f   : > { %v13523_v54 = vmax.f32 %v13395_v55, 0.0  ;;  %v13396_v45 = vadd.f32 %v23869_v59, %v17672_v1 }
 0x640   : > { %v15640_v52 = vpack.c.bf16 %v13525_v17, %v13525_v17  ;;  %v13526_v48 = vmax.f32 %v13398_v2, 0.0 }
 0x641   : > { %v15638_v12 = vpack.c.bf16 %v13523_v54, %v13523_v54  ;;  %v13524_v35 = vmax.f32 %v13396_v45, 0.0 }
 0x642   : > { %14166 = vst.msk [vmem:[%s23557_s12 + $0x1f8] sm:$0xf] %vm14039_vm5, %v15640_v52  ;;  %v15641_v62 = vpack.c.bf16 %v13526_v48, %v13526_v48 }
 0x643   : > { %14164 = vst.msk [vmem:[%s23557_s12 + $0x1f0] sm:$0xf] %vm14039_vm5, %v15638_v12  ;;  %v15639_v3 = vpack.c.bf16 %v13524_v35, %v13524_v35 }
 0x644   : > { %14167 = vst.msk [vmem:[%s23557_s12 + $0x1fc] sm:$0xf] %vm14039_vm5, %v15641_v62 }
 0x645   : > { %14165 = vst.msk [vmem:[%s23557_s12 + $0x1f4] sm:$0xf] %vm14039_vm5, %v15639_v3 }
 0x646   : > { %19027 = shalt.err (!%p19024_p10)
}
 0x647   : > { %s19028_s26 = scalar_lea.hbm %s24029_s27, 8192  ;;  %s19032_s13 = scalar_lea.hbm %s24096_s5, 65536 }
 0x648   : > { %p19029_p11 = scmp.ne.s32.totalorder %s24029_s27, %s19028_s26  ;;  %p19033_p0 = scmp.lt.u32.totalorder %s24029_s27, %s24096_s5 }
 0x649   : > { %p19034_p1 = scmp.lt.u32.totalorder %s19032_s13, %s19028_s26  ;;  %p19036_p4 = scmp.lt.u32.totalorder %s19028_s26, %s24029_s27 }
 0x64a   : > { %p19030_p12 = pnand %p19029_p11, %p19195_p3 }
 0x64b   : > { %p19035_p2 = por %p19034_p1, %p19033_p0 }
 0x64c   : > { %p19031_p13 = pneg %p19030_p12 }
 0x64d   : > { %p19037_p5 = por %p19036_p4, %p19035_p2 }
 0x64f   : > { %p19038_p6 = pnand %p19037_p5, %p19031_p13 }
 0x651   : > { %19041 = shalt.err (!%p19038_p6)
}
 0x652   : > { %s19113_s29 = smov 4  }
 0x653   : > { %18573 = dma.vmem_to_hbm [thread:$0]  (%p19195_p3), %s24022_s22, 8192, %s24029_s27, %s24037_s14, %s19110_s28, %s19110_s28, %s19113_s29  }
 0x654 PF: > { %p18579_p7 = scmp.ge.s32.totalorder %s19108_s25, 2  ;;  %s14200_s15 = sand.u32 1, %s19080_s18  }
 0x655   : > { %s14201_s16 = scalar_lea.sflag [#allocation4], %s14200_s15 }
 0x656   : > { %p18576_p9 = pnand %p18579_p7, %p19204_p8 }
 0x658   : > { %19075 = dma.done.wait (!%p18576_p9), %s14201_s16, 8192  }
 0x659   : > { %19077 = vsyncadd (!%p18576_p9), %s14201_s16, 4294959104  ;;  %s18_s25 = sadd.s32 1, %s19108_s25   ;;  %s24355_s6 = sld [smem:[#allocation6_spill]] }
 0x65a   : > { %p15_p10 = scmp.ge.s32.totalorder %s18_s25, 10   ;;  %s24356_s28 = sld [smem:[#allocation7_spill]] }
 0x65b   : > { %s24357_s18 = smov %s19084_s19  ;;  %s24358_s19 = smov %s19088_s20 }
 0x65c   : > { %s24359_s20 = smov %s19213_s11  ;;  %s24360_s21 = smov %s19100_s23 }
 0x65d   : > { %s24361_s22 = smov %s19104_s24  ;;  %17 = sbr.rel (!%p15_p10) target bundleno = 5 (0x5), region = 99 }
 0x65f   : > { %s24362_s23 = smov %s24355_s6 }
 0x660   : > { %s24363_s24 = smov %s24356_s28 }
 0x664   :  { %14206 = vsyncpa [#allocation4], 1 }
 0x665   :  { %14208 = vsyncpa [#allocation4 + $0x1], 1 }

</bundles_post_ra>
